<compile_context>
chip_gen: v7x
topology: tpu7x:2x2x1
jax: 0.10.0
libtpu: 0.0.40
codegen_flags: <defaults>
</compile_context>

<pallas_src>
import math
from functools import partial

import jax
import jax.numpy as jnp
from jax import lax
from jax.experimental import pallas as pl
from jax.experimental.pallas import tpu as pltpu


# ----------------------- in-kernel helpers (pure value math) -----------------------

def _dot(a, b):
    return jnp.dot(a, b, preferred_element_type=jnp.float32)


def _layernorm(x, g, b):
    mean = jnp.mean(x, axis=-1, keepdims=True)
    xc = x - mean
    var = jnp.mean(xc * xc, axis=-1, keepdims=True)
    return xc * lax.rsqrt(var + 1e-5) * g + b


def _sigmoid(y):
    # exact division (parity with the PyTorch reference)
    return 1.0 / (1.0 + jnp.exp(-y))


def _mha(xq, xkv, g, pre, *, H, BB, Lq, Lk, cross):
    """Multi-head attention for all BB batch elements and all H heads at once.

    QKV projection columns are pre-permuted (in the wrapper) to d-major head order:
    component d of head h lives at column d*H + h.  With head_dim = E//H == 2 the
    score / PV contractions are broadcast multiply-adds over (BB, Lq, Lk, H) on the
    VPU -- no depth-2 MXU matmuls and no per-head or per-batch grid steps.
    """
    E = xq.shape[-1]
    dh = E // H                                   # == 2 (nhead = d_model, width = 2*d_model)
    scale = 1.0 / math.sqrt(dh)

    if not cross:
        qkv = _dot(xq, g(pre + "qkv_w")) + g(pre + "qkv_b")      # (BB*Lq, 3E) one fused matmul
        qp, kp, vp = qkv[:, :E], qkv[:, E:2 * E], qkv[:, 2 * E:]
    else:
        # separate Q and fused K|V weights -> MXU operands never sliced mid-lane-tile
        qp = _dot(xq, g(pre + "q_w")) + g(pre + "q_b")           # (BB*Lq, E)
        kv = _dot(xkv, g(pre + "kv_w")) + g(pre + "kv_b")        # (BB*Lk, 2E)
        kp, vp = kv[:, :E], kv[:, E:]

    q3 = qp.reshape(BB, Lq, E)                   # free reshapes (L is a full sublane tile)
    k3 = kp.reshape(BB, Lk, E)
    v3 = vp.reshape(BB, Lk, E)

    # scores s[b, i, j, h] = sum_d q[b,i,d,h] * k[b,j,d,h]
    s = None
    for d in range(dh):
        qd = q3[:, :, d * H:(d + 1) * H]                          # (BB, Lq, H)
        kd = k3[:, :, d * H:(d + 1) * H]                          # (BB, Lk, H)
        contrib = qd[:, :, None, :] * kd[:, None, :, :]           # (BB, Lq, Lk, H)
        s = contrib if s is None else s + contrib
    s = s * scale

    m = jnp.max(s, axis=2, keepdims=True)                         # softmax over keys
    e = jnp.exp(s - m)
    pattn = e / jnp.sum(e, axis=2, keepdims=True)

    outs = [jnp.sum(pattn * v3[:, :, d * H:(d + 1) * H][:, None, :, :], axis=2)
            for d in range(dh)]                                   # each (BB, Lq, H)
    o = jnp.concatenate(outs, axis=-1).reshape(BB * Lq, E)        # d-major head order
    return _dot(o, g(pre + "o_w")) + g(pre + "o_b")


def _encoder_layer(x, g, pre, *, H, BB, L):     # PyTorch post-norm TransformerEncoderLayer (relu FFN)
    x = _layernorm(x + _mha(x, x, g, pre, H=H, BB=BB, Lq=L, Lk=L, cross=False),
                   g(pre + "n1_g"), g(pre + "n1_b"))
    h = jnp.maximum(_dot(x, g(pre + "ff_w1")) + g(pre + "ff_b1"), 0.0)
    return _layernorm(x + _dot(h, g(pre + "ff_w2")) + g(pre + "ff_b2"),
                      g(pre + "n2_g"), g(pre + "n2_b"))


def _decoder_layer(x, memory, g, pre, *, H, BB, L):   # PyTorch post-norm TransformerDecoderLayer
    x = _layernorm(x + _mha(x, x, g, pre + "sa.", H=H, BB=BB, Lq=L, Lk=L, cross=False),
                   g(pre + "n1_g"), g(pre + "n1_b"))
    x = _layernorm(x + _mha(x, memory, g, pre + "ca.", H=H, BB=BB, Lq=L, Lk=L, cross=True),
                   g(pre + "n2_g"), g(pre + "n2_b"))
    h = jnp.maximum(_dot(x, g(pre + "ff_w1")) + g(pre + "ff_b1"), 0.0)
    return _layernorm(x + _dot(h, g(pre + "ff_w2")) + g(pre + "ff_b2"),
                      g(pre + "n3_g"), g(pre + "n3_b"))


# --------------------------------- fused kernel ---------------------------------

def _tranad_kernel(x_ref, w_ref, out_ref, *, reg, d_model, seq_len, batch_block):
    dm, H, L, BB = d_model, d_model, seq_len, batch_block       # nhead = d_model
    E = 2 * dm

    def g(name):
        off, r, c = reg[name]                    # static python ints -> static ref slices
        return w_ref[off:off + r, :c]

    # ---- anomaly_detection instance normalization over time, per batch element ----
    x3 = x_ref[...]                                              # (BB, L, C)
    C = x3.shape[-1]
    mean = jnp.mean(x3, axis=1, keepdims=True)                   # (BB, 1, C)
    xc = x3 - mean
    var = jnp.mean(xc * xc, axis=1, keepdims=True)               # biased (unbiased=False)
    stdev = jnp.sqrt(var + 1e-5)
    xn3 = xc / stdev                                             # (BB, L, C)

    # ---- DataEmbedding: Conv1d(C, dm, k=3, padding=1, circular, bias=False) as a single
    #      (BB*L, 3C) @ (3C, dm) matmul built from circular time shifts, + sinusoidal PE.
    # TODO(synk): the slice+concat circular shifts below could become pltpu.roll
    # (sublane rotate) once that lowering is verified for sub-(8,128) operands.
    xm1 = jnp.concatenate([xn3[:, L - 1:, :], xn3[:, :L - 1, :]], axis=1)   # x[t-1]
    xp1 = jnp.concatenate([xn3[:, 1:, :], xn3[:, :1, :]], axis=1)           # x[t+1]
    x_unf = jnp.concatenate([xm1, xn3, xp1], axis=-1).reshape(BB * L, 3 * C)  # col = k*C + c
    src = _dot(x_unf, g("conv_w"))                                # (BB*L, dm)
    src = (src.reshape(BB, L, dm) + g("pe_dm")[None]).reshape(BB * L, dm)

    sqrt_dm = math.sqrt(dm)                      # spec: src * sqrt(d_model) after the concat
    pe2 = g("pe_2dm")                            # (L, 2*dm)

    def encode(c):                               # c: (BB*L, dm)
        xcat = jnp.concatenate([src, c], axis=-1) * sqrt_dm                 # (BB*L, E)
        xcat = (xcat.reshape(BB, L, E) + pe2[None]).reshape(BB * L, E)
        return _encoder_layer(xcat, g, "enc.", H=H, BB=BB, L=L)

    memory = encode(jnp.zeros_like(src))
    tgt = jnp.concatenate([src, src], axis=-1)                   # src.repeat(1, 1, 2)

    d1 = _decoder_layer(tgt, memory, g, "dec1.", H=H, BB=BB, L=L)
    x1 = _sigmoid(_dot(d1, g("fcn_w")) + g("fcn_b"))             # (BB*L, dm)
    c1 = (x1 - src) ** 2

    memory2 = encode(c1)
    d2 = _decoder_layer(tgt, memory2, g, "dec2.", H=H, BB=BB, L=L)
    x2 = _sigmoid(_dot(d2, g("fcn_w")) + g("fcn_b"))             # (BB*L, dm)

    dec = _dot(x2, g("proj_w")) + g("proj_b")                    # (BB*L, c_out)
    c_out = dec.shape[-1]

    # ---- de-normalize (fused; c_out == enc_in), one lane-stacked write per step ----
    out_ref[...] = dec.reshape(BB, L, c_out) * stdev + mean


# ------------------------------- weight packing -------------------------------

def pack_params(params):
    """Pack every weight leaf into one contiguous f32 slab.

    Rows of each leaf are padded to a multiple of 8 (sublane-aligned slices in the
    kernel), columns to the max leaf width.  Returns (slab, registry) with
    registry[name] = (row_offset, rows, cols) as static Python ints.
    """
    names = sorted(params.keys())
    width = max(int(params[n].shape[-1]) for n in names)
    chunks, reg, off = [], {}, 0
    for n in names:
        a = jnp.asarray(params[n], jnp.float32)
        r, c = int(a.shape[0]), int(a.shape[1])
        rp = ((r + 7) // 8) * 8
        buf = jnp.zeros((rp, width), jnp.float32).at[:r, :c].set(a)
        chunks.append(buf)
        reg[n] = (off, r, c)
        off += rp
    return jnp.concatenate(chunks, axis=0), reg


# --------------------------------- wrapper ---------------------------------

def tranad_forward(slab, reg, cfg, x_enc, batch_block=None):
    B, L, C = x_enc.shape
    c_out = cfg["c_out"]
    # Default: grid=(1,), all batch elements row-stacked (single-TC v5e/v6e sweet spot).
    # On v7x pass batch_block = B // 2 to keep two "parallel" steps (one per TensorCore).
    BB = B if batch_block is None else batch_block
    assert B % BB == 0, (B, BB)
    G = B // BB

    kernel = partial(_tranad_kernel, reg=reg, d_model=cfg["d_model"],
                     seq_len=L, batch_block=BB)

    return pl.pallas_call(
        kernel,
        out_shape=jax.ShapeDtypeStruct((B, L, c_out), jnp.float32),
        grid=(G,),
        in_specs=[
            pl.BlockSpec((BB, L, C), lambda i: (i, 0, 0)),        # batch slab of inputs
            pl.BlockSpec(slab.shape, lambda i: (0, 0)),           # single VMEM weight slab
        ],
        out_specs=pl.BlockSpec((BB, L, c_out), lambda i: (i, 0, 0)),
        compiler_params=pltpu.CompilerParams(
            dimension_semantics=("parallel",)),
    )(x_enc, slab)


# ------------------------- deterministic parameter init -------------------------

def sinusoidal_pe(max_len, d):
    pos = jnp.arange(max_len, dtype=jnp.float32)[:, None]
    div = jnp.exp(jnp.arange(0, d, 2, dtype=jnp.float32) * (-math.log(10000.0) / d))
    pe = jnp.zeros((max_len, d), jnp.float32)
    pe = pe.at[:, 0::2].set(jnp.sin(pos * div))
    pe = pe.at[:, 1::2].set(jnp.cos(pos * div)[:, : d // 2])
    return pe


def init_params(key, cfg):
    dm = cfg["d_model"]
    E = 2 * dm
    H = dm
    dh = E // H          # = 2
    FF = 16
    C = cfg["enc_in"]
    L = cfg["seq_len"]
    keys = iter(jax.random.split(key, 128))

    def w(shape, scale=0.05):
        return jax.random.normal(next(keys), shape, jnp.float32) * scale

    # head permutation: new column d*H + h  <-  PyTorch column h*dh + d
    perm = jnp.array([h * dh + d for d in range(dh) for h in range(H)], dtype=jnp.int32)

    p = {}

    def add_attn(prefix, split_cross):
        wq, wk, wv, wo = w((E, E)), w((E, E)), w((E, E)), w((E, E))
        bq = bk = bv = bo = jnp.zeros((E,), jnp.float32)
        if not split_cross:
            p[prefix + "qkv_w"] = jnp.concatenate([wq[:, perm], wk[:, perm], wv[:, perm]], axis=1)
            p[prefix + "qkv_b"] = jnp.concatenate([bq[perm], bk[perm], bv[perm]])[None, :]
        else:
            # cross-attention: Q separate from fused K|V so kernel-side weight slices
            # start on lane-tile boundaries (perf-review item).
            p[prefix + "q_w"] = wq[:, perm]
            p[prefix + "q_b"] = bq[perm][None, :]
            p[prefix + "kv_w"] = jnp.concatenate([wk[:, perm], wv[:, perm]], axis=1)
            p[prefix + "kv_b"] = jnp.concatenate([bk[perm], bv[perm]])[None, :]
        p[prefix + "o_w"] = wo[perm, :]
        p[prefix + "o_b"] = bo[None, :]

    def add_ln(name):
        p[name + "_g"] = jnp.ones((1, E), jnp.float32)
        p[name + "_b"] = jnp.zeros((1, E), jnp.float32)

    def add_ff(prefix):
        p[prefix + "ff_w1"] = w((E, FF)); p[prefix + "ff_b1"] = jnp.zeros((1, FF), jnp.float32)
        p[prefix + "ff_w2"] = w((FF, E)); p[prefix + "ff_b2"] = jnp.zeros((1, E), jnp.float32)

    # encoder layer
    add_attn("enc.", split_cross=False); add_ff("enc."); add_ln("enc.n1"); add_ln("enc.n2")
    # decoder layers
    for dname in ("dec1.", "dec2."):
        add_attn(dname + "sa.", split_cross=False)
        add_attn(dname + "ca.", split_cross=True)
        add_ff(dname)
        add_ln(dname + "n1"); add_ln(dname + "n2"); add_ln(dname + "n3")

    conv = w((dm, C, 3), 0.2)                                   # Conv1d weight (out, in, k)
    p["conv_w"] = conv.transpose(2, 1, 0).reshape(3 * C, dm)    # row = k*C + c
    p["pe_dm"] = sinusoidal_pe(L, dm)       # PositionalEmbedding (DataEmbedding), (L, dm)
    p["pe_2dm"] = sinusoidal_pe(L, E)       # PositionalEncoding (TranAD), (L, 2*dm)
    p["fcn_w"] = w((E, dm)); p["fcn_b"] = jnp.zeros((1, dm), jnp.float32)
    p["proj_w"] = w((dm, cfg["c_out"])); p["proj_b"] = jnp.zeros((1, cfg["c_out"]), jnp.float32)
    return p


# ------------------------------------ main ------------------------------------

if __name__ == "__main__":
    cfg = dict(task_name="anomaly_detection", seq_len=8, pred_len=0,
               d_model=32, enc_in=4, c_out=4, embed="timeF", freq="h", dropout=0.1)

    key = jax.random.PRNGKey(0)
    pkey, xkey = jax.random.split(key)
    params = init_params(pkey, cfg)
    slab, reg = pack_params(params)              # one contiguous weight slab + offsets

    B = 2
    x_enc = jax.random.normal(xkey, (B, cfg["seq_len"], cfg["enc_in"]), jnp.float32)
    # forward(x_enc, x_mark_enc, x_dec, x_mark_dec): only x_enc is used for anomaly_detection.

    fwd = jax.jit(lambda x, s: tranad_forward(s, reg, cfg, x))
    out = fwd(x_enc, slab)
    jax.block_until_ready(out)
    assert out.shape == (B, cfg["seq_len"], cfg["c_out"]), out.shape
    assert bool(jnp.all(jnp.isfinite(out)))
    print("KERNEL_OK")
</pallas_src>

<mosaic_0001>
module attributes {stable_mosaic.version = 11 : i64} {
  func.func @_tranad_kernel(%arg0: i32, %arg1: memref<2x8x4xf32, #tpu.memory_space<vmem>>, %arg2: memref<1424x192xf32, #tpu.memory_space<vmem>>, %arg3: memref<2x8x4xf32, #tpu.memory_space<vmem>>) attributes {dimension_semantics = [#tpu.dimension_semantics<parallel>], iteration_bounds = array<i64: 1>, scalar_prefetch = 0 : i64, scratch_operands = 0 : i64, tpu.core_type = #tpu.core_type<tc>, window_params = [{transform_indices = @transform_0, window_bounds = array<i64: 2, 8, 4>}, {pipeline_mode = #tpu.pipeline_mode<synchronous>, transform_indices = @transform_1, window_bounds = array<i64: 1424, 192>}, {transform_indices = @transform_2, window_bounds = array<i64: 2, 8, 4>}]} {
    %c0 = arith.constant 0 : index
    %c0_0 = arith.constant 0 : index
    %c0_1 = arith.constant 0 : index
    %0 = vector.load %arg1[%c0, %c0_0, %c0_1] : memref<2x8x4xf32, #tpu.memory_space<vmem>>, vector<2x8x4xf32>
    %cst = arith.constant dense<0.000000e+00> : vector<2x4xf32>
    %1 = vector.multi_reduction <add>, %0, %cst [1] : vector<2x8x4xf32> to vector<2x4xf32>
    %2 = vector.shape_cast %1 : vector<2x4xf32> to vector<2x1x4xf32>
    %cst_2 = arith.constant 8.000000e+00 : f32
    %3 = vector.broadcast %cst_2 : f32 to vector<2x1x4xf32>
    %4 = arith.divf %2, %3 : vector<2x1x4xf32>
    %5 = vector.broadcast %4 : vector<2x1x4xf32> to vector<2x8x4xf32>
    %6 = arith.subf %0, %5 : vector<2x8x4xf32>
    %7 = arith.mulf %6, %6 : vector<2x8x4xf32>
    %cst_3 = arith.constant dense<0.000000e+00> : vector<2x4xf32>
    %8 = vector.multi_reduction <add>, %7, %cst_3 [1] : vector<2x8x4xf32> to vector<2x4xf32>
    %9 = vector.shape_cast %8 : vector<2x4xf32> to vector<2x1x4xf32>
    %cst_4 = arith.constant 8.000000e+00 : f32
    %10 = vector.broadcast %cst_4 : f32 to vector<2x1x4xf32>
    %11 = arith.divf %9, %10 : vector<2x1x4xf32>
    %cst_5 = arith.constant 9.99999974E-6 : f32
    %12 = vector.broadcast %cst_5 : f32 to vector<2x1x4xf32>
    %13 = arith.addf %11, %12 : vector<2x1x4xf32>
    %14 = math.sqrt %13 : vector<2x1x4xf32>
    %15 = vector.broadcast %14 : vector<2x1x4xf32> to vector<2x8x4xf32>
    %16 = arith.divf %6, %15 : vector<2x8x4xf32>
    %17 = vector.extract_strided_slice %16 {offsets = [0, 7, 0], sizes = [2, 1, 4], strides = [1, 1, 1]} : vector<2x8x4xf32> to vector<2x1x4xf32>
    %18 = vector.extract_strided_slice %16 {offsets = [0, 0, 0], sizes = [2, 7, 4], strides = [1, 1, 1]} : vector<2x8x4xf32> to vector<2x7x4xf32>
    %19 = tpu.concatenate %17, %18 in 1 : vector<2x1x4xf32>, vector<2x7x4xf32> -> vector<2x8x4xf32>
    %20 = vector.extract_strided_slice %16 {offsets = [0, 1, 0], sizes = [2, 7, 4], strides = [1, 1, 1]} : vector<2x8x4xf32> to vector<2x7x4xf32>
    %21 = vector.extract_strided_slice %16 {offsets = [0, 0, 0], sizes = [2, 1, 4], strides = [1, 1, 1]} : vector<2x8x4xf32> to vector<2x1x4xf32>
    %22 = tpu.concatenate %20, %21 in 1 : vector<2x7x4xf32>, vector<2x1x4xf32> -> vector<2x8x4xf32>
    %23 = tpu.concatenate %19, %16, %22 in 2 : vector<2x8x4xf32>, vector<2x8x4xf32>, vector<2x8x4xf32> -> vector<2x8x12xf32>
    %24 = vector.shape_cast %23 : vector<2x8x12xf32> to vector<16x12xf32>
    %c0_6 = arith.constant 0 : index
    %c0_7 = arith.constant 0 : index
    %25 = vector.load %arg2[%c0_6, %c0_7] : memref<1424x192xf32, #tpu.memory_space<vmem>>, vector<12x32xf32>
    %cst_8 = arith.constant dense<0.000000e+00> : vector<16x32xf32>
    %26 = tpu.matmul %24, %25, %cst_8 {dimension_numbers = #tpu.dot_dimension_numbers<[1], [0], [0], [1], [0, 0, 1, 1], [], []>} : vector<16x12xf32>, vector<12x32xf32>, vector<16x32xf32> -> vector<16x32xf32>
    %27 = vector.shape_cast %26 : vector<16x32xf32> to vector<2x8x32xf32>
    %c1376 = arith.constant 1376 : index
    %c0_9 = arith.constant 0 : index
    %28 = vector.load %arg2[%c1376, %c0_9] : memref<1424x192xf32, #tpu.memory_space<vmem>>, vector<8x32xf32>
    %29 = vector.shape_cast %28 : vector<8x32xf32> to vector<1x8x32xf32>
    %30 = vector.broadcast %29 : vector<1x8x32xf32> to vector<2x8x32xf32>
    %31 = arith.addf %27, %30 : vector<2x8x32xf32>
    %32 = vector.shape_cast %31 : vector<2x8x32xf32> to vector<16x32xf32>
    %c1368 = arith.constant 1368 : index
    %c0_10 = arith.constant 0 : index
    %33 = vector.load %arg2[%c1368, %c0_10] : memref<1424x192xf32, #tpu.memory_space<vmem>>, vector<8x64xf32>
    %cst_11 = arith.constant 0.000000e+00 : f32
    %34 = vector.broadcast %cst_11 : f32 to vector<16x32xf32>
    %35 = tpu.concatenate %32, %34 in 1 : vector<16x32xf32>, vector<16x32xf32> -> vector<16x64xf32>
    %cst_12 = arith.constant 5.65685415 : f32
    %36 = vector.broadcast %cst_12 : f32 to vector<16x64xf32>
    %37 = arith.mulf %35, %36 : vector<16x64xf32>
    %38 = vector.shape_cast %37 : vector<16x64xf32> to vector<2x8x64xf32>
    %39 = vector.shape_cast %33 : vector<8x64xf32> to vector<1x8x64xf32>
    %40 = vector.broadcast %39 : vector<1x8x64xf32> to vector<2x8x64xf32>
    %41 = arith.addf %38, %40 : vector<2x8x64xf32>
    %42 = vector.shape_cast %41 : vector<2x8x64xf32> to vector<16x64xf32>
    %c1232 = arith.constant 1232 : index
    %c0_13 = arith.constant 0 : index
    %43 = vector.load %arg2[%c1232, %c0_13] : memref<1424x192xf32, #tpu.memory_space<vmem>>, vector<64x192xf32>
    %cst_14 = arith.constant dense<0.000000e+00> : vector<16x192xf32>
    %44 = tpu.matmul %42, %43, %cst_14 {dimension_numbers = #tpu.dot_dimension_numbers<[1], [0], [0], [1], [0, 0, 1, 1], [], []>} : vector<16x64xf32>, vector<64x192xf32>, vector<16x192xf32> -> vector<16x192xf32>
    %c1224 = arith.constant 1224 : index
    %c0_15 = arith.constant 0 : index
    %45 = vector.load %arg2[%c1224, %c0_15] : memref<1424x192xf32, #tpu.memory_space<vmem>>, vector<1x192xf32>
    %46 = vector.broadcast %45 : vector<1x192xf32> to vector<16x192xf32>
    %47 = arith.addf %44, %46 : vector<16x192xf32>
    %48 = vector.extract_strided_slice %47 {offsets = [0, 0], sizes = [16, 64], strides = [1, 1]} : vector<16x192xf32> to vector<16x64xf32>
    %49 = vector.extract_strided_slice %47 {offsets = [0, 64], sizes = [16, 64], strides = [1, 1]} : vector<16x192xf32> to vector<16x64xf32>
    %50 = vector.extract_strided_slice %47 {offsets = [0, 128], sizes = [16, 64], strides = [1, 1]} : vector<16x192xf32> to vector<16x64xf32>
    %51 = vector.shape_cast %48 : vector<16x64xf32> to vector<2x8x64xf32>
    %52 = vector.shape_cast %49 : vector<16x64xf32> to vector<2x8x64xf32>
    %53 = vector.shape_cast %50 : vector<16x64xf32> to vector<2x8x64xf32>
    %54 = vector.extract_strided_slice %51 {offsets = [0, 0, 0], sizes = [2, 8, 32], strides = [1, 1, 1]} : vector<2x8x64xf32> to vector<2x8x32xf32>
    %55 = vector.extract_strided_slice %52 {offsets = [0, 0, 0], sizes = [2, 8, 32], strides = [1, 1, 1]} : vector<2x8x64xf32> to vector<2x8x32xf32>
    %56 = vector.shape_cast %54 : vector<2x8x32xf32> to vector<2x8x1x32xf32>
    %57 = vector.shape_cast %55 : vector<2x8x32xf32> to vector<2x1x8x32xf32>
    %58 = vector.broadcast %56 : vector<2x8x1x32xf32> to vector<2x8x8x32xf32>
    %59 = vector.broadcast %57 : vector<2x1x8x32xf32> to vector<2x8x8x32xf32>
    %60 = arith.mulf %58, %59 : vector<2x8x8x32xf32>
    %61 = vector.extract_strided_slice %51 {offsets = [0, 0, 32], sizes = [2, 8, 32], strides = [1, 1, 1]} : vector<2x8x64xf32> to vector<2x8x32xf32>
    %62 = vector.extract_strided_slice %52 {offsets = [0, 0, 32], sizes = [2, 8, 32], strides = [1, 1, 1]} : vector<2x8x64xf32> to vector<2x8x32xf32>
    %63 = vector.shape_cast %61 : vector<2x8x32xf32> to vector<2x8x1x32xf32>
    %64 = vector.shape_cast %62 : vector<2x8x32xf32> to vector<2x1x8x32xf32>
    %65 = vector.broadcast %63 : vector<2x8x1x32xf32> to vector<2x8x8x32xf32>
    %66 = vector.broadcast %64 : vector<2x1x8x32xf32> to vector<2x8x8x32xf32>
    %67 = arith.mulf %65, %66 : vector<2x8x8x32xf32>
    %68 = arith.addf %60, %67 : vector<2x8x8x32xf32>
    %cst_16 = arith.constant 0.707106769 : f32
    %69 = vector.broadcast %cst_16 : f32 to vector<2x8x8x32xf32>
    %70 = arith.mulf %68, %69 : vector<2x8x8x32xf32>
    %cst_17 = arith.constant dense<0xFF800000> : vector<2x8x32xf32>
    %71 = vector.multi_reduction <maximumf>, %70, %cst_17 [2] : vector<2x8x8x32xf32> to vector<2x8x32xf32>
    %72 = vector.shape_cast %71 : vector<2x8x32xf32> to vector<2x8x1x32xf32>
    %73 = vector.broadcast %72 : vector<2x8x1x32xf32> to vector<2x8x8x32xf32>
    %74 = arith.subf %70, %73 : vector<2x8x8x32xf32>
    %75 = math.exp %74 : vector<2x8x8x32xf32>
    %cst_18 = arith.constant dense<0.000000e+00> : vector<2x8x32xf32>
    %76 = vector.multi_reduction <add>, %75, %cst_18 [2] : vector<2x8x8x32xf32> to vector<2x8x32xf32>
    %77 = vector.shape_cast %76 : vector<2x8x32xf32> to vector<2x8x1x32xf32>
    %78 = vector.broadcast %77 : vector<2x8x1x32xf32> to vector<2x8x8x32xf32>
    %79 = arith.divf %75, %78 : vector<2x8x8x32xf32>
    %80 = vector.extract_strided_slice %53 {offsets = [0, 0, 0], sizes = [2, 8, 32], strides = [1, 1, 1]} : vector<2x8x64xf32> to vector<2x8x32xf32>
    %81 = vector.shape_cast %80 : vector<2x8x32xf32> to vector<2x1x8x32xf32>
    %82 = vector.broadcast %81 : vector<2x1x8x32xf32> to vector<2x8x8x32xf32>
    %83 = arith.mulf %79, %82 : vector<2x8x8x32xf32>
    %cst_19 = arith.constant dense<0.000000e+00> : vector<2x8x32xf32>
    %84 = vector.multi_reduction <add>, %83, %cst_19 [2] : vector<2x8x8x32xf32> to vector<2x8x32xf32>
    %85 = vector.extract_strided_slice %53 {offsets = [0, 0, 32], sizes = [2, 8, 32], strides = [1, 1, 1]} : vector<2x8x64xf32> to vector<2x8x32xf32>
    %86 = vector.shape_cast %85 : vector<2x8x32xf32> to vector<2x1x8x32xf32>
    %87 = vector.broadcast %86 : vector<2x1x8x32xf32> to vector<2x8x8x32xf32>
    %88 = arith.mulf %79, %87 : vector<2x8x8x32xf32>
    %cst_20 = arith.constant dense<0.000000e+00> : vector<2x8x32xf32>
    %89 = vector.multi_reduction <add>, %88, %cst_20 [2] : vector<2x8x8x32xf32> to vector<2x8x32xf32>
    %90 = tpu.concatenate %84, %89 in 2 : vector<2x8x32xf32>, vector<2x8x32xf32> -> vector<2x8x64xf32>
    %91 = vector.shape_cast %90 : vector<2x8x64xf32> to vector<16x64xf32>
    %c1160 = arith.constant 1160 : index
    %c0_21 = arith.constant 0 : index
    %92 = vector.load %arg2[%c1160, %c0_21] : memref<1424x192xf32, #tpu.memory_space<vmem>>, vector<64x64xf32>
    %cst_22 = arith.constant dense<0.000000e+00> : vector<16x64xf32>
    %93 = tpu.matmul %91, %92, %cst_22 {dimension_numbers = #tpu.dot_dimension_numbers<[1], [0], [0], [1], [0, 0, 1, 1], [], []>} : vector<16x64xf32>, vector<64x64xf32>, vector<16x64xf32> -> vector<16x64xf32>
    %c1152 = arith.constant 1152 : index
    %c0_23 = arith.constant 0 : index
    %94 = vector.load %arg2[%c1152, %c0_23] : memref<1424x192xf32, #tpu.memory_space<vmem>>, vector<1x64xf32>
    %95 = vector.broadcast %94 : vector<1x64xf32> to vector<16x64xf32>
    %96 = arith.addf %93, %95 : vector<16x64xf32>
    %97 = arith.addf %42, %96 : vector<16x64xf32>
    %c1128 = arith.constant 1128 : index
    %c0_24 = arith.constant 0 : index
    %98 = vector.load %arg2[%c1128, %c0_24] : memref<1424x192xf32, #tpu.memory_space<vmem>>, vector<1x64xf32>
    %c1120 = arith.constant 1120 : index
    %c0_25 = arith.constant 0 : index
    %99 = vector.load %arg2[%c1120, %c0_25] : memref<1424x192xf32, #tpu.memory_space<vmem>>, vector<1x64xf32>
    %cst_26 = arith.constant dense<0.000000e+00> : vector<16xf32>
    %100 = vector.multi_reduction <add>, %97, %cst_26 [1] : vector<16x64xf32> to vector<16xf32>
    %101 = vector.shape_cast %100 : vector<16xf32> to vector<16x1xf32>
    %cst_27 = arith.constant 6.400000e+01 : f32
    %102 = vector.broadcast %cst_27 : f32 to vector<16x1xf32>
    %103 = arith.divf %101, %102 : vector<16x1xf32>
    %104 = vector.broadcast %103 : vector<16x1xf32> to vector<16x64xf32>
    %105 = arith.subf %97, %104 : vector<16x64xf32>
    %106 = arith.mulf %105, %105 : vector<16x64xf32>
    %cst_28 = arith.constant dense<0.000000e+00> : vector<16xf32>
    %107 = vector.multi_reduction <add>, %106, %cst_28 [1] : vector<16x64xf32> to vector<16xf32>
    %108 = vector.shape_cast %107 : vector<16xf32> to vector<16x1xf32>
    %cst_29 = arith.constant 6.400000e+01 : f32
    %109 = vector.broadcast %cst_29 : f32 to vector<16x1xf32>
    %110 = arith.divf %108, %109 : vector<16x1xf32>
    %cst_30 = arith.constant 9.99999974E-6 : f32
    %111 = vector.broadcast %cst_30 : f32 to vector<16x1xf32>
    %112 = arith.addf %110, %111 : vector<16x1xf32>
    %113 = math.rsqrt %112 : vector<16x1xf32>
    %114 = vector.broadcast %113 : vector<16x1xf32> to vector<16x64xf32>
    %115 = arith.mulf %105, %114 : vector<16x64xf32>
    %116 = vector.broadcast %98 : vector<1x64xf32> to vector<16x64xf32>
    %117 = arith.mulf %115, %116 : vector<16x64xf32>
    %118 = vector.broadcast %99 : vector<1x64xf32> to vector<16x64xf32>
    %119 = arith.addf %117, %118 : vector<16x64xf32>
    %c1040 = arith.constant 1040 : index
    %c0_31 = arith.constant 0 : index
    %120 = vector.load %arg2[%c1040, %c0_31] : memref<1424x192xf32, #tpu.memory_space<vmem>>, vector<64x16xf32>
    %cst_32 = arith.constant dense<0.000000e+00> : vector<16x16xf32>
    %121 = tpu.matmul %119, %120, %cst_32 {dimension_numbers = #tpu.dot_dimension_numbers<[1], [0], [0], [1], [0, 0, 1, 1], [], []>} : vector<16x64xf32>, vector<64x16xf32>, vector<16x16xf32> -> vector<16x16xf32>
    %c1024 = arith.constant 1024 : index
    %c0_33 = arith.constant 0 : index
    %122 = vector.load %arg2[%c1024, %c0_33] : memref<1424x192xf32, #tpu.memory_space<vmem>>, vector<1x16xf32>
    %123 = vector.broadcast %122 : vector<1x16xf32> to vector<16x16xf32>
    %124 = arith.addf %121, %123 : vector<16x16xf32>
    %cst_34 = arith.constant 0.000000e+00 : f32
    %125 = vector.broadcast %cst_34 : f32 to vector<16x16xf32>
    %126 = arith.maximumf %124, %125 : vector<16x16xf32>
    %c1104 = arith.constant 1104 : index
    %c0_35 = arith.constant 0 : index
    %127 = vector.load %arg2[%c1104, %c0_35] : memref<1424x192xf32, #tpu.memory_space<vmem>>, vector<16x64xf32>
    %cst_36 = arith.constant dense<0.000000e+00> : vector<16x64xf32>
    %128 = tpu.matmul %126, %127, %cst_36 {dimension_numbers = #tpu.dot_dimension_numbers<[1], [0], [0], [1], [0, 0, 1, 1], [], []>} : vector<16x16xf32>, vector<16x64xf32>, vector<16x64xf32> -> vector<16x64xf32>
    %129 = arith.addf %119, %128 : vector<16x64xf32>
    %c1032 = arith.constant 1032 : index
    %c0_37 = arith.constant 0 : index
    %130 = vector.load %arg2[%c1032, %c0_37] : memref<1424x192xf32, #tpu.memory_space<vmem>>, vector<1x64xf32>
    %131 = vector.broadcast %130 : vector<1x64xf32> to vector<16x64xf32>
    %132 = arith.addf %129, %131 : vector<16x64xf32>
    %c1144 = arith.constant 1144 : index
    %c0_38 = arith.constant 0 : index
    %133 = vector.load %arg2[%c1144, %c0_38] : memref<1424x192xf32, #tpu.memory_space<vmem>>, vector<1x64xf32>
    %c1136 = arith.constant 1136 : index
    %c0_39 = arith.constant 0 : index
    %134 = vector.load %arg2[%c1136, %c0_39] : memref<1424x192xf32, #tpu.memory_space<vmem>>, vector<1x64xf32>
    %cst_40 = arith.constant dense<0.000000e+00> : vector<16xf32>
    %135 = vector.multi_reduction <add>, %132, %cst_40 [1] : vector<16x64xf32> to vector<16xf32>
    %136 = vector.shape_cast %135 : vector<16xf32> to vector<16x1xf32>
    %cst_41 = arith.constant 6.400000e+01 : f32
    %137 = vector.broadcast %cst_41 : f32 to vector<16x1xf32>
    %138 = arith.divf %136, %137 : vector<16x1xf32>
    %139 = vector.broadcast %138 : vector<16x1xf32> to vector<16x64xf32>
    %140 = arith.subf %132, %139 : vector<16x64xf32>
    %141 = arith.mulf %140, %140 : vector<16x64xf32>
    %cst_42 = arith.constant dense<0.000000e+00> : vector<16xf32>
    %142 = vector.multi_reduction <add>, %141, %cst_42 [1] : vector<16x64xf32> to vector<16xf32>
    %143 = vector.shape_cast %142 : vector<16xf32> to vector<16x1xf32>
    %cst_43 = arith.constant 6.400000e+01 : f32
    %144 = vector.broadcast %cst_43 : f32 to vector<16x1xf32>
    %145 = arith.divf %143, %144 : vector<16x1xf32>
    %cst_44 = arith.constant 9.99999974E-6 : f32
    %146 = vector.broadcast %cst_44 : f32 to vector<16x1xf32>
    %147 = arith.addf %145, %146 : vector<16x1xf32>
    %148 = math.rsqrt %147 : vector<16x1xf32>
    %149 = vector.broadcast %148 : vector<16x1xf32> to vector<16x64xf32>
    %150 = arith.mulf %140, %149 : vector<16x64xf32>
    %151 = vector.broadcast %133 : vector<1x64xf32> to vector<16x64xf32>
    %152 = arith.mulf %150, %151 : vector<16x64xf32>
    %153 = vector.broadcast %134 : vector<1x64xf32> to vector<16x64xf32>
    %154 = arith.addf %152, %153 : vector<16x64xf32>
    %155 = tpu.concatenate %32, %32 in 1 : vector<16x32xf32>, vector<16x32xf32> -> vector<16x64xf32>
    %c456 = arith.constant 456 : index
    %c0_45 = arith.constant 0 : index
    %156 = vector.load %arg2[%c456, %c0_45] : memref<1424x192xf32, #tpu.memory_space<vmem>>, vector<64x192xf32>
    %cst_46 = arith.constant dense<0.000000e+00> : vector<16x192xf32>
    %157 = tpu.matmul %155, %156, %cst_46 {dimension_numbers = #tpu.dot_dimension_numbers<[1], [0], [0], [1], [0, 0, 1, 1], [], []>} : vector<16x64xf32>, vector<64x192xf32>, vector<16x192xf32> -> vector<16x192xf32>
    %c448 = arith.constant 448 : index
    %c0_47 = arith.constant 0 : index
    %158 = vector.load %arg2[%c448, %c0_47] : memref<1424x192xf32, #tpu.memory_space<vmem>>, vector<1x192xf32>
    %159 = vector.broadcast %158 : vector<1x192xf32> to vector<16x192xf32>
    %160 = arith.addf %157, %159 : vector<16x192xf32>
    %161 = vector.extract_strided_slice %160 {offsets = [0, 0], sizes = [16, 64], strides = [1, 1]} : vector<16x192xf32> to vector<16x64xf32>
    %162 = vector.extract_strided_slice %160 {offsets = [0, 64], sizes = [16, 64], strides = [1, 1]} : vector<16x192xf32> to vector<16x64xf32>
    %163 = vector.extract_strided_slice %160 {offsets = [0, 128], sizes = [16, 64], strides = [1, 1]} : vector<16x192xf32> to vector<16x64xf32>
    %164 = vector.shape_cast %161 : vector<16x64xf32> to vector<2x8x64xf32>
    %165 = vector.shape_cast %162 : vector<16x64xf32> to vector<2x8x64xf32>
    %166 = vector.shape_cast %163 : vector<16x64xf32> to vector<2x8x64xf32>
    %167 = vector.extract_strided_slice %164 {offsets = [0, 0, 0], sizes = [2, 8, 32], strides = [1, 1, 1]} : vector<2x8x64xf32> to vector<2x8x32xf32>
    %168 = vector.extract_strided_slice %165 {offsets = [0, 0, 0], sizes = [2, 8, 32], strides = [1, 1, 1]} : vector<2x8x64xf32> to vector<2x8x32xf32>
    %169 = vector.shape_cast %167 : vector<2x8x32xf32> to vector<2x8x1x32xf32>
    %170 = vector.shape_cast %168 : vector<2x8x32xf32> to vector<2x1x8x32xf32>
    %171 = vector.broadcast %169 : vector<2x8x1x32xf32> to vector<2x8x8x32xf32>
    %172 = vector.broadcast %170 : vector<2x1x8x32xf32> to vector<2x8x8x32xf32>
    %173 = arith.mulf %171, %172 : vector<2x8x8x32xf32>
    %174 = vector.extract_strided_slice %164 {offsets = [0, 0, 32], sizes = [2, 8, 32], strides = [1, 1, 1]} : vector<2x8x64xf32> to vector<2x8x32xf32>
    %175 = vector.extract_strided_slice %165 {offsets = [0, 0, 32], sizes = [2, 8, 32], strides = [1, 1, 1]} : vector<2x8x64xf32> to vector<2x8x32xf32>
    %176 = vector.shape_cast %174 : vector<2x8x32xf32> to vector<2x8x1x32xf32>
    %177 = vector.shape_cast %175 : vector<2x8x32xf32> to vector<2x1x8x32xf32>
    %178 = vector.broadcast %176 : vector<2x8x1x32xf32> to vector<2x8x8x32xf32>
    %179 = vector.broadcast %177 : vector<2x1x8x32xf32> to vector<2x8x8x32xf32>
    %180 = arith.mulf %178, %179 : vector<2x8x8x32xf32>
    %181 = arith.addf %173, %180 : vector<2x8x8x32xf32>
    %cst_48 = arith.constant 0.707106769 : f32
    %182 = vector.broadcast %cst_48 : f32 to vector<2x8x8x32xf32>
    %183 = arith.mulf %181, %182 : vector<2x8x8x32xf32>
    %cst_49 = arith.constant dense<0xFF800000> : vector<2x8x32xf32>
    %184 = vector.multi_reduction <maximumf>, %183, %cst_49 [2] : vector<2x8x8x32xf32> to vector<2x8x32xf32>
    %185 = vector.shape_cast %184 : vector<2x8x32xf32> to vector<2x8x1x32xf32>
    %186 = vector.broadcast %185 : vector<2x8x1x32xf32> to vector<2x8x8x32xf32>
    %187 = arith.subf %183, %186 : vector<2x8x8x32xf32>
    %188 = math.exp %187 : vector<2x8x8x32xf32>
    %cst_50 = arith.constant dense<0.000000e+00> : vector<2x8x32xf32>
    %189 = vector.multi_reduction <add>, %188, %cst_50 [2] : vector<2x8x8x32xf32> to vector<2x8x32xf32>
    %190 = vector.shape_cast %189 : vector<2x8x32xf32> to vector<2x8x1x32xf32>
    %191 = vector.broadcast %190 : vector<2x8x1x32xf32> to vector<2x8x8x32xf32>
    %192 = arith.divf %188, %191 : vector<2x8x8x32xf32>
    %193 = vector.extract_strided_slice %166 {offsets = [0, 0, 0], sizes = [2, 8, 32], strides = [1, 1, 1]} : vector<2x8x64xf32> to vector<2x8x32xf32>
    %194 = vector.shape_cast %193 : vector<2x8x32xf32> to vector<2x1x8x32xf32>
    %195 = vector.broadcast %194 : vector<2x1x8x32xf32> to vector<2x8x8x32xf32>
    %196 = arith.mulf %192, %195 : vector<2x8x8x32xf32>
    %cst_51 = arith.constant dense<0.000000e+00> : vector<2x8x32xf32>
    %197 = vector.multi_reduction <add>, %196, %cst_51 [2] : vector<2x8x8x32xf32> to vector<2x8x32xf32>
    %198 = vector.extract_strided_slice %166 {offsets = [0, 0, 32], sizes = [2, 8, 32], strides = [1, 1, 1]} : vector<2x8x64xf32> to vector<2x8x32xf32>
    %199 = vector.shape_cast %198 : vector<2x8x32xf32> to vector<2x1x8x32xf32>
    %200 = vector.broadcast %199 : vector<2x1x8x32xf32> to vector<2x8x8x32xf32>
    %201 = arith.mulf %192, %200 : vector<2x8x8x32xf32>
    %cst_52 = arith.constant dense<0.000000e+00> : vector<2x8x32xf32>
    %202 = vector.multi_reduction <add>, %201, %cst_52 [2] : vector<2x8x8x32xf32> to vector<2x8x32xf32>
    %203 = tpu.concatenate %197, %202 in 2 : vector<2x8x32xf32>, vector<2x8x32xf32> -> vector<2x8x64xf32>
    %204 = vector.shape_cast %203 : vector<2x8x64xf32> to vector<16x64xf32>
    %c384 = arith.constant 384 : index
    %c0_53 = arith.constant 0 : index
    %205 = vector.load %arg2[%c384, %c0_53] : memref<1424x192xf32, #tpu.memory_space<vmem>>, vector<64x64xf32>
    %cst_54 = arith.constant dense<0.000000e+00> : vector<16x64xf32>
    %206 = tpu.matmul %204, %205, %cst_54 {dimension_numbers = #tpu.dot_dimension_numbers<[1], [0], [0], [1], [0, 0, 1, 1], [], []>} : vector<16x64xf32>, vector<64x64xf32>, vector<16x64xf32> -> vector<16x64xf32>
    %c376 = arith.constant 376 : index
    %c0_55 = arith.constant 0 : index
    %207 = vector.load %arg2[%c376, %c0_55] : memref<1424x192xf32, #tpu.memory_space<vmem>>, vector<1x64xf32>
    %208 = vector.broadcast %207 : vector<1x64xf32> to vector<16x64xf32>
    %209 = arith.addf %206, %208 : vector<16x64xf32>
    %210 = arith.addf %155, %209 : vector<16x64xf32>
    %c336 = arith.constant 336 : index
    %c0_56 = arith.constant 0 : index
    %211 = vector.load %arg2[%c336, %c0_56] : memref<1424x192xf32, #tpu.memory_space<vmem>>, vector<1x64xf32>
    %c328 = arith.constant 328 : index
    %c0_57 = arith.constant 0 : index
    %212 = vector.load %arg2[%c328, %c0_57] : memref<1424x192xf32, #tpu.memory_space<vmem>>, vector<1x64xf32>
    %cst_58 = arith.constant dense<0.000000e+00> : vector<16xf32>
    %213 = vector.multi_reduction <add>, %210, %cst_58 [1] : vector<16x64xf32> to vector<16xf32>
    %214 = vector.shape_cast %213 : vector<16xf32> to vector<16x1xf32>
    %cst_59 = arith.constant 6.400000e+01 : f32
    %215 = vector.broadcast %cst_59 : f32 to vector<16x1xf32>
    %216 = arith.divf %214, %215 : vector<16x1xf32>
    %217 = vector.broadcast %216 : vector<16x1xf32> to vector<16x64xf32>
    %218 = arith.subf %210, %217 : vector<16x64xf32>
    %219 = arith.mulf %218, %218 : vector<16x64xf32>
    %cst_60 = arith.constant dense<0.000000e+00> : vector<16xf32>
    %220 = vector.multi_reduction <add>, %219, %cst_60 [1] : vector<16x64xf32> to vector<16xf32>
    %221 = vector.shape_cast %220 : vector<16xf32> to vector<16x1xf32>
    %cst_61 = arith.constant 6.400000e+01 : f32
    %222 = vector.broadcast %cst_61 : f32 to vector<16x1xf32>
    %223 = arith.divf %221, %222 : vector<16x1xf32>
    %cst_62 = arith.constant 9.99999974E-6 : f32
    %224 = vector.broadcast %cst_62 : f32 to vector<16x1xf32>
    %225 = arith.addf %223, %224 : vector<16x1xf32>
    %226 = math.rsqrt %225 : vector<16x1xf32>
    %227 = vector.broadcast %226 : vector<16x1xf32> to vector<16x64xf32>
    %228 = arith.mulf %218, %227 : vector<16x64xf32>
    %229 = vector.broadcast %211 : vector<1x64xf32> to vector<16x64xf32>
    %230 = arith.mulf %228, %229 : vector<16x64xf32>
    %231 = vector.broadcast %212 : vector<1x64xf32> to vector<16x64xf32>
    %232 = arith.addf %230, %231 : vector<16x64xf32>
    %c168 = arith.constant 168 : index
    %c0_63 = arith.constant 0 : index
    %233 = vector.load %arg2[%c168, %c0_63] : memref<1424x192xf32, #tpu.memory_space<vmem>>, vector<64x64xf32>
    %cst_64 = arith.constant dense<0.000000e+00> : vector<16x64xf32>
    %234 = tpu.matmul %232, %233, %cst_64 {dimension_numbers = #tpu.dot_dimension_numbers<[1], [0], [0], [1], [0, 0, 1, 1], [], []>} : vector<16x64xf32>, vector<64x64xf32>, vector<16x64xf32> -> vector<16x64xf32>
    %c160 = arith.constant 160 : index
    %c0_65 = arith.constant 0 : index
    %235 = vector.load %arg2[%c160, %c0_65] : memref<1424x192xf32, #tpu.memory_space<vmem>>, vector<1x64xf32>
    %236 = vector.broadcast %235 : vector<1x64xf32> to vector<16x64xf32>
    %237 = arith.addf %234, %236 : vector<16x64xf32>
    %c24 = arith.constant 24 : index
    %c0_66 = arith.constant 0 : index
    %238 = vector.load %arg2[%c24, %c0_66] : memref<1424x192xf32, #tpu.memory_space<vmem>>, vector<64x128xf32>
    %cst_67 = arith.constant dense<0.000000e+00> : vector<16x128xf32>
    %239 = tpu.matmul %154, %238, %cst_67 {dimension_numbers = #tpu.dot_dimension_numbers<[1], [0], [0], [1], [0, 0, 1, 1], [], []>} : vector<16x64xf32>, vector<64x128xf32>, vector<16x128xf32> -> vector<16x128xf32>
    %c16 = arith.constant 16 : index
    %c0_68 = arith.constant 0 : index
    %240 = vector.load %arg2[%c16, %c0_68] : memref<1424x192xf32, #tpu.memory_space<vmem>>, vector<1x128xf32>
    %241 = vector.broadcast %240 : vector<1x128xf32> to vector<16x128xf32>
    %242 = arith.addf %239, %241 : vector<16x128xf32>
    %243 = vector.extract_strided_slice %242 {offsets = [0, 0], sizes = [16, 64], strides = [1, 1]} : vector<16x128xf32> to vector<16x64xf32>
    %244 = vector.extract_strided_slice %242 {offsets = [0, 64], sizes = [16, 64], strides = [1, 1]} : vector<16x128xf32> to vector<16x64xf32>
    %245 = vector.shape_cast %237 : vector<16x64xf32> to vector<2x8x64xf32>
    %246 = vector.shape_cast %243 : vector<16x64xf32> to vector<2x8x64xf32>
    %247 = vector.shape_cast %244 : vector<16x64xf32> to vector<2x8x64xf32>
    %248 = vector.extract_strided_slice %245 {offsets = [0, 0, 0], sizes = [2, 8, 32], strides = [1, 1, 1]} : vector<2x8x64xf32> to vector<2x8x32xf32>
    %249 = vector.extract_strided_slice %246 {offsets = [0, 0, 0], sizes = [2, 8, 32], strides = [1, 1, 1]} : vector<2x8x64xf32> to vector<2x8x32xf32>
    %250 = vector.shape_cast %248 : vector<2x8x32xf32> to vector<2x8x1x32xf32>
    %251 = vector.shape_cast %249 : vector<2x8x32xf32> to vector<2x1x8x32xf32>
    %252 = vector.broadcast %250 : vector<2x8x1x32xf32> to vector<2x8x8x32xf32>
    %253 = vector.broadcast %251 : vector<2x1x8x32xf32> to vector<2x8x8x32xf32>
    %254 = arith.mulf %252, %253 : vector<2x8x8x32xf32>
    %255 = vector.extract_strided_slice %245 {offsets = [0, 0, 32], sizes = [2, 8, 32], strides = [1, 1, 1]} : vector<2x8x64xf32> to vector<2x8x32xf32>
    %256 = vector.extract_strided_slice %246 {offsets = [0, 0, 32], sizes = [2, 8, 32], strides = [1, 1, 1]} : vector<2x8x64xf32> to vector<2x8x32xf32>
    %257 = vector.shape_cast %255 : vector<2x8x32xf32> to vector<2x8x1x32xf32>
    %258 = vector.shape_cast %256 : vector<2x8x32xf32> to vector<2x1x8x32xf32>
    %259 = vector.broadcast %257 : vector<2x8x1x32xf32> to vector<2x8x8x32xf32>
    %260 = vector.broadcast %258 : vector<2x1x8x32xf32> to vector<2x8x8x32xf32>
    %261 = arith.mulf %259, %260 : vector<2x8x8x32xf32>
    %262 = arith.addf %254, %261 : vector<2x8x8x32xf32>
    %cst_69 = arith.constant 0.707106769 : f32
    %263 = vector.broadcast %cst_69 : f32 to vector<2x8x8x32xf32>
    %264 = arith.mulf %262, %263 : vector<2x8x8x32xf32>
    %cst_70 = arith.constant dense<0xFF800000> : vector<2x8x32xf32>
    %265 = vector.multi_reduction <maximumf>, %264, %cst_70 [2] : vector<2x8x8x32xf32> to vector<2x8x32xf32>
    %266 = vector.shape_cast %265 : vector<2x8x32xf32> to vector<2x8x1x32xf32>
    %267 = vector.broadcast %266 : vector<2x8x1x32xf32> to vector<2x8x8x32xf32>
    %268 = arith.subf %264, %267 : vector<2x8x8x32xf32>
    %269 = math.exp %268 : vector<2x8x8x32xf32>
    %cst_71 = arith.constant dense<0.000000e+00> : vector<2x8x32xf32>
    %270 = vector.multi_reduction <add>, %269, %cst_71 [2] : vector<2x8x8x32xf32> to vector<2x8x32xf32>
    %271 = vector.shape_cast %270 : vector<2x8x32xf32> to vector<2x8x1x32xf32>
    %272 = vector.broadcast %271 : vector<2x8x1x32xf32> to vector<2x8x8x32xf32>
    %273 = arith.divf %269, %272 : vector<2x8x8x32xf32>
    %274 = vector.extract_strided_slice %247 {offsets = [0, 0, 0], sizes = [2, 8, 32], strides = [1, 1, 1]} : vector<2x8x64xf32> to vector<2x8x32xf32>
    %275 = vector.shape_cast %274 : vector<2x8x32xf32> to vector<2x1x8x32xf32>
    %276 = vector.broadcast %275 : vector<2x1x8x32xf32> to vector<2x8x8x32xf32>
    %277 = arith.mulf %273, %276 : vector<2x8x8x32xf32>
    %cst_72 = arith.constant dense<0.000000e+00> : vector<2x8x32xf32>
    %278 = vector.multi_reduction <add>, %277, %cst_72 [2] : vector<2x8x8x32xf32> to vector<2x8x32xf32>
    %279 = vector.extract_strided_slice %247 {offsets = [0, 0, 32], sizes = [2, 8, 32], strides = [1, 1, 1]} : vector<2x8x64xf32> to vector<2x8x32xf32>
    %280 = vector.shape_cast %279 : vector<2x8x32xf32> to vector<2x1x8x32xf32>
    %281 = vector.broadcast %280 : vector<2x1x8x32xf32> to vector<2x8x8x32xf32>
    %282 = arith.mulf %273, %281 : vector<2x8x8x32xf32>
    %cst_73 = arith.constant dense<0.000000e+00> : vector<2x8x32xf32>
    %283 = vector.multi_reduction <add>, %282, %cst_73 [2] : vector<2x8x8x32xf32> to vector<2x8x32xf32>
    %284 = tpu.concatenate %278, %283 in 2 : vector<2x8x32xf32>, vector<2x8x32xf32> -> vector<2x8x64xf32>
    %285 = vector.shape_cast %284 : vector<2x8x64xf32> to vector<16x64xf32>
    %c96 = arith.constant 96 : index
    %c0_74 = arith.constant 0 : index
    %286 = vector.load %arg2[%c96, %c0_74] : memref<1424x192xf32, #tpu.memory_space<vmem>>, vector<64x64xf32>
    %cst_75 = arith.constant dense<0.000000e+00> : vector<16x64xf32>
    %287 = tpu.matmul %285, %286, %cst_75 {dimension_numbers = #tpu.dot_dimension_numbers<[1], [0], [0], [1], [0, 0, 1, 1], [], []>} : vector<16x64xf32>, vector<64x64xf32>, vector<16x64xf32> -> vector<16x64xf32>
    %c88 = arith.constant 88 : index
    %c0_76 = arith.constant 0 : index
    %288 = vector.load %arg2[%c88, %c0_76] : memref<1424x192xf32, #tpu.memory_space<vmem>>, vector<1x64xf32>
    %289 = vector.broadcast %288 : vector<1x64xf32> to vector<16x64xf32>
    %290 = arith.addf %287, %289 : vector<16x64xf32>
    %291 = arith.addf %232, %290 : vector<16x64xf32>
    %c352 = arith.constant 352 : index
    %c0_77 = arith.constant 0 : index
    %292 = vector.load %arg2[%c352, %c0_77] : memref<1424x192xf32, #tpu.memory_space<vmem>>, vector<1x64xf32>
    %c344 = arith.constant 344 : index
    %c0_78 = arith.constant 0 : index
    %293 = vector.load %arg2[%c344, %c0_78] : memref<1424x192xf32, #tpu.memory_space<vmem>>, vector<1x64xf32>
    %cst_79 = arith.constant dense<0.000000e+00> : vector<16xf32>
    %294 = vector.multi_reduction <add>, %291, %cst_79 [1] : vector<16x64xf32> to vector<16xf32>
    %295 = vector.shape_cast %294 : vector<16xf32> to vector<16x1xf32>
    %cst_80 = arith.constant 6.400000e+01 : f32
    %296 = vector.broadcast %cst_80 : f32 to vector<16x1xf32>
    %297 = arith.divf %295, %296 : vector<16x1xf32>
    %298 = vector.broadcast %297 : vector<16x1xf32> to vector<16x64xf32>
    %299 = arith.subf %291, %298 : vector<16x64xf32>
    %300 = arith.mulf %299, %299 : vector<16x64xf32>
    %cst_81 = arith.constant dense<0.000000e+00> : vector<16xf32>
    %301 = vector.multi_reduction <add>, %300, %cst_81 [1] : vector<16x64xf32> to vector<16xf32>
    %302 = vector.shape_cast %301 : vector<16xf32> to vector<16x1xf32>
    %cst_82 = arith.constant 6.400000e+01 : f32
    %303 = vector.broadcast %cst_82 : f32 to vector<16x1xf32>
    %304 = arith.divf %302, %303 : vector<16x1xf32>
    %cst_83 = arith.constant 9.99999974E-6 : f32
    %305 = vector.broadcast %cst_83 : f32 to vector<16x1xf32>
    %306 = arith.addf %304, %305 : vector<16x1xf32>
    %307 = math.rsqrt %306 : vector<16x1xf32>
    %308 = vector.broadcast %307 : vector<16x1xf32> to vector<16x64xf32>
    %309 = arith.mulf %299, %308 : vector<16x64xf32>
    %310 = vector.broadcast %292 : vector<1x64xf32> to vector<16x64xf32>
    %311 = arith.mulf %309, %310 : vector<16x64xf32>
    %312 = vector.broadcast %293 : vector<1x64xf32> to vector<16x64xf32>
    %313 = arith.addf %311, %312 : vector<16x64xf32>
    %c248 = arith.constant 248 : index
    %c0_84 = arith.constant 0 : index
    %314 = vector.load %arg2[%c248, %c0_84] : memref<1424x192xf32, #tpu.memory_space<vmem>>, vector<64x16xf32>
    %cst_85 = arith.constant dense<0.000000e+00> : vector<16x16xf32>
    %315 = tpu.matmul %313, %314, %cst_85 {dimension_numbers = #tpu.dot_dimension_numbers<[1], [0], [0], [1], [0, 0, 1, 1], [], []>} : vector<16x64xf32>, vector<64x16xf32>, vector<16x16xf32> -> vector<16x16xf32>
    %c232 = arith.constant 232 : index
    %c0_86 = arith.constant 0 : index
    %316 = vector.load %arg2[%c232, %c0_86] : memref<1424x192xf32, #tpu.memory_space<vmem>>, vector<1x16xf32>
    %317 = vector.broadcast %316 : vector<1x16xf32> to vector<16x16xf32>
    %318 = arith.addf %315, %317 : vector<16x16xf32>
    %cst_87 = arith.constant 0.000000e+00 : f32
    %319 = vector.broadcast %cst_87 : f32 to vector<16x16xf32>
    %320 = arith.maximumf %318, %319 : vector<16x16xf32>
    %c312 = arith.constant 312 : index
    %c0_88 = arith.constant 0 : index
    %321 = vector.load %arg2[%c312, %c0_88] : memref<1424x192xf32, #tpu.memory_space<vmem>>, vector<16x64xf32>
    %cst_89 = arith.constant dense<0.000000e+00> : vector<16x64xf32>
    %322 = tpu.matmul %320, %321, %cst_89 {dimension_numbers = #tpu.dot_dimension_numbers<[1], [0], [0], [1], [0, 0, 1, 1], [], []>} : vector<16x16xf32>, vector<16x64xf32>, vector<16x64xf32> -> vector<16x64xf32>
    %323 = arith.addf %313, %322 : vector<16x64xf32>
    %c240 = arith.constant 240 : index
    %c0_90 = arith.constant 0 : index
    %324 = vector.load %arg2[%c240, %c0_90] : memref<1424x192xf32, #tpu.memory_space<vmem>>, vector<1x64xf32>
    %325 = vector.broadcast %324 : vector<1x64xf32> to vector<16x64xf32>
    %326 = arith.addf %323, %325 : vector<16x64xf32>
    %c368 = arith.constant 368 : index
    %c0_91 = arith.constant 0 : index
    %327 = vector.load %arg2[%c368, %c0_91] : memref<1424x192xf32, #tpu.memory_space<vmem>>, vector<1x64xf32>
    %c360 = arith.constant 360 : index
    %c0_92 = arith.constant 0 : index
    %328 = vector.load %arg2[%c360, %c0_92] : memref<1424x192xf32, #tpu.memory_space<vmem>>, vector<1x64xf32>
    %cst_93 = arith.constant dense<0.000000e+00> : vector<16xf32>
    %329 = vector.multi_reduction <add>, %326, %cst_93 [1] : vector<16x64xf32> to vector<16xf32>
    %330 = vector.shape_cast %329 : vector<16xf32> to vector<16x1xf32>
    %cst_94 = arith.constant 6.400000e+01 : f32
    %331 = vector.broadcast %cst_94 : f32 to vector<16x1xf32>
    %332 = arith.divf %330, %331 : vector<16x1xf32>
    %333 = vector.broadcast %332 : vector<16x1xf32> to vector<16x64xf32>
    %334 = arith.subf %326, %333 : vector<16x64xf32>
    %335 = arith.mulf %334, %334 : vector<16x64xf32>
    %cst_95 = arith.constant dense<0.000000e+00> : vector<16xf32>
    %336 = vector.multi_reduction <add>, %335, %cst_95 [1] : vector<16x64xf32> to vector<16xf32>
    %337 = vector.shape_cast %336 : vector<16xf32> to vector<16x1xf32>
    %cst_96 = arith.constant 6.400000e+01 : f32
    %338 = vector.broadcast %cst_96 : f32 to vector<16x1xf32>
    %339 = arith.divf %337, %338 : vector<16x1xf32>
    %cst_97 = arith.constant 9.99999974E-6 : f32
    %340 = vector.broadcast %cst_97 : f32 to vector<16x1xf32>
    %341 = arith.addf %339, %340 : vector<16x1xf32>
    %342 = math.rsqrt %341 : vector<16x1xf32>
    %343 = vector.broadcast %342 : vector<16x1xf32> to vector<16x64xf32>
    %344 = arith.mulf %334, %343 : vector<16x64xf32>
    %345 = vector.broadcast %327 : vector<1x64xf32> to vector<16x64xf32>
    %346 = arith.mulf %344, %345 : vector<16x64xf32>
    %347 = vector.broadcast %328 : vector<1x64xf32> to vector<16x64xf32>
    %348 = arith.addf %346, %347 : vector<16x64xf32>
    %c1304 = arith.constant 1304 : index
    %c0_98 = arith.constant 0 : index
    %349 = vector.load %arg2[%c1304, %c0_98] : memref<1424x192xf32, #tpu.memory_space<vmem>>, vector<64x32xf32>
    %cst_99 = arith.constant dense<0.000000e+00> : vector<16x32xf32>
    %350 = tpu.matmul %348, %349, %cst_99 {dimension_numbers = #tpu.dot_dimension_numbers<[1], [0], [0], [1], [0, 0, 1, 1], [], []>} : vector<16x64xf32>, vector<64x32xf32>, vector<16x32xf32> -> vector<16x32xf32>
    %c1296 = arith.constant 1296 : index
    %c0_100 = arith.constant 0 : index
    %351 = vector.load %arg2[%c1296, %c0_100] : memref<1424x192xf32, #tpu.memory_space<vmem>>, vector<1x32xf32>
    %352 = vector.broadcast %351 : vector<1x32xf32> to vector<16x32xf32>
    %353 = arith.addf %350, %352 : vector<16x32xf32>
    %cst_101 = arith.constant 0.000000e+00 : f32
    %354 = vector.broadcast %cst_101 : f32 to vector<16x32xf32>
    %355 = arith.subf %354, %353 : vector<16x32xf32>
    %356 = math.exp %355 : vector<16x32xf32>
    %cst_102 = arith.constant 1.000000e+00 : f32
    %357 = vector.broadcast %cst_102 : f32 to vector<16x32xf32>
    %358 = arith.addf %357, %356 : vector<16x32xf32>
    %cst_103 = arith.constant 1.000000e+00 : f32
    %359 = vector.broadcast %cst_103 : f32 to vector<16x32xf32>
    %360 = arith.divf %359, %358 : vector<16x32xf32>
    %361 = arith.subf %360, %32 : vector<16x32xf32>
    %362 = arith.mulf %361, %361 : vector<16x32xf32>
    %363 = tpu.concatenate %32, %362 in 1 : vector<16x32xf32>, vector<16x32xf32> -> vector<16x64xf32>
    %cst_104 = arith.constant 5.65685415 : f32
    %364 = vector.broadcast %cst_104 : f32 to vector<16x64xf32>
    %365 = arith.mulf %363, %364 : vector<16x64xf32>
    %366 = vector.shape_cast %365 : vector<16x64xf32> to vector<2x8x64xf32>
    %367 = vector.shape_cast %33 : vector<8x64xf32> to vector<1x8x64xf32>
    %368 = vector.broadcast %367 : vector<1x8x64xf32> to vector<2x8x64xf32>
    %369 = arith.addf %366, %368 : vector<2x8x64xf32>
    %370 = vector.shape_cast %369 : vector<2x8x64xf32> to vector<16x64xf32>
    %c1232_105 = arith.constant 1232 : index
    %c0_106 = arith.constant 0 : index
    %371 = vector.load %arg2[%c1232_105, %c0_106] : memref<1424x192xf32, #tpu.memory_space<vmem>>, vector<64x192xf32>
    %cst_107 = arith.constant dense<0.000000e+00> : vector<16x192xf32>
    %372 = tpu.matmul %370, %371, %cst_107 {dimension_numbers = #tpu.dot_dimension_numbers<[1], [0], [0], [1], [0, 0, 1, 1], [], []>} : vector<16x64xf32>, vector<64x192xf32>, vector<16x192xf32> -> vector<16x192xf32>
    %c1224_108 = arith.constant 1224 : index
    %c0_109 = arith.constant 0 : index
    %373 = vector.load %arg2[%c1224_108, %c0_109] : memref<1424x192xf32, #tpu.memory_space<vmem>>, vector<1x192xf32>
    %374 = vector.broadcast %373 : vector<1x192xf32> to vector<16x192xf32>
    %375 = arith.addf %372, %374 : vector<16x192xf32>
    %376 = vector.extract_strided_slice %375 {offsets = [0, 0], sizes = [16, 64], strides = [1, 1]} : vector<16x192xf32> to vector<16x64xf32>
    %377 = vector.extract_strided_slice %375 {offsets = [0, 64], sizes = [16, 64], strides = [1, 1]} : vector<16x192xf32> to vector<16x64xf32>
    %378 = vector.extract_strided_slice %375 {offsets = [0, 128], sizes = [16, 64], strides = [1, 1]} : vector<16x192xf32> to vector<16x64xf32>
    %379 = vector.shape_cast %376 : vector<16x64xf32> to vector<2x8x64xf32>
    %380 = vector.shape_cast %377 : vector<16x64xf32> to vector<2x8x64xf32>
    %381 = vector.shape_cast %378 : vector<16x64xf32> to vector<2x8x64xf32>
    %382 = vector.extract_strided_slice %379 {offsets = [0, 0, 0], sizes = [2, 8, 32], strides = [1, 1, 1]} : vector<2x8x64xf32> to vector<2x8x32xf32>
    %383 = vector.extract_strided_slice %380 {offsets = [0, 0, 0], sizes = [2, 8, 32], strides = [1, 1, 1]} : vector<2x8x64xf32> to vector<2x8x32xf32>
    %384 = vector.shape_cast %382 : vector<2x8x32xf32> to vector<2x8x1x32xf32>
    %385 = vector.shape_cast %383 : vector<2x8x32xf32> to vector<2x1x8x32xf32>
    %386 = vector.broadcast %384 : vector<2x8x1x32xf32> to vector<2x8x8x32xf32>
    %387 = vector.broadcast %385 : vector<2x1x8x32xf32> to vector<2x8x8x32xf32>
    %388 = arith.mulf %386, %387 : vector<2x8x8x32xf32>
    %389 = vector.extract_strided_slice %379 {offsets = [0, 0, 32], sizes = [2, 8, 32], strides = [1, 1, 1]} : vector<2x8x64xf32> to vector<2x8x32xf32>
    %390 = vector.extract_strided_slice %380 {offsets = [0, 0, 32], sizes = [2, 8, 32], strides = [1, 1, 1]} : vector<2x8x64xf32> to vector<2x8x32xf32>
    %391 = vector.shape_cast %389 : vector<2x8x32xf32> to vector<2x8x1x32xf32>
    %392 = vector.shape_cast %390 : vector<2x8x32xf32> to vector<2x1x8x32xf32>
    %393 = vector.broadcast %391 : vector<2x8x1x32xf32> to vector<2x8x8x32xf32>
    %394 = vector.broadcast %392 : vector<2x1x8x32xf32> to vector<2x8x8x32xf32>
    %395 = arith.mulf %393, %394 : vector<2x8x8x32xf32>
    %396 = arith.addf %388, %395 : vector<2x8x8x32xf32>
    %cst_110 = arith.constant 0.707106769 : f32
    %397 = vector.broadcast %cst_110 : f32 to vector<2x8x8x32xf32>
    %398 = arith.mulf %396, %397 : vector<2x8x8x32xf32>
    %cst_111 = arith.constant dense<0xFF800000> : vector<2x8x32xf32>
    %399 = vector.multi_reduction <maximumf>, %398, %cst_111 [2] : vector<2x8x8x32xf32> to vector<2x8x32xf32>
    %400 = vector.shape_cast %399 : vector<2x8x32xf32> to vector<2x8x1x32xf32>
    %401 = vector.broadcast %400 : vector<2x8x1x32xf32> to vector<2x8x8x32xf32>
    %402 = arith.subf %398, %401 : vector<2x8x8x32xf32>
    %403 = math.exp %402 : vector<2x8x8x32xf32>
    %cst_112 = arith.constant dense<0.000000e+00> : vector<2x8x32xf32>
    %404 = vector.multi_reduction <add>, %403, %cst_112 [2] : vector<2x8x8x32xf32> to vector<2x8x32xf32>
    %405 = vector.shape_cast %404 : vector<2x8x32xf32> to vector<2x8x1x32xf32>
    %406 = vector.broadcast %405 : vector<2x8x1x32xf32> to vector<2x8x8x32xf32>
    %407 = arith.divf %403, %406 : vector<2x8x8x32xf32>
    %408 = vector.extract_strided_slice %381 {offsets = [0, 0, 0], sizes = [2, 8, 32], strides = [1, 1, 1]} : vector<2x8x64xf32> to vector<2x8x32xf32>
    %409 = vector.shape_cast %408 : vector<2x8x32xf32> to vector<2x1x8x32xf32>
    %410 = vector.broadcast %409 : vector<2x1x8x32xf32> to vector<2x8x8x32xf32>
    %411 = arith.mulf %407, %410 : vector<2x8x8x32xf32>
    %cst_113 = arith.constant dense<0.000000e+00> : vector<2x8x32xf32>
    %412 = vector.multi_reduction <add>, %411, %cst_113 [2] : vector<2x8x8x32xf32> to vector<2x8x32xf32>
    %413 = vector.extract_strided_slice %381 {offsets = [0, 0, 32], sizes = [2, 8, 32], strides = [1, 1, 1]} : vector<2x8x64xf32> to vector<2x8x32xf32>
    %414 = vector.shape_cast %413 : vector<2x8x32xf32> to vector<2x1x8x32xf32>
    %415 = vector.broadcast %414 : vector<2x1x8x32xf32> to vector<2x8x8x32xf32>
    %416 = arith.mulf %407, %415 : vector<2x8x8x32xf32>
    %cst_114 = arith.constant dense<0.000000e+00> : vector<2x8x32xf32>
    %417 = vector.multi_reduction <add>, %416, %cst_114 [2] : vector<2x8x8x32xf32> to vector<2x8x32xf32>
    %418 = tpu.concatenate %412, %417 in 2 : vector<2x8x32xf32>, vector<2x8x32xf32> -> vector<2x8x64xf32>
    %419 = vector.shape_cast %418 : vector<2x8x64xf32> to vector<16x64xf32>
    %c1160_115 = arith.constant 1160 : index
    %c0_116 = arith.constant 0 : index
    %420 = vector.load %arg2[%c1160_115, %c0_116] : memref<1424x192xf32, #tpu.memory_space<vmem>>, vector<64x64xf32>
    %cst_117 = arith.constant dense<0.000000e+00> : vector<16x64xf32>
    %421 = tpu.matmul %419, %420, %cst_117 {dimension_numbers = #tpu.dot_dimension_numbers<[1], [0], [0], [1], [0, 0, 1, 1], [], []>} : vector<16x64xf32>, vector<64x64xf32>, vector<16x64xf32> -> vector<16x64xf32>
    %c1152_118 = arith.constant 1152 : index
    %c0_119 = arith.constant 0 : index
    %422 = vector.load %arg2[%c1152_118, %c0_119] : memref<1424x192xf32, #tpu.memory_space<vmem>>, vector<1x64xf32>
    %423 = vector.broadcast %422 : vector<1x64xf32> to vector<16x64xf32>
    %424 = arith.addf %421, %423 : vector<16x64xf32>
    %425 = arith.addf %370, %424 : vector<16x64xf32>
    %c1128_120 = arith.constant 1128 : index
    %c0_121 = arith.constant 0 : index
    %426 = vector.load %arg2[%c1128_120, %c0_121] : memref<1424x192xf32, #tpu.memory_space<vmem>>, vector<1x64xf32>
    %c1120_122 = arith.constant 1120 : index
    %c0_123 = arith.constant 0 : index
    %427 = vector.load %arg2[%c1120_122, %c0_123] : memref<1424x192xf32, #tpu.memory_space<vmem>>, vector<1x64xf32>
    %cst_124 = arith.constant dense<0.000000e+00> : vector<16xf32>
    %428 = vector.multi_reduction <add>, %425, %cst_124 [1] : vector<16x64xf32> to vector<16xf32>
    %429 = vector.shape_cast %428 : vector<16xf32> to vector<16x1xf32>
    %cst_125 = arith.constant 6.400000e+01 : f32
    %430 = vector.broadcast %cst_125 : f32 to vector<16x1xf32>
    %431 = arith.divf %429, %430 : vector<16x1xf32>
    %432 = vector.broadcast %431 : vector<16x1xf32> to vector<16x64xf32>
    %433 = arith.subf %425, %432 : vector<16x64xf32>
    %434 = arith.mulf %433, %433 : vector<16x64xf32>
    %cst_126 = arith.constant dense<0.000000e+00> : vector<16xf32>
    %435 = vector.multi_reduction <add>, %434, %cst_126 [1] : vector<16x64xf32> to vector<16xf32>
    %436 = vector.shape_cast %435 : vector<16xf32> to vector<16x1xf32>
    %cst_127 = arith.constant 6.400000e+01 : f32
    %437 = vector.broadcast %cst_127 : f32 to vector<16x1xf32>
    %438 = arith.divf %436, %437 : vector<16x1xf32>
    %cst_128 = arith.constant 9.99999974E-6 : f32
    %439 = vector.broadcast %cst_128 : f32 to vector<16x1xf32>
    %440 = arith.addf %438, %439 : vector<16x1xf32>
    %441 = math.rsqrt %440 : vector<16x1xf32>
    %442 = vector.broadcast %441 : vector<16x1xf32> to vector<16x64xf32>
    %443 = arith.mulf %433, %442 : vector<16x64xf32>
    %444 = vector.broadcast %426 : vector<1x64xf32> to vector<16x64xf32>
    %445 = arith.mulf %443, %444 : vector<16x64xf32>
    %446 = vector.broadcast %427 : vector<1x64xf32> to vector<16x64xf32>
    %447 = arith.addf %445, %446 : vector<16x64xf32>
    %c1040_129 = arith.constant 1040 : index
    %c0_130 = arith.constant 0 : index
    %448 = vector.load %arg2[%c1040_129, %c0_130] : memref<1424x192xf32, #tpu.memory_space<vmem>>, vector<64x16xf32>
    %cst_131 = arith.constant dense<0.000000e+00> : vector<16x16xf32>
    %449 = tpu.matmul %447, %448, %cst_131 {dimension_numbers = #tpu.dot_dimension_numbers<[1], [0], [0], [1], [0, 0, 1, 1], [], []>} : vector<16x64xf32>, vector<64x16xf32>, vector<16x16xf32> -> vector<16x16xf32>
    %c1024_132 = arith.constant 1024 : index
    %c0_133 = arith.constant 0 : index
    %450 = vector.load %arg2[%c1024_132, %c0_133] : memref<1424x192xf32, #tpu.memory_space<vmem>>, vector<1x16xf32>
    %451 = vector.broadcast %450 : vector<1x16xf32> to vector<16x16xf32>
    %452 = arith.addf %449, %451 : vector<16x16xf32>
    %cst_134 = arith.constant 0.000000e+00 : f32
    %453 = vector.broadcast %cst_134 : f32 to vector<16x16xf32>
    %454 = arith.maximumf %452, %453 : vector<16x16xf32>
    %c1104_135 = arith.constant 1104 : index
    %c0_136 = arith.constant 0 : index
    %455 = vector.load %arg2[%c1104_135, %c0_136] : memref<1424x192xf32, #tpu.memory_space<vmem>>, vector<16x64xf32>
    %cst_137 = arith.constant dense<0.000000e+00> : vector<16x64xf32>
    %456 = tpu.matmul %454, %455, %cst_137 {dimension_numbers = #tpu.dot_dimension_numbers<[1], [0], [0], [1], [0, 0, 1, 1], [], []>} : vector<16x16xf32>, vector<16x64xf32>, vector<16x64xf32> -> vector<16x64xf32>
    %457 = arith.addf %447, %456 : vector<16x64xf32>
    %c1032_138 = arith.constant 1032 : index
    %c0_139 = arith.constant 0 : index
    %458 = vector.load %arg2[%c1032_138, %c0_139] : memref<1424x192xf32, #tpu.memory_space<vmem>>, vector<1x64xf32>
    %459 = vector.broadcast %458 : vector<1x64xf32> to vector<16x64xf32>
    %460 = arith.addf %457, %459 : vector<16x64xf32>
    %c1144_140 = arith.constant 1144 : index
    %c0_141 = arith.constant 0 : index
    %461 = vector.load %arg2[%c1144_140, %c0_141] : memref<1424x192xf32, #tpu.memory_space<vmem>>, vector<1x64xf32>
    %c1136_142 = arith.constant 1136 : index
    %c0_143 = arith.constant 0 : index
    %462 = vector.load %arg2[%c1136_142, %c0_143] : memref<1424x192xf32, #tpu.memory_space<vmem>>, vector<1x64xf32>
    %cst_144 = arith.constant dense<0.000000e+00> : vector<16xf32>
    %463 = vector.multi_reduction <add>, %460, %cst_144 [1] : vector<16x64xf32> to vector<16xf32>
    %464 = vector.shape_cast %463 : vector<16xf32> to vector<16x1xf32>
    %cst_145 = arith.constant 6.400000e+01 : f32
    %465 = vector.broadcast %cst_145 : f32 to vector<16x1xf32>
    %466 = arith.divf %464, %465 : vector<16x1xf32>
    %467 = vector.broadcast %466 : vector<16x1xf32> to vector<16x64xf32>
    %468 = arith.subf %460, %467 : vector<16x64xf32>
    %469 = arith.mulf %468, %468 : vector<16x64xf32>
    %cst_146 = arith.constant dense<0.000000e+00> : vector<16xf32>
    %470 = vector.multi_reduction <add>, %469, %cst_146 [1] : vector<16x64xf32> to vector<16xf32>
    %471 = vector.shape_cast %470 : vector<16xf32> to vector<16x1xf32>
    %cst_147 = arith.constant 6.400000e+01 : f32
    %472 = vector.broadcast %cst_147 : f32 to vector<16x1xf32>
    %473 = arith.divf %471, %472 : vector<16x1xf32>
    %cst_148 = arith.constant 9.99999974E-6 : f32
    %474 = vector.broadcast %cst_148 : f32 to vector<16x1xf32>
    %475 = arith.addf %473, %474 : vector<16x1xf32>
    %476 = math.rsqrt %475 : vector<16x1xf32>
    %477 = vector.broadcast %476 : vector<16x1xf32> to vector<16x64xf32>
    %478 = arith.mulf %468, %477 : vector<16x64xf32>
    %479 = vector.broadcast %461 : vector<1x64xf32> to vector<16x64xf32>
    %480 = arith.mulf %478, %479 : vector<16x64xf32>
    %481 = vector.broadcast %462 : vector<1x64xf32> to vector<16x64xf32>
    %482 = arith.addf %480, %481 : vector<16x64xf32>
    %c960 = arith.constant 960 : index
    %c0_149 = arith.constant 0 : index
    %483 = vector.load %arg2[%c960, %c0_149] : memref<1424x192xf32, #tpu.memory_space<vmem>>, vector<64x192xf32>
    %cst_150 = arith.constant dense<0.000000e+00> : vector<16x192xf32>
    %484 = tpu.matmul %155, %483, %cst_150 {dimension_numbers = #tpu.dot_dimension_numbers<[1], [0], [0], [1], [0, 0, 1, 1], [], []>} : vector<16x64xf32>, vector<64x192xf32>, vector<16x192xf32> -> vector<16x192xf32>
    %c952 = arith.constant 952 : index
    %c0_151 = arith.constant 0 : index
    %485 = vector.load %arg2[%c952, %c0_151] : memref<1424x192xf32, #tpu.memory_space<vmem>>, vector<1x192xf32>
    %486 = vector.broadcast %485 : vector<1x192xf32> to vector<16x192xf32>
    %487 = arith.addf %484, %486 : vector<16x192xf32>
    %488 = vector.extract_strided_slice %487 {offsets = [0, 0], sizes = [16, 64], strides = [1, 1]} : vector<16x192xf32> to vector<16x64xf32>
    %489 = vector.extract_strided_slice %487 {offsets = [0, 64], sizes = [16, 64], strides = [1, 1]} : vector<16x192xf32> to vector<16x64xf32>
    %490 = vector.extract_strided_slice %487 {offsets = [0, 128], sizes = [16, 64], strides = [1, 1]} : vector<16x192xf32> to vector<16x64xf32>
    %491 = vector.shape_cast %488 : vector<16x64xf32> to vector<2x8x64xf32>
    %492 = vector.shape_cast %489 : vector<16x64xf32> to vector<2x8x64xf32>
    %493 = vector.shape_cast %490 : vector<16x64xf32> to vector<2x8x64xf32>
    %494 = vector.extract_strided_slice %491 {offsets = [0, 0, 0], sizes = [2, 8, 32], strides = [1, 1, 1]} : vector<2x8x64xf32> to vector<2x8x32xf32>
    %495 = vector.extract_strided_slice %492 {offsets = [0, 0, 0], sizes = [2, 8, 32], strides = [1, 1, 1]} : vector<2x8x64xf32> to vector<2x8x32xf32>
    %496 = vector.shape_cast %494 : vector<2x8x32xf32> to vector<2x8x1x32xf32>
    %497 = vector.shape_cast %495 : vector<2x8x32xf32> to vector<2x1x8x32xf32>
    %498 = vector.broadcast %496 : vector<2x8x1x32xf32> to vector<2x8x8x32xf32>
    %499 = vector.broadcast %497 : vector<2x1x8x32xf32> to vector<2x8x8x32xf32>
    %500 = arith.mulf %498, %499 : vector<2x8x8x32xf32>
    %501 = vector.extract_strided_slice %491 {offsets = [0, 0, 32], sizes = [2, 8, 32], strides = [1, 1, 1]} : vector<2x8x64xf32> to vector<2x8x32xf32>
    %502 = vector.extract_strided_slice %492 {offsets = [0, 0, 32], sizes = [2, 8, 32], strides = [1, 1, 1]} : vector<2x8x64xf32> to vector<2x8x32xf32>
    %503 = vector.shape_cast %501 : vector<2x8x32xf32> to vector<2x8x1x32xf32>
    %504 = vector.shape_cast %502 : vector<2x8x32xf32> to vector<2x1x8x32xf32>
    %505 = vector.broadcast %503 : vector<2x8x1x32xf32> to vector<2x8x8x32xf32>
    %506 = vector.broadcast %504 : vector<2x1x8x32xf32> to vector<2x8x8x32xf32>
    %507 = arith.mulf %505, %506 : vector<2x8x8x32xf32>
    %508 = arith.addf %500, %507 : vector<2x8x8x32xf32>
    %cst_152 = arith.constant 0.707106769 : f32
    %509 = vector.broadcast %cst_152 : f32 to vector<2x8x8x32xf32>
    %510 = arith.mulf %508, %509 : vector<2x8x8x32xf32>
    %cst_153 = arith.constant dense<0xFF800000> : vector<2x8x32xf32>
    %511 = vector.multi_reduction <maximumf>, %510, %cst_153 [2] : vector<2x8x8x32xf32> to vector<2x8x32xf32>
    %512 = vector.shape_cast %511 : vector<2x8x32xf32> to vector<2x8x1x32xf32>
    %513 = vector.broadcast %512 : vector<2x8x1x32xf32> to vector<2x8x8x32xf32>
    %514 = arith.subf %510, %513 : vector<2x8x8x32xf32>
    %515 = math.exp %514 : vector<2x8x8x32xf32>
    %cst_154 = arith.constant dense<0.000000e+00> : vector<2x8x32xf32>
    %516 = vector.multi_reduction <add>, %515, %cst_154 [2] : vector<2x8x8x32xf32> to vector<2x8x32xf32>
    %517 = vector.shape_cast %516 : vector<2x8x32xf32> to vector<2x8x1x32xf32>
    %518 = vector.broadcast %517 : vector<2x8x1x32xf32> to vector<2x8x8x32xf32>
    %519 = arith.divf %515, %518 : vector<2x8x8x32xf32>
    %520 = vector.extract_strided_slice %493 {offsets = [0, 0, 0], sizes = [2, 8, 32], strides = [1, 1, 1]} : vector<2x8x64xf32> to vector<2x8x32xf32>
    %521 = vector.shape_cast %520 : vector<2x8x32xf32> to vector<2x1x8x32xf32>
    %522 = vector.broadcast %521 : vector<2x1x8x32xf32> to vector<2x8x8x32xf32>
    %523 = arith.mulf %519, %522 : vector<2x8x8x32xf32>
    %cst_155 = arith.constant dense<0.000000e+00> : vector<2x8x32xf32>
    %524 = vector.multi_reduction <add>, %523, %cst_155 [2] : vector<2x8x8x32xf32> to vector<2x8x32xf32>
    %525 = vector.extract_strided_slice %493 {offsets = [0, 0, 32], sizes = [2, 8, 32], strides = [1, 1, 1]} : vector<2x8x64xf32> to vector<2x8x32xf32>
    %526 = vector.shape_cast %525 : vector<2x8x32xf32> to vector<2x1x8x32xf32>
    %527 = vector.broadcast %526 : vector<2x1x8x32xf32> to vector<2x8x8x32xf32>
    %528 = arith.mulf %519, %527 : vector<2x8x8x32xf32>
    %cst_156 = arith.constant dense<0.000000e+00> : vector<2x8x32xf32>
    %529 = vector.multi_reduction <add>, %528, %cst_156 [2] : vector<2x8x8x32xf32> to vector<2x8x32xf32>
    %530 = tpu.concatenate %524, %529 in 2 : vector<2x8x32xf32>, vector<2x8x32xf32> -> vector<2x8x64xf32>
    %531 = vector.shape_cast %530 : vector<2x8x64xf32> to vector<16x64xf32>
    %c888 = arith.constant 888 : index
    %c0_157 = arith.constant 0 : index
    %532 = vector.load %arg2[%c888, %c0_157] : memref<1424x192xf32, #tpu.memory_space<vmem>>, vector<64x64xf32>
    %cst_158 = arith.constant dense<0.000000e+00> : vector<16x64xf32>
    %533 = tpu.matmul %531, %532, %cst_158 {dimension_numbers = #tpu.dot_dimension_numbers<[1], [0], [0], [1], [0, 0, 1, 1], [], []>} : vector<16x64xf32>, vector<64x64xf32>, vector<16x64xf32> -> vector<16x64xf32>
    %c880 = arith.constant 880 : index
    %c0_159 = arith.constant 0 : index
    %534 = vector.load %arg2[%c880, %c0_159] : memref<1424x192xf32, #tpu.memory_space<vmem>>, vector<1x64xf32>
    %535 = vector.broadcast %534 : vector<1x64xf32> to vector<16x64xf32>
    %536 = arith.addf %533, %535 : vector<16x64xf32>
    %537 = arith.addf %155, %536 : vector<16x64xf32>
    %c840 = arith.constant 840 : index
    %c0_160 = arith.constant 0 : index
    %538 = vector.load %arg2[%c840, %c0_160] : memref<1424x192xf32, #tpu.memory_space<vmem>>, vector<1x64xf32>
    %c832 = arith.constant 832 : index
    %c0_161 = arith.constant 0 : index
    %539 = vector.load %arg2[%c832, %c0_161] : memref<1424x192xf32, #tpu.memory_space<vmem>>, vector<1x64xf32>
    %cst_162 = arith.constant dense<0.000000e+00> : vector<16xf32>
    %540 = vector.multi_reduction <add>, %537, %cst_162 [1] : vector<16x64xf32> to vector<16xf32>
    %541 = vector.shape_cast %540 : vector<16xf32> to vector<16x1xf32>
    %cst_163 = arith.constant 6.400000e+01 : f32
    %542 = vector.broadcast %cst_163 : f32 to vector<16x1xf32>
    %543 = arith.divf %541, %542 : vector<16x1xf32>
    %544 = vector.broadcast %543 : vector<16x1xf32> to vector<16x64xf32>
    %545 = arith.subf %537, %544 : vector<16x64xf32>
    %546 = arith.mulf %545, %545 : vector<16x64xf32>
    %cst_164 = arith.constant dense<0.000000e+00> : vector<16xf32>
    %547 = vector.multi_reduction <add>, %546, %cst_164 [1] : vector<16x64xf32> to vector<16xf32>
    %548 = vector.shape_cast %547 : vector<16xf32> to vector<16x1xf32>
    %cst_165 = arith.constant 6.400000e+01 : f32
    %549 = vector.broadcast %cst_165 : f32 to vector<16x1xf32>
    %550 = arith.divf %548, %549 : vector<16x1xf32>
    %cst_166 = arith.constant 9.99999974E-6 : f32
    %551 = vector.broadcast %cst_166 : f32 to vector<16x1xf32>
    %552 = arith.addf %550, %551 : vector<16x1xf32>
    %553 = math.rsqrt %552 : vector<16x1xf32>
    %554 = vector.broadcast %553 : vector<16x1xf32> to vector<16x64xf32>
    %555 = arith.mulf %545, %554 : vector<16x64xf32>
    %556 = vector.broadcast %538 : vector<1x64xf32> to vector<16x64xf32>
    %557 = arith.mulf %555, %556 : vector<16x64xf32>
    %558 = vector.broadcast %539 : vector<1x64xf32> to vector<16x64xf32>
    %559 = arith.addf %557, %558 : vector<16x64xf32>
    %c672 = arith.constant 672 : index
    %c0_167 = arith.constant 0 : index
    %560 = vector.load %arg2[%c672, %c0_167] : memref<1424x192xf32, #tpu.memory_space<vmem>>, vector<64x64xf32>
    %cst_168 = arith.constant dense<0.000000e+00> : vector<16x64xf32>
    %561 = tpu.matmul %559, %560, %cst_168 {dimension_numbers = #tpu.dot_dimension_numbers<[1], [0], [0], [1], [0, 0, 1, 1], [], []>} : vector<16x64xf32>, vector<64x64xf32>, vector<16x64xf32> -> vector<16x64xf32>
    %c664 = arith.constant 664 : index
    %c0_169 = arith.constant 0 : index
    %562 = vector.load %arg2[%c664, %c0_169] : memref<1424x192xf32, #tpu.memory_space<vmem>>, vector<1x64xf32>
    %563 = vector.broadcast %562 : vector<1x64xf32> to vector<16x64xf32>
    %564 = arith.addf %561, %563 : vector<16x64xf32>
    %c528 = arith.constant 528 : index
    %c0_170 = arith.constant 0 : index
    %565 = vector.load %arg2[%c528, %c0_170] : memref<1424x192xf32, #tpu.memory_space<vmem>>, vector<64x128xf32>
    %cst_171 = arith.constant dense<0.000000e+00> : vector<16x128xf32>
    %566 = tpu.matmul %482, %565, %cst_171 {dimension_numbers = #tpu.dot_dimension_numbers<[1], [0], [0], [1], [0, 0, 1, 1], [], []>} : vector<16x64xf32>, vector<64x128xf32>, vector<16x128xf32> -> vector<16x128xf32>
    %c520 = arith.constant 520 : index
    %c0_172 = arith.constant 0 : index
    %567 = vector.load %arg2[%c520, %c0_172] : memref<1424x192xf32, #tpu.memory_space<vmem>>, vector<1x128xf32>
    %568 = vector.broadcast %567 : vector<1x128xf32> to vector<16x128xf32>
    %569 = arith.addf %566, %568 : vector<16x128xf32>
    %570 = vector.extract_strided_slice %569 {offsets = [0, 0], sizes = [16, 64], strides = [1, 1]} : vector<16x128xf32> to vector<16x64xf32>
    %571 = vector.extract_strided_slice %569 {offsets = [0, 64], sizes = [16, 64], strides = [1, 1]} : vector<16x128xf32> to vector<16x64xf32>
    %572 = vector.shape_cast %564 : vector<16x64xf32> to vector<2x8x64xf32>
    %573 = vector.shape_cast %570 : vector<16x64xf32> to vector<2x8x64xf32>
    %574 = vector.shape_cast %571 : vector<16x64xf32> to vector<2x8x64xf32>
    %575 = vector.extract_strided_slice %572 {offsets = [0, 0, 0], sizes = [2, 8, 32], strides = [1, 1, 1]} : vector<2x8x64xf32> to vector<2x8x32xf32>
    %576 = vector.extract_strided_slice %573 {offsets = [0, 0, 0], sizes = [2, 8, 32], strides = [1, 1, 1]} : vector<2x8x64xf32> to vector<2x8x32xf32>
    %577 = vector.shape_cast %575 : vector<2x8x32xf32> to vector<2x8x1x32xf32>
    %578 = vector.shape_cast %576 : vector<2x8x32xf32> to vector<2x1x8x32xf32>
    %579 = vector.broadcast %577 : vector<2x8x1x32xf32> to vector<2x8x8x32xf32>
    %580 = vector.broadcast %578 : vector<2x1x8x32xf32> to vector<2x8x8x32xf32>
    %581 = arith.mulf %579, %580 : vector<2x8x8x32xf32>
    %582 = vector.extract_strided_slice %572 {offsets = [0, 0, 32], sizes = [2, 8, 32], strides = [1, 1, 1]} : vector<2x8x64xf32> to vector<2x8x32xf32>
    %583 = vector.extract_strided_slice %573 {offsets = [0, 0, 32], sizes = [2, 8, 32], strides = [1, 1, 1]} : vector<2x8x64xf32> to vector<2x8x32xf32>
    %584 = vector.shape_cast %582 : vector<2x8x32xf32> to vector<2x8x1x32xf32>
    %585 = vector.shape_cast %583 : vector<2x8x32xf32> to vector<2x1x8x32xf32>
    %586 = vector.broadcast %584 : vector<2x8x1x32xf32> to vector<2x8x8x32xf32>
    %587 = vector.broadcast %585 : vector<2x1x8x32xf32> to vector<2x8x8x32xf32>
    %588 = arith.mulf %586, %587 : vector<2x8x8x32xf32>
    %589 = arith.addf %581, %588 : vector<2x8x8x32xf32>
    %cst_173 = arith.constant 0.707106769 : f32
    %590 = vector.broadcast %cst_173 : f32 to vector<2x8x8x32xf32>
    %591 = arith.mulf %589, %590 : vector<2x8x8x32xf32>
    %cst_174 = arith.constant dense<0xFF800000> : vector<2x8x32xf32>
    %592 = vector.multi_reduction <maximumf>, %591, %cst_174 [2] : vector<2x8x8x32xf32> to vector<2x8x32xf32>
    %593 = vector.shape_cast %592 : vector<2x8x32xf32> to vector<2x8x1x32xf32>
    %594 = vector.broadcast %593 : vector<2x8x1x32xf32> to vector<2x8x8x32xf32>
    %595 = arith.subf %591, %594 : vector<2x8x8x32xf32>
    %596 = math.exp %595 : vector<2x8x8x32xf32>
    %cst_175 = arith.constant dense<0.000000e+00> : vector<2x8x32xf32>
    %597 = vector.multi_reduction <add>, %596, %cst_175 [2] : vector<2x8x8x32xf32> to vector<2x8x32xf32>
    %598 = vector.shape_cast %597 : vector<2x8x32xf32> to vector<2x8x1x32xf32>
    %599 = vector.broadcast %598 : vector<2x8x1x32xf32> to vector<2x8x8x32xf32>
    %600 = arith.divf %596, %599 : vector<2x8x8x32xf32>
    %601 = vector.extract_strided_slice %574 {offsets = [0, 0, 0], sizes = [2, 8, 32], strides = [1, 1, 1]} : vector<2x8x64xf32> to vector<2x8x32xf32>
    %602 = vector.shape_cast %601 : vector<2x8x32xf32> to vector<2x1x8x32xf32>
    %603 = vector.broadcast %602 : vector<2x1x8x32xf32> to vector<2x8x8x32xf32>
    %604 = arith.mulf %600, %603 : vector<2x8x8x32xf32>
    %cst_176 = arith.constant dense<0.000000e+00> : vector<2x8x32xf32>
    %605 = vector.multi_reduction <add>, %604, %cst_176 [2] : vector<2x8x8x32xf32> to vector<2x8x32xf32>
    %606 = vector.extract_strided_slice %574 {offsets = [0, 0, 32], sizes = [2, 8, 32], strides = [1, 1, 1]} : vector<2x8x64xf32> to vector<2x8x32xf32>
    %607 = vector.shape_cast %606 : vector<2x8x32xf32> to vector<2x1x8x32xf32>
    %608 = vector.broadcast %607 : vector<2x1x8x32xf32> to vector<2x8x8x32xf32>
    %609 = arith.mulf %600, %608 : vector<2x8x8x32xf32>
    %cst_177 = arith.constant dense<0.000000e+00> : vector<2x8x32xf32>
    %610 = vector.multi_reduction <add>, %609, %cst_177 [2] : vector<2x8x8x32xf32> to vector<2x8x32xf32>
    %611 = tpu.concatenate %605, %610 in 2 : vector<2x8x32xf32>, vector<2x8x32xf32> -> vector<2x8x64xf32>
    %612 = vector.shape_cast %611 : vector<2x8x64xf32> to vector<16x64xf32>
    %c600 = arith.constant 600 : index
    %c0_178 = arith.constant 0 : index
    %613 = vector.load %arg2[%c600, %c0_178] : memref<1424x192xf32, #tpu.memory_space<vmem>>, vector<64x64xf32>
    %cst_179 = arith.constant dense<0.000000e+00> : vector<16x64xf32>
    %614 = tpu.matmul %612, %613, %cst_179 {dimension_numbers = #tpu.dot_dimension_numbers<[1], [0], [0], [1], [0, 0, 1, 1], [], []>} : vector<16x64xf32>, vector<64x64xf32>, vector<16x64xf32> -> vector<16x64xf32>
    %c592 = arith.constant 592 : index
    %c0_180 = arith.constant 0 : index
    %615 = vector.load %arg2[%c592, %c0_180] : memref<1424x192xf32, #tpu.memory_space<vmem>>, vector<1x64xf32>
    %616 = vector.broadcast %615 : vector<1x64xf32> to vector<16x64xf32>
    %617 = arith.addf %614, %616 : vector<16x64xf32>
    %618 = arith.addf %559, %617 : vector<16x64xf32>
    %c856 = arith.constant 856 : index
    %c0_181 = arith.constant 0 : index
    %619 = vector.load %arg2[%c856, %c0_181] : memref<1424x192xf32, #tpu.memory_space<vmem>>, vector<1x64xf32>
    %c848 = arith.constant 848 : index
    %c0_182 = arith.constant 0 : index
    %620 = vector.load %arg2[%c848, %c0_182] : memref<1424x192xf32, #tpu.memory_space<vmem>>, vector<1x64xf32>
    %cst_183 = arith.constant dense<0.000000e+00> : vector<16xf32>
    %621 = vector.multi_reduction <add>, %618, %cst_183 [1] : vector<16x64xf32> to vector<16xf32>
    %622 = vector.shape_cast %621 : vector<16xf32> to vector<16x1xf32>
    %cst_184 = arith.constant 6.400000e+01 : f32
    %623 = vector.broadcast %cst_184 : f32 to vector<16x1xf32>
    %624 = arith.divf %622, %623 : vector<16x1xf32>
    %625 = vector.broadcast %624 : vector<16x1xf32> to vector<16x64xf32>
    %626 = arith.subf %618, %625 : vector<16x64xf32>
    %627 = arith.mulf %626, %626 : vector<16x64xf32>
    %cst_185 = arith.constant dense<0.000000e+00> : vector<16xf32>
    %628 = vector.multi_reduction <add>, %627, %cst_185 [1] : vector<16x64xf32> to vector<16xf32>
    %629 = vector.shape_cast %628 : vector<16xf32> to vector<16x1xf32>
    %cst_186 = arith.constant 6.400000e+01 : f32
    %630 = vector.broadcast %cst_186 : f32 to vector<16x1xf32>
    %631 = arith.divf %629, %630 : vector<16x1xf32>
    %cst_187 = arith.constant 9.99999974E-6 : f32
    %632 = vector.broadcast %cst_187 : f32 to vector<16x1xf32>
    %633 = arith.addf %631, %632 : vector<16x1xf32>
    %634 = math.rsqrt %633 : vector<16x1xf32>
    %635 = vector.broadcast %634 : vector<16x1xf32> to vector<16x64xf32>
    %636 = arith.mulf %626, %635 : vector<16x64xf32>
    %637 = vector.broadcast %619 : vector<1x64xf32> to vector<16x64xf32>
    %638 = arith.mulf %636, %637 : vector<16x64xf32>
    %639 = vector.broadcast %620 : vector<1x64xf32> to vector<16x64xf32>
    %640 = arith.addf %638, %639 : vector<16x64xf32>
    %c752 = arith.constant 752 : index
    %c0_188 = arith.constant 0 : index
    %641 = vector.load %arg2[%c752, %c0_188] : memref<1424x192xf32, #tpu.memory_space<vmem>>, vector<64x16xf32>
    %cst_189 = arith.constant dense<0.000000e+00> : vector<16x16xf32>
    %642 = tpu.matmul %640, %641, %cst_189 {dimension_numbers = #tpu.dot_dimension_numbers<[1], [0], [0], [1], [0, 0, 1, 1], [], []>} : vector<16x64xf32>, vector<64x16xf32>, vector<16x16xf32> -> vector<16x16xf32>
    %c736 = arith.constant 736 : index
    %c0_190 = arith.constant 0 : index
    %643 = vector.load %arg2[%c736, %c0_190] : memref<1424x192xf32, #tpu.memory_space<vmem>>, vector<1x16xf32>
    %644 = vector.broadcast %643 : vector<1x16xf32> to vector<16x16xf32>
    %645 = arith.addf %642, %644 : vector<16x16xf32>
    %cst_191 = arith.constant 0.000000e+00 : f32
    %646 = vector.broadcast %cst_191 : f32 to vector<16x16xf32>
    %647 = arith.maximumf %645, %646 : vector<16x16xf32>
    %c816 = arith.constant 816 : index
    %c0_192 = arith.constant 0 : index
    %648 = vector.load %arg2[%c816, %c0_192] : memref<1424x192xf32, #tpu.memory_space<vmem>>, vector<16x64xf32>
    %cst_193 = arith.constant dense<0.000000e+00> : vector<16x64xf32>
    %649 = tpu.matmul %647, %648, %cst_193 {dimension_numbers = #tpu.dot_dimension_numbers<[1], [0], [0], [1], [0, 0, 1, 1], [], []>} : vector<16x16xf32>, vector<16x64xf32>, vector<16x64xf32> -> vector<16x64xf32>
    %650 = arith.addf %640, %649 : vector<16x64xf32>
    %c744 = arith.constant 744 : index
    %c0_194 = arith.constant 0 : index
    %651 = vector.load %arg2[%c744, %c0_194] : memref<1424x192xf32, #tpu.memory_space<vmem>>, vector<1x64xf32>
    %652 = vector.broadcast %651 : vector<1x64xf32> to vector<16x64xf32>
    %653 = arith.addf %650, %652 : vector<16x64xf32>
    %c872 = arith.constant 872 : index
    %c0_195 = arith.constant 0 : index
    %654 = vector.load %arg2[%c872, %c0_195] : memref<1424x192xf32, #tpu.memory_space<vmem>>, vector<1x64xf32>
    %c864 = arith.constant 864 : index
    %c0_196 = arith.constant 0 : index
    %655 = vector.load %arg2[%c864, %c0_196] : memref<1424x192xf32, #tpu.memory_space<vmem>>, vector<1x64xf32>
    %cst_197 = arith.constant dense<0.000000e+00> : vector<16xf32>
    %656 = vector.multi_reduction <add>, %653, %cst_197 [1] : vector<16x64xf32> to vector<16xf32>
    %657 = vector.shape_cast %656 : vector<16xf32> to vector<16x1xf32>
    %cst_198 = arith.constant 6.400000e+01 : f32
    %658 = vector.broadcast %cst_198 : f32 to vector<16x1xf32>
    %659 = arith.divf %657, %658 : vector<16x1xf32>
    %660 = vector.broadcast %659 : vector<16x1xf32> to vector<16x64xf32>
    %661 = arith.subf %653, %660 : vector<16x64xf32>
    %662 = arith.mulf %661, %661 : vector<16x64xf32>
    %cst_199 = arith.constant dense<0.000000e+00> : vector<16xf32>
    %663 = vector.multi_reduction <add>, %662, %cst_199 [1] : vector<16x64xf32> to vector<16xf32>
    %664 = vector.shape_cast %663 : vector<16xf32> to vector<16x1xf32>
    %cst_200 = arith.constant 6.400000e+01 : f32
    %665 = vector.broadcast %cst_200 : f32 to vector<16x1xf32>
    %666 = arith.divf %664, %665 : vector<16x1xf32>
    %cst_201 = arith.constant 9.99999974E-6 : f32
    %667 = vector.broadcast %cst_201 : f32 to vector<16x1xf32>
    %668 = arith.addf %666, %667 : vector<16x1xf32>
    %669 = math.rsqrt %668 : vector<16x1xf32>
    %670 = vector.broadcast %669 : vector<16x1xf32> to vector<16x64xf32>
    %671 = arith.mulf %661, %670 : vector<16x64xf32>
    %672 = vector.broadcast %654 : vector<1x64xf32> to vector<16x64xf32>
    %673 = arith.mulf %671, %672 : vector<16x64xf32>
    %674 = vector.broadcast %655 : vector<1x64xf32> to vector<16x64xf32>
    %675 = arith.addf %673, %674 : vector<16x64xf32>
    %c1304_202 = arith.constant 1304 : index
    %c0_203 = arith.constant 0 : index
    %676 = vector.load %arg2[%c1304_202, %c0_203] : memref<1424x192xf32, #tpu.memory_space<vmem>>, vector<64x32xf32>
    %cst_204 = arith.constant dense<0.000000e+00> : vector<16x32xf32>
    %677 = tpu.matmul %675, %676, %cst_204 {dimension_numbers = #tpu.dot_dimension_numbers<[1], [0], [0], [1], [0, 0, 1, 1], [], []>} : vector<16x64xf32>, vector<64x32xf32>, vector<16x32xf32> -> vector<16x32xf32>
    %c1296_205 = arith.constant 1296 : index
    %c0_206 = arith.constant 0 : index
    %678 = vector.load %arg2[%c1296_205, %c0_206] : memref<1424x192xf32, #tpu.memory_space<vmem>>, vector<1x32xf32>
    %679 = vector.broadcast %678 : vector<1x32xf32> to vector<16x32xf32>
    %680 = arith.addf %677, %679 : vector<16x32xf32>
    %cst_207 = arith.constant 0.000000e+00 : f32
    %681 = vector.broadcast %cst_207 : f32 to vector<16x32xf32>
    %682 = arith.subf %681, %680 : vector<16x32xf32>
    %683 = math.exp %682 : vector<16x32xf32>
    %cst_208 = arith.constant 1.000000e+00 : f32
    %684 = vector.broadcast %cst_208 : f32 to vector<16x32xf32>
    %685 = arith.addf %684, %683 : vector<16x32xf32>
    %cst_209 = arith.constant 1.000000e+00 : f32
    %686 = vector.broadcast %cst_209 : f32 to vector<16x32xf32>
    %687 = arith.divf %686, %685 : vector<16x32xf32>
    %c1392 = arith.constant 1392 : index
    %c0_210 = arith.constant 0 : index
    %688 = vector.load %arg2[%c1392, %c0_210] : memref<1424x192xf32, #tpu.memory_space<vmem>>, vector<32x4xf32>
    %cst_211 = arith.constant dense<0.000000e+00> : vector<16x4xf32>
    %689 = tpu.matmul %687, %688, %cst_211 {dimension_numbers = #tpu.dot_dimension_numbers<[1], [0], [0], [1], [0, 0, 1, 1], [], []>} : vector<16x32xf32>, vector<32x4xf32>, vector<16x4xf32> -> vector<16x4xf32>
    %c1384 = arith.constant 1384 : index
    %c0_212 = arith.constant 0 : index
    %690 = vector.load %arg2[%c1384, %c0_212] : memref<1424x192xf32, #tpu.memory_space<vmem>>, vector<1x4xf32>
    %691 = vector.broadcast %690 : vector<1x4xf32> to vector<16x4xf32>
    %692 = arith.addf %689, %691 : vector<16x4xf32>
    %693 = vector.shape_cast %692 : vector<16x4xf32> to vector<2x8x4xf32>
    %694 = vector.broadcast %14 : vector<2x1x4xf32> to vector<2x8x4xf32>
    %695 = arith.mulf %693, %694 : vector<2x8x4xf32>
    %696 = vector.broadcast %4 : vector<2x1x4xf32> to vector<2x8x4xf32>
    %697 = arith.addf %695, %696 : vector<2x8x4xf32>
    %c0_213 = arith.constant 0 : index
    %c0_214 = arith.constant 0 : index
    %c0_215 = arith.constant 0 : index
    %698 = vector.load %arg3[%c0_213, %c0_214, %c0_215] : memref<2x8x4xf32, #tpu.memory_space<vmem>>, vector<2x8x4xf32>
    tpu.vector_store %arg3[%c0_213, %c0_214, %c0_215], %697 {strides = array<i32>} : memref<2x8x4xf32, #tpu.memory_space<vmem>>, vector<2x8x4xf32>,
    return
  }
  func.func @transform_0(%arg0: i32) -> (i32, i32, i32) {
    %c0_i32 = arith.constant 0 : i32
    %c0_i32_0 = arith.constant 0 : i32
    %c0_i32_1 = arith.constant 0 : i32
    return %arg0, %c0_i32, %c0_i32_0 : i32, i32, i32
  }
  func.func @transform_1(%arg0: i32) -> (i32, i32) {
    %c0_i32 = arith.constant 0 : i32
    %c0_i32_0 = arith.constant 0 : i32
    %c0_i32_1 = arith.constant 0 : i32
    return %c0_i32, %c0_i32_0 : i32, i32
  }
  func.func @transform_2(%arg0: i32) -> (i32, i32, i32) {
    %c0_i32 = arith.constant 0 : i32
    %c0_i32_0 = arith.constant 0 : i32
    %c0_i32_1 = arith.constant 0 : i32
    return %arg0, %c0_i32, %c0_i32_0 : i32, i32, i32
  }
}

</mosaic_0001>

<bundles_post_ra>
// kernel: _lambda_.1
= control target key start
LH: loop header
LB: loop body
LE: loop exit
PB: predicated region body
PF: predicated region fallthrough
CT: control target
= control target key end

     0   :  { %vm13_vm0 = vcmask 31744   ;;  %vm115_vm5 = vcmask 1043456   ;;  %vm9897_vm6 = vmmov 1   ;;  %s9898_s4 = smov 4   ;;  %s9899_s5 = smov 8   ;;  %vm103_vm8 = vcmask 64512   ;;  %s13914_s0 = inlined_call_operand.vmem [shape: f32[2,8,4], index: 0, kind: input, shape index: {}]   ;;  %s13915_s1 = inlined_call_operand.vmem [shape: f32[1424,192], index: 1, kind: input, shape index: {}]   ;;  %s13916_s2 = inlined_call_operand.vmem [shape: f32[2,8,4], index: 2, kind: output, shape index: {}]  }
   0x1   :  { %v11_v0 = vld [vmem:[%s13914_s0] sm:$0xff]  ;;  %v12_v1 = vld [vmem:[%s13914_s0 + $0x8] sm:$0xff]  ;;  %v107_v51 = vld [vmem:[%s13915_s1 + $0x10] sm:$0xf]  ;;  %vm108_vm9 = vcmask 97280   ;;  %vm198_vm10 = vcmask 261120  }
   0x2   :  { %v14_v2 = vsel %vm13_vm0, %v11_v0, 0.0  ;;  %v21_v3 = vsel %vm13_vm0, %v12_v1, 0.0  ;;  %v106_v50 = vld [vmem:[%s13915_s1] sm:$0xff]  ;;  %vm9083_vm7 = vmpackc.low %vm115_vm5, %vm9897_vm6  ;;  %v206_v53 = vld [vmem:[%s13915_s1 + $0x9a8] sm:$0xff]  ;;  %vm234_vm11 = vcmask 523264   ;;  %s9901_s27 = smov 64  }
   0x3   :  { %v15_v4 = vrot.slane %v14_v2, 4  ;;  %v22_v5 = vrot.slane %v21_v3, 4  ;;  %v9082_v52 = vpack.c.bf16 %v107_v51, %v106_v50  ;;  %v208_v54 = vld [vmem:[%s13915_s1 + $0x9b8] sm:$0xff]  ;;  %v205_v55 = vld [vmem:[%s13915_s1 + $0x9a0] sm:$0xff]  ;;  %v207_v57 = vld [vmem:[%s13915_s1 + $0x9b0] sm:$0xff]  ;;  %s9903_s28 = smov 96  }
   0x4   :  { %v9965_v56 = vpack.c.bf16 %v208_v54, %v206_v53  ;;  %v210_v58 = vld [vmem:[%s13915_s1 + $0x9c8] sm:$0xff]  ;;  %v212_v59 = vld [vmem:[%s13915_s1 + $0x9d8] sm:$0xff]  ;;  %v9976_v60 = vpack.c.bf16 %v207_v57, %v205_v55  ;;  %v209_v62 = vld [vmem:[%s13915_s1 + $0x9c0] sm:$0xff]  ;;  %vm1200_vm12 = vcmask 1041409   ;;  %vm1202_vm13 = vcmask 1042434   ;;  %s9904_s0 = smov 32  }
   0x5   :  { %v16_v6 = vadd.f32 %v15_v4, %v14_v2  ;;  %v23_v7 = vadd.f32 %v22_v5, %v21_v3  ;;  %9084 = vmatprep.subr.msk.bf16.mxu0 %vm9083_vm7, %v9082_v52  ;;  %v9978_v61 = vpack.c.bf16 %v212_v59, %v210_v58  ;;  %v211_v63 = vld [vmem:[%s13915_s1 + $0x9d0] sm:$0xff]  ;;  %v9902_v58 = vmov 1966171168  }
   0x6   :  { %9087 = vmatpush3.bf16.msk.msra.mxu0 %vm9083_vm7, %v9082_v52  ;;  %9089 = vmatprep.subr.bf16.mxu1 %v9965_v56  ;;  %v9989_v3 = vpack.c.bf16 %v211_v63, %v209_v62  ;;  %v322_v59 = vunpack.c.l.s4 %v9902_v58  ;;  %vm1204_vm14 = vcmask 1043459   ;;  %vm1206_vm15 = vcmask 1044484  }
   0x7   :  { %v17_v8 = vrot.slane %v16_v6, 2  ;;  %v24_v9 = vrot.slane %v23_v7, 2  ;;  %13974 = vst [vmem:[#allocation6_spill] sm:$0xff] %v9978_v61  ;;  %9091 = vmatpush1.bf16.msra.mxu1 %v9976_v60 }
   0x8   :  { %13975 = vst [vmem:[#allocation7_spill] sm:$0xff] %v9989_v3  ;;  %9093 = vmatprep.subr.bf16.mxu1 %v9978_v61  ;;  %v323_v62 = vunpack.c.0.s8 %v322_v59 }
   0x9   :  { %v18_v10 = vadd.f32 %v17_v8, %v16_v6  ;;  %v25_v11 = vadd.f32 %v24_v9, %v23_v7 }
   0xb   :  { %v19_v12 = vrot.slane %v18_v10, 1  ;;  %v26_v13 = vrot.slane %v25_v11, 1  ;;  %9095 = vmatpush1.bf16.msra.mxu1 %v9989_v3 }
   0xd   :  { %v20_v14 = vadd.f32 %v19_v12, %v18_v10  ;;  %v27_v15 = vadd.f32 %v26_v13, %v25_v11 }
   0xf   :  { %v9928_v16 = vmul.f32 0.125, %v20_v14  ;;  %v9930_v17 = vmul.f32 0.125, %v27_v15 }
  0x11   :  { %13970 = vst [vmem:[#allocation2_spill] sm:$0xff] %v9928_v16  ;;  %13971 = vst [vmem:[#allocation3_spill] sm:$0xff] %v9930_v17  ;;  %v9933_v18 = vsub.f32 %v11_v0, %v9928_v16  ;;  %v9936_v19 = vsub.f32 %v12_v1, %v9930_v17 }
  0x13   :  { %v33_v20 = vmul.f32 %v9933_v18, %v9933_v18  ;;  %v34_v21 = vmul.f32 %v9936_v19, %v9936_v19 }
  0x15   :  { %v35_v22 = vsel %vm13_vm0, %v33_v20, 0.0  ;;  %v42_v23 = vsel %vm13_vm0, %v34_v21, 0.0  ;;  %v216_v20 = vld [vmem:[%s13915_s1 + $0x9f8] sm:$0xff] }
  0x16   :  { %v36_v24 = vrot.slane %v35_v22, 4  ;;  %v43_v25 = vrot.slane %v42_v23, 4 }
  0x18   :  { %v37_v26 = vadd.f32 %v36_v24, %v35_v22  ;;  %v44_v27 = vadd.f32 %v43_v25, %v42_v23  ;;  %v213_v22 = vld [vmem:[%s13915_s1 + $0x9e0] sm:$0xff]  ;;  %v215_v23 = vld [vmem:[%s13915_s1 + $0x9f0] sm:$0xff]  ;;  %v218_v25 = vld [vmem:[%s13915_s1 + $0xa08] sm:$0xff] }
  0x19   :  { %v10010_v24 = vpack.c.bf16 %v215_v23, %v213_v22 }
  0x1a   :  { %v38_v28 = vrot.slane %v37_v26, 2  ;;  %v45_v29 = vrot.slane %v44_v27, 2 }
  0x1b   :  { %13977 = vst [vmem:[#allocation9_spill] sm:$0xff] %v10010_v24 }
  0x1c   :  { %v39_v30 = vadd.f32 %v38_v28, %v37_v26  ;;  %v46_v31 = vadd.f32 %v45_v29, %v44_v27  ;;  %v220_v26 = vld [vmem:[%s13915_s1 + $0xa18] sm:$0xff]  ;;  %v217_v27 = vld [vmem:[%s13915_s1 + $0xa00] sm:$0xff]  ;;  %v219_v29 = vld [vmem:[%s13915_s1 + $0xa10] sm:$0xff] }
  0x1d   :  { %v10023_v28 = vpack.c.bf16 %v220_v26, %v218_v25 }
  0x1e   :  { %v40_v32 = vrot.slane %v39_v30, 1  ;;  %v47_v33 = vrot.slane %v46_v31, 1 }
  0x1f   :  { %13978 = vst [vmem:[#allocation10_spill] sm:$0xff] %v10023_v28 }
  0x20   :  { %v41_v34 = vadd.f32 %v40_v32, %v39_v30  ;;  %v48_v35 = vadd.f32 %v47_v33, %v46_v31  ;;  %v13917_v30 = vmov 0.0   ;;  %v10029_v31 = vpack.c.bf16 %v219_v29, %v217_v27  ;;  %v194_v32 = vld [vmem:[%s13915_s1 + $0xac0] sm:$0xff] }
  0x21   :  { %305 = vmatprep.mubr.f32.mxu1 %v13917_v30 }
  0x22   :  { %v49_v36 = vmul.f32 0.125, %v41_v34  ;;  %v50_v37 = vmul.f32 0.125, %v48_v35  ;;  %13979 = vst [vmem:[#allocation11_spill] sm:$0xff] %v10029_v31 }
  0x24   :  { %v51_v38 = vadd.f32 1e-05, %v49_v36  ;;  %v52_v39 = vadd.f32 1e-05, %v50_v37  ;;  %v197_v37 = vld [vmem:[%s13915_s1 + $0xab0] sm:$0xff] }
  0x26   :  { %9440 = vrsqrt.f32 %v51_v38  ;;  %vm55_vm1 = vcmp.eq.f32.partialorder %v51_v38, inf  ;;  %v58_v41 = vand.u32 2147483648, %v51_v38  ;;  %vm57_vm2 = vcmp.eq.f32.partialorder %v51_v38, 0.0 }
  0x27   :  { %9442 = vrsqrt.f32 %v52_v39  ;;  %vm62_vm3 = vcmp.eq.f32.partialorder %v52_v39, inf  ;;  %v65_v44 = vand.u32 2147483648, %v52_v39  ;;  %vm64_vm4 = vcmp.eq.f32.partialorder %v52_v39, 0.0 }
  0x30   :  { %v9441_v40 = vpop.eup %9440 }
  0x31   :  { %v9443_v42 = vpop.eup %9442  ;;  %v54_v43 = vmul.f32 %v9441_v40, %v51_v38 }
  0x32   :  { %v61_v45 = vmul.f32 %v9443_v42, %v52_v39 }
  0x33   :  { %v56_v46 = vsel %vm55_vm1, %v51_v38, %v54_v43  ;;  %vm1208_vm1 = vcmask 1045509  }
  0x34   :  { %v9944_v47 = vsel %vm57_vm2, %v58_v41, %v56_v46  ;;  %v63_v48 = vsel %vm62_vm3, %v52_v39, %v61_v45  ;;  %vm1210_vm2 = vcmask 1046534   ;;  %vm1212_vm3 = vcmask 1047559  }
  0x35   :  { %13972 = vst [vmem:[#allocation4_spill] sm:$0xff] %v9944_v47  ;;  %9444 = vrcp.f32 %v9944_v47  ;;  %v9947_v49 = vsel %vm64_vm4, %v65_v44, %v63_v48  ;;  %v224_v44 = vlaneseq  ;;  %v10064_v48 = vld [vmem:[%s13915_s1 + $0x990] ss:$8 sm:$0x3]  ;;  %vm1480_vm4 = vcmask 130048  }
  0x36   :  { %13973 = vst [vmem:[#allocation5_spill] sm:$0xff] %v9947_v49  ;;  %9446 = vrcp.f32 %v9947_v49 }
  0x37   :  { %v10056_v45 = vshrl.u32 %v224_v44, 7 }
  0x39   :  { %v10059_v46 = vsub.s32 0, %v10056_v45  ;;  %v10079_v63 = vsub.s32 %v323_v62, %v10056_v45 }
  0x3b   :  { %13982 = vst [vmem:[#allocation14_spill] sm:$0xff] %v10059_v46  ;;  %v10068_v50 = vrot.slane %v10064_v48, %v10059_v46 }
  0x3d   :  { %13983 = vst [vmem:[#allocation15_spill] sm:$0xff] %v10068_v50 }
  0x3f   :  { %v9445_v0 = vpop.eup %9444 }
  0x40   :  { %v9447_v1 = vpop.eup %9446  ;;  %v68_v2 = vmul.f32 %v9445_v0, %v9933_v18 }
  0x41   :  { %v70_v4 = vmul.f32 %v9447_v1, %v9936_v19  ;;  %v214_v19 = vld [vmem:[%s13915_s1 + $0x9e8] sm:$0xff] }
  0x42   :  { %87 = vrot.lane.b32.xlu0 %v68_v2, %s9898_s4  ;;  %v80_v5 = vrot.slane %v68_v2, 1  ;;  %v73_v7 = vrot.slane %v68_v2, 7  ;;  %v10002_v21 = vpack.c.bf16 %v216_v20, %v214_v19 }
  0x43   :  { %v81_v6 = vrot.slane %v70_v4, 1  ;;  %v74_v10 = vrot.slane %v70_v4, 7 }
  0x44   :  { %95 = vrot.lane.b32.xlu1 %v80_v5, %s9899_s5  ;;  %13976 = vst [vmem:[#allocation8_spill] sm:$0xff] %v10002_v21  ;;  %9097 = vmatprep.subr.bf16.mxu1 %v10002_v21 }
  0x45   :  { %9099 = vmatpush1.bf16.msra.mxu1 %v10010_v24 }
  0x46   :  { %89 = vrot.lane.b32.xlu0 %v70_v4, %s9898_s4  ;;  %9101 = vmatprep.subr.bf16.mxu1 %v10023_v28 }
  0x48   :  { %97 = vrot.lane.b32.xlu1 %v81_v6, %s9899_s5 }
  0x49   :  { %9103 = vmatpush1.bf16.msra.mxu1 %v10029_v31 }
  0xb4   :  { %v88_v8 = vpop.permute.xlu0 %87 }
  0xb5   :  { %v101_v9 = vsel %vm13_vm0, %v73_v7, %v88_v8 }
  0xb6   :  { %v96_v11 = vpop.permute.xlu1 %95 }
  0xb7   :  { %v104_v12 = vsel %vm103_vm8, %v101_v9, %v96_v11 }
  0xb8   :  { %8736 = vmatprep.mubr.msk.f32.mxu0 %vm108_vm9, %v104_v12  ;;  %v90_v13 = vpop.permute.xlu0 %89 }
  0xb9   :  { %v102_v14 = vsel %vm13_vm0, %v74_v10, %v90_v13 }
  0xba   :  { %v98_v15 = vpop.permute.xlu1 %97 }
  0xbb   :  { %v105_v18 = vsel %vm103_vm8, %v102_v14, %v98_v15 }
  0xbc   :  { %8737 = vmatmul.mubr.msk.f32.vlgmr.msra.gmra.mrb[0].mxu0 %vm108_vm9, %v105_v18 }
 0x18f   :  { %v8738_v33 = vpop.f32.mrb[0].mxu0 }
 0x190   :  { %v10036_v34 = vadd.f32 %v8738_v33, %v194_v32  ;;  %v185_v35 = vpop.f32.mrb[1].mxu0 }
 0x191   :  { %v10038_v36 = vadd.f32 %v194_v32, %v185_v35 }
 0x192   :  { %13980 = vst [vmem:[#allocation12_spill] sm:$0xff] %v10036_v34  ;;  %v200_v39 = vsel %vm198_vm10, %v10036_v34, 0.0 }
 0x193   :  { %13981 = vst [vmem:[#allocation13_spill] sm:$0xff] %v10038_v36  ;;  %v199_v38 = vsel %vm198_vm10, %v10038_v36, 0.0  ;;  %v202_v42 = vmul.f32 5.656854, %v200_v39 }
 0x194   :  { %v201_v40 = vmul.f32 5.656854, %v199_v38 }
 0x195   :  { %v10052_v43 = vadd.f32 %v202_v42, %v197_v37 }
 0x196   :  { %v10047_v41 = vadd.f32 %v201_v40, %v197_v37 }
 0x198   :  { %8494 = vmatmul.mubr.msk.f32.vlgmr.msra.gmra.mrb[0].mxu1 %vm234_vm11, %v10047_v41 }
 0x199   :  { %311 = vmatprep.mubr.f32.mxu1 %v13917_v30 }
 0x19c   :  { %8495 = vmatmul.mubr.msk.f32.gmra.mrb[2].mxu1 %vm234_vm11, %v10052_v43 }
 0x26b   :  { %v307_v51 = vpop.f32.mrb[0].mxu1 }
 0x26c   :  { %v308_v52 = vadd.f32 %v307_v51, %v10068_v50  ;;  %v10071_v53 = vpop.f32.mrb[1].mxu1 }
 0x26e   :  { %498 = vrot.lane.b32.xlu0 %v308_v52, %s9901_s27  ;;  %v327_v0 = vrot.slane %v308_v52, %v10079_v63  ;;  %v320_v2 = vcombine.high %v308_v52, %v308_v52 }
 0x26f   :  { %v313_v54 = vpop.f32.mrb[2].mxu1 }
 0x270   :  { %v314_v55 = vadd.f32 %v313_v54, %v10068_v50  ;;  %v10075_v57 = vpop.f32.mrb[3].mxu1  ;;  %v335_v1 = vcombine.high %v327_v0, %v327_v0  ;;  %v343_v4 = vrot.slane %v327_v0, %v10079_v63  ;;  %v334_v7 = vrot.slane %v320_v2, %v10079_v63 }
 0x272   :  { %500 = vrot.lane.b32.xlu1 %v314_v55, %s9901_s27  ;;  %v376_v5 = vrot.slane %v314_v55, %v10079_v63  ;;  %v357_v6 = vrot.slane %v335_v1, %v10079_v63  ;;  %v421_v8 = vrot.slane %v343_v4, %v10059_v46  ;;  %v365_v11 = vcombine.high %v343_v4, %v343_v4 }
 0x273   :  { %v336_v18 = vcombine.high %v334_v7, %v334_v7  ;;  %v350_v20 = vrot.slane %v334_v7, %v10079_v63  ;;  %v369_v29 = vcombine.high %v314_v55, %v314_v55 }
 0x274   :  { %v384_v9 = vcombine.high %v376_v5, %v376_v5  ;;  %v425_v10 = vrot.slane %v357_v6, %v10059_v46  ;;  %v367_v12 = vcombine.high %v357_v6, %v357_v6  ;;  %v392_v19 = vrot.slane %v376_v5, %v10079_v63 }
 0x275   :  { %v429_v22 = vrot.slane %v365_v11, %v10059_v46  ;;  %v364_v33 = vrot.slane %v336_v18, %v10079_v63  ;;  %v437_v37 = vrot.slane %v350_v20, %v10059_v46  ;;  %v383_v42 = vrot.slane %v369_v29, %v10079_v63 }
 0x276   :  { %v433_v23 = vrot.slane %v367_v12, %v10059_v46  ;;  %v406_v25 = vrot.slane %v384_v9, %v10079_v63  ;;  %v414_v38 = vcombine.high %v392_v19, %v392_v19  ;;  %v366_v54 = vcombine.high %v350_v20, %v350_v20 }
 0x277   :  { %v441_v44 = vrot.slane %v364_v33, %v10059_v46  ;;  %v385_v59 = vcombine.high %v383_v42, %v383_v42  ;;  %v399_v1 = vrot.slane %v383_v42, %v10079_v63  ;;  %v453_v5 = vrot.slane %v392_v19, %v10059_v46 }
 0x278   :  { %v457_v35 = vrot.slane %v406_v25, %v10059_v46  ;;  %v461_v51 = vrot.slane %v414_v38, %v10059_v46  ;;  %v416_v52 = vcombine.high %v406_v25, %v406_v25  ;;  %v445_v0 = vrot.slane %v366_v54, %v10059_v46 }
 0x279   :  { %v469_v6 = vrot.slane %v399_v1, %v10059_v46  ;;  %v413_v7 = vrot.slane %v385_v59, %v10079_v63  ;;  %v415_v11 = vcombine.high %v399_v1, %v399_v1  ;;  %v10156_v20 = vsub.s32 1, %v10056_v45 }
 0x27a   :  { %v465_v62 = vrot.slane %v416_v52, %v10059_v46 }
 0x27b   :  { %v473_v12 = vrot.slane %v413_v7, %v10059_v46  ;;  %v417_v19 = vcombine.high %v413_v7, %v413_v7  ;;  %13984 = vst [vmem:[#allocation16_spill] sm:$0xff] %v10156_v20  ;;  %v477_v25 = vrot.slane %v415_v11, %v10059_v46 }
 0x27d   :  { %v481_v29 = vrot.slane %v417_v19, %v10059_v46 }
 0x2e0   :  { %v499_v13 = vpop.permute.xlu0 %498 }
 0x2e1   :  { %v10088_v14 = vmul.f32 %v499_v13, %v421_v8  ;;  %v10090_v15 = vmul.f32 %v499_v13, %v425_v10  ;;  %v10101_v26 = vmul.f32 %v499_v13, %v429_v22  ;;  %v10103_v27 = vmul.f32 %v499_v13, %v433_v23 }
 0x2e2   :  { %v10114_v40 = vmul.f32 %v499_v13, %v437_v37  ;;  %v10125_v58 = vmul.f32 %v499_v13, %v441_v44  ;;  %v10136_v4 = vmul.f32 %v499_v13, %v445_v0  ;;  %v368_v8 = vcombine.high %v364_v33, %v364_v33 }
 0x2e3   :  { %536 = vrot.lane.b32.xlu0 %v10088_v14, %s9903_s28  ;;  %538 = vrot.lane.b32.xlu1 %v10090_v15, %s9903_s28  ;;  %v10170_v33 = vrot.slane %v10064_v48, %v10156_v20 }
 0x2e4   :  { %v501_v32 = vpop.permute.xlu1 %500  ;;  %v449_v18 = vrot.slane %v368_v8, %v10059_v46 }
 0x2e5   :  { %v10112_v39 = vmul.f32 %v501_v32, %v457_v35  ;;  %v10123_v55 = vmul.f32 %v501_v32, %v461_v51  ;;  %v10134_v2 = vmul.f32 %v501_v32, %v465_v62  ;;  %v10145_v9 = vmul.f32 %v501_v32, %v469_v6  ;;  %13985 = vst [vmem:[#allocation17_spill] sm:$0xff] %v10170_v33 }
 0x2e6   :  { %v10147_v10 = vmul.f32 %v501_v32, %v453_v5  ;;  %v10158_v22 = vmul.f32 %v501_v32, %v473_v12  ;;  %v10160_v23 = vmul.f32 %v499_v13, %v449_v18  ;;  %v10172_v45 = vmul.f32 %v501_v32, %v477_v25 }
 0x2e7   :  { %540 = vrot.lane.b32.xlu0 %v10101_v26, %s9903_s28  ;;  %542 = vrot.lane.b32.xlu1 %v10103_v27, %s9903_s28  ;;  %v10174_v35 = vmul.f32 %v501_v32, %v481_v29  ;;  %v10182_v13 = vadd.f32 %v10071_v53, %v10170_v33  ;;  %v10186_v37 = vadd.f32 %v10075_v57, %v10170_v33 }
 0x2eb   :  { %554 = vrot.lane.b32.xlu0 %v10112_v39, %s9903_s28  ;;  %544 = vrot.lane.b32.xlu1 %v10114_v40, %s9903_s28 }
 0x2ef   :  { %556 = vrot.lane.b32.xlu0 %v10123_v55, %s9903_s28  ;;  %546 = vrot.lane.b32.xlu1 %v10125_v58, %s9903_s28 }
 0x2f3   :  { %558 = vrot.lane.b32.xlu0 %v10134_v2, %s9903_s28  ;;  %548 = vrot.lane.b32.xlu1 %v10136_v4, %s9903_s28 }
 0x2f7   :  { %560 = vrot.lane.b32.xlu0 %v10145_v9, %s9903_s28  ;;  %552 = vrot.lane.b32.xlu1 %v10147_v10, %s9903_s28 }
 0x2fb   :  { %562 = vrot.lane.b32.xlu0 %v10158_v22, %s9903_s28  ;;  %550 = vrot.lane.b32.xlu1 %v10160_v23, %s9903_s28 }
 0x2ff   :  { %564 = vrot.lane.b32.xlu0 %v10172_v45, %s9903_s28  ;;  %566 = vrot.lane.b32.xlu1 %v10174_v35, %s9903_s28 }
 0x303   :  { %1050 = vrot.lane.b32.xlu0 %v10182_v13, %s9903_s28  ;;  %1052 = vrot.lane.b32.xlu1 %v10186_v37, %s9903_s28 }
 0x355   :  { %v537_v48 = vpop.permute.xlu0 %536  ;;  %v539_v32 = vpop.permute.xlu1 %538 }
 0x356   :  { %v584_v38 = vadd.f32 %v537_v48, %v10088_v14  ;;  %v585_v42 = vadd.f32 %v539_v32, %v10090_v15 }
 0x358   :  { %v600_v44 = vmul.f32 0.70710677, %v584_v38  ;;  %v601_v51 = vmul.f32 0.70710677, %v585_v42 }
 0x359   :  { %v541_v53 = vpop.permute.xlu0 %540  ;;  %v543_v52 = vpop.permute.xlu1 %542 }
 0x35a   :  { %v616_v54 = vsel %vm198_vm10, %v600_v44, -inf  ;;  %v623_v57 = vsel %vm198_vm10, %v601_v51, -inf  ;;  %v586_v59 = vadd.f32 %v541_v53, %v10101_v26  ;;  %v587_v62 = vadd.f32 %v543_v52, %v10103_v27 }
 0x35b   :  { %v617_v0 = vrot.slane %v616_v54, 4  ;;  %v624_v1 = vrot.slane %v623_v57, 4 }
 0x35c   :  { %v10198_v5 = vmul.f32 0.70710677, %v586_v59  ;;  %v10200_v6 = vmul.f32 0.70710677, %v587_v62 }
 0x35d   :  { %v618_v14 = vmax.f32 %v616_v54, %v617_v0  ;;  %v625_v15 = vmax.f32 %v623_v57, %v624_v1  ;;  %v555_v7 = vpop.permute.xlu0 %554  ;;  %v545_v8 = vpop.permute.xlu1 %544 }
 0x35e   :  { %v630_v11 = vsel %vm198_vm10, %v10198_v5, -inf  ;;  %v637_v12 = vsel %vm198_vm10, %v10200_v6, -inf  ;;  %v593_v26 = vadd.f32 %v555_v7, %v10112_v39  ;;  %v588_v27 = vadd.f32 %v545_v8, %v10114_v40 }
 0x35f   :  { %v619_v18 = vrot.slane %v618_v14, 2  ;;  %v626_v19 = vrot.slane %v625_v15, 2  ;;  %v631_v25 = vrot.slane %v630_v11, 4  ;;  %v638_v29 = vrot.slane %v637_v12, 4 }
 0x360   :  { %v10208_v48 = vmul.f32 0.70710677, %v593_v26  ;;  %v10210_v32 = vmul.f32 0.70710677, %v588_v27 }
 0x361   :  { %v620_v38 = vmax.f32 %v618_v14, %v619_v18  ;;  %v627_v42 = vmax.f32 %v625_v15, %v626_v19  ;;  %v632_v53 = vmax.f32 %v630_v11, %v631_v25  ;;  %v639_v52 = vmax.f32 %v637_v12, %v638_v29  ;;  %v557_v54 = vpop.permute.xlu0 %556  ;;  %v547_v57 = vpop.permute.xlu1 %546 }
 0x362   :  { %v679_v59 = vsel %vm198_vm10, %v10208_v48, -inf  ;;  %v644_v39 = vsel %vm198_vm10, %v10210_v32, -inf  ;;  %v594_v40 = vadd.f32 %v557_v54, %v10123_v55  ;;  %v589_v62 = vadd.f32 %v547_v57, %v10125_v58 }
 0x363   :  { %v621_v0 = vrot.slane %v620_v38, 1  ;;  %v628_v1 = vrot.slane %v627_v42, 1  ;;  %v633_v7 = vrot.slane %v632_v53, 2  ;;  %v640_v8 = vrot.slane %v639_v52, 2 }
 0x364   :  { %v680_v14 = vrot.slane %v679_v59, 4  ;;  %v645_v15 = vrot.slane %v644_v39, 4  ;;  %v10218_v11 = vmul.f32 0.70710677, %v594_v40  ;;  %v10220_v12 = vmul.f32 0.70710677, %v589_v62 }
 0x365   :  { %v622_v26 = vmax.f32 %v620_v38, %v621_v0  ;;  %v629_v27 = vmax.f32 %v627_v42, %v628_v1  ;;  %v634_v18 = vmax.f32 %v632_v53, %v633_v7  ;;  %v641_v19 = vmax.f32 %v639_v52, %v640_v8  ;;  %v559_v54 = vpop.permute.xlu0 %558  ;;  %v549_v8 = vpop.permute.xlu1 %548 }
 0x366   :  { %v681_v25 = vmax.f32 %v679_v59, %v680_v14  ;;  %v646_v29 = vmax.f32 %v644_v39, %v645_v15  ;;  %v686_v55 = vsel %vm198_vm10, %v10218_v11, -inf  ;;  %v651_v58 = vsel %vm198_vm10, %v10220_v12, -inf }
 0x367   :  { %v728_v57 = vsub.f32 %v600_v44, %v622_v26  ;;  %v729_v30 = vsub.f32 %v601_v51, %v629_v27  ;;  %v635_v16 = vrot.slane %v634_v18, 1  ;;  %v642_v40 = vrot.slane %v641_v19, 1 }
 0x368   :  { %v682_v17 = vrot.slane %v681_v25, 2  ;;  %v647_v62 = vrot.slane %v646_v29, 2  ;;  %v687_v47 = vrot.slane %v686_v55, 4  ;;  %v652_v38 = vrot.slane %v651_v58, 4 }
 0x369   :  { %v744_v42 = vmul.f32 1.442695, %v728_v57  ;;  %v746_v53 = vmul.f32 1.442695, %v729_v30  ;;  %v636_v52 = vmax.f32 %v634_v18, %v635_v16  ;;  %v643_v59 = vmax.f32 %v641_v19, %v642_v40  ;;  %v561_v57 = vpop.permute.xlu0 %560  ;;  %v553_v40 = vpop.permute.xlu1 %552 }
 0x36a   :  { %v683_v39 = vmax.f32 %v681_v25, %v682_v17  ;;  %v648_v0 = vmax.f32 %v646_v29, %v647_v62  ;;  %v688_v1 = vmax.f32 %v686_v55, %v687_v47  ;;  %v653_v7 = vmax.f32 %v651_v58, %v652_v38 }
 0x36b   :  { %9448 = vpow2.f32 %v744_v42  ;;  %v730_v14 = vsub.f32 %v10198_v5, %v636_v52  ;;  %v731_v44 = vsub.f32 %v10200_v6, %v643_v59  ;;  %v595_v51 = vadd.f32 %v559_v54, %v10134_v2 }
 0x36c   :  { %9450 = vpow2.f32 %v746_v53  ;;  %v684_v15 = vrot.slane %v683_v39, 1  ;;  %v649_v26 = vrot.slane %v648_v0, 1  ;;  %v689_v27 = vrot.slane %v688_v1, 2 }
 0x36d   :  { %v748_v30 = vmul.f32 1.442695, %v730_v14  ;;  %v750_v16 = vmul.f32 1.442695, %v731_v44  ;;  %v654_v18 = vrot.slane %v653_v7, 2  ;;  %v590_v17 = vadd.f32 %v549_v8, %v10136_v4 }
 0x36e   :  { %v685_v47 = vmax.f32 %v683_v39, %v684_v15  ;;  %v650_v19 = vmax.f32 %v648_v0, %v649_v26  ;;  %v690_v25 = vmax.f32 %v688_v1, %v689_v27  ;;  %v10230_v29 = vmul.f32 0.70710677, %v595_v51 }
 0x36f   :  { %9452 = vpow2.f32 %v748_v30  ;;  %v655_v5 = vmax.f32 %v653_v7, %v654_v18  ;;  %v10232_v6 = vmul.f32 0.70710677, %v590_v17  ;;  %v596_v2 = vadd.f32 %v561_v57, %v10145_v9 }
 0x370   :  { %9454 = vpow2.f32 %v750_v16  ;;  %v737_v55 = vsub.f32 %v10208_v48, %v685_v47  ;;  %v732_v58 = vsub.f32 %v10210_v32, %v650_v19  ;;  %v691_v54 = vrot.slane %v690_v25, 1 }
 0x371   :  { %v656_v62 = vrot.slane %v655_v5, 1  ;;  %v693_v4 = vsel %vm198_vm10, %v10230_v29, -inf  ;;  %v658_v38 = vsel %vm198_vm10, %v10232_v6, -inf  ;;  %v10241_v42 = vmul.f32 0.70710677, %v596_v2 }
 0x372   :  { %v762_v53 = vmul.f32 1.442695, %v737_v55  ;;  %v752_v52 = vmul.f32 1.442695, %v732_v58  ;;  %v692_v59 = vmax.f32 %v690_v25, %v691_v54  ;;  %v694_v9 = vrot.slane %v693_v4, 4 }
 0x373   :  { %v657_v39 = vmax.f32 %v655_v5, %v656_v62  ;;  %v659_v0 = vrot.slane %v658_v38, 4  ;;  %v700_v48 = vsel %vm198_vm10, %v10241_v42, -inf  ;;  %v592_v32 = vadd.f32 %v553_v40, %v10147_v10 }
 0x374   :  { %9456 = vpow2.f32 %v762_v53  ;;  %v738_v1 = vsub.f32 %v10218_v11, %v692_v59  ;;  %v695_v7 = vmax.f32 %v693_v4, %v694_v9  ;;  %v701_v8 = vrot.slane %v700_v48, 4 }
 0x375   :  { %v10247_v14 = vpop.eup %9448  ;;  %9458 = vpow2.f32 %v752_v52  ;;  %v733_v44 = vsub.f32 %v10220_v12, %v657_v39  ;;  %v660_v51 = vmax.f32 %v658_v38, %v659_v0  ;;  %v10250_v15 = vmul.f32 0.70710677, %v592_v32 }
 0x376   :  { %v10252_v26 = vpop.eup %9450  ;;  %v776_v27 = vsel %vm198_vm10, %v10247_v14, 0.0  ;;  %v764_v57 = vmul.f32 1.442695, %v738_v1  ;;  %v696_v10 = vrot.slane %v695_v7, 2  ;;  %v702_v30 = vmax.f32 %v700_v48, %v701_v8 }
 0x377   :  { %v777_v16 = vrot.slane %v776_v27, 4  ;;  %v783_v11 = vsel %vm198_vm10, %v10252_v26, 0.0  ;;  %v754_v18 = vmul.f32 1.442695, %v733_v44  ;;  %v661_v17 = vrot.slane %v660_v51, 2 }
 0x378   :  { %v784_v47 = vrot.slane %v783_v11, 4  ;;  %9460 = vpow2.f32 %v764_v57  ;;  %v697_v12 = vmax.f32 %v695_v7, %v696_v10  ;;  %v703_v19 = vrot.slane %v702_v30, 2 }
 0x379   :  { %v10258_v25 = vpop.eup %9452  ;;  %v778_v5 = vadd.f32 %v777_v16, %v776_v27  ;;  %9462 = vpow2.f32 %v754_v18  ;;  %v662_v2 = vmax.f32 %v660_v51, %v661_v17  ;;  %v672_v55 = vsel %vm198_vm10, %v10250_v15, -inf }
 0x37a   :  { %v10262_v58 = vpop.eup %9454  ;;  %v785_v54 = vadd.f32 %v784_v47, %v783_v11  ;;  %v790_v40 = vsel %vm198_vm10, %v10258_v25, 0.0  ;;  %v698_v62 = vrot.slane %v697_v12, 1  ;;  %v704_v4 = vmax.f32 %v702_v30, %v703_v19 }
 0x37b   :  { %v779_v38 = vrot.slane %v778_v5, 2  ;;  %v791_v53 = vrot.slane %v790_v40, 4  ;;  %v797_v52 = vsel %vm198_vm10, %v10262_v58, 0.0  ;;  %v663_v59 = vrot.slane %v662_v2, 1 }
 0x37c   :  { %v786_v9 = vrot.slane %v785_v54, 2  ;;  %v798_v39 = vrot.slane %v797_v52, 4  ;;  %v699_v0 = vmax.f32 %v697_v12, %v698_v62  ;;  %v705_v48 = vrot.slane %v704_v4, 1 }
 0x37d   :  { %v780_v32 = vadd.f32 %v779_v38, %v778_v5  ;;  %v792_v1 = vadd.f32 %v791_v53, %v790_v40  ;;  %v664_v7 = vmax.f32 %v662_v2, %v663_v59  ;;  %v673_v8 = vrot.slane %v672_v55, 4 }
 0x37e   :  { %v10268_v44 = vpop.eup %9456  ;;  %v787_v51 = vadd.f32 %v786_v9, %v785_v54  ;;  %v799_v27 = vadd.f32 %v798_v39, %v797_v52  ;;  %v739_v57 = vsub.f32 %v10230_v29, %v699_v0  ;;  %v706_v10 = vmax.f32 %v704_v4, %v705_v48 }
 0x37f   :  { %v10271_v30 = vpop.eup %9458  ;;  %v781_v16 = vrot.slane %v780_v32, 1  ;;  %v793_v11 = vrot.slane %v792_v1, 2  ;;  %v839_v18 = vsel %vm198_vm10, %v10268_v44, 0.0  ;;  %v734_v17 = vsub.f32 %v10232_v6, %v664_v7 }
 0x380   :  { %v788_v47 = vrot.slane %v787_v51, 1  ;;  %v800_v12 = vrot.slane %v799_v27, 2  ;;  %v840_v19 = vrot.slane %v839_v18, 4  ;;  %v804_v5 = vsel %vm198_vm10, %v10271_v30, 0.0 }
 0x381   :  { %v782_v2 = vadd.f32 %v781_v16, %v780_v32  ;;  %v794_v54 = vadd.f32 %v793_v11, %v792_v1  ;;  %v805_v40 = vrot.slane %v804_v5, 4  ;;  %v766_v29 = vmul.f32 1.442695, %v739_v57  ;;  %v563_v1 = vpop.permute.xlu0 %562 }
 0x382   :  { %v10278_v62 = vpop.eup %9460  ;;  %v789_v4 = vadd.f32 %v788_v47, %v787_v51  ;;  %v801_v38 = vadd.f32 %v800_v12, %v799_v27  ;;  %v841_v53 = vadd.f32 %v840_v19, %v839_v18  ;;  %v756_v52 = vmul.f32 1.442695, %v734_v17 }
 0x383   :  { %v10280_v59 = vpop.eup %9462  ;;  %9464 = vrcp.f32 %v782_v2  ;;  %v795_v6 = vrot.slane %v794_v54, 1  ;;  %v806_v9 = vadd.f32 %v805_v40, %v804_v5  ;;  %v846_v39 = vsel %vm198_vm10, %v10278_v62, 0.0  ;;  %v551_v40 = vpop.permute.xlu1 %550 }
 0x384   :  { %9466 = vrcp.f32 %v789_v4  ;;  %v802_v0 = vrot.slane %v801_v38, 1  ;;  %v842_v48 = vrot.slane %v841_v53, 2  ;;  %v847_v32 = vrot.slane %v846_v39, 4 }
 0x385   :  { %v796_v7 = vadd.f32 %v795_v6, %v794_v54  ;;  %v807_v57 = vrot.slane %v806_v9, 2  ;;  %v811_v51 = vsel %vm198_vm10, %v10280_v59, 0.0  ;;  %9468 = vpow2.f32 %v766_v29 }
 0x386   :  { %v803_v27 = vadd.f32 %v802_v0, %v801_v38  ;;  %v843_v16 = vadd.f32 %v842_v48, %v841_v53  ;;  %v848_v11 = vadd.f32 %v847_v32, %v846_v39  ;;  %v812_v18 = vrot.slane %v811_v51, 4  ;;  %v565_v39 = vpop.permute.xlu0 %564 }
 0x387   :  { %9470 = vrcp.f32 %v796_v7  ;;  %v808_v17 = vadd.f32 %v807_v57, %v806_v9  ;;  %v740_v47 = vsub.f32 %v10241_v42, %v706_v10  ;;  %v674_v12 = vmax.f32 %v672_v55, %v673_v8 }
 0x388   :  { %9472 = vrcp.f32 %v803_v27  ;;  %v844_v19 = vrot.slane %v843_v16, 1  ;;  %v849_v5 = vrot.slane %v848_v11, 2  ;;  %v813_v2 = vadd.f32 %v812_v18, %v811_v51 }
 0x389   :  { %v809_v54 = vrot.slane %v808_v17, 1  ;;  %9474 = vpow2.f32 %v756_v52  ;;  %v768_v4 = vmul.f32 1.442695, %v740_v47  ;;  %v675_v6 = vrot.slane %v674_v12, 2 }
 0x38a   :  { %v845_v49 = vadd.f32 %v844_v19, %v843_v16  ;;  %v850_v29 = vadd.f32 %v849_v5, %v848_v11  ;;  %v814_v38 = vrot.slane %v813_v2, 2  ;;  %v597_v53 = vadd.f32 %v563_v1, %v10158_v22 }
 0x38b   :  { %v810_v0 = vadd.f32 %v809_v54, %v808_v17  ;;  %9476 = vpow2.f32 %v768_v4  ;;  %v676_v9 = vmax.f32 %v674_v12, %v675_v6  ;;  %v591_v42 = vadd.f32 %v551_v40, %v10160_v23 }
 0x38c   :  { %9478 = vrcp.f32 %v845_v49  ;;  %v851_v55 = vrot.slane %v850_v29, 1  ;;  %v815_v8 = vadd.f32 %v814_v38, %v813_v2  ;;  %v10289_v10 = vmul.f32 0.70710677, %v597_v53 }
 0x38d   :  { %v9465_v48 = vpop.eup %9464  ;;  %9480 = vrcp.f32 %v810_v0  ;;  %v677_v52 = vrot.slane %v676_v9, 1  ;;  %v10291_v32 = vmul.f32 0.70710677, %v591_v42  ;;  %v10294_v7 = vadd.f32 %v565_v39, %v10172_v45 }
 0x38e   :  { %v9467_v22 = vpop.eup %9466  ;;  %v10297_v1 = vmul.f32 %v9465_v48, %v10247_v14  ;;  %v852_v57 = vadd.f32 %v851_v55, %v850_v29  ;;  %v816_v51 = vrot.slane %v815_v8, 1  ;;  %v707_v49 = vsel %vm198_vm10, %v10289_v10, -inf }
 0x38f   :  { %v10301_v23 = vpop.eup %9468  ;;  %v10304_v27 = vmul.f32 %v9467_v22, %v10252_v26  ;;  %v678_v16 = vmax.f32 %v676_v9, %v677_v52  ;;  %v708_v11 = vrot.slane %v707_v49, 4  ;;  %v10308_v45 = vsel %vm198_vm10, %v10291_v32, -inf }
 0x390   :  { %v920_v14 = vmul.f32 %v10297_v1, %v10182_v13  ;;  %9482 = vrcp.f32 %v852_v57  ;;  %v817_v18 = vadd.f32 %v816_v51, %v815_v8  ;;  %v853_v17 = vsel %vm198_vm10, %v10301_v23, 0.0 }
 0x391   :  { %v9471_v47 = vpop.eup %9470  ;;  %v921_v12 = vmul.f32 %v10304_v27, %v10182_v13  ;;  %v854_v26 = vrot.slane %v853_v17, 4  ;;  %v736_v19 = vsub.f32 %v10250_v15, %v678_v16  ;;  %v709_v5 = vmax.f32 %v707_v49, %v708_v11 }
 0x392   :  { %v9473_v2 = vpop.eup %9472  ;;  %v936_v40 = vsel %vm198_vm10, %v920_v14, 0.0  ;;  %v10319_v54 = vmul.f32 %v9471_v47, %v10258_v25  ;;  %9484 = vrcp.f32 %v817_v18  ;;  %v666_v4 = vrot.slane %v10308_v45, 4 }
 0x393   :  { %v10322_v6 = vpop.eup %9474  ;;  %v937_v29 = vrot.slane %v936_v40, 4  ;;  %v943_v38 = vsel %vm198_vm10, %v921_v12, 0.0  ;;  %v10326_v53 = vmul.f32 %v9473_v2, %v10262_v58  ;;  %v855_v39 = vadd.f32 %v854_v26, %v853_v17 }
 0x394   :  { %v944_v15 = vrot.slane %v943_v38, 4  ;;  %v922_v0 = vmul.f32 %v10319_v54, %v10182_v13  ;;  %v818_v25 = vsel %vm198_vm10, %v10322_v6, 0.0  ;;  %v760_v9 = vmul.f32 1.442695, %v736_v19 }
 0x395   :  { %v10332_v42 = vpop.eup %9476  ;;  %v938_v55 = vadd.f32 %v937_v29, %v936_v40  ;;  %v923_v8 = vmul.f32 %v10326_v53, %v10182_v13  ;;  %v856_v48 = vrot.slane %v855_v39, 2  ;;  %v819_v52 = vrot.slane %v818_v25, 4 }
 0x396   :  { %v9479_v22 = vpop.eup %9478  ;;  %v945_v58 = vadd.f32 %v944_v15, %v943_v38  ;;  %v950_v57 = vsel %vm198_vm10, %v922_v0, 0.0  ;;  %v860_v51 = vsel %vm198_vm10, %v10332_v42, 0.0  ;;  %9486 = vpow2.f32 %v760_v9 }
 0x397   :  { %v9481_v49 = vpop.eup %9480  ;;  %v939_v16 = vrot.slane %v938_v55, 2  ;;  %v951_v11 = vrot.slane %v950_v57, 4  ;;  %v957_v14 = vsel %vm198_vm10, %v923_v8, 0.0  ;;  %v10341_v18 = vmul.f32 %v9479_v22, %v10268_v44 }
 0x398   :  { %v946_v17 = vrot.slane %v945_v58, 2  ;;  %v958_v47 = vrot.slane %v957_v14, 4  ;;  %v10344_v12 = vmul.f32 %v9481_v49, %v10271_v30  ;;  %v857_v26 = vadd.f32 %v856_v48, %v855_v39 }
 0x399   :  { %v10346_v19 = vadd.f32 %v939_v16, %v938_v55  ;;  %v10348_v2 = vadd.f32 %v951_v11, %v950_v57  ;;  %v929_v40 = vmul.f32 %v10341_v18, %v10186_v37  ;;  %v820_v29 = vadd.f32 %v819_v52, %v818_v25 }
 0x39a   :  { %v9483_v38 = vpop.eup %9482  ;;  %v10352_v15 = vadd.f32 %v946_v17, %v945_v58  ;;  %v10354_v0 = vadd.f32 %v958_v47, %v957_v14  ;;  %v10358_v44 = vmul.f32 %v10344_v12, %v10182_v13  ;;  %v858_v30 = vrot.slane %v857_v26, 1 }
 0x39b   :  { %v999_v9 = vsel %vm198_vm10, %v929_v40, 0.0  ;;  %v10363_v55 = vmul.f32 %v9483_v38, %v10278_v62  ;;  %v821_v8 = vrot.slane %v820_v29, 2  ;;  %v861_v22 = vrot.slane %v860_v51, 4 }
 0x39c   :  { %v9485_v48 = vpop.eup %9484  ;;  %v1000_v25 = vrot.slane %v999_v9, 4  ;;  %v859_v52 = vadd.f32 %v858_v30, %v857_v26  ;;  %v710_v58 = vrot.slane %v709_v5, 2  ;;  %v667_v11 = vmax.f32 %v10308_v45, %v666_v4 }
 0x39d   :  { %v930_v57 = vmul.f32 %v10363_v55, %v10186_v37  ;;  %v10368_v49 = vmul.f32 %v9485_v48, %v10280_v59  ;;  %v822_v16 = vadd.f32 %v821_v8, %v820_v29  ;;  %v862_v17 = vadd.f32 %v861_v22, %v860_v51  ;;  %v567_v8 = vpop.permute.xlu1 %566 }
 0x39e   :  { %v1001_v14 = vadd.f32 %v1000_v25, %v999_v9  ;;  %9488 = vrcp.f32 %v859_v52  ;;  %v711_v62 = vmax.f32 %v709_v5, %v710_v58  ;;  %v668_v38 = vrot.slane %v667_v11, 2 }
 0x39f   :  { %v1006_v47 = vsel %vm198_vm10, %v930_v57, 0.0  ;;  %v10374_v26 = vmul.f32 %v10368_v49, %v10182_v13  ;;  %v823_v40 = vrot.slane %v822_v16, 1  ;;  %v863_v48 = vrot.slane %v862_v17, 2 }
 0x3a0   :  { %v10376_v30 = vpop.eup %9486  ;;  %v1002_v39 = vrot.slane %v1001_v14, 2  ;;  %v1007_v59 = vrot.slane %v1006_v47, 4  ;;  %v712_v29 = vrot.slane %v711_v62, 1  ;;  %v669_v5 = vmax.f32 %v667_v11, %v668_v38  ;;  %v10390_v38 = vpop.permute.xlu0 %1050 }
 0x3a1   :  { %v824_v45 = vadd.f32 %v823_v40, %v822_v16  ;;  %v832_v4 = vsel %vm198_vm10, %v10376_v30, 0.0  ;;  %v10381_v51 = vmul.f32 0.70710677, %v10294_v7  ;;  %v864_v52 = vadd.f32 %v863_v48, %v862_v17 }
 0x3a2   :  { %v10383_v9 = vadd.f32 %v1002_v39, %v1001_v14  ;;  %v10385_v25 = vadd.f32 %v1007_v59, %v1006_v47  ;;  %v833_v22 = vrot.slane %v832_v4, 4  ;;  %v713_v58 = vmax.f32 %v711_v62, %v712_v29  ;;  %v10398_v29 = vpop.permute.xlu1 %1052 }
 0x3a3   :  { %9490 = vrcp.f32 %v824_v45  ;;  %v670_v57 = vrot.slane %v669_v5, 1  ;;  %v714_v33 = vsel %vm198_vm10, %v10381_v51, -inf  ;;  %v865_v40 = vrot.slane %v864_v52, 1 }
 0x3a4   :  { %v834_v50 = vadd.f32 %v833_v22, %v832_v4  ;;  %v715_v11 = vrot.slane %v714_v33, 4  ;;  %v741_v7 = vsub.f32 %v10289_v10, %v713_v58  ;;  %v599_v14 = vadd.f32 %v567_v8, %v10174_v35 }
 0x3a5   :  { %v671_v39 = vmax.f32 %v669_v5, %v670_v57  ;;  %v1056_v17 = vmul.f32 %v10390_v38, %v10297_v1  ;;  %v866_v62 = vadd.f32 %v865_v40, %v864_v52  ;;  %v1057_v48 = vmul.f32 %v10390_v38, %v10304_v27 }
 0x3a6   :  { %v835_v47 = vrot.slane %v834_v50, 2  ;;  %v716_v59 = vmax.f32 %v714_v33, %v715_v11  ;;  %v770_v45 = vmul.f32 1.442695, %v741_v7  ;;  %v10401_v22 = vmul.f32 0.70710677, %v599_v14 }
 0x3a7   :  { %v735_v4 = vsub.f32 %v10291_v32, %v671_v39  ;;  %v10405_v10 = vmul.f32 %v10398_v29, %v10341_v18  ;;  %9492 = vrcp.f32 %v866_v62  ;;  %v1058_v33 = vmul.f32 %v10390_v38, %v10319_v54 }
 0x3a8   :  { %v9489_v35 = vpop.eup %9488  ;;  %v836_v1 = vadd.f32 %v835_v47, %v834_v50  ;;  %v717_v8 = vrot.slane %v716_v59, 2  ;;  %9494 = vpow2.f32 %v770_v45  ;;  %v721_v32 = vsel %vm198_vm10, %v10401_v22, -inf }
 0x3a9   :  { %v10410_v27 = vmul.f32 %v9489_v35, %v10301_v23  ;;  %v758_v5 = vmul.f32 1.442695, %v735_v4  ;;  %v722_v57 = vrot.slane %v721_v32, 4  ;;  %v1059_v18 = vmul.f32 %v10390_v38, %v10326_v53 }
 0x3aa   :  { %v837_v52 = vrot.slane %v836_v1, 1  ;;  %v718_v58 = vmax.f32 %v716_v59, %v717_v8  ;;  %v1060_v54 = vmul.f32 %v10390_v38, %v10344_v12  ;;  %v1061_v23 = vmul.f32 %v10390_v38, %v10368_v49 }
 0x3ab   :  { %v931_v50 = vmul.f32 %v10410_v27, %v10186_v37  ;;  %9496 = vpow2.f32 %v758_v5  ;;  %v723_v7 = vmax.f32 %v721_v32, %v722_v57  ;;  %v1072_v39 = vsel %vm198_vm10, %v1056_v17, 0.0 }
 0x3ac   :  { %v838_v40 = vadd.f32 %v837_v52, %v836_v1  ;;  %v719_v11 = vrot.slane %v718_v58, 1  ;;  %v1073_v47 = vrot.slane %v1072_v39, 4  ;;  %v1079_v53 = vsel %vm198_vm10, %v1057_v48, 0.0 }
 0x3ad   :  { %v9491_v14 = vpop.eup %9490  ;;  %v1013_v62 = vsel %vm198_vm10, %v931_v50, 0.0  ;;  %v1086_v59 = vsel %vm198_vm10, %v1058_v33, 0.0  ;;  %v724_v49 = vrot.slane %v723_v7, 2  ;;  %v1080_v1 = vrot.slane %v1079_v53, 4 }
 0x3ae   :  { %v1014_v45 = vrot.slane %v1013_v62, 4  ;;  %v10427_v4 = vmul.f32 %v9491_v14, %v10322_v6  ;;  %9498 = vrcp.f32 %v838_v40  ;;  %v720_v12 = vmax.f32 %v718_v58, %v719_v11 }
 0x3af   :  { %v1074_v35 = vadd.f32 %v1073_v47, %v1072_v39  ;;  %v1087_v8 = vrot.slane %v1086_v59, 4  ;;  %v1093_v48 = vsel %vm198_vm10, %v1059_v18, 0.0  ;;  %v725_v33 = vmax.f32 %v723_v7, %v724_v49 }
 0x3b0   :  { %v10429_v5 = vadd.f32 %v1014_v45, %v1013_v62  ;;  %v742_v17 = vsub.f32 %v10381_v51, %v720_v12  ;;  %v1062_v32 = vmul.f32 %v10390_v38, %v10427_v4  ;;  %v1081_v57 = vadd.f32 %v1080_v1, %v1079_v53 }
 0x3b1   :  { %v1075_v52 = vrot.slane %v1074_v35, 2  ;;  %v1088_v6 = vadd.f32 %v1087_v8, %v1086_v59  ;;  %v9493_v50 = vpop.eup %9492  ;;  %v1094_v58 = vrot.slane %v1093_v48, 4  ;;  %v1100_v11 = vsel %vm198_vm10, %v1060_v54, 0.0 }
 0x3b2   :  { %v772_v40 = vmul.f32 1.442695, %v742_v17  ;;  %v1107_v39 = vsel %vm198_vm10, %v1061_v23, 0.0  ;;  %v10437_v14 = vpop.eup %9494  ;;  %v10440_v51 = vmul.f32 %v9493_v50, %v10332_v42  ;;  %v726_v62 = vrot.slane %v725_v33, 1 }
 0x3b3   :  { %v1076_v47 = vadd.f32 %v1075_v52, %v1074_v35  ;;  %v1082_v45 = vrot.slane %v1081_v57, 2  ;;  %v867_v18 = vsel %vm198_vm10, %v10437_v14, 0.0  ;;  %v1089_v7 = vrot.slane %v1088_v6, 2 }
 0x3b4   :  { %9500 = vpow2.f32 %v772_v40  ;;  %v1095_v53 = vadd.f32 %v1094_v58, %v1093_v48  ;;  %v10448_v54 = vmul.f32 %v10440_v51, %v10186_v37  ;;  %v868_v23 = vrot.slane %v867_v18, 4 }
 0x3b5   :  { %v10444_v59 = vpop.eup %9496  ;;  %v727_v12 = vmax.f32 %v725_v33, %v726_v62  ;;  %v1077_v42 = vrot.slane %v1076_v47, 1  ;;  %v1083_v35 = vadd.f32 %v1082_v45, %v1081_v57  ;;  %v1090_v1 = vadd.f32 %v1089_v7, %v1088_v6 }
 0x3b6   :  { %v825_v49 = vsel %vm198_vm10, %v10444_v59, 0.0  ;;  %v1096_v8 = vrot.slane %v1095_v53, 2  ;;  %v869_v17 = vadd.f32 %v868_v23, %v867_v18  ;;  %v1101_v28 = vrot.slane %v1100_v11, 4 }
 0x3b7   :  { %v826_v52 = vrot.slane %v825_v49, 4  ;;  %v743_v48 = vsub.f32 %v10401_v22, %v727_v12  ;;  %v1078_v50 = vadd.f32 %v1077_v42, %v1076_v47  ;;  %v1084_v58 = vrot.slane %v1083_v35, 1 }
 0x3b8   :  { %v9499_v40 = vpop.eup %9498  ;;  %v1091_v16 = vrot.slane %v1090_v1, 1  ;;  %v1097_v31 = vadd.f32 %v1096_v8, %v1095_v53  ;;  %v870_v62 = vrot.slane %v869_v17, 2  ;;  %v1102_v18 = vadd.f32 %v1101_v28, %v1100_v11 }
 0x3b9   :  { %v905_v33 = vmul.f32 %v9499_v40, %v10376_v30  ;;  %v827_v24 = vadd.f32 %v826_v52, %v825_v49  ;;  %v774_v21 = vmul.f32 1.442695, %v743_v48  ;;  %v1085_v57 = vadd.f32 %v1084_v58, %v1083_v35 }
 0x3ba   :  { %v1092_v6 = vadd.f32 %v1091_v16, %v1090_v1  ;;  %v1098_v45 = vrot.slane %v1097_v31, 1  ;;  %v871_v22 = vadd.f32 %v870_v62, %v869_v17  ;;  %v1103_v12 = vrot.slane %v1102_v18, 2 }
 0x3bb   :  { %v928_v7 = vmul.f32 %v905_v33, %v10186_v37  ;;  %v828_v47 = vrot.slane %v827_v24, 2  ;;  %9502 = vpow2.f32 %v774_v21  ;;  %v1064_v23 = vmul.f32 %v10398_v29, %v905_v33 }
 0x3bc   :  { %v1099_v53 = vadd.f32 %v1098_v45, %v1097_v31  ;;  %v1108_v42 = vrot.slane %v1107_v39, 4  ;;  %v872_v8 = vrot.slane %v871_v22, 1  ;;  %v1114_v52 = vsel %vm198_vm10, %v1062_v32, 0.0 }
 0x3bd   :  { %v992_v30 = vsel %vm198_vm10, %v928_v7, 0.0  ;;  %v829_v49 = vadd.f32 %v828_v47, %v827_v24  ;;  %v1104_v11 = vadd.f32 %v1103_v12, %v1102_v18  ;;  %v1115_v1 = vrot.slane %v1114_v52, 4 }
 0x3be   :  { %v10458_v16 = vpop.eup %9500  ;;  %v993_v28 = vrot.slane %v992_v30, 4  ;;  %v1109_v35 = vadd.f32 %v1108_v42, %v1107_v39  ;;  %v873_v17 = vadd.f32 %v872_v8, %v871_v22  ;;  %v1239_v48 = vsel %vm1200_vm12, %v1085_v57, %v1078_v50 }
 0x3bf   :  { %v830_v21 = vrot.slane %v829_v49, 1  ;;  %v874_v31 = vsel %vm198_vm10, %v10458_v16, 0.0  ;;  %v1105_v33 = vrot.slane %v1104_v11, 1  ;;  %v1116_v62 = vadd.f32 %v1115_v1, %v1114_v52 }
 0x3c0   :  { %v994_v40 = vadd.f32 %v993_v28, %v992_v30  ;;  %v875_v58 = vrot.slane %v874_v31, 4  ;;  %v1110_v24 = vrot.slane %v1109_v35, 2  ;;  %9504 = vrcp.f32 %v873_v17 }
 0x3c1   :  { %v831_v32 = vadd.f32 %v830_v21, %v829_v49  ;;  %v1240_v45 = vsel %vm1202_vm13, %v1092_v6, %v1239_v48  ;;  %v1106_v7 = vadd.f32 %v1105_v33, %v1104_v11  ;;  %v1117_v47 = vrot.slane %v1116_v62, 2 }
 0x3c2   :  { %v995_v18 = vrot.slane %v994_v40, 2  ;;  %v876_v39 = vadd.f32 %v875_v58, %v874_v31  ;;  %v1111_v22 = vadd.f32 %v1110_v24, %v1109_v35  ;;  %v1241_v12 = vsel %vm1204_vm14, %v1099_v53, %v1240_v45 }
 0x3c3   :  { %9506 = vrcp.f32 %v831_v32  ;;  %v1066_v50 = vmul.f32 %v10398_v29, %v10363_v55  ;;  %v1242_v8 = vsel %vm1206_vm15, %v1106_v7, %v1241_v12  ;;  %v1118_v6 = vadd.f32 %v1117_v47, %v1116_v62 }
 0x3c4   :  { %v10467_v57 = vadd.f32 %v995_v18, %v994_v40  ;;  %v877_v42 = vrot.slane %v876_v39, 2  ;;  %v1112_v30 = vrot.slane %v1111_v22, 1  ;;  %v1067_v52 = vmul.f32 %v10398_v29, %v10410_v27 }
 0x3c5   :  { %v10470_v49 = vpop.eup %9502  ;;  %v1068_v28 = vmul.f32 %v10398_v29, %v10440_v51  ;;  %v1128_v53 = vsel %vm198_vm10, %v1064_v23, 0.0  ;;  %v1119_v21 = vrot.slane %v1118_v6, 1  ;;  %v1135_v31 = vsel %vm198_vm10, %v10405_v10, 0.0 }
 0x3c6   :  { %v878_v11 = vadd.f32 %v877_v42, %v876_v39  ;;  %v881_v55 = vsel %vm198_vm10, %v10470_v49, 0.0  ;;  %v1113_v35 = vadd.f32 %v1112_v30, %v1111_v22  ;;  %v1129_v1 = vrot.slane %v1128_v53, 4 }
 0x3c7   :  { %v882_v17 = vrot.slane %v881_v55, 4  ;;  %v1142_v48 = vsel %vm198_vm10, %v1066_v50, 0.0  ;;  %v1136_v51 = vrot.slane %v1135_v31, 4  ;;  %v1120_v23 = vadd.f32 %v1119_v21, %v1118_v6 }
 0x3c8   :  { %v879_v40 = vrot.slane %v878_v11, 1  ;;  %v1243_v27 = vsel %vm1208_vm1, %v1113_v35, %v1242_v8  ;;  %v1130_v58 = vadd.f32 %v1129_v1, %v1128_v53  ;;  %v1143_v24 = vrot.slane %v1142_v48, 4 }
 0x3c9   :  { %v883_v33 = vadd.f32 %v882_v17, %v881_v55  ;;  %v1149_v32 = vsel %vm198_vm10, %v1067_v52, 0.0  ;;  %v1137_v18 = vadd.f32 %v1136_v51, %v1135_v31  ;;  %v10485_v10 = vsel %vm1210_vm2, %v1120_v23, %v1243_v27 }
 0x3ca   :  { %v880_v62 = vadd.f32 %v879_v40, %v878_v11  ;;  %v1131_v45 = vrot.slane %v1130_v58, 2  ;;  %v1150_v39 = vrot.slane %v1149_v32, 4  ;;  %v9505_v7 = vpop.eup %9504  ;;  %v1144_v47 = vadd.f32 %v1143_v24, %v1142_v48  ;;  %v1261_v48 = vld [vmem:[%s13915_s1 + $0x910] sm:$0xff]  ;;  %v1262_v40 = vld [vmem:[%s13915_s1 + $0x920] sm:$0xff] }
 0x3cb   :  { %v884_v22 = vrot.slane %v883_v33, 2  ;;  %v1156_v12 = vsel %vm198_vm10, %v1068_v28, 0.0  ;;  %v915_v50 = vmul.f32 %v9505_v7, %v10437_v14  ;;  %v1138_v30 = vrot.slane %v1137_v18, 2 }
 0x3cc   :  { %9508 = vrcp.f32 %v880_v62  ;;  %v1132_v42 = vadd.f32 %v1131_v45, %v1130_v58  ;;  %v1145_v52 = vrot.slane %v1144_v47, 2  ;;  %v1151_v53 = vadd.f32 %v1150_v39, %v1149_v32  ;;  %v1263_v62 = vld [vmem:[%s13915_s1 + $0x930] sm:$0xff]  ;;  %v1264_v45 = vld [vmem:[%s13915_s1 + $0x940] sm:$0xff] }
 0x3cd   :  { %v9507_v8 = vpop.eup %9506  ;;  %v885_v6 = vadd.f32 %v884_v22, %v883_v33  ;;  %v1157_v11 = vrot.slane %v1156_v12, 4  ;;  %v10490_v55 = vmul.f32 %v915_v50, %v10186_v37  ;;  %v1069_v1 = vmul.f32 %v10398_v29, %v915_v50  ;;  %v1265_v22 = vld [vmem:[%s13915_s1 + $0x950] sm:$0xff] }
 0x3ce   :  { %v10493_v35 = vmul.f32 %v9507_v8, %v10444_v59  ;;  %v1133_v17 = vrot.slane %v1132_v42, 1  ;;  %v1139_v21 = vadd.f32 %v1138_v30, %v1137_v18  ;;  %v1146_v14 = vadd.f32 %v1145_v52, %v1144_v47  ;;  %v1266_v47 = vld [vmem:[%s13915_s1 + $0x960] sm:$0xff] }
 0x3cf   :  { %v886_v28 = vrot.slane %v885_v6, 1  ;;  %v1152_v31 = vrot.slane %v1151_v53, 2  ;;  %v1158_v58 = vadd.f32 %v1157_v11, %v1156_v12  ;;  %v1163_v51 = vsel %vm198_vm10, %v1069_v1, 0.0 }
 0x3d0   :  { %v1063_v27 = vmul.f32 %v10390_v38, %v10493_v35  ;;  %v1134_v59 = vadd.f32 %v1133_v17, %v1132_v42  ;;  %v1140_v23 = vrot.slane %v1139_v21, 1  ;;  %v1147_v24 = vrot.slane %v1146_v14, 1 }
 0x3d1   :  { %v887_v33 = vadd.f32 %v886_v28, %v885_v6  ;;  %v1153_v32 = vadd.f32 %v1152_v31, %v1151_v53  ;;  %v1159_v39 = vrot.slane %v1158_v58, 2  ;;  %v1164_v38 = vrot.slane %v1163_v51, 4 }
 0x3d2   :  { %v1121_v18 = vsel %vm198_vm10, %v1063_v27, 0.0  ;;  %v10512_v7 = vpack.c.bf16 %v1262_v40, %v1261_v48  ;;  %v1141_v50 = vadd.f32 %v1140_v23, %v1139_v21  ;;  %v1148_v42 = vadd.f32 %v1147_v24, %v1146_v14 }
 0x3d3   :  { %9510 = vrcp.f32 %v887_v33  ;;  %v1122_v12 = vrot.slane %v1121_v18, 4  ;;  %v1154_v30 = vrot.slane %v1153_v32, 1  ;;  %v1160_v8 = vadd.f32 %v1159_v39, %v1158_v58 }
 0x3d4   :  { %13986 = vst [vmem:[#allocation18_spill] sm:$0xff] %v10512_v7  ;;  %v1165_v6 = vadd.f32 %v1164_v38, %v1163_v51  ;;  %9105 = vmatprep.subr.bf16.mxu0 %v10512_v7  ;;  %v10521_v52 = vpack.c.bf16 %v1264_v45, %v1263_v62  ;;  %v1246_v11 = vsel %vm1200_vm12, %v1141_v50, %v1134_v59  ;;  %v941_v59 = vrot.slane %v10346_v19, 1 }
 0x3d5   :  { %v1123_v53 = vadd.f32 %v1122_v12, %v1121_v18  ;;  %9107 = vmatpush3.bf16.msra.mxu0 %v10512_v7  ;;  %v10525_v1 = vpack.c.bf16 %v1266_v47, %v1265_v22  ;;  %v926_v17 = vmul.f32 %v10427_v4, %v10182_v13  ;;  %v1155_v21 = vadd.f32 %v1154_v30, %v1153_v32 }
 0x3d6   :  { %13987 = vst [vmem:[#allocation19_spill] sm:$0xff] %v10521_v52  ;;  %v9509_v28 = vpop.eup %9508  ;;  %v1161_v14 = vrot.slane %v1160_v8, 1  ;;  %v1166_v31 = vrot.slane %v1165_v6, 2  ;;  %v1247_v48 = vsel %vm1202_vm13, %v1148_v42, %v1246_v11  ;;  %9109 = vmatprep.subr.bf16.mxu0 %v10521_v52  ;;  %v948_v58 = vrot.slane %v10352_v15, 1 }
 0x3d7   :  { %13988 = vst [vmem:[#allocation20_spill] sm:$0xff] %v10525_v1  ;;  %v10532_v40 = vmul.f32 %v9509_v28, %v10458_v16  ;;  %v1124_v27 = vrot.slane %v1123_v53, 2  ;;  %v1248_v4 = vsel %vm1204_vm14, %v1155_v21, %v1247_v48  ;;  %v13989_v23 = vrot.slane %v10348_v2, 2 }
 0x3d8   :  { %v1162_v51 = vadd.f32 %v1161_v14, %v1160_v8  ;;  %v1167_v33 = vadd.f32 %v1166_v31, %v1165_v6  ;;  %v942_v16 = vadd.f32 %v941_v59, %v10346_v19  ;;  %v949_v45 = vadd.f32 %v948_v58, %v10352_v15 }
 0x3d9   :  { %v954_v24 = vadd.f32 %v13989_v23, %v10348_v2  ;;  %v1125_v32 = vadd.f32 %v1124_v27, %v1123_v53  ;;  %v1070_v62 = vmul.f32 %v10398_v29, %v10532_v40  ;;  %9111 = vmatpush3.bf16.msra.mxu0 %v10521_v52  ;;  %v960_v22 = vrot.slane %v10354_v0, 2 }
 0x3da   :  { %v1168_v18 = vrot.slane %v1167_v33, 1  ;;  %v1249_v39 = vsel %vm1206_vm15, %v1162_v51, %v1248_v4  ;;  %9113 = vmatprep.subr.bf16.mxu0 %v10525_v1  ;;  %v964_v12 = vsel %vm198_vm10, %v10358_v44, 0.0  ;;  %v971_v50 = vsel %vm198_vm10, %v10374_v26, 0.0 }
 0x3db   :  { %v955_v38 = vrot.slane %v954_v24, 1  ;;  %v1126_v47 = vrot.slane %v1125_v32, 1  ;;  %v1170_v2 = vsel %vm198_vm10, %v1070_v62, 0.0  ;;  %v961_v30 = vadd.f32 %v960_v22, %v10354_v0 }
 0x3dc   :  { %v1169_v19 = vadd.f32 %v1168_v18, %v1167_v33  ;;  %v1171_v42 = vrot.slane %v1170_v2, 4  ;;  %v965_v53 = vrot.slane %v964_v12, 4  ;;  %v972_v11 = vrot.slane %v971_v50, 4 }
 0x3dd   :  { %v956_v15 = vadd.f32 %v955_v38, %v954_v24  ;;  %v9511_v8 = vpop.eup %9510  ;;  %v1127_v6 = vadd.f32 %v1126_v47, %v1125_v32  ;;  %9115 = vmatpush3.bf16.msra.mxu0 %v10525_v1  ;;  %v978_v28 = vsel %vm198_vm10, %v926_v17, 0.0  ;;  %v962_v31 = vrot.slane %v961_v30, 1  ;;  %v1268_v24 = vld [vmem:[%s13915_s1 + $0x980] sm:$0xff] }
 0x3de   :  { %v919_v21 = vmul.f32 %v9511_v8, %v10470_v49  ;;  %v1172_v14 = vadd.f32 %v1171_v42, %v1170_v2  ;;  %v1250_v44 = vsel %vm1208_vm1, %v1169_v19, %v1249_v39  ;;  %v966_v48 = vadd.f32 %v965_v53, %v964_v12 }
 0x3df   :  { %v1245_v26 = vsel %vm1212_vm3, %v1127_v6, %v10485_v10  ;;  %v973_v27 = vadd.f32 %v972_v11, %v971_v50  ;;  %v979_v0 = vrot.slane %v978_v28, 4  ;;  %v963_v51 = vadd.f32 %v962_v31, %v961_v30  ;;  %v1267_v10 = vld [vmem:[%s13915_s1 + $0x970] sm:$0xff] }
 0x3e0   :  { %1253 = vrot.lane.b32.xlu0 %v1245_v26, %s9904_s0  ;;  %v1071_v59 = vmul.f32 %v10398_v29, %v919_v21  ;;  %v1173_v58 = vrot.slane %v1172_v14, 2  ;;  %v1201_v17 = vsel %vm1200_vm12, %v949_v45, %v942_v16  ;;  %v967_v49 = vrot.slane %v966_v48, 2 }
 0x3e1   :  { %v974_v33 = vrot.slane %v973_v27, 2  ;;  %v980_v4 = vadd.f32 %v979_v0, %v978_v28  ;;  %v1203_v23 = vsel %vm1202_vm13, %v956_v15, %v1201_v17  ;;  %v927_v16 = vmul.f32 %v10493_v35, %v10182_v13 }
 0x3e2   :  { %v1174_v32 = vadd.f32 %v1173_v58, %v1172_v14  ;;  %v1177_v29 = vsel %vm198_vm10, %v1071_v59, 0.0  ;;  %v1205_v62 = vsel %vm1204_vm14, %v963_v51, %v1203_v23  ;;  %v968_v18 = vadd.f32 %v967_v49, %v966_v48 }
 0x3e3   :  { %v1178_v45 = vrot.slane %v1177_v29, 4  ;;  %v975_v39 = vadd.f32 %v974_v33, %v973_v27  ;;  %v981_v38 = vrot.slane %v980_v4, 2  ;;  %v985_v47 = vsel %vm198_vm10, %v927_v16, 0.0 }
 0x3e4   :  { %v1175_v22 = vrot.slane %v1174_v32, 1  ;;  %v10575_v2 = vpack.c.bf16 %v1268_v24, %v1267_v10  ;;  %v934_v12 = vmul.f32 %v10532_v40, %v10186_v37  ;;  %v969_v19 = vrot.slane %v968_v18, 1 }
 0x3e5   :  { %v1179_v50 = vadd.f32 %v1178_v45, %v1177_v29  ;;  %v976_v42 = vrot.slane %v975_v39, 1  ;;  %v982_v15 = vadd.f32 %v981_v38, %v980_v4  ;;  %v986_v8 = vrot.slane %v985_v47, 4 }
 0x3e6   :  { %13990 = vst [vmem:[#allocation21_spill] sm:$0xff] %v10575_v2  ;;  %v1176_v30 = vadd.f32 %v1175_v22, %v1174_v32  ;;  %9117 = vmatprep.subr.bf16.mxu0 %v10575_v2  ;;  %v935_v13 = vmul.f32 %v919_v21, %v10186_v37  ;;  %v997_v35 = vrot.slane %v10467_v57, 1  ;;  %v970_v53 = vadd.f32 %v969_v19, %v968_v18 }
 0x3e7   :  { %v1180_v6 = vrot.slane %v1179_v50, 2  ;;  %v977_v11 = vadd.f32 %v976_v42, %v975_v39  ;;  %v983_v28 = vrot.slane %v982_v15, 1  ;;  %9119 = vmatpush3.bf16.msra.mxu0 %v10575_v2  ;;  %v987_v14 = vadd.f32 %v986_v8, %v985_v47 }
 0x3e8   :  { %v1251_v40 = vsel %vm1210_vm2, %v1176_v30, %v1250_v44  ;;  %v998_v31 = vadd.f32 %v997_v35, %v10467_v57  ;;  %v1004_v26 = vrot.slane %v10383_v9, 1  ;;  %v1207_v0 = vsel %vm1206_vm15, %v970_v53, %v1205_v62 }
 0x3e9   :  { %v1181_v48 = vadd.f32 %v1180_v6, %v1179_v50  ;;  %v984_v27 = vadd.f32 %v983_v28, %v982_v15  ;;  %v13991_v37 = vrot.slane %v10385_v25, 2  ;;  %v1209_v59 = vsel %vm1208_vm1, %v977_v11, %v1207_v0 }
 0x3ea   :  { %v988_v58 = vrot.slane %v987_v14, 2  ;;  %v1005_v51 = vadd.f32 %v1004_v26, %v10383_v9  ;;  %v1016_v44 = vrot.slane %v10429_v5, 2  ;;  %v1020_v33 = vsel %vm198_vm10, %v10448_v54, 0.0 }
 0x3eb   :  { %v1010_v21 = vadd.f32 %v13991_v37, %v10385_v25  ;;  %v1182_v17 = vrot.slane %v1181_v48, 1  ;;  %v1211_v57 = vsel %vm1210_vm2, %v984_v27, %v1209_v59  ;;  %v1021_v10 = vrot.slane %v1020_v33, 4 }
 0x3ec   :  { %v989_v4 = vadd.f32 %v988_v58, %v987_v14  ;;  %v1017_v23 = vadd.f32 %v1016_v44, %v10429_v5  ;;  %v1027_v25 = vsel %vm198_vm10, %v10490_v55, 0.0  ;;  %v1034_v9 = vsel %vm198_vm10, %v934_v12, 0.0 }
 0x3ed   :  { %v1011_v49 = vrot.slane %v1010_v21, 1  ;;  %v1183_v24 = vadd.f32 %v1182_v17, %v1181_v48  ;;  %v1028_v29 = vrot.slane %v1027_v25, 4  ;;  %v1022_v45 = vadd.f32 %v1021_v10, %v1020_v33  ;;  %v1269_v33 = vld [vmem:[%s13915_s1 + $0x900] ss:$0 sm:$0xff] }
 0x3ee   :  { %v990_v62 = vrot.slane %v989_v4, 1  ;;  %v1018_v16 = vrot.slane %v1017_v23, 1  ;;  %v1035_v18 = vrot.slane %v1034_v9, 4  ;;  %v1041_v54 = vsel %vm198_vm10, %v935_v13, 0.0 }
 0x3ef   :  { %v1012_v32 = vadd.f32 %v1011_v49, %v1010_v21  ;;  %v1252_v39 = vsel %vm1212_vm3, %v1183_v24, %v1251_v40  ;;  %v1029_v38 = vadd.f32 %v1028_v29, %v1027_v25  ;;  %v1214_v5 = vsel %vm1200_vm12, %v1005_v51, %v998_v31 }
 0x3f0   :  { %1255 = vrot.lane.b32.xlu1 %v1252_v39, %s9904_s0  ;;  %v991_v22 = vadd.f32 %v990_v62, %v989_v4  ;;  %v1019_v55 = vadd.f32 %v1018_v16, %v1017_v23  ;;  %v1023_v47 = vrot.slane %v1022_v45, 2  ;;  %v1036_v50 = vadd.f32 %v1035_v18, %v1034_v9 }
 0x3f1   :  { %v1030_v19 = vrot.slane %v1029_v38, 2  ;;  %v1042_v42 = vrot.slane %v1041_v54, 4  ;;  %v1215_v12 = vsel %vm1202_vm13, %v1012_v32, %v1214_v5 }
 0x3f2   :  { %v1213_v15 = vsel %vm1212_vm3, %v991_v22, %v1211_v57  ;;  %v1024_v30 = vadd.f32 %v1023_v47, %v1022_v45  ;;  %v1037_v8 = vrot.slane %v1036_v50, 2  ;;  %v1216_v35 = vsel %vm1204_vm14, %v1019_v55, %v1215_v12  ;;  %v1386_v22 = vld [vmem:[%s13915_s1 + $0x820] sm:$0xff]  ;;  %v1387_v55 = vld [vmem:[%s13915_s1 + $0x830] sm:$0xff] }
 0x3f3   :  { %v1031_v6 = vadd.f32 %v1030_v19, %v1029_v38  ;;  %v1043_v13 = vadd.f32 %v1042_v42, %v1041_v54  ;;  %v1388_v47 = vld [vmem:[%s13915_s1 + $0x840] sm:$0xff]  ;;  %v1389_v19 = vld [vmem:[%s13915_s1 + $0x850] sm:$0xff] }
 0x3f4   :  { %v1025_v53 = vrot.slane %v1024_v30, 1  ;;  %v1038_v11 = vadd.f32 %v1037_v8, %v1036_v50  ;;  %v10637_v50 = vpack.c.bf16 %v1387_v55, %v1386_v22  ;;  %v10642_v42 = vpack.c.bf16 %v1389_v19, %v1388_v47  ;;  %v1390_v12 = vld [vmem:[%s13915_s1 + $0x860] sm:$0xff]  ;;  %v1617_v19 = vld [vmem:[%s13915_s1 + $0x3d0] sm:$0xff] }
 0x3f5   :  { %v1032_v28 = vrot.slane %v1031_v6, 1  ;;  %v1044_v40 = vrot.slane %v1043_v13, 2  ;;  %v1392_v8 = vld [vmem:[%s13915_s1 + $0x880] sm:$0xff]  ;;  %v13997_v55 = vmov 0.0  }
 0x3f6   :  { %v1026_v14 = vadd.f32 %v1025_v53, %v1024_v30  ;;  %v1039_v31 = vrot.slane %v1038_v11, 1  ;;  %13992 = vst [vmem:[#allocation22_spill] sm:$0xff] %v10637_v50  ;;  %13993 = vst [vmem:[#allocation23_spill] sm:$0xff] %v10642_v42  ;;  %9121 = vmatprep.subr.bf16.mxu1 %v10637_v50 }
 0x3f7   :  { %v1033_v26 = vadd.f32 %v1032_v28, %v1031_v6  ;;  %v1045_v48 = vadd.f32 %v1044_v40, %v1043_v13  ;;  %9123 = vmatpush3.bf16.msra.mxu1 %v10637_v50 }
 0x3f8   :  { %v1040_v27 = vadd.f32 %v1039_v31, %v1038_v11  ;;  %v1217_v0 = vsel %vm1206_vm15, %v1026_v14, %v1216_v35  ;;  %9125 = vmatprep.subr.bf16.mxu1 %v10642_v42  ;;  %v1393_v35 = vld [vmem:[%s13915_s1 + $0x890] sm:$0xff] }
 0x3f9   :  { %v1046_v37 = vrot.slane %v1045_v48, 1  ;;  %v1218_v21 = vsel %vm1208_vm1, %v1033_v26, %v1217_v0  ;;  %v10663_v6 = vpack.c.bf16 %v1393_v35, %v1392_v8  ;;  %v1353_v26 = vld [vmem:[%s13915_s1 + $0x8d0] ss:$0 sm:$0xff]  ;;  %v1624_v8 = vld [vmem:[%s13915_s1 + $0x408] sm:$0xff] }
 0x3fa   :  { %v1219_v59 = vsel %vm1210_vm2, %v1040_v27, %v1218_v21  ;;  %v1354_v27 = vld [vmem:[%s13915_s1 + $0x8c0] ss:$0 sm:$0xff] }
 0x3fb   :  { %v1047_v58 = vadd.f32 %v1046_v37, %v1045_v48  ;;  %9127 = vmatpush3.bf16.msra.mxu1 %v10642_v42  ;;  %13995 = vst [vmem:[#allocation25_spill] sm:$0xff] %v10663_v6 }
 0x3fd   :  { %v1220_v51 = vsel %vm1212_vm3, %v1047_v58, %v1219_v59 }
 0x452   :  { %v1254_v44 = vpop.permute.xlu0 %1253 }
 0x453   :  { %v1259_v17 = vsel %vm198_vm10, %v1213_v15, %v1254_v44  ;;  %v1391_v15 = vld [vmem:[%s13915_s1 + $0x870] sm:$0xff]  ;;  %v1478_v44 = vld [vmem:[%s13915_s1 + $0x8a0] sm:$0xff] }
 0x454   :  { %8755 = vmatprep.mubr.msk.f32.mxu0 %vm234_vm11, %v1259_v17  ;;  %v10653_v30 = vpack.c.bf16 %v1391_v15, %v1390_v12  ;;  %v1479_v17 = vld [vmem:[%s13915_s1 + $0x8b0] sm:$0xff]  ;;  %v1619_v12 = vld [vmem:[%s13915_s1 + $0x3e0] sm:$0xff]  ;;  %v1622_v15 = vld [vmem:[%s13915_s1 + $0x3f8] sm:$0xff] }
 0x455   :  { %v9150_v35 = vpack.c.bf16 %v1619_v12, %v1617_v19 }
 0x456   :  { %13994 = vst [vmem:[#allocation24_spill] sm:$0xff] %v10653_v30  ;;  %9129 = vmatprep.subr.bf16.mxu1 %v10653_v30 }
 0x457   :  { %9131 = vmatpush3.bf16.msra.mxu1 %v10653_v30 }
 0x458   :  { %9133 = vmatprep.subr.bf16.mxu1 %v10663_v6 }
 0x45b   :  { %9135 = vmatpush3.bf16.msra.mxu1 %v10663_v6 }
 0x462   :  { %v1256_v57 = vpop.permute.xlu1 %1255 }
 0x463   :  { %v1260_v49 = vsel %vm198_vm10, %v1220_v51, %v1256_v57  ;;  %v10688_v57 = vpack.c.bf16 %v1479_v17, %v1478_v44 }
 0x464   :  { %8756 = vmatmul.mubr.msk.f32.vlgmr.msra.gmra.mrb[2].mxu0 %vm234_vm11, %v1260_v49  ;;  %v1610_v49 = vld [vmem:[%s13915_s1 + $0x398] sm:$0xff] }
 0x465   :  { %13996 = vst [vmem:[#allocation26_spill] sm:$0xff] %v10688_v57  ;;  %9137 = vmatprep.subr.bf16.mxu0 %v10688_v57 }
 0x466   :  { %9139 = vmatpush3.bf16.msra.mxu0 %v10688_v57 }
 0x537   :  { %v8757_v4 = vpop.f32.mrb[2].mxu0 }
 0x538   :  { %v1348_v23 = vadd.f32 %v8757_v4, %v1269_v33  ;;  %v1342_v10 = vpop.f32.mrb[3].mxu0 }
 0x539   :  { %v1343_v25 = vadd.f32 %v1342_v10, %v1269_v33  ;;  %v1612_v33 = vld [vmem:[%s13915_s1 + $0x3a8] sm:$0xff] }
 0x53a   :  { %v1352_v24 = vadd.f32 %v1348_v23, %v10052_v43  ;;  %v9140_v4 = vpack.c.bf16 %v1612_v33, %v1610_v49  ;;  %v1394_v23 = vld [vmem:[%s13915_s1 + $0x800] ss:$0 sm:$0xff] }
 0x53b   :  { %v1351_v32 = vadd.f32 %v1343_v25, %v10047_v41 }
 0x53c   :  { %v1358_v29 = vsel %vm234_vm11, %v1352_v24, 0.0  ;;  %9141 = vmatprep.subr.bf16.mxu0 %v9140_v4 }
 0x53d   :  { %1359 = vadd.xlane.f32.xlu1 %v1358_v29  ;;  %v1355_v9 = vsel %vm234_vm11, %v1351_v32, 0.0  ;;  %v1611_v29 = vld [vmem:[%s13915_s1 + $0x3a0] sm:$0xff] }
 0x53e   :  { %1356 = vadd.xlane.f32.xlu0 %v1355_v9 }
 0x54e   :  { %1601 = vrot.lane.b32.xlu1 %v10038_v36, %s9904_s0 }
 0x5ca   :  { %v1360_v62 = vpop.xlane.xlu1 %1359 }
 0x5cb   :  { %v1363_v16 = vmul.f32 0.015625, %v1360_v62  ;;  %v1357_v45 = vpop.xlane.xlu0 %1356  ;;  %v1614_v62 = vld [vmem:[%s13915_s1 + $0x3b8] sm:$0xff] }
 0x5cc   :  { %v1362_v18 = vmul.f32 0.015625, %v1357_v45 }
 0x5cd   :  { %v1365_v39 = vsub.f32 %v1352_v24, %v1363_v16  ;;  %v1616_v16 = vld [vmem:[%s13915_s1 + $0x3c8] sm:$0xff] }
 0x5ce   :  { %v1364_v38 = vsub.f32 %v1351_v32, %v1362_v18  ;;  %v1609_v32 = vld [vmem:[%s13915_s1 + $0x390] sm:$0xff] }
 0x5cf   :  { %v1367_v5 = vmul.f32 %v1365_v39, %v1365_v39  ;;  %v9142_v18 = vpack.c.bf16 %v1611_v29, %v1609_v32 }
 0x5d0   :  { %v1366_v54 = vmul.f32 %v1364_v38, %v1364_v38 }
 0x5d1   :  { %v1371_v41 = vsel %vm234_vm11, %v1367_v5, 0.0  ;;  %v1618_v5 = vld [vmem:[%s13915_s1 + $0x3d8] sm:$0xff] }
 0x5d2   :  { %v1368_v43 = vsel %vm234_vm11, %v1366_v54, 0.0  ;;  %v1613_v54 = vld [vmem:[%s13915_s1 + $0x3b0] sm:$0xff] }
 0x5d3   :  { %1369 = vadd.xlane.f32.xlu0 %v1368_v43  ;;  %v1615_v43 = vld [vmem:[%s13915_s1 + $0x3c0] sm:$0xff] }
 0x5d4   :  { %v9146_v22 = vpack.c.bf16 %v1615_v43, %v1613_v54 }
 0x5d7   :  { %1372 = vadd.xlane.f32.xlu0 %v1371_v41  ;;  %v1620_v41 = vld [vmem:[%s13915_s1 + $0x3e8] sm:$0xff] }
 0x5d8   :  { %v9148_v47 = vpack.c.bf16 %v1620_v41, %v1618_v5 }
 0x5ed   :  { %1603 = vrot.lane.b32.xlu0 %v10036_v34, %s9904_s0 }
 0x660   :  { %v1370_v13 = vpop.xlane.xlu0 %1369 }
 0x661   :  { %v1374_v53 = vmul.f32 0.015625, %v1370_v13  ;;  %v9152_v13 = vpack.c.bf16 %v1624_v8, %v1622_v15 }
 0x663   :  { %v1376_v11 = vadd.f32 1e-05, %v1374_v53  ;;  %v1621_v53 = vld [vmem:[%s13915_s1 + $0x3f0] sm:$0xff] }
 0x664   :  { %v1373_v28 = vpop.xlane.xlu0 %1372 }
 0x665   :  { %9512 = vrsqrt.f32 %v1376_v11  ;;  %v1375_v40 = vmul.f32 0.015625, %v1373_v28  ;;  %v1623_v11 = vld [vmem:[%s13915_s1 + $0x400] sm:$0xff] }
 0x666   :  { %v9154_v28 = vpack.c.bf16 %v1623_v11, %v1621_v53 }
 0x667   :  { %v1377_v14 = vadd.f32 1e-05, %v1375_v40  ;;  %v1602_v40 = vpop.permute.xlu1 %1601 }
 0x669   :  { %9514 = vrsqrt.f32 %v1377_v14  ;;  %v10748_v14 = vsel %vm198_vm10, %v10038_v36, %v1602_v40 }
 0x66a   :  { %13998 = vst [vmem:[#allocation27_spill] sm:$0xff] %v10748_v14 }
 0x66f   :  { %v9513_v31 = vpop.eup %9512 }
 0x670   :  { %v1380_v48 = vmul.f32 %v9513_v31, %v1364_v38  ;;  %v9144_v38 = vpack.c.bf16 %v1616_v16, %v1614_v62  ;;  %v1604_v31 = vpop.permute.xlu0 %1603 }
 0x672   :  { %v1382_v0 = vmul.f32 %v1380_v48, %v1353_v26 }
 0x673   :  { %v9515_v37 = vpop.eup %9514 }
 0x674   :  { %v1381_v21 = vmul.f32 %v9515_v37, %v1365_v39  ;;  %v10674_v59 = vadd.f32 %v1382_v0, %v1354_v27  ;;  %v8502_v0 = vld [vmem:[%s13915_s1 + $0x380] ss:$8 sm:$0x3] }
 0x675   :  { %v1631_v37 = vrot.slane %v8502_v0, %v10059_v46 }
 0x676   :  { %v1383_v58 = vmul.f32 %v1381_v21, %v1353_v26  ;;  %8774 = vmatprep.mubr.msk.f32.mxu1 %vm234_vm11, %v10674_v59  ;;  %v10755_v26 = vsel %vm198_vm10, %v10036_v34, %v1604_v31  ;;  %v1635_v21 = vrot.slane %v8502_v0, %v10156_v20 }
 0x677   :  { %13999 = vst [vmem:[#allocation28_spill] sm:$0xff] %v10755_v26 }
 0x678   :  { %v10678_v51 = vadd.f32 %v1383_v58, %v1354_v27 }
 0x67a   :  { %8775 = vmatmul.mubr.msk.f32.vlgmr.msra.gmra.mrb[4].mxu1 %vm234_vm11, %v10678_v51 }
 0x74d   :  { %v8776_v10 = vpop.f32.mrb[4].mxu1 }
 0x74e   :  { %v1473_v25 = vadd.f32 %v8776_v10, %v1394_v23  ;;  %v1467_v24 = vpop.f32.mrb[5].mxu1 }
 0x74f   :  { %v1468_v9 = vadd.f32 %v1467_v24, %v1394_v23 }
 0x750   :  { %v1477_v39 = vmax.f32 %v1473_v25, 0.0 }
 0x751   :  { %v1476_v45 = vmax.f32 %v1468_v9, 0.0 }
 0x753   :  { %8781 = vmatprep.mubr.msk.f32.mxu0 %vm1480_vm4, %v1476_v45 }
 0x754   :  { %8782 = vmatmul.mubr.msk.f32.vlgmr.msra.gmra.mrb[4].mxu0 %vm1480_vm4, %v1477_v39 }
 0x755   :  { %9143 = vmatpush1.bf16.msra.mxu0 %v9142_v18  ;;  %1708 = vmatprep.mubr.f32.mxu0 %v13997_v55 }
 0x756   :  { %9145 = vmatprep.subr.bf16.mxu0 %v9144_v38 }
 0x759   :  { %9147 = vmatpush1.bf16.msra.mxu0 %v9146_v22 }
 0x75a   :  { %9149 = vmatprep.subr.bf16.mxu0 %v9148_v47 }
 0x75d   :  { %9151 = vmatpush1.bf16.msra.mxu0 %v9150_v35 }
 0x75e   :  { %9153 = vmatprep.subr.bf16.mxu0 %v9152_v13 }
 0x761   :  { %9155 = vmatpush1.bf16.msra.mxu0 %v9154_v28 }
 0x764   :  { %8503 = vmatmul.mubr.msk.f32.vlgmr.msra.gmra.mrb[6].mxu0 %vm234_vm11, %v10748_v14 }
 0x765   :  { %1714 = vmatprep.mubr.f32.mxu0 %v13997_v55 }
 0x768   :  { %8504 = vmatmul.mubr.msk.f32.gmra.mrb[8].mxu0 %vm234_vm11, %v10755_v26 }
 0x827   :  { %v10759_v48 = vpop.f32.mrb[4].mxu0 }
 0x828   :  { %v10761_v27 = vpop.f32.mrb[5].mxu0 }
 0x837   :  { %v1710_v58 = vpop.f32.mrb[6].mxu0 }
 0x838   :  { %v1711_v44 = vadd.f32 %v1710_v58, %v1631_v37  ;;  %v1712_v17 = vpop.f32.mrb[7].mxu0 }
 0x839   :  { %v10768_v49 = vadd.f32 %v1712_v17, %v1635_v21 }
 0x83a   :  { %1901 = vrot.lane.b32.xlu1 %v1711_v44, %s9901_s27  ;;  %v1730_v25 = vrot.slane %v1711_v44, %v10079_v63  ;;  %v1723_v32 = vcombine.high %v1711_v44, %v1711_v44 }
 0x83b   :  { %v1716_v33 = vpop.f32.mrb[8].mxu0 }
 0x83c   :  { %v1717_v4 = vadd.f32 %v1716_v33, %v1631_v37  ;;  %v1718_v23 = vpop.f32.mrb[9].mxu0  ;;  %v1738_v24 = vcombine.high %v1730_v25, %v1730_v25  ;;  %v1746_v29 = vrot.slane %v1730_v25, %v10079_v63  ;;  %v1737_v16 = vrot.slane %v1723_v32, %v10079_v63 }
 0x83d   :  { %v10771_v10 = vadd.f32 %v1718_v23, %v1635_v21 }
 0x83e   :  { %1903 = vrot.lane.b32.xlu1 %v1717_v4, %s9901_s27  ;;  %v1779_v9 = vrot.slane %v1717_v4, %v10079_v63  ;;  %v1760_v62 = vrot.slane %v1738_v24, %v10079_v63  ;;  %v1824_v45 = vrot.slane %v1746_v29, %v10059_v46  ;;  %v1768_v38 = vcombine.high %v1746_v29, %v1746_v29 }
 0x83f   :  { %v1739_v22 = vcombine.high %v1737_v16, %v1737_v16  ;;  %v1753_v19 = vrot.slane %v1737_v16, %v10079_v63  ;;  %v1772_v53 = vcombine.high %v1717_v4, %v1717_v4 }
 0x840   :  { %v1787_v18 = vcombine.high %v1779_v9, %v1779_v9  ;;  %v1828_v39 = vrot.slane %v1760_v62, %v10059_v46  ;;  %v1770_v54 = vcombine.high %v1760_v62, %v1760_v62  ;;  %v1795_v47 = vrot.slane %v1779_v9, %v10079_v63 }
 0x841   :  { %v1832_v12 = vrot.slane %v1768_v38, %v10059_v46  ;;  %v1767_v28 = vrot.slane %v1739_v22, %v10079_v63  ;;  %v1840_v40 = vrot.slane %v1753_v19, %v10059_v46  ;;  %v1786_v58 = vrot.slane %v1772_v53, %v10079_v63 }
 0x842   :  { %v1836_v15 = vrot.slane %v1770_v54, %v10059_v46  ;;  %v1809_v8 = vrot.slane %v1787_v18, %v10079_v63  ;;  %v1817_v0 = vcombine.high %v1795_v47, %v1795_v47  ;;  %v1769_v33 = vcombine.high %v1753_v19, %v1753_v19 }
 0x843   :  { %v1844_v44 = vrot.slane %v1767_v28, %v10059_v46  ;;  %v1788_v24 = vcombine.high %v1786_v58, %v1786_v58  ;;  %v1802_v9 = vrot.slane %v1786_v58, %v10079_v63 }
 0x844   :  { %v1860_v31 = vrot.slane %v1809_v8, %v10059_v46  ;;  %v1864_v17 = vrot.slane %v1817_v0, %v10059_v46  ;;  %v1819_v4 = vcombine.high %v1809_v8, %v1809_v8  ;;  %v1848_v32 = vrot.slane %v1769_v33, %v10059_v46 }
 0x845   :  { %v1872_v18 = vrot.slane %v1802_v9, %v10059_v46  ;;  %v1816_v38 = vrot.slane %v1788_v24, %v10079_v63  ;;  %v1818_v19 = vcombine.high %v1802_v9, %v1802_v9 }
 0x846   :  { %v1868_v29 = vrot.slane %v1819_v4, %v10059_v46 }
 0x8ac   :  { %v1902_v43 = vpop.permute.xlu1 %1901 }
 0x8ad   :  { %v10781_v5 = vmul.f32 %v1902_v43, %v1824_v45  ;;  %v10783_v41 = vmul.f32 %v1902_v43, %v1828_v39  ;;  %v10794_v35 = vmul.f32 %v1902_v43, %v1832_v12  ;;  %v10796_v13 = vmul.f32 %v1902_v43, %v1836_v15 }
 0x8ae   :  { %v10805_v37 = vmul.f32 %v1902_v43, %v1840_v40  ;;  %v10816_v23 = vmul.f32 %v1902_v43, %v1844_v44  ;;  %v10827_v62 = vmul.f32 %v1902_v43, %v1848_v32  ;;  %v1856_v45 = vrot.slane %v1795_v47, %v10059_v46 }
 0x8af   :  { %1939 = vrot.lane.b32.xlu0 %v10781_v5, %s9903_s28  ;;  %1941 = vrot.lane.b32.xlu1 %v10783_v41, %s9903_s28  ;;  %v1771_v39 = vcombine.high %v1767_v28, %v1767_v28  ;;  %v1876_v12 = vrot.slane %v1816_v38, %v10059_v46  ;;  %v1820_v15 = vcombine.high %v1816_v38, %v1816_v38 }
 0x8b0   :  { %v1904_v11 = vpop.permute.xlu1 %1903  ;;  %v1880_v28 = vrot.slane %v1818_v19, %v10059_v46 }
 0x8b1   :  { %v10807_v21 = vmul.f32 %v1904_v11, %v1860_v31  ;;  %v10818_v25 = vmul.f32 %v1904_v11, %v1864_v17  ;;  %v10829_v16 = vmul.f32 %v1904_v11, %v1868_v29  ;;  %v10838_v54 = vmul.f32 %v1904_v11, %v1856_v45 }
 0x8b2   :  { %v10840_v22 = vmul.f32 %v1904_v11, %v1872_v18  ;;  %v1852_v47 = vrot.slane %v1771_v39, %v10059_v46  ;;  %v10850_v53 = vmul.f32 %v1904_v11, %v1876_v12  ;;  %v1884_v40 = vrot.slane %v1820_v15, %v10059_v46 }
 0x8b3   :  { %1943 = vrot.lane.b32.xlu0 %v10794_v35, %s9903_s28  ;;  %1945 = vrot.lane.b32.xlu1 %v10796_v13, %s9903_s28  ;;  %v10858_v31 = vmul.f32 %v1904_v11, %v1880_v28 }
 0x8b4   :  { %v10848_v8 = vmul.f32 %v1902_v43, %v1852_v47  ;;  %v10860_v0 = vmul.f32 %v1904_v11, %v1884_v40 }
 0x8b7   :  { %1947 = vrot.lane.b32.xlu1 %v10805_v37, %s9903_s28  ;;  %1957 = vrot.lane.b32.xlu0 %v10807_v21, %s9903_s28 }
 0x8bb   :  { %1949 = vrot.lane.b32.xlu1 %v10816_v23, %s9903_s28  ;;  %1959 = vrot.lane.b32.xlu0 %v10818_v25, %s9903_s28 }
 0x8bf   :  { %1951 = vrot.lane.b32.xlu1 %v10827_v62, %s9903_s28  ;;  %1961 = vrot.lane.b32.xlu0 %v10829_v16, %s9903_s28 }
 0x8c3   :  { %1955 = vrot.lane.b32.xlu1 %v10838_v54, %s9903_s28  ;;  %1963 = vrot.lane.b32.xlu0 %v10840_v22, %s9903_s28 }
 0x8c7   :  { %1953 = vrot.lane.b32.xlu1 %v10848_v8, %s9903_s28  ;;  %1965 = vrot.lane.b32.xlu0 %v10850_v53, %s9903_s28 }
 0x8cb   :  { %1967 = vrot.lane.b32.xlu0 %v10858_v31, %s9903_s28  ;;  %1969 = vrot.lane.b32.xlu1 %v10860_v0, %s9903_s28 }
 0x8cf   :  { %2453 = vrot.lane.b32.xlu0 %v10768_v49, %s9903_s28  ;;  %2455 = vrot.lane.b32.xlu1 %v10771_v10, %s9903_s28 }
 0x921   :  { %v1942_v43 = vpop.permute.xlu1 %1941  ;;  %v1940_v58 = vpop.permute.xlu0 %1939 }
 0x922   :  { %v1988_v44 = vadd.f32 %v1942_v43, %v10783_v41  ;;  %v1987_v17 = vadd.f32 %v1940_v58, %v10781_v5 }
 0x924   :  { %v2004_v11 = vmul.f32 0.70710677, %v1988_v44  ;;  %v2003_v33 = vmul.f32 0.70710677, %v1987_v17 }
 0x925   :  { %v1946_v4 = vpop.permute.xlu1 %1945  ;;  %v1944_v24 = vpop.permute.xlu0 %1943 }
 0x926   :  { %v2026_v32 = vsel %vm198_vm10, %v2004_v11, -inf  ;;  %v2019_v29 = vsel %vm198_vm10, %v2003_v33, -inf  ;;  %v1990_v9 = vadd.f32 %v1946_v4, %v10796_v13  ;;  %v1989_v45 = vadd.f32 %v1944_v24, %v10794_v35 }
 0x927   :  { %v2027_v18 = vrot.slane %v2026_v32, 4  ;;  %v2020_v39 = vrot.slane %v2019_v29, 4 }
 0x928   :  { %v10876_v38 = vmul.f32 0.70710677, %v1990_v9  ;;  %v10878_v19 = vmul.f32 0.70710677, %v1989_v45 }
 0x929   :  { %v2028_v41 = vmax.f32 %v2026_v32, %v2027_v18  ;;  %v2021_v5 = vmax.f32 %v2019_v29, %v2020_v39  ;;  %v1948_v47 = vpop.permute.xlu1 %1947  ;;  %v1958_v12 = vpop.permute.xlu0 %1957 }
 0x92a   :  { %v2040_v15 = vsel %vm198_vm10, %v10876_v38, -inf  ;;  %v2033_v28 = vsel %vm198_vm10, %v10878_v19, -inf  ;;  %v1991_v13 = vadd.f32 %v1948_v47, %v10805_v37  ;;  %v1996_v35 = vadd.f32 %v1958_v12, %v10807_v21 }
 0x92b   :  { %v2029_v40 = vrot.slane %v2028_v41, 2  ;;  %v2022_v43 = vrot.slane %v2021_v5, 2  ;;  %v2041_v58 = vrot.slane %v2040_v15, 4  ;;  %v2034_v44 = vrot.slane %v2033_v28, 4 }
 0x92c   :  { %v10886_v17 = vmul.f32 0.70710677, %v1991_v13  ;;  %v10888_v4 = vmul.f32 0.70710677, %v1996_v35 }
 0x92d   :  { %v2030_v24 = vmax.f32 %v2028_v41, %v2029_v40  ;;  %v2023_v32 = vmax.f32 %v2021_v5, %v2022_v43  ;;  %v2042_v29 = vmax.f32 %v2040_v15, %v2041_v58  ;;  %v2035_v9 = vmax.f32 %v2033_v28, %v2034_v44  ;;  %v1950_v45 = vpop.permute.xlu1 %1949  ;;  %v1960_v18 = vpop.permute.xlu0 %1959 }
 0x92e   :  { %v2047_v39 = vsel %vm198_vm10, %v10886_v17, -inf  ;;  %v2082_v37 = vsel %vm198_vm10, %v10888_v4, -inf  ;;  %v1992_v21 = vadd.f32 %v1950_v45, %v10816_v23  ;;  %v1997_v47 = vadd.f32 %v1960_v18, %v10818_v25 }
 0x92f   :  { %v2031_v12 = vrot.slane %v2030_v24, 1  ;;  %v2024_v13 = vrot.slane %v2023_v32, 1  ;;  %v2043_v35 = vrot.slane %v2042_v29, 2  ;;  %v2036_v20 = vrot.slane %v2035_v9, 2 }
 0x930   :  { %v2048_v41 = vrot.slane %v2047_v39, 4  ;;  %v2083_v5 = vrot.slane %v2082_v37, 4  ;;  %v10896_v15 = vmul.f32 0.70710677, %v1992_v21  ;;  %v10898_v28 = vmul.f32 0.70710677, %v1997_v47 }
 0x931   :  { %v2032_v40 = vmax.f32 %v2030_v24, %v2031_v12  ;;  %v2025_v43 = vmax.f32 %v2023_v32, %v2024_v13  ;;  %v2044_v58 = vmax.f32 %v2042_v29, %v2043_v35  ;;  %v2037_v44 = vmax.f32 %v2035_v9, %v2036_v20  ;;  %v1952_v45 = vpop.permute.xlu1 %1951  ;;  %v1962_v35 = vpop.permute.xlu0 %1961 }
 0x932   :  { %v2049_v6 = vmax.f32 %v2047_v39, %v2048_v41  ;;  %v2084_v30 = vmax.f32 %v2082_v37, %v2083_v5  ;;  %v2054_v23 = vsel %vm198_vm10, %v10896_v15, -inf  ;;  %v2089_v25 = vsel %vm198_vm10, %v10898_v28, -inf }
 0x933   :  { %v2132_v18 = vsub.f32 %v2004_v11, %v2032_v40  ;;  %v2131_v42 = vsub.f32 %v2003_v33, %v2025_v43  ;;  %v2045_v36 = vrot.slane %v2044_v58, 1  ;;  %v2038_v21 = vrot.slane %v2037_v44, 1 }
 0x934   :  { %v2050_v34 = vrot.slane %v2049_v6, 2  ;;  %v2085_v47 = vrot.slane %v2084_v30, 2  ;;  %v2055_v57 = vrot.slane %v2054_v23, 4  ;;  %v2090_v24 = vrot.slane %v2089_v25, 4 }
 0x935   :  { %v2149_v32 = vmul.f32 1.442695, %v2132_v18  ;;  %v2147_v29 = vmul.f32 1.442695, %v2131_v42  ;;  %v2046_v20 = vmax.f32 %v2044_v58, %v2045_v36  ;;  %v2039_v9 = vmax.f32 %v2037_v44, %v2038_v21  ;;  %v1956_v18 = vpop.permute.xlu1 %1955  ;;  %v1964_v21 = vpop.permute.xlu0 %1963 }
 0x936   :  { %v2051_v39 = vmax.f32 %v2049_v6, %v2050_v34  ;;  %v2086_v37 = vmax.f32 %v2084_v30, %v2085_v47  ;;  %v2056_v12 = vmax.f32 %v2054_v23, %v2055_v57  ;;  %v2091_v13 = vmax.f32 %v2089_v25, %v2090_v24 }
 0x937   :  { %9516 = vpow2.f32 %v2149_v32  ;;  %v2134_v41 = vsub.f32 %v10876_v38, %v2046_v20  ;;  %v2133_v11 = vsub.f32 %v10878_v19, %v2039_v9  ;;  %v1993_v33 = vadd.f32 %v1952_v45, %v10827_v62 }
 0x938   :  { %9518 = vpow2.f32 %v2147_v29  ;;  %v2052_v5 = vrot.slane %v2051_v39, 1  ;;  %v2087_v40 = vrot.slane %v2086_v37, 1  ;;  %v2057_v43 = vrot.slane %v2056_v12, 2 }
 0x939   :  { %v2153_v42 = vmul.f32 1.442695, %v2134_v41  ;;  %v2151_v36 = vmul.f32 1.442695, %v2133_v11  ;;  %v2092_v58 = vrot.slane %v2091_v13, 2  ;;  %v1998_v34 = vadd.f32 %v1962_v35, %v10829_v16 }
 0x93a   :  { %v2053_v30 = vmax.f32 %v2051_v39, %v2052_v5  ;;  %v2088_v6 = vmax.f32 %v2086_v37, %v2087_v40  ;;  %v2058_v57 = vmax.f32 %v2056_v12, %v2057_v43  ;;  %v10908_v44 = vmul.f32 0.70710677, %v1993_v33 }
 0x93b   :  { %9520 = vpow2.f32 %v2153_v42  ;;  %v2093_v38 = vmax.f32 %v2091_v13, %v2092_v58  ;;  %v10910_v19 = vmul.f32 0.70710677, %v1998_v34  ;;  %v1995_v62 = vadd.f32 %v1956_v18, %v10838_v54 }
 0x93c   :  { %9522 = vpow2.f32 %v2151_v36  ;;  %v2135_v23 = vsub.f32 %v10886_v17, %v2053_v30  ;;  %v2140_v25 = vsub.f32 %v10888_v4, %v2088_v6  ;;  %v2059_v45 = vrot.slane %v2058_v57, 1 }
 0x93d   :  { %v2094_v47 = vrot.slane %v2093_v38, 1  ;;  %v2061_v16 = vsel %vm198_vm10, %v10908_v44, -inf  ;;  %v2096_v24 = vsel %vm198_vm10, %v10910_v19, -inf  ;;  %v10919_v32 = vmul.f32 0.70710677, %v1995_v62 }
 0x93e   :  { %v2155_v29 = vmul.f32 1.442695, %v2135_v23  ;;  %v2165_v20 = vmul.f32 1.442695, %v2140_v25  ;;  %v2060_v9 = vmax.f32 %v2058_v57, %v2059_v45  ;;  %v2062_v54 = vrot.slane %v2061_v16, 4 }
 0x93f   :  { %v2095_v39 = vmax.f32 %v2093_v38, %v2094_v47  ;;  %v2097_v37 = vrot.slane %v2096_v24, 4  ;;  %v2075_v17 = vsel %vm198_vm10, %v10919_v32, -inf  ;;  %v1999_v4 = vadd.f32 %v1964_v21, %v10840_v22 }
 0x940   :  { %9524 = vpow2.f32 %v2155_v29  ;;  %v2136_v12 = vsub.f32 %v10896_v15, %v2060_v9  ;;  %v2063_v13 = vmax.f32 %v2061_v16, %v2062_v54  ;;  %v2076_v35 = vrot.slane %v2075_v17, 4 }
 0x941   :  { %v10925_v41 = vpop.eup %9516  ;;  %9526 = vpow2.f32 %v2165_v20  ;;  %v2141_v11 = vsub.f32 %v10898_v28, %v2095_v39  ;;  %v2098_v33 = vmax.f32 %v2096_v24, %v2097_v37  ;;  %v10928_v5 = vmul.f32 0.70710677, %v1999_v4 }
 0x942   :  { %v10930_v40 = vpop.eup %9518  ;;  %v2186_v43 = vsel %vm198_vm10, %v10925_v41, 0.0  ;;  %v2157_v18 = vmul.f32 1.442695, %v2136_v12  ;;  %v2064_v22 = vrot.slane %v2063_v13, 2  ;;  %v2077_v42 = vmax.f32 %v2075_v17, %v2076_v35 }
 0x943   :  { %v2187_v36 = vrot.slane %v2186_v43, 4  ;;  %v2179_v15 = vsel %vm198_vm10, %v10930_v40, 0.0  ;;  %v2167_v58 = vmul.f32 1.442695, %v2141_v11  ;;  %v2099_v34 = vrot.slane %v2098_v33, 2 }
 0x944   :  { %v2180_v30 = vrot.slane %v2179_v15, 4  ;;  %9528 = vpow2.f32 %v2157_v18  ;;  %v2065_v28 = vmax.f32 %v2063_v13, %v2064_v22  ;;  %v2078_v6 = vrot.slane %v2077_v42, 2 }
 0x945   :  { %v10936_v57 = vpop.eup %9520  ;;  %v2188_v38 = vadd.f32 %v2187_v36, %v2186_v43  ;;  %9530 = vpow2.f32 %v2167_v58  ;;  %v2100_v62 = vmax.f32 %v2098_v33, %v2099_v34  ;;  %v2103_v23 = vsel %vm198_vm10, %v10928_v5, -inf }
 0x946   :  { %v10940_v25 = vpop.eup %9522  ;;  %v2181_v45 = vadd.f32 %v2180_v30, %v2179_v15  ;;  %v2200_v21 = vsel %vm198_vm10, %v10936_v57, 0.0  ;;  %v2066_v47 = vrot.slane %v2065_v28, 1  ;;  %v2079_v16 = vmax.f32 %v2077_v42, %v2078_v6 }
 0x947   :  { %v2189_v24 = vrot.slane %v2188_v38, 2  ;;  %v2201_v29 = vrot.slane %v2200_v21, 4  ;;  %v2193_v20 = vsel %vm198_vm10, %v10940_v25, 0.0  ;;  %v2101_v9 = vrot.slane %v2100_v62, 1 }
 0x948   :  { %v2182_v54 = vrot.slane %v2181_v45, 2  ;;  %v2194_v39 = vrot.slane %v2193_v20, 4  ;;  %v2067_v37 = vmax.f32 %v2065_v28, %v2066_v47  ;;  %v2080_v17 = vrot.slane %v2079_v16, 1 }
 0x949   :  { %v2190_v4 = vadd.f32 %v2189_v24, %v2188_v38  ;;  %v2202_v12 = vadd.f32 %v2201_v29, %v2200_v21  ;;  %v2102_v13 = vmax.f32 %v2100_v62, %v2101_v9  ;;  %v2104_v35 = vrot.slane %v2103_v23, 4 }
 0x94a   :  { %v10946_v11 = vpop.eup %9524  ;;  %v2183_v33 = vadd.f32 %v2182_v54, %v2181_v45  ;;  %v2195_v43 = vadd.f32 %v2194_v39, %v2193_v20  ;;  %v2137_v18 = vsub.f32 %v10908_v44, %v2067_v37  ;;  %v2081_v22 = vmax.f32 %v2079_v16, %v2080_v17 }
 0x94b   :  { %v10949_v42 = vpop.eup %9526  ;;  %v2191_v36 = vrot.slane %v2190_v4, 1  ;;  %v2203_v15 = vrot.slane %v2202_v12, 2  ;;  %v2207_v58 = vsel %vm198_vm10, %v10946_v11, 0.0  ;;  %v2142_v34 = vsub.f32 %v10910_v19, %v2102_v13 }
 0x94c   :  { %v2184_v30 = vrot.slane %v2183_v33, 1  ;;  %v2196_v28 = vrot.slane %v2195_v43, 2  ;;  %v2208_v6 = vrot.slane %v2207_v58, 4  ;;  %v2242_v38 = vsel %vm198_vm10, %v10949_v42, 0.0 }
 0x94d   :  { %v2192_v62 = vadd.f32 %v2191_v36, %v2190_v4  ;;  %v2204_v45 = vadd.f32 %v2203_v15, %v2202_v12  ;;  %v2243_v21 = vrot.slane %v2242_v38, 4  ;;  %v2159_v44 = vmul.f32 1.442695, %v2137_v18  ;;  %v1954_v12 = vpop.permute.xlu1 %1953 }
 0x94e   :  { %v10956_v47 = vpop.eup %9528  ;;  %v2185_v16 = vadd.f32 %v2184_v30, %v2183_v33  ;;  %v2197_v24 = vadd.f32 %v2196_v28, %v2195_v43  ;;  %v2209_v29 = vadd.f32 %v2208_v6, %v2207_v58  ;;  %v2169_v20 = vmul.f32 1.442695, %v2142_v34 }
 0x94f   :  { %v10958_v9 = vpop.eup %9530  ;;  %9532 = vrcp.f32 %v2192_v62  ;;  %v2205_v19 = vrot.slane %v2204_v45, 1  ;;  %v2244_v54 = vadd.f32 %v2243_v21, %v2242_v38  ;;  %v2214_v39 = vsel %vm198_vm10, %v10956_v47, 0.0  ;;  %v1966_v21 = vpop.permute.xlu0 %1965 }
 0x950   :  { %9534 = vrcp.f32 %v2185_v16  ;;  %v2198_v37 = vrot.slane %v2197_v24, 1  ;;  %v2210_v17 = vrot.slane %v2209_v29, 2  ;;  %v2215_v4 = vrot.slane %v2214_v39, 4 }
 0x951   :  { %v2206_v13 = vadd.f32 %v2205_v19, %v2204_v45  ;;  %v2245_v18 = vrot.slane %v2244_v54, 2  ;;  %v2249_v33 = vsel %vm198_vm10, %v10958_v9, 0.0  ;;  %9536 = vpow2.f32 %v2159_v44 }
 0x952   :  { %v2199_v43 = vadd.f32 %v2198_v37, %v2197_v24  ;;  %v2211_v36 = vadd.f32 %v2210_v17, %v2209_v29  ;;  %v2216_v15 = vadd.f32 %v2215_v4, %v2214_v39  ;;  %v2250_v58 = vrot.slane %v2249_v33, 4  ;;  %v1970_v39 = vpop.permute.xlu1 %1969 }
 0x953   :  { %9538 = vrcp.f32 %v2206_v13  ;;  %v2246_v34 = vadd.f32 %v2245_v18, %v2244_v54  ;;  %v2139_v30 = vsub.f32 %v10919_v32, %v2081_v22  ;;  %v2105_v28 = vmax.f32 %v2103_v23, %v2104_v35 }
 0x954   :  { %9540 = vrcp.f32 %v2199_v43  ;;  %v2212_v6 = vrot.slane %v2211_v36, 1  ;;  %v2217_v38 = vrot.slane %v2216_v15, 2  ;;  %v2251_v62 = vadd.f32 %v2250_v58, %v2249_v33 }
 0x955   :  { %v2247_v45 = vrot.slane %v2246_v34, 1  ;;  %9542 = vpow2.f32 %v2169_v20  ;;  %v2163_v16 = vmul.f32 1.442695, %v2139_v30  ;;  %v2106_v19 = vrot.slane %v2105_v28, 2 }
 0x956   :  { %v2213_v2 = vadd.f32 %v2212_v6, %v2211_v36  ;;  %v2218_v44 = vadd.f32 %v2217_v38, %v2216_v15  ;;  %v2252_v24 = vrot.slane %v2251_v62, 2  ;;  %v1994_v29 = vadd.f32 %v1954_v12, %v10848_v8 }
 0x957   :  { %v2248_v37 = vadd.f32 %v2247_v45, %v2246_v34  ;;  %9544 = vpow2.f32 %v2163_v16  ;;  %v2107_v54 = vmax.f32 %v2105_v28, %v2106_v19  ;;  %v2000_v32 = vadd.f32 %v1966_v21, %v10850_v53 }
 0x958   :  { %9546 = vrcp.f32 %v2213_v2  ;;  %v2219_v23 = vrot.slane %v2218_v44, 1  ;;  %v2253_v35 = vadd.f32 %v2252_v24, %v2251_v62  ;;  %v10967_v22 = vmul.f32 0.70710677, %v1994_v29 }
 0x959   :  { %v9533_v17 = vpop.eup %9532  ;;  %9548 = vrcp.f32 %v2248_v37  ;;  %v2108_v20 = vrot.slane %v2107_v54, 1  ;;  %v10969_v4 = vmul.f32 0.70710677, %v2000_v32  ;;  %v10972_v13 = vadd.f32 %v1970_v39, %v10860_v0 }
 0x95a   :  { %v9535_v8 = vpop.eup %9534  ;;  %v10975_v12 = vmul.f32 %v9533_v17, %v10925_v41  ;;  %v2220_v18 = vadd.f32 %v2219_v23, %v2218_v44  ;;  %v2254_v33 = vrot.slane %v2253_v35, 1  ;;  %v2068_v2 = vsel %vm198_vm10, %v10967_v22, -inf }
 0x95b   :  { %v10979_v53 = vpop.eup %9536  ;;  %v10982_v43 = vmul.f32 %v9535_v8, %v10930_v40  ;;  %v2109_v36 = vmax.f32 %v2107_v54, %v2108_v20  ;;  %v2069_v15 = vrot.slane %v2068_v2, 4  ;;  %v2110_v0 = vsel %vm198_vm10, %v10969_v4, -inf }
 0x95c   :  { %v2324_v58 = vmul.f32 %v10975_v12, %v10768_v49  ;;  %9550 = vrcp.f32 %v2220_v18  ;;  %v2255_v41 = vadd.f32 %v2254_v33, %v2253_v35  ;;  %v2221_v34 = vsel %vm198_vm10, %v10979_v53, 0.0 }
 0x95d   :  { %v9539_v30 = vpop.eup %9538  ;;  %v2323_v28 = vmul.f32 %v10982_v43, %v10768_v49  ;;  %v2222_v6 = vrot.slane %v2221_v34, 4  ;;  %v2143_v40 = vsub.f32 %v10928_v5, %v2109_v36  ;;  %v2070_v38 = vmax.f32 %v2068_v2, %v2069_v15 }
 0x95e   :  { %v9541_v62 = vpop.eup %9540  ;;  %v2346_v21 = vsel %vm198_vm10, %v2324_v58, 0.0  ;;  %v10995_v45 = vmul.f32 %v9539_v30, %v10936_v57  ;;  %9552 = vrcp.f32 %v2255_v41  ;;  %v2111_v16 = vrot.slane %v2110_v0, 4 }
 0x95f   :  { %v10997_v19 = vpop.eup %9542  ;;  %v2347_v44 = vrot.slane %v2346_v21, 4  ;;  %v2339_v24 = vsel %vm198_vm10, %v2323_v28, 0.0  ;;  %v11001_v29 = vmul.f32 %v9541_v62, %v10940_v25  ;;  %v2223_v39 = vadd.f32 %v2222_v6, %v2221_v34 }
 0x960   :  { %v2340_v37 = vrot.slane %v2339_v24, 4  ;;  %v2326_v5 = vmul.f32 %v10995_v45, %v10768_v49  ;;  %v2256_v54 = vsel %vm198_vm10, %v10997_v19, 0.0  ;;  %v2171_v57 = vmul.f32 1.442695, %v2143_v40 }
 0x961   :  { %v11007_v32 = vpop.eup %9544  ;;  %v2348_v23 = vadd.f32 %v2347_v44, %v2346_v21  ;;  %v2325_v35 = vmul.f32 %v11001_v29, %v10768_v49  ;;  %v2224_v17 = vrot.slane %v2223_v39, 2  ;;  %v2257_v20 = vrot.slane %v2256_v54, 4 }
 0x962   :  { %v9547_v8 = vpop.eup %9546  ;;  %v2341_v25 = vadd.f32 %v2340_v37, %v2339_v24  ;;  %v2360_v18 = vsel %vm198_vm10, %v2326_v5, 0.0  ;;  %v2235_v33 = vsel %vm198_vm10, %v11007_v32, 0.0  ;;  %9554 = vpow2.f32 %v2171_v57 }
 0x963   :  { %v9549_v2 = vpop.eup %9548  ;;  %v2349_v36 = vrot.slane %v2348_v23, 2  ;;  %v2361_v15 = vrot.slane %v2360_v18, 4  ;;  %v2353_v58 = vsel %vm198_vm10, %v2325_v35, 0.0  ;;  %v11016_v41 = vmul.f32 %v9547_v8, %v10946_v11 }
 0x964   :  { %v2342_v34 = vrot.slane %v2341_v25, 2  ;;  %v2354_v30 = vrot.slane %v2353_v58, 4  ;;  %v2310_v28 = vmul.f32 %v9549_v2, %v10949_v42  ;;  %v2225_v6 = vadd.f32 %v2224_v17, %v2223_v39 }
 0x965   :  { %v11019_v40 = vadd.f32 %v2349_v36, %v2348_v23  ;;  %v11021_v62 = vadd.f32 %v2361_v15, %v2360_v18  ;;  %v11025_v21 = vmul.f32 %v11016_v41, %v10768_v49  ;;  %v2258_v44 = vadd.f32 %v2257_v20, %v2256_v54  ;;  %v1968_v15 = vpop.permute.xlu0 %1967 }
 0x966   :  { %v9551_v24 = vpop.eup %9550  ;;  %v11027_v37 = vadd.f32 %v2342_v34, %v2341_v25  ;;  %v11029_v5 = vadd.f32 %v2354_v30, %v2353_v58  ;;  %v2332_v11 = vmul.f32 %v2310_v28, %v10771_v10  ;;  %v2226_v57 = vrot.slane %v2225_v6, 1 }
 0x967   :  { %v11033_v42 = vmul.f32 %v9551_v24, %v10956_v47  ;;  %v2259_v39 = vrot.slane %v2258_v44, 2  ;;  %v2236_v23 = vrot.slane %v2235_v33, 4  ;;  %v2071_v35 = vrot.slane %v2070_v38, 2 }
 0x968   :  { %v9553_v17 = vpop.eup %9552  ;;  %v2402_v18 = vsel %vm198_vm10, %v2332_v11, 0.0  ;;  %v2227_v54 = vadd.f32 %v2226_v57, %v2225_v6  ;;  %v2112_v20 = vmax.f32 %v2110_v0, %v2111_v16  ;;  %v11047_v0 = vmul.f32 0.70710677, %v10972_v13 }
 0x969   :  { %v2403_v25 = vrot.slane %v2402_v18, 4  ;;  %v11039_v2 = vmul.f32 %v11033_v42, %v10768_v49  ;;  %v11042_v36 = vmul.f32 %v9553_v17, %v10958_v9  ;;  %v2260_v47 = vadd.f32 %v2259_v39, %v2258_v44 }
 0x96a   :  { %9556 = vrcp.f32 %v2227_v54  ;;  %v2237_v58 = vadd.f32 %v2236_v23, %v2235_v33  ;;  %v2072_v34 = vmax.f32 %v2070_v38, %v2071_v35  ;;  %v2113_v30 = vrot.slane %v2112_v20, 2 }
 0x96b   :  { %v2404_v24 = vadd.f32 %v2403_v25, %v2402_v18  ;;  %v2333_v11 = vmul.f32 %v11042_v36, %v10771_v10  ;;  %v2261_v6 = vrot.slane %v2260_v47, 1  ;;  %v2001_v44 = vadd.f32 %v1968_v15, %v10858_v31 }
 0x96c   :  { %v11049_v16 = vpop.eup %9554  ;;  %v2238_v57 = vrot.slane %v2237_v58, 2  ;;  %v2073_v8 = vrot.slane %v2072_v34, 1  ;;  %v2114_v9 = vmax.f32 %v2112_v20, %v2113_v30  ;;  %v2124_v20 = vsel %vm198_vm10, %v11047_v0, -inf }
 0x96d   :  { %v2405_v39 = vrot.slane %v2404_v24, 2  ;;  %v2409_v33 = vsel %vm198_vm10, %v2333_v11, 0.0  ;;  %v2262_v38 = vadd.f32 %v2261_v6, %v2260_v47  ;;  %v2263_v23 = vsel %vm198_vm10, %v11049_v16, 0.0  ;;  %v11062_v11 = vpop.permute.xlu1 %2455 }
 0x96e   :  { %v2410_v35 = vrot.slane %v2409_v33, 4  ;;  %v2239_v17 = vadd.f32 %v2238_v57, %v2237_v58  ;;  %v2264_v18 = vrot.slane %v2263_v23, 4  ;;  %v2074_v54 = vmax.f32 %v2072_v34, %v2073_v8 }
 0x96f   :  { %v11055_v13 = vadd.f32 %v2405_v39, %v2404_v24  ;;  %9558 = vrcp.f32 %v2262_v38  ;;  %v2115_v25 = vrot.slane %v2114_v9, 1  ;;  %v2125_v1 = vrot.slane %v2124_v20, 4 }
 0x970   :  { %v11059_v30 = vadd.f32 %v2410_v35, %v2409_v33  ;;  %v2240_v31 = vrot.slane %v2239_v17, 1  ;;  %v2265_v15 = vadd.f32 %v2264_v18, %v2263_v23  ;;  %v2138_v47 = vsub.f32 %v10967_v22, %v2074_v54  ;;  %v11070_v33 = vpop.permute.xlu0 %2453 }
 0x971   :  { %v2116_v6 = vmax.f32 %v2114_v9, %v2115_v25  ;;  %v11064_v58 = vmul.f32 0.70710677, %v2001_v44  ;;  %v11067_v8 = vmul.f32 %v11062_v11, %v2310_v28  ;;  %v2126_v23 = vmax.f32 %v2124_v20, %v2125_v1 }
 0x972   :  { %v2241_v24 = vadd.f32 %v2240_v31, %v2239_v17  ;;  %v2266_v57 = vrot.slane %v2265_v15, 2  ;;  %v2161_v39 = vmul.f32 1.442695, %v2138_v47  ;;  %v2459_v9 = vmul.f32 %v11070_v33, %v10982_v43 }
 0x973   :  { %v2144_v38 = vsub.f32 %v10969_v4, %v2116_v6  ;;  %v2117_v22 = vsel %vm198_vm10, %v11064_v58, -inf  ;;  %v2460_v17 = vmul.f32 %v11070_v33, %v10975_v12  ;;  %v2127_v4 = vrot.slane %v2126_v23, 2 }
 0x974   :  { %v9557_v44 = vpop.eup %9556  ;;  %9560 = vrcp.f32 %v2241_v24  ;;  %v2267_v28 = vadd.f32 %v2266_v57, %v2265_v15  ;;  %v2118_v35 = vrot.slane %v2117_v22, 4  ;;  %v2461_v20 = vmul.f32 %v11070_v33, %v11001_v29 }
 0x975   :  { %v11080_v18 = vmul.f32 %v9557_v44, %v10979_v53  ;;  %9562 = vpow2.f32 %v2161_v39  ;;  %v2173_v54 = vmul.f32 1.442695, %v2144_v38  ;;  %v2462_v43 = vmul.f32 %v11070_v33, %v10995_v45 }
 0x976   :  { %v2268_v1 = vrot.slane %v2267_v28, 1  ;;  %v2119_v25 = vmax.f32 %v2117_v22, %v2118_v35  ;;  %v2128_v31 = vmax.f32 %v2126_v23, %v2127_v4  ;;  %v2463_v15 = vmul.f32 %v11070_v33, %v11016_v41 }
 0x977   :  { %9564 = vpow2.f32 %v2173_v54  ;;  %v11090_v12 = vmul.f32 %v11070_v33, %v11033_v42  ;;  %v11094_v6 = vmul.f32 %v11070_v33, %v11080_v18  ;;  %v2475_v29 = vsel %vm198_vm10, %v2459_v9, 0.0 }
 0x978   :  { %v2269_v53 = vadd.f32 %v2268_v1, %v2267_v28  ;;  %v2120_v47 = vrot.slane %v2119_v25, 2  ;;  %v2129_v57 = vrot.slane %v2128_v31, 1  ;;  %v2476_v45 = vrot.slane %v2475_v29, 4 }
 0x979   :  { %v9559_v24 = vpop.eup %9558  ;;  %v2482_v39 = vsel %vm198_vm10, %v2460_v17, 0.0  ;;  %v2489_v38 = vsel %vm198_vm10, %v2461_v20, 0.0  ;;  %v2496_v35 = vsel %vm198_vm10, %v2462_v43, 0.0 }
 0x97a   :  { %v11100_v41 = vmul.f32 %v9559_v24, %v10997_v19  ;;  %9566 = vrcp.f32 %v2269_v53  ;;  %v2121_v42 = vmax.f32 %v2119_v25, %v2120_v47  ;;  %v2483_v23 = vrot.slane %v2482_v39, 4 }
 0x97b   :  { %v2130_v22 = vmax.f32 %v2128_v31, %v2129_v57  ;;  %v2477_v44 = vadd.f32 %v2476_v45, %v2475_v29  ;;  %v2490_v28 = vrot.slane %v2489_v38, 4  ;;  %v2497_v1 = vrot.slane %v2496_v35, 4 }
 0x97c   :  { %v2334_v9 = vmul.f32 %v11100_v41, %v10771_v10  ;;  %v2122_v54 = vrot.slane %v2121_v42, 1  ;;  %v2484_v4 = vadd.f32 %v2483_v23, %v2482_v39  ;;  %v2503_v19 = vsel %vm198_vm10, %v2463_v15, 0.0 }
 0x97d   :  { %v2146_v17 = vsub.f32 %v11047_v0, %v2130_v22  ;;  %v2478_v20 = vrot.slane %v2477_v44, 2  ;;  %v2491_v34 = vadd.f32 %v2490_v28, %v2489_v38  ;;  %v2498_v29 = vadd.f32 %v2497_v1, %v2496_v35 }
 0x97e   :  { %v9561_v53 = vpop.eup %9560  ;;  %v2416_v25 = vsel %vm198_vm10, %v2334_v9, 0.0  ;;  %v2123_v31 = vmax.f32 %v2121_v42, %v2122_v54  ;;  %v2485_v47 = vrot.slane %v2484_v4, 2  ;;  %v2504_v50 = vrot.slane %v2503_v19, 4 }
 0x97f   :  { %v11108_v24 = vpop.eup %9562  ;;  %v2417_v43 = vrot.slane %v2416_v25, 4  ;;  %v2308_v57 = vmul.f32 %v9561_v53, %v11007_v32  ;;  %v2177_v45 = vmul.f32 1.442695, %v2146_v17  ;;  %v2479_v39 = vadd.f32 %v2478_v20, %v2477_v44 }
 0x980   :  { %v2228_v0 = vsel %vm198_vm10, %v11108_v24, 0.0  ;;  %v2145_v38 = vsub.f32 %v11064_v58, %v2123_v31  ;;  %v2486_v23 = vadd.f32 %v2485_v47, %v2484_v4  ;;  %v2492_v15 = vrot.slane %v2491_v34, 2 }
 0x981   :  { %v11114_v22 = vpop.eup %9564  ;;  %v11116_v28 = vadd.f32 %v2417_v43, %v2416_v25  ;;  %v2331_v42 = vmul.f32 %v2308_v57, %v10771_v10  ;;  %v2229_v35 = vrot.slane %v2228_v0, 4  ;;  %9568 = vpow2.f32 %v2177_v45 }
 0x982   :  { %v2270_v32 = vsel %vm198_vm10, %v11114_v22, 0.0  ;;  %v2175_v9 = vmul.f32 1.442695, %v2145_v38  ;;  %v11122_v44 = vmul.f32 %v11062_v11, %v2308_v57  ;;  %v2480_v54 = vrot.slane %v2479_v39, 1 }
 0x983   :  { %v2395_v58 = vsel %vm198_vm10, %v2331_v42, 0.0  ;;  %v2230_v4 = vadd.f32 %v2229_v35, %v2228_v0  ;;  %v2271_v1 = vrot.slane %v2270_v32, 4  ;;  %v2487_v17 = vrot.slane %v2486_v23, 1 }
 0x984   :  { %v9567_v20 = vpop.eup %9566  ;;  %v2396_v53 = vrot.slane %v2395_v58, 4  ;;  %9570 = vpow2.f32 %v2175_v9  ;;  %v2481_v25 = vadd.f32 %v2480_v54, %v2479_v39  ;;  %v2493_v31 = vadd.f32 %v2492_v15, %v2491_v34 }
 0x985   :  { %v2316_v47 = vmul.f32 %v9567_v20, %v11049_v16  ;;  %v2231_v43 = vrot.slane %v2230_v4, 2  ;;  %v2272_v45 = vadd.f32 %v2271_v1, %v2270_v32  ;;  %v2488_v52 = vadd.f32 %v2487_v17, %v2486_v23 }
 0x986   :  { %v2397_v38 = vadd.f32 %v2396_v53, %v2395_v58  ;;  %v2494_v7 = vrot.slane %v2493_v31, 1  ;;  %v2499_v57 = vrot.slane %v2498_v29, 2  ;;  %v2510_v35 = vsel %vm198_vm10, %v11090_v12, 0.0 }
 0x987   :  { %v11127_v3 = vmul.f32 %v2316_v47, %v10771_v10  ;;  %v2232_v0 = vadd.f32 %v2231_v43, %v2230_v4  ;;  %v2273_v42 = vrot.slane %v2272_v45, 2  ;;  %v2505_v15 = vadd.f32 %v2504_v50, %v2503_v19 }
 0x988   :  { %v2398_v9 = vrot.slane %v2397_v38, 2  ;;  %v2495_v39 = vadd.f32 %v2494_v7, %v2493_v31  ;;  %v2500_v34 = vadd.f32 %v2499_v57, %v2498_v29  ;;  %v2511_v32 = vrot.slane %v2510_v35, 4 }
 0x989   :  { %v2233_v16 = vrot.slane %v2232_v0, 1  ;;  %v2274_v54 = vadd.f32 %v2273_v42, %v2272_v45  ;;  %v2517_v23 = vsel %vm198_vm10, %v11094_v6, 0.0  ;;  %v2506_v17 = vrot.slane %v2505_v15, 2 }
 0x98a   :  { %v11133_v58 = vadd.f32 %v2398_v9, %v2397_v38  ;;  %v2501_v1 = vrot.slane %v2500_v34, 1  ;;  %v2518_v20 = vrot.slane %v2517_v23, 4  ;;  %v2512_v12 = vadd.f32 %v2511_v32, %v2510_v35 }
 0x98b   :  { %v11135_v4 = vpop.eup %9568  ;;  %v2234_v53 = vadd.f32 %v2233_v16, %v2232_v0  ;;  %v2275_v43 = vrot.slane %v2274_v54, 1  ;;  %v2635_v7 = vsel %vm1200_vm12, %v2488_v52, %v2481_v25  ;;  %v2507_v29 = vadd.f32 %v2506_v17, %v2505_v15 }
 0x98c   :  { %v2284_v50 = vsel %vm198_vm10, %v11135_v4, 0.0  ;;  %v2502_v19 = vadd.f32 %v2501_v1, %v2500_v34  ;;  %v2519_v31 = vadd.f32 %v2518_v20, %v2517_v23  ;;  %v2513_v38 = vrot.slane %v2512_v12, 2 }
 0x98d   :  { %9572 = vrcp.f32 %v2234_v53  ;;  %v2276_v6 = vadd.f32 %v2275_v43, %v2274_v54  ;;  %v2285_v45 = vrot.slane %v2284_v50, 4  ;;  %v2508_v42 = vrot.slane %v2507_v29, 1 }
 0x98e   :  { %v11140_v57 = vpop.eup %9570  ;;  %v2520_v9 = vrot.slane %v2519_v31, 2  ;;  %v2636_v0 = vsel %vm1202_vm13, %v2495_v39, %v2635_v7  ;;  %v2469_v35 = vmul.f32 %v11062_v11, %v11042_v36  ;;  %v2514_v34 = vadd.f32 %v2513_v38, %v2512_v12 }
 0x98f   :  { %9574 = vrcp.f32 %v2276_v6  ;;  %v2286_v52 = vadd.f32 %v2285_v45, %v2284_v50  ;;  %v2277_v25 = vsel %vm198_vm10, %v11140_v57, 0.0  ;;  %v2509_v16 = vadd.f32 %v2508_v42, %v2507_v29 }
 0x990   :  { %v2278_v15 = vrot.slane %v2277_v25, 4  ;;  %v2521_v54 = vadd.f32 %v2520_v9, %v2519_v31  ;;  %v2637_v32 = vsel %vm1204_vm14, %v2502_v19, %v2636_v0  ;;  %v2515_v1 = vrot.slane %v2514_v34, 1 }
 0x991   :  { %v2287_v23 = vrot.slane %v2286_v52, 2  ;;  %v2470_v17 = vmul.f32 %v11062_v11, %v11100_v41  ;;  %v2471_v39 = vmul.f32 %v11062_v11, %v2316_v47  ;;  %v2638_v53 = vsel %vm1206_vm15, %v2509_v16, %v2637_v32 }
 0x992   :  { %v2279_v20 = vadd.f32 %v2278_v15, %v2277_v25  ;;  %v2522_v36 = vrot.slane %v2521_v54, 1  ;;  %v2531_v43 = vsel %vm198_vm10, %v11122_v44, 0.0  ;;  %v2516_v7 = vadd.f32 %v2515_v1, %v2514_v34 }
 0x993   :  { %v2288_v12 = vadd.f32 %v2287_v23, %v2286_v52  ;;  %v2532_v50 = vrot.slane %v2531_v43, 4  ;;  %v2538_v19 = vsel %vm198_vm10, %v11067_v8, 0.0  ;;  %v2545_v41 = vsel %vm198_vm10, %v2469_v35, 0.0 }
 0x994   :  { %v2280_v29 = vrot.slane %v2279_v20, 2  ;;  %v2523_v31 = vadd.f32 %v2522_v36, %v2521_v54  ;;  %v2539_v6 = vrot.slane %v2538_v19, 4  ;;  %v2639_v47 = vsel %vm1208_vm1, %v2516_v7, %v2638_v53 }
 0x995   :  { %v2289_v45 = vrot.slane %v2288_v12, 1  ;;  %v2533_v38 = vadd.f32 %v2532_v50, %v2531_v43  ;;  %v2546_v42 = vrot.slane %v2545_v41, 4  ;;  %v2552_v52 = vsel %vm198_vm10, %v2470_v17, 0.0 }
 0x996   :  { %v2281_v9 = vadd.f32 %v2280_v29, %v2279_v20  ;;  %v11159_v0 = vsel %vm1210_vm2, %v2523_v31, %v2639_v47  ;;  %v2540_v44 = vadd.f32 %v2539_v6, %v2538_v19  ;;  %v2553_v16 = vrot.slane %v2552_v52, 4 }
 0x997   :  { %v9573_v25 = vpop.eup %9572  ;;  %v2290_v34 = vadd.f32 %v2289_v45, %v2288_v12  ;;  %v2534_v8 = vrot.slane %v2533_v38, 2  ;;  %v2547_v15 = vadd.f32 %v2546_v42, %v2545_v41  ;;  %v2559_v23 = vsel %vm198_vm10, %v2471_v39, 0.0  ;;  %v2658_v39 = vld [vmem:[%s13915_s1 + $0x310] sm:$0xff]  ;;  %v2659_v41 = vld [vmem:[%s13915_s1 + $0x320] sm:$0xff] }
 0x998   :  { %v2282_v54 = vrot.slane %v2281_v9, 1  ;;  %v2306_v35 = vmul.f32 %v9573_v25, %v11108_v24  ;;  %v2541_v32 = vrot.slane %v2540_v44, 2  ;;  %v2554_v53 = vadd.f32 %v2553_v16, %v2552_v52  ;;  %v2657_v24 = vld [vmem:[%s13915_s1 + $0x300] sm:$0xff]  ;;  %v2662_v52 = vld [vmem:[%s13915_s1 + $0x350] sm:$0xff] }
 0x999   :  { %v9575_v1 = vpop.eup %9574  ;;  %9576 = vrcp.f32 %v2290_v34  ;;  %v2535_v20 = vadd.f32 %v2534_v8, %v2533_v38  ;;  %v2548_v36 = vrot.slane %v2547_v15, 2  ;;  %v2560_v31 = vrot.slane %v2559_v23, 4 }
 0x99a   :  { %v2318_v43 = vmul.f32 %v9575_v1, %v11114_v22  ;;  %v2283_v7 = vadd.f32 %v2282_v54, %v2281_v9  ;;  %v2466_v17 = vmul.f32 %v11070_v33, %v2306_v35  ;;  %v2542_v12 = vadd.f32 %v2541_v32, %v2540_v44  ;;  %v2660_v9 = vld [vmem:[%s13915_s1 + $0x330] sm:$0xff]  ;;  %v2661_v44 = vld [vmem:[%s13915_s1 + $0x340] sm:$0xff] }
 0x99b   :  { %v2536_v50 = vrot.slane %v2535_v20, 1  ;;  %v2549_v19 = vadd.f32 %v2548_v36, %v2547_v15  ;;  %v2555_v29 = vrot.slane %v2554_v53, 2  ;;  %v2561_v34 = vadd.f32 %v2560_v31, %v2559_v23 }
 0x99c   :  { %v11173_v6 = vmul.f32 %v2318_v43, %v10771_v10  ;;  %9578 = vrcp.f32 %v2283_v7  ;;  %v2524_v22 = vsel %vm198_vm10, %v2466_v17, 0.0  ;;  %v2472_v33 = vmul.f32 %v11062_v11, %v2318_v43 }
 0x99d   :  { %v2525_v45 = vrot.slane %v2524_v22, 4  ;;  %v2537_v47 = vadd.f32 %v2536_v50, %v2535_v20  ;;  %v2543_v38 = vrot.slane %v2542_v12, 1  ;;  %v2550_v42 = vrot.slane %v2549_v19, 1 }
 0x99e   :  { %v2556_v25 = vadd.f32 %v2555_v29, %v2554_v53  ;;  %v2566_v8 = vsel %vm198_vm10, %v2472_v33, 0.0  ;;  %v9156_v15 = vpack.c.bf16 %v2658_v39, %v2657_v24  ;;  %v2562_v36 = vrot.slane %v2561_v34, 2 }
 0x99f   :  { %v2526_v16 = vadd.f32 %v2525_v45, %v2524_v22  ;;  %v2544_v54 = vadd.f32 %v2543_v38, %v2542_v12  ;;  %v2551_v32 = vadd.f32 %v2550_v42, %v2549_v19  ;;  %v2567_v1 = vrot.slane %v2566_v8, 4 }
 0x9a0   :  { %v2557_v20 = vrot.slane %v2556_v25, 1  ;;  %9157 = vmatprep.subr.bf16.mxu1 %v9156_v15  ;;  %v9160_v43 = vpack.c.bf16 %v2660_v9, %v2659_v41  ;;  %v9164_v7 = vpack.c.bf16 %v2662_v52, %v2661_v44  ;;  %v2329_v23 = vmul.f32 %v11080_v18, %v10768_v49 }
 0x9a1   :  { %v2527_v17 = vrot.slane %v2526_v16, 2  ;;  %v2568_v50 = vadd.f32 %v2567_v1, %v2566_v8  ;;  %v2642_v61 = vsel %vm1200_vm12, %v2544_v54, %v2537_v47  ;;  %9159 = vmatpush3.bf16.msra.mxu1 %v9156_v15  ;;  %v2563_v29 = vadd.f32 %v2562_v36, %v2561_v34 }
 0x9a2   :  { %v2558_v53 = vadd.f32 %v2557_v20, %v2556_v25  ;;  %v2643_v31 = vsel %vm1202_vm13, %v2551_v32, %v2642_v61  ;;  %9161 = vmatprep.subr.bf16.mxu1 %v9160_v43  ;;  %v2330_v12 = vmul.f32 %v2306_v35, %v10768_v49  ;;  %v2344_v22 = vrot.slane %v11027_v37, 1 }
 0x9a3   :  { %v9577_v19 = vpop.eup %9576  ;;  %v2528_v24 = vadd.f32 %v2527_v17, %v2526_v16  ;;  %v2569_v39 = vrot.slane %v2568_v50, 2  ;;  %v2351_v33 = vrot.slane %v11019_v40, 1  ;;  %v2564_v45 = vrot.slane %v2563_v29, 1 }
 0x9a4   :  { %v11198_v41 = vmul.f32 %v9577_v19, %v11135_v4  ;;  %v2644_v18 = vsel %vm1204_vm14, %v2558_v53, %v2643_v31  ;;  %v14000_v47 = vrot.slane %v11029_v5, 2  ;;  %v2345_v49 = vadd.f32 %v2344_v22, %v11027_v37 }
 0x9a5   :  { %v2529_v38 = vrot.slane %v2528_v24, 1  ;;  %v2570_v42 = vadd.f32 %v2569_v39, %v2568_v50  ;;  %9163 = vmatpush3.bf16.msra.mxu1 %v9160_v43  ;;  %v2352_v35 = vadd.f32 %v2351_v33, %v11019_v40  ;;  %v2565_v4 = vadd.f32 %v2564_v45, %v2563_v29 }
 0x9a6   :  { %v2357_v61 = vadd.f32 %v14000_v47, %v11029_v5  ;;  %v9579_v9 = vpop.eup %9578  ;;  %v2474_v44 = vmul.f32 %v11062_v11, %v11198_v41  ;;  %9165 = vmatprep.subr.bf16.mxu1 %v9164_v7  ;;  %v2363_v25 = vrot.slane %v11021_v62, 2  ;;  %v2367_v15 = vsel %vm198_vm10, %v11025_v21, 0.0 }
 0x9a7   :  { %v11210_v34 = vmul.f32 %v9579_v9, %v11140_v57  ;;  %v2530_v5 = vadd.f32 %v2529_v38, %v2528_v24  ;;  %v2571_v8 = vrot.slane %v2570_v42, 1  ;;  %v2645_v40 = vsel %vm1206_vm15, %v2565_v4, %v2644_v18 }
 0x9a8   :  { %v2358_v52 = vrot.slane %v2357_v61, 1  ;;  %v2580_v37 = vsel %vm198_vm10, %v2474_v44, 0.0  ;;  %v2364_v54 = vadd.f32 %v2363_v25, %v11021_v62  ;;  %v2368_v21 = vrot.slane %v2367_v15, 4 }
 0x9a9   :  { %v2641_v32 = vsel %vm1212_vm3, %v2530_v5, %v11159_v0  ;;  %v2473_v1 = vmul.f32 %v11062_v11, %v11210_v34  ;;  %v2572_v57 = vadd.f32 %v2571_v8, %v2570_v42  ;;  %v2581_v20 = vrot.slane %v2580_v37, 4  ;;  %9167 = vmatpush3.bf16.msra.mxu1 %v9164_v7  ;;  %v2663_v7 = vld [vmem:[%s13915_s1 + $0x360] sm:$0xff] }
 0x9aa   :  { %v2359_v16 = vadd.f32 %v2358_v52, %v2357_v61  ;;  %2649 = vrot.lane.b32.xlu0 %v2641_v32, %s9904_s0  ;;  %v2365_v36 = vrot.slane %v2364_v54, 1  ;;  %v2374_v43 = vsel %vm198_vm10, %v11039_v2, 0.0  ;;  %v2381_v17 = vsel %vm198_vm10, %v2329_v23, 0.0  ;;  %v2664_v2 = vld [vmem:[%s13915_s1 + $0x370] sm:$0xff] }
 0x9ab   :  { %v2573_v62 = vsel %vm198_vm10, %v2473_v1, 0.0  ;;  %v2582_v50 = vadd.f32 %v2581_v20, %v2580_v37  ;;  %v2646_v0 = vsel %vm1208_vm1, %v2572_v57, %v2645_v40  ;;  %v2375_v53 = vrot.slane %v2374_v43, 4 }
 0x9ac   :  { %v2574_v29 = vrot.slane %v2573_v62, 4  ;;  %v2366_v11 = vadd.f32 %v2365_v36, %v2364_v54  ;;  %v2369_v31 = vadd.f32 %v2368_v21, %v2367_v15  ;;  %v2382_v19 = vrot.slane %v2381_v17, 4 }
 0x9ad   :  { %v2583_v24 = vrot.slane %v2582_v50, 2  ;;  %v2376_v23 = vadd.f32 %v2375_v53, %v2374_v43  ;;  %v2388_v39 = vsel %vm198_vm10, %v2330_v12, 0.0  ;;  %v2603_v22 = vsel %vm1200_vm12, %v2352_v35, %v2345_v49 }
 0x9ae   :  { %v2575_v33 = vadd.f32 %v2574_v29, %v2573_v62  ;;  %v2370_v45 = vrot.slane %v2369_v31, 2  ;;  %v2383_v18 = vadd.f32 %v2382_v19, %v2381_v17  ;;  %v2389_v47 = vrot.slane %v2388_v39, 4 }
 0x9af   :  { %v2584_v61 = vadd.f32 %v2583_v24, %v2582_v50  ;;  %v2377_v38 = vrot.slane %v2376_v23, 2  ;;  %v2604_v42 = vsel %vm1202_vm13, %v2359_v16, %v2603_v22  ;;  %v9168_v9 = vpack.c.bf16 %v2664_v2, %v2663_v7 }
 0x9b0   :  { %v2576_v44 = vrot.slane %v2575_v33, 2  ;;  %v2371_v4 = vadd.f32 %v2370_v45, %v2369_v31  ;;  %v2384_v52 = vrot.slane %v2383_v18, 2  ;;  %v2390_v25 = vadd.f32 %v2389_v47, %v2388_v39 }
 0x9b1   :  { %v2585_v5 = vrot.slane %v2584_v61, 1  ;;  %v2378_v8 = vadd.f32 %v2377_v38, %v2376_v23  ;;  %v2605_v15 = vsel %vm1204_vm14, %v2366_v11, %v2604_v42  ;;  %9169 = vmatprep.subr.bf16.mxu1 %v9168_v9  ;;  %v2338_v12 = vmul.f32 %v11198_v41, %v10771_v10 }
 0x9b2   :  { %v2577_v49 = vadd.f32 %v2576_v44, %v2575_v33  ;;  %v2372_v35 = vrot.slane %v2371_v4, 1  ;;  %v2385_v37 = vadd.f32 %v2384_v52, %v2383_v18  ;;  %v2391_v40 = vrot.slane %v2390_v25, 2  ;;  %9171 = vmatpush3.bf16.msra.mxu1 %v9168_v9 }
 0x9b3   :  { %v2586_v54 = vadd.f32 %v2585_v5, %v2584_v61  ;;  %v2379_v16 = vrot.slane %v2378_v8, 1  ;;  %v2400_v32 = vrot.slane %v11133_v58, 1  ;;  %v2407_v1 = vrot.slane %v11055_v13, 1 }
 0x9b4   :  { %v2578_v57 = vrot.slane %v2577_v49, 1  ;;  %v2373_v20 = vadd.f32 %v2372_v35, %v2371_v4  ;;  %v2386_v36 = vrot.slane %v2385_v37, 1  ;;  %v2392_v21 = vadd.f32 %v2391_v40, %v2390_v25 }
 0x9b5   :  { %v2380_v43 = vadd.f32 %v2379_v16, %v2378_v8  ;;  %v2401_v17 = vadd.f32 %v2400_v32, %v11133_v58  ;;  %v2408_v41 = vadd.f32 %v2407_v1, %v11055_v13  ;;  %v14001_v62 = vrot.slane %v11059_v30, 2 }
 0x9b6   :  { %v2579_v53 = vadd.f32 %v2578_v57, %v2577_v49  ;;  %v2387_v29 = vadd.f32 %v2386_v36, %v2385_v37  ;;  %v2393_v11 = vrot.slane %v2392_v21, 1  ;;  %v2606_v31 = vsel %vm1206_vm15, %v2373_v20, %v2605_v15 }
 0x9b7   :  { %v2413_v50 = vadd.f32 %v14001_v62, %v11059_v30  ;;  %v2607_v19 = vsel %vm1208_vm1, %v2380_v43, %v2606_v31  ;;  %v2419_v2 = vrot.slane %v11116_v28, 2  ;;  %v2423_v24 = vsel %vm198_vm10, %v11127_v3, 0.0  ;;  %v2665_v31 = vld [vmem:[%s13915_s1 + $0x2f0] ss:$0 sm:$0xff] }
 0x9b8   :  { %v2647_v58 = vsel %vm1210_vm2, %v2579_v53, %v2646_v0  ;;  %v2394_v13 = vadd.f32 %v2393_v11, %v2392_v21  ;;  %v2608_v23 = vsel %vm1210_vm2, %v2387_v29, %v2607_v19  ;;  %v2424_v39 = vrot.slane %v2423_v24, 4 }
 0x9b9   :  { %v2414_v7 = vrot.slane %v2413_v50, 1  ;;  %v2648_v30 = vsel %vm1212_vm3, %v2586_v54, %v2647_v58  ;;  %v2420_v33 = vadd.f32 %v2419_v2, %v11116_v28  ;;  %v2430_v45 = vsel %vm198_vm10, %v11173_v6, 0.0 }
 0x9ba   :  { %2651 = vrot.lane.b32.xlu1 %v2648_v30, %s9904_s0  ;;  %v2609_v18 = vsel %vm1212_vm3, %v2394_v13, %v2608_v23  ;;  %v2425_v47 = vadd.f32 %v2424_v39, %v2423_v24  ;;  %v2431_v3 = vrot.slane %v2430_v45, 4  ;;  %v2444_v0 = vsel %vm198_vm10, %v2338_v12, 0.0  ;;  %v1564_v23 = vld [vmem:[%s13915_s1 + $0x810] ss:$0 sm:$0xff] }
 0x9bb   :  { %v2415_v22 = vadd.f32 %v2414_v7, %v2413_v50  ;;  %v2421_v61 = vrot.slane %v2420_v33, 1  ;;  %v2445_v38 = vrot.slane %v2444_v0, 4  ;;  %v2610_v42 = vsel %vm1200_vm12, %v2408_v41, %v2401_v17 }
 0x9bc   :  { %v2337_v9 = vmul.f32 %v11210_v34, %v10771_v10  ;;  %v2426_v44 = vrot.slane %v2425_v47, 2  ;;  %v2432_v28 = vadd.f32 %v2431_v3, %v2430_v45  ;;  %v1562_v24 = vadd.f32 %v10761_v27, %v10674_v59 }
 0x9bd   :  { %v2611_v4 = vsel %vm1202_vm13, %v2415_v22, %v2610_v42  ;;  %v2422_v6 = vadd.f32 %v2421_v61, %v2420_v33  ;;  %v2446_v52 = vadd.f32 %v2445_v38, %v2444_v0  ;;  %v1563_v22 = vadd.f32 %v10759_v48, %v10678_v51 }
 0x9be   :  { %v2437_v25 = vsel %vm198_vm10, %v2337_v9, 0.0  ;;  %v2427_v5 = vadd.f32 %v2426_v44, %v2425_v47  ;;  %v2433_v8 = vrot.slane %v2432_v28, 2  ;;  %v1565_v45 = vadd.f32 %v1564_v23, %v1562_v24 }
 0x9bf   :  { %v2438_v15 = vrot.slane %v2437_v25, 4  ;;  %v2447_v49 = vrot.slane %v2446_v52, 2  ;;  %v2612_v12 = vsel %vm1204_vm14, %v2422_v6, %v2611_v4  ;;  %v1566_v27 = vadd.f32 %v1564_v23, %v1563_v22 }
 0x9c0   :  { %v2428_v35 = vrot.slane %v2427_v5, 1  ;;  %v2434_v37 = vadd.f32 %v2433_v8, %v2432_v28  ;;  %v1569_v59 = vsel %vm234_vm11, %v1565_v45, 0.0 }
 0x9c1   :  { %v2439_v40 = vadd.f32 %v2438_v15, %v2437_v25  ;;  %v2448_v54 = vadd.f32 %v2447_v49, %v2446_v52 }
 0x9c2   :  { %v2429_v16 = vadd.f32 %v2428_v35, %v2427_v5  ;;  %v2435_v10 = vrot.slane %v2434_v37, 1  ;;  %v2781_v35 = vld [vmem:[%s13915_s1 + $0x150] sm:$0xff] }
 0x9c3   :  { %v2440_v34 = vrot.slane %v2439_v40, 2  ;;  %v2449_v32 = vrot.slane %v2448_v54, 1 }
 0x9c4   :  { %v2436_v1 = vadd.f32 %v2435_v10, %v2434_v37  ;;  %v2613_v57 = vsel %vm1206_vm15, %v2429_v16, %v2612_v12  ;;  %v2782_v37 = vld [vmem:[%s13915_s1 + $0x160] sm:$0xff]  ;;  %v2871_v10 = vld [vmem:[%s13915_s1 + $0x30] sm:$0xff] }
 0x9c5   :  { %v2441_v20 = vadd.f32 %v2440_v34, %v2439_v40  ;;  %v2450_v43 = vadd.f32 %v2449_v32, %v2448_v54  ;;  %v9172_v40 = vpack.c.bf16 %v2782_v37, %v2781_v35  ;;  %v2783_v54 = vld [vmem:[%s13915_s1 + $0x170] sm:$0xff]  ;;  %v2784_v16 = vld [vmem:[%s13915_s1 + $0x180] sm:$0xff] }
 0x9c6   :  { %v2614_v36 = vsel %vm1208_vm1, %v2436_v1, %v2613_v57  ;;  %v9176_v34 = vpack.c.bf16 %v2784_v16, %v2783_v54  ;;  %v2872_v32 = vld [vmem:[%s13915_s1 + $0x40] sm:$0xff]  ;;  %v2785_v1 = vld [vmem:[%s13915_s1 + $0x190] sm:$0xff] }
 0x9c7   :  { %v2442_v21 = vrot.slane %v2441_v20, 1  ;;  %9173 = vmatprep.subr.bf16.mxu0 %v9172_v40  ;;  %v2786_v57 = vld [vmem:[%s13915_s1 + $0x1a0] sm:$0xff] }
 0x9c8   :  { %9175 = vmatpush3.bf16.msra.mxu0 %v9172_v40  ;;  %v2789_v35 = vld [vmem:[%s13915_s1 + $0x140] ss:$0 sm:$0xff] }
 0x9c9   :  { %v2443_v17 = vadd.f32 %v2442_v21, %v2441_v20  ;;  %v9188_v20 = vpack.c.bf16 %v2872_v32, %v2871_v10  ;;  %v2873_v21 = vld [vmem:[%s13915_s1 + $0x50] sm:$0xff]  ;;  %9177 = vmatprep.subr.bf16.mxu0 %v9176_v34 }
 0x9cb   :  { %v2615_v41 = vsel %vm1210_vm2, %v2443_v17, %v2614_v36  ;;  %v9180_v36 = vpack.c.bf16 %v2786_v57, %v2785_v1  ;;  %v2787_v17 = vld [vmem:[%s13915_s1 + $0x1b0] sm:$0xff]  ;;  %9189 = vmatprep.subr.bf16.mxu1 %v9188_v20 }
 0x9cc   :  { %v2616_v62 = vsel %vm1212_vm3, %v2450_v43, %v2615_v41  ;;  %v2874_v43 = vld [vmem:[%s13915_s1 + $0x60] sm:$0xff]  ;;  %9179 = vmatpush3.bf16.msra.mxu0 %v9176_v34 }
 0x9cd   :  { %v9192_v41 = vpack.c.bf16 %v2874_v43, %v2873_v21  ;;  %9181 = vmatprep.subr.bf16.mxu0 %v9180_v36 }
 0x9d0   :  { %9183 = vmatpush3.bf16.msra.mxu0 %v9180_v36 }
 0xa1c   :  { %v2650_v50 = vpop.permute.xlu0 %2649 }
 0xa1d   :  { %v2655_v53 = vsel %vm198_vm10, %v2609_v18, %v2650_v50  ;;  %v1572_v18 = vsel %vm234_vm11, %v1566_v27, 0.0  ;;  %v2875_v50 = vld [vmem:[%s13915_s1 + $0x70] sm:$0xff] }
 0xa1e   :  { %8800 = vmatprep.mubr.msk.f32.mxu1 %vm234_vm11, %v2655_v53  ;;  %v2876_v53 = vld [vmem:[%s13915_s1 + $0x80] sm:$0xff] }
 0xa2c   :  { %v2652_v29 = vpop.permute.xlu1 %2651 }
 0xa2d   :  { %v2656_v11 = vsel %vm198_vm10, %v2616_v62, %v2652_v29  ;;  %v2788_v62 = vld [vmem:[%s13915_s1 + $0x1c0] sm:$0xff] }
 0xa2e   :  { %8801 = vmatmul.mubr.msk.f32.vlgmr.msra.gmra.mrb[6].mxu1 %vm234_vm11, %v2656_v11  ;;  %v9184_v29 = vpack.c.bf16 %v2788_v62, %v2787_v17  ;;  %v9196_v11 = vpack.c.bf16 %v2876_v53, %v2875_v50  ;;  %v2879_v17 = vld [vmem:[%s13915_s1 + $0x20] ss:$0 sm:$0xff] }
 0xa2f   :  { %9191 = vmatpush3.bf16.msra.mxu1 %v9188_v20 }
 0xa30   :  { %9193 = vmatprep.subr.bf16.mxu1 %v9192_v41  ;;  %9185 = vmatprep.subr.bf16.mxu0 %v9184_v29 }
 0xa31   :  { %9187 = vmatpush3.bf16.msra.mxu0 %v9184_v29 }
 0xa33   :  { %9195 = vmatpush3.bf16.msra.mxu1 %v9192_v41 }
 0xa34   :  { %9197 = vmatprep.subr.bf16.mxu1 %v9196_v11 }
 0xa37   :  { %9199 = vmatpush3.bf16.msra.mxu1 %v9196_v11 }
 0xb01   :  { %v8802_v19 = vpop.f32.mrb[6].mxu1 }
 0xb02   :  { %v2744_v7 = vadd.f32 %v8802_v19, %v2665_v31  ;;  %v2738_v2 = vpop.f32.mrb[7].mxu1  ;;  %v2878_v19 = vld [vmem:[%s13915_s1 + $0xa0] sm:$0xff] }
 0xb03   :  { %v2739_v58 = vadd.f32 %v2738_v2, %v2665_v31  ;;  %v2877_v31 = vld [vmem:[%s13915_s1 + $0x90] sm:$0xff] }
 0xb04   :  { %v2748_v13 = vadd.f32 %v2744_v7, %v10755_v26  ;;  %v9200_v7 = vpack.c.bf16 %v2878_v19, %v2877_v31 }
 0xb05   :  { %v2747_v39 = vadd.f32 %v2739_v58, %v10748_v14 }
 0xb06   :  { %v2754_v30 = vsel %vm234_vm11, %v2748_v13, 0.0  ;;  %9201 = vmatprep.subr.bf16.mxu1 %v9200_v7 }
 0xb07   :  { %2755 = vadd.xlane.f32.xlu1 %v2754_v30  ;;  %v2751_v33 = vsel %vm234_vm11, %v2747_v39, 0.0  ;;  %9203 = vmatpush3.bf16.msra.mxu1 %v9200_v7 }
 0xb08   :  { %2752 = vadd.xlane.f32.xlu0 %v2751_v33 }
 0xb0c   :  { %1570 = vadd.xlane.f32.xlu0 %v1569_v59 }
 0xb10   :  { %1573 = vadd.xlane.f32.xlu0 %v1572_v18 }
 0xb94   :  { %v2756_v47 = vpop.xlane.xlu1 %2755 }
 0xb95   :  { %v2758_v3 = vmul.f32 0.015625, %v2756_v47  ;;  %v2753_v0 = vpop.xlane.xlu0 %2752  ;;  %v2749_v47 = vld [vmem:[%s13915_s1 + $0x2a0] ss:$0 sm:$0xff] }
 0xb96   :  { %v2757_v61 = vmul.f32 0.015625, %v2753_v0 }
 0xb97   :  { %v11290_v38 = vsub.f32 %v2748_v13, %v2758_v3 }
 0xb98   :  { %v11292_v42 = vsub.f32 %v2747_v39, %v2757_v61 }
 0xb99   :  { %v1571_v51 = vpop.xlane.xlu0 %1570  ;;  %v2762_v48 = vmul.f32 %v11290_v38, %v11290_v38 }
 0xb9a   :  { %v1575_v9 = vmul.f32 0.015625, %v1571_v51  ;;  %v2761_v44 = vmul.f32 %v11292_v42, %v11292_v42  ;;  %v2750_v51 = vld [vmem:[%s13915_s1 + $0x290] ss:$0 sm:$0xff] }
 0xb9b   :  { %v2766_v28 = vsel %vm234_vm11, %v2762_v48, 0.0 }
 0xb9c   :  { %v11299_v4 = vsub.f32 %v1565_v45, %v1575_v9  ;;  %2767 = vadd.xlane.f32.xlu0 %v2766_v28  ;;  %v2763_v6 = vsel %vm234_vm11, %v2761_v44, 0.0  ;;  %v1567_v28 = vld [vmem:[%s13915_s1 + $0x8f0] ss:$0 sm:$0xff] }
 0xb9d   :  { %2764 = vadd.xlane.f32.xlu1 %v2763_v6  ;;  %v1574_v52 = vpop.xlane.xlu0 %1573 }
 0xb9e   :  { %v1576_v25 = vmul.f32 0.015625, %v1574_v52  ;;  %v1579_v5 = vmul.f32 %v11299_v4, %v11299_v4 }
 0xba0   :  { %v11304_v8 = vsub.f32 %v1566_v27, %v1576_v25  ;;  %v1581_v15 = vsel %vm234_vm11, %v1579_v5, 0.0 }
 0xba1   :  { %1582 = vadd.xlane.f32.xlu1 %v1581_v15 }
 0xba2   :  { %v1580_v49 = vmul.f32 %v11304_v8, %v11304_v8 }
 0xba4   :  { %v1584_v12 = vsel %vm234_vm11, %v1580_v49, 0.0 }
 0xba5   :  { %1585 = vadd.xlane.f32.xlu0 %v1584_v12 }
 0xc29   :  { %v2768_v2 = vpop.xlane.xlu0 %2767 }
 0xc2a   :  { %v2770_v24 = vmul.f32 0.015625, %v2768_v2  ;;  %v2765_v58 = vpop.xlane.xlu1 %2764 }
 0xc2b   :  { %v2769_v13 = vmul.f32 0.015625, %v2765_v58 }
 0xc2c   :  { %v2772_v23 = vadd.f32 1e-05, %v2770_v24 }
 0xc2d   :  { %v2771_v39 = vadd.f32 1e-05, %v2769_v13 }
 0xc2e   :  { %9580 = vrsqrt.f32 %v2772_v23  ;;  %v1583_v30 = vpop.xlane.xlu1 %1582 }
 0xc2f   :  { %9582 = vrsqrt.f32 %v2771_v39  ;;  %v1587_v22 = vmul.f32 0.015625, %v1583_v30 }
 0xc31   :  { %v1589_v33 = vadd.f32 1e-05, %v1587_v22 }
 0xc32   :  { %v1586_v45 = vpop.xlane.xlu0 %1585 }
 0xc33   :  { %9584 = vrsqrt.f32 %v1589_v33  ;;  %v1588_v59 = vmul.f32 0.015625, %v1586_v45 }
 0xc35   :  { %v1590_v27 = vadd.f32 1e-05, %v1588_v59 }
 0xc37   :  { %9586 = vrsqrt.f32 %v1590_v27 }
 0xc38   :  { %v9581_v18 = vpop.eup %9580 }
 0xc39   :  { %v9583_v3 = vpop.eup %9582  ;;  %v2776_v0 = vmul.f32 %v9581_v18, %v11290_v38  ;;  %v1568_v38 = vld [vmem:[%s13915_s1 + $0x8e0] ss:$0 sm:$0xff] }
 0xc3a   :  { %v2775_v61 = vmul.f32 %v9583_v3, %v11292_v42 }
 0xc3b   :  { %v2778_v48 = vmul.f32 %v2776_v0, %v2749_v47 }
 0xc3c   :  { %v2777_v9 = vmul.f32 %v2775_v61, %v2749_v47 }
 0xc3d   :  { %v9585_v44 = vpop.eup %9584  ;;  %v11372_v25 = vadd.f32 %v2778_v48, %v2750_v51 }
 0xc3e   :  { %v11369_v6 = vadd.f32 %v2777_v9, %v2750_v51  ;;  %v1593_v52 = vmul.f32 %v9585_v44, %v11299_v4 }
 0xc40   :  { %8819 = vmatprep.mubr.msk.f32.mxu0 %vm234_vm11, %v11369_v6  ;;  %v1595_v42 = vmul.f32 %v1593_v52, %v1567_v28 }
 0xc41   :  { %v9587_v5 = vpop.eup %9586  ;;  %8820 = vmatmul.mubr.msk.f32.vlgmr.msra.gmra.mrb[10].mxu0 %vm234_vm11, %v11372_v25 }
 0xc42   :  { %v1594_v15 = vmul.f32 %v9587_v5, %v11304_v8  ;;  %v1597_v49 = vadd.f32 %v1595_v42, %v1568_v38 }
 0xc44   :  { %8838 = vmatprep.mubr.msk.f32.mxu1 %vm234_vm11, %v1597_v49  ;;  %v1596_v4 = vmul.f32 %v1594_v15, %v1567_v28 }
 0xc46   :  { %v1598_v12 = vadd.f32 %v1596_v4, %v1568_v38 }
 0xc48   :  { %8839 = vmatmul.mubr.msk.f32.vlgmr.msra.gmra.mrb[8].mxu1 %vm234_vm11, %v1598_v12 }
 0xd14   :  { %v8821_v37 = vpop.f32.mrb[10].mxu0 }
 0xd15   :  { %v2868_v40 = vadd.f32 %v8821_v37, %v2789_v35  ;;  %v2862_v54 = vpop.f32.mrb[11].mxu0 }
 0xd16   :  { %v2863_v16 = vadd.f32 %v2862_v54, %v2789_v35 }
 0xd17   :  { %v3012_v10 = vcombine.high %v2868_v40, %v2868_v40  ;;  %v3019_v34 = vrot.slane %v2868_v40, %v10079_v63 }
 0xd18   :  { %v2963_v32 = vcombine.high %v2863_v16, %v2863_v16  ;;  %v2970_v8 = vrot.slane %v2863_v16, %v10079_v63 }
 0xd19   :  { %v3026_v1 = vrot.slane %v3012_v10, %v10079_v63  ;;  %v3027_v57 = vcombine.high %v3019_v34, %v3019_v34  ;;  %v3035_v20 = vrot.slane %v3019_v34, %v10079_v63 }
 0xd1a   :  { %v2977_v36 = vrot.slane %v2963_v32, %v10079_v63  ;;  %v2978_v21 = vcombine.high %v2970_v8, %v2970_v8  ;;  %v2986_v43 = vrot.slane %v2970_v8, %v10079_v63 }
 0xd1b   :  { %v3028_v41 = vcombine.high %v3026_v1, %v3026_v1  ;;  %v3042_v62 = vrot.slane %v3026_v1, %v10079_v63  ;;  %v3049_v50 = vrot.slane %v3027_v57, %v10079_v63  ;;  %v3057_v53 = vcombine.high %v3035_v20, %v3035_v20  ;;  %v8840_v29 = vpop.f32.mrb[8].mxu1 }
 0xd1c   :  { %v2979_v11 = vcombine.high %v2977_v36, %v2977_v36  ;;  %v2993_v31 = vrot.slane %v2977_v36, %v10079_v63  ;;  %v3000_v19 = vrot.slane %v2978_v21, %v10079_v63  ;;  %v3008_v7 = vcombine.high %v2986_v43, %v2986_v43  ;;  %v2952_v2 = vpop.f32.mrb[9].mxu1 }
 0xd1d   :  { %v2958_v24 = vadd.f32 %v8840_v29, %v2879_v17  ;;  %v2953_v58 = vadd.f32 %v2952_v2, %v2879_v17  ;;  %v3096_v13 = vrot.slane %v3035_v20, %v10059_v46  ;;  %v3100_v23 = vrot.slane %v3049_v50, %v10059_v46 }
 0xd1e   :  { %v3064_v39 = vrot.slane %v2986_v43, %v10059_v46  ;;  %v3104_v30 = vrot.slane %v3057_v53, %v10059_v46  ;;  %v3072_v22 = vrot.slane %v3008_v7, %v10059_v46  ;;  %v3112_v33 = vrot.slane %v3042_v62, %v10059_v46 }
 0xd1f   :  { %v3149_v45 = vmul.f32 %v3096_v13, %v2958_v24  ;;  %v3150_v59 = vmul.f32 %v3100_v23, %v2958_v24  ;;  %v3080_v27 = vrot.slane %v2993_v31, %v10059_v46  ;;  %v3068_v18 = vrot.slane %v3000_v19, %v10059_v46 }
 0xd20   :  { %v3141_v47 = vmul.f32 %v3064_v39, %v2953_v58  ;;  %v3151_v3 = vmul.f32 %v3104_v30, %v2958_v24  ;;  %v11408_v0 = vmul.f32 %v3072_v22, %v2953_v58  ;;  %v11410_v61 = vmul.f32 %v3112_v33, %v2958_v24 }
 0xd21   :  { %3189 = vrot.lane.b32.xlu1 %v3149_v45, %s9903_s28  ;;  %3191 = vrot.lane.b32.xlu0 %v3150_v59, %s9903_s28  ;;  %v11414_v51 = vmul.f32 %v3080_v27, %v2953_v58  ;;  %v11416_v48 = vmul.f32 %v3068_v18, %v2953_v58  ;;  %v3010_v9 = vcombine.high %v3000_v19, %v3000_v19 }
 0xd22   :  { %v3059_v44 = vcombine.high %v3049_v50, %v3049_v50  ;;  %v3007_v28 = vrot.slane %v2979_v11, %v10079_v63  ;;  %v3056_v52 = vrot.slane %v3028_v41, %v10079_v63  ;;  %v3009_v38 = vcombine.high %v2993_v31, %v2993_v31 }
 0xd23   :  { %v3076_v42 = vrot.slane %v3010_v9, %v10059_v46  ;;  %v3058_v5 = vcombine.high %v3042_v62, %v3042_v62 }
 0xd24   :  { %v3108_v15 = vrot.slane %v3059_v44, %v10059_v46  ;;  %v3084_v49 = vrot.slane %v3007_v28, %v10059_v46  ;;  %v3116_v4 = vrot.slane %v3056_v52, %v10059_v46  ;;  %v3088_v12 = vrot.slane %v3009_v38, %v10059_v46 }
 0xd25   :  { %3173 = vrot.lane.b32.xlu1 %v3141_v47, %s9903_s28  ;;  %3193 = vrot.lane.b32.xlu0 %v3151_v3, %s9903_s28  ;;  %v11427_v35 = vmul.f32 %v3076_v42, %v2953_v58  ;;  %v3120_v37 = vrot.slane %v3058_v5, %v10059_v46  ;;  %v3011_v40 = vcombine.high %v3007_v28, %v3007_v28 }
 0xd26   :  { %v11430_v54 = vmul.f32 %v3108_v15, %v2958_v24  ;;  %v11432_v16 = vmul.f32 %v3084_v49, %v2953_v58  ;;  %v11434_v10 = vmul.f32 %v3116_v4, %v2958_v24  ;;  %v11436_v34 = vmul.f32 %v3088_v12, %v2953_v58 }
 0xd27   :  { %v11438_v32 = vmul.f32 %v3120_v37, %v2958_v24  ;;  %v3092_v8 = vrot.slane %v3011_v40, %v10059_v46  ;;  %v3060_v1 = vcombine.high %v3056_v52, %v3056_v52 }
 0xd29   :  { %3177 = vrot.lane.b32.xlu1 %v11408_v0, %s9903_s28  ;;  %3197 = vrot.lane.b32.xlu0 %v11410_v61, %s9903_s28  ;;  %v11445_v57 = vmul.f32 %v3092_v8, %v2953_v58  ;;  %v3124_v20 = vrot.slane %v3060_v1, %v10059_v46 }
 0xd2b   :  { %v11448_v36 = vmul.f32 %v3124_v20, %v2958_v24 }
 0xd2d   :  { %3181 = vrot.lane.b32.xlu1 %v11414_v51, %s9903_s28  ;;  %3175 = vrot.lane.b32.xlu0 %v11416_v48, %s9903_s28 }
 0xd31   :  { %3179 = vrot.lane.b32.xlu1 %v11427_v35, %s9903_s28  ;;  %3195 = vrot.lane.b32.xlu0 %v11430_v54, %s9903_s28 }
 0xd35   :  { %3183 = vrot.lane.b32.xlu1 %v11432_v16, %s9903_s28  ;;  %3199 = vrot.lane.b32.xlu0 %v11434_v10, %s9903_s28 }
 0xd39   :  { %3185 = vrot.lane.b32.xlu1 %v11436_v34, %s9903_s28  ;;  %3201 = vrot.lane.b32.xlu0 %v11438_v32, %s9903_s28 }
 0xd3d   :  { %3187 = vrot.lane.b32.xlu1 %v11445_v57, %s9903_s28  ;;  %3693 = vrot.lane.b32.xlu0 %v2953_v58, %s9904_s0 }
 0xd41   :  { %3203 = vrot.lane.b32.xlu1 %v11448_v36, %s9903_s28  ;;  %3559 = vrot.lane.b32.xlu0 %v2953_v58, %s9901_s27 }
 0xd45   :  { %3695 = vrot.lane.b32.xlu1 %v2958_v24, %s9904_s0 }
 0xd49   :  { %3561 = vrot.lane.b32.xlu1 %v2958_v24, %s9901_s27 }
 0xd93   :  { %v3190_v21 = vpop.permute.xlu1 %3189  ;;  %v3192_v43 = vpop.permute.xlu0 %3191 }
 0xd94   :  { %v3229_v17 = vadd.f32 %v3190_v21, %v3149_v45  ;;  %v3230_v41 = vadd.f32 %v3192_v43, %v3150_v59 }
 0xd96   :  { %v3245_v62 = vmul.f32 0.70710677, %v3229_v17  ;;  %v3246_v50 = vmul.f32 0.70710677, %v3230_v41 }
 0xd97   :  { %v3174_v53 = vpop.permute.xlu1 %3173  ;;  %v3194_v29 = vpop.permute.xlu0 %3193 }
 0xd98   :  { %v3309_v11 = vsel %vm198_vm10, %v3245_v62, -inf  ;;  %v3316_v31 = vsel %vm198_vm10, %v3246_v50, -inf  ;;  %v3221_v19 = vadd.f32 %v3174_v53, %v3141_v47  ;;  %v3231_v7 = vadd.f32 %v3194_v29, %v3151_v3 }
 0xd99   :  { %v3310_v2 = vrot.slane %v3309_v11, 4  ;;  %v3317_v58 = vrot.slane %v3316_v31, 4 }
 0xd9a   :  { %v11476_v13 = vmul.f32 0.70710677, %v3221_v19  ;;  %v11478_v23 = vmul.f32 0.70710677, %v3231_v7 }
 0xd9b   :  { %v3311_v24 = vmax.f32 %v3309_v11, %v3310_v2  ;;  %v3318_v39 = vmax.f32 %v3316_v31, %v3317_v58  ;;  %v3178_v30 = vpop.permute.xlu1 %3177  ;;  %v3198_v22 = vpop.permute.xlu0 %3197 }
 0xd9c   :  { %v3253_v33 = vsel %vm198_vm10, %v11476_v13, -inf  ;;  %v3323_v45 = vsel %vm198_vm10, %v11478_v23, -inf  ;;  %v3223_v59 = vadd.f32 %v3178_v30, %v11408_v0  ;;  %v3233_v27 = vadd.f32 %v3198_v22, %v11410_v61 }
 0xd9d   :  { %v3312_v18 = vrot.slane %v3311_v24, 2  ;;  %v3319_v47 = vrot.slane %v3318_v39, 2  ;;  %v3254_v3 = vrot.slane %v3253_v33, 4  ;;  %v3324_v9 = vrot.slane %v3323_v45, 4 }
 0xd9e   :  { %v11486_v44 = vmul.f32 0.70710677, %v3223_v59  ;;  %v11488_v28 = vmul.f32 0.70710677, %v3233_v27 }
 0xd9f   :  { %v3313_v52 = vmax.f32 %v3311_v24, %v3312_v18  ;;  %v3320_v38 = vmax.f32 %v3318_v39, %v3319_v47  ;;  %v3255_v42 = vmax.f32 %v3253_v33, %v3254_v3  ;;  %v3325_v5 = vmax.f32 %v3323_v45, %v3324_v9  ;;  %v3182_v15 = vpop.permute.xlu1 %3181  ;;  %v3176_v49 = vpop.permute.xlu0 %3175 }
 0xda0   :  { %v3267_v4 = vsel %vm198_vm10, %v11486_v44, -inf  ;;  %v3337_v0 = vsel %vm198_vm10, %v11488_v28, -inf  ;;  %v3225_v61 = vadd.f32 %v3182_v15, %v11414_v51  ;;  %v3222_v12 = vadd.f32 %v3176_v49, %v11416_v48 }
 0xda1   :  { %v3314_v37 = vrot.slane %v3313_v52, 1  ;;  %v3321_v40 = vrot.slane %v3320_v38, 1  ;;  %v3256_v8 = vrot.slane %v3255_v42, 2  ;;  %v3326_v1 = vrot.slane %v3325_v5, 2 }
 0xda2   :  { %v3268_v20 = vrot.slane %v3267_v4, 4  ;;  %v3338_v21 = vrot.slane %v3337_v0, 4  ;;  %v11496_v43 = vmul.f32 0.70710677, %v3225_v61  ;;  %v11498_v17 = vmul.f32 0.70710677, %v3222_v12 }
 0xda3   :  { %v3315_v41 = vmax.f32 %v3313_v52, %v3314_v37  ;;  %v3322_v53 = vmax.f32 %v3320_v38, %v3321_v40  ;;  %v3257_v29 = vmax.f32 %v3255_v42, %v3256_v8  ;;  %v3327_v11 = vmax.f32 %v3325_v5, %v3326_v1  ;;  %v3180_v7 = vpop.permute.xlu1 %3179  ;;  %v3196_v42 = vpop.permute.xlu0 %3195 }
 0xda4   :  { %v3269_v31 = vmax.f32 %v3267_v4, %v3268_v20  ;;  %v3339_v19 = vmax.f32 %v3337_v0, %v3338_v21  ;;  %v3281_v51 = vsel %vm198_vm10, %v11496_v43, -inf  ;;  %v3260_v48 = vsel %vm198_vm10, %v11498_v17, -inf }
 0xda5   :  { %v3373_v2 = vsub.f32 %v3245_v62, %v3315_v41  ;;  %v3374_v58 = vsub.f32 %v3246_v50, %v3322_v53  ;;  %v3258_v24 = vrot.slane %v3257_v29, 1  ;;  %v3328_v39 = vrot.slane %v3327_v11, 1 }
 0xda6   :  { %v3270_v30 = vrot.slane %v3269_v31, 2  ;;  %v3340_v22 = vrot.slane %v3339_v19, 2  ;;  %v3282_v33 = vrot.slane %v3281_v51, 4  ;;  %v3261_v45 = vrot.slane %v3260_v48, 4 }
 0xda7   :  { %v3397_v59 = vmul.f32 1.442695, %v3373_v2  ;;  %v3399_v27 = vmul.f32 1.442695, %v3374_v58  ;;  %v3259_v18 = vmax.f32 %v3257_v29, %v3258_v24  ;;  %v3329_v47 = vmax.f32 %v3327_v11, %v3328_v39  ;;  %v3184_v0 = vpop.permute.xlu1 %3183  ;;  %v3200_v11 = vpop.permute.xlu0 %3199 }
 0xda8   :  { %v3271_v3 = vmax.f32 %v3269_v31, %v3270_v30  ;;  %v3341_v9 = vmax.f32 %v3339_v19, %v3340_v22  ;;  %v3283_v52 = vmax.f32 %v3281_v51, %v3282_v33  ;;  %v3262_v38 = vmax.f32 %v3260_v48, %v3261_v45 }
 0xda9   :  { %9588 = vpow2.f32 %v3397_v59  ;;  %v3365_v5 = vsub.f32 %v11476_v13, %v3259_v18  ;;  %v3375_v62 = vsub.f32 %v11478_v23, %v3329_v47  ;;  %v3224_v50 = vadd.f32 %v3180_v7, %v11427_v35 }
 0xdaa   :  { %9590 = vpow2.f32 %v3399_v27  ;;  %v3272_v15 = vrot.slane %v3271_v3, 1  ;;  %v3342_v49 = vrot.slane %v3341_v9, 1  ;;  %v3284_v4 = vrot.slane %v3283_v52, 2 }
 0xdab   :  { %v3381_v61 = vmul.f32 1.442695, %v3365_v5  ;;  %v3401_v12 = vmul.f32 1.442695, %v3375_v62  ;;  %v3263_v37 = vrot.slane %v3262_v38, 2  ;;  %v3232_v40 = vadd.f32 %v3196_v42, %v11430_v54 }
 0xdac   :  { %v3273_v8 = vmax.f32 %v3271_v3, %v3272_v15  ;;  %v3343_v1 = vmax.f32 %v3341_v9, %v3342_v49  ;;  %v3285_v20 = vmax.f32 %v3283_v52, %v3284_v4  ;;  %v11508_v21 = vmul.f32 0.70710677, %v3224_v50 }
 0xdad   :  { %9592 = vpow2.f32 %v3381_v61  ;;  %v3264_v13 = vmax.f32 %v3262_v38, %v3263_v37  ;;  %v11510_v23 = vmul.f32 0.70710677, %v3232_v40  ;;  %v3226_v35 = vadd.f32 %v3184_v0, %v11432_v16 }
 0xdae   :  { %9594 = vpow2.f32 %v3401_v12  ;;  %v3367_v41 = vsub.f32 %v11486_v44, %v3273_v8  ;;  %v3377_v53 = vsub.f32 %v11488_v28, %v3343_v1  ;;  %v3286_v29 = vrot.slane %v3285_v20, 1 }
 0xdaf   :  { %v3265_v31 = vrot.slane %v3264_v13, 1  ;;  %v3274_v54 = vsel %vm198_vm10, %v11508_v21, -inf  ;;  %v3330_v19 = vsel %vm198_vm10, %v11510_v23, -inf  ;;  %v11519_v51 = vmul.f32 0.70710677, %v3226_v35 }
 0xdb0   :  { %v3385_v48 = vmul.f32 1.442695, %v3367_v41  ;;  %v3405_v7 = vmul.f32 1.442695, %v3377_v53  ;;  %v3287_v2 = vmax.f32 %v3285_v20, %v3286_v29  ;;  %v3275_v16 = vrot.slane %v3274_v54, 4 }
 0xdb1   :  { %v3266_v58 = vmax.f32 %v3264_v13, %v3265_v31  ;;  %v3331_v24 = vrot.slane %v3330_v19, 4  ;;  %v3288_v44 = vsel %vm198_vm10, %v11519_v51, -inf  ;;  %v3234_v28 = vadd.f32 %v3200_v11, %v11434_v10 }
 0xdb2   :  { %9596 = vpow2.f32 %v3385_v48  ;;  %v3369_v39 = vsub.f32 %v11496_v43, %v3287_v2  ;;  %v3276_v30 = vmax.f32 %v3274_v54, %v3275_v16  ;;  %v3289_v22 = vrot.slane %v3288_v44, 4 }
 0xdb3   :  { %v11525_v33 = vpop.eup %9588  ;;  %9598 = vpow2.f32 %v3405_v7  ;;  %v3366_v45 = vsub.f32 %v11498_v17, %v3266_v58  ;;  %v3332_v59 = vmax.f32 %v3330_v19, %v3331_v24  ;;  %v11528_v27 = vmul.f32 0.70710677, %v3234_v28 }
 0xdb4   :  { %v11530_v18 = vpop.eup %9590  ;;  %v3469_v47 = vsel %vm198_vm10, %v11525_v33, 0.0  ;;  %v3389_v3 = vmul.f32 1.442695, %v3369_v39  ;;  %v3277_v10 = vrot.slane %v3276_v30, 2  ;;  %v3290_v9 = vmax.f32 %v3288_v44, %v3289_v22 }
 0xdb5   :  { %v3470_v52 = vrot.slane %v3469_v47, 4  ;;  %v3476_v43 = vsel %vm198_vm10, %v11530_v18, 0.0  ;;  %v3383_v38 = vmul.f32 1.442695, %v3366_v45  ;;  %v3333_v42 = vrot.slane %v3332_v59, 2 }
 0xdb6   :  { %v3477_v5 = vrot.slane %v3476_v43, 4  ;;  %9600 = vpow2.f32 %v3389_v3  ;;  %v3278_v17 = vmax.f32 %v3276_v30, %v3277_v10  ;;  %v3291_v62 = vrot.slane %v3290_v9, 2 }
 0xdb7   :  { %v11536_v50 = vpop.eup %9592  ;;  %v3471_v15 = vadd.f32 %v3470_v52, %v3469_v47  ;;  %9602 = vpow2.f32 %v3383_v38  ;;  %v3334_v49 = vmax.f32 %v3332_v59, %v3333_v42  ;;  %v3344_v4 = vsel %vm198_vm10, %v11528_v27, -inf }
 0xdb8   :  { %v11540_v0 = vpop.eup %9594  ;;  %v3478_v61 = vadd.f32 %v3477_v5, %v3476_v43  ;;  %v3413_v12 = vsel %vm198_vm10, %v11536_v50, 0.0  ;;  %v3279_v37 = vrot.slane %v3278_v17, 1  ;;  %v3292_v40 = vmax.f32 %v3290_v9, %v3291_v62 }
 0xdb9   :  { %v3472_v8 = vrot.slane %v3471_v15, 2  ;;  %v3414_v1 = vrot.slane %v3413_v12, 4  ;;  %v3483_v20 = vsel %vm198_vm10, %v11540_v0, 0.0  ;;  %v3335_v13 = vrot.slane %v3334_v49, 1 }
 0xdba   :  { %v3479_v35 = vrot.slane %v3478_v61, 2  ;;  %v3484_v41 = vrot.slane %v3483_v20, 4  ;;  %v3280_v53 = vmax.f32 %v3278_v17, %v3279_v37  ;;  %v3293_v29 = vrot.slane %v3292_v40, 1 }
 0xdbb   :  { %v3473_v11 = vadd.f32 %v3472_v8, %v3471_v15  ;;  %v3415_v31 = vadd.f32 %v3414_v1, %v3413_v12  ;;  %v3336_v54 = vmax.f32 %v3334_v49, %v3335_v13  ;;  %v3345_v19 = vrot.slane %v3344_v4, 4  ;;  %v3186_v49 = vpop.permute.xlu1 %3185 }
 0xdbc   :  { %v11546_v48 = vpop.eup %9596  ;;  %v3480_v7 = vadd.f32 %v3479_v35, %v3478_v61  ;;  %v3485_v2 = vadd.f32 %v3484_v41, %v3483_v20  ;;  %v3368_v16 = vsub.f32 %v11508_v21, %v3280_v53  ;;  %v3294_v58 = vmax.f32 %v3292_v40, %v3293_v29 }
 0xdbd   :  { %v11549_v24 = vpop.eup %9598  ;;  %v3474_v44 = vrot.slane %v3473_v11, 1  ;;  %v3416_v28 = vrot.slane %v3415_v31, 2  ;;  %v3427_v39 = vsel %vm198_vm10, %v11546_v48, 0.0  ;;  %v3376_v30 = vsub.f32 %v11510_v23, %v3336_v54 }
 0xdbe   :  { %v3481_v22 = vrot.slane %v3480_v7, 1  ;;  %v3486_v45 = vrot.slane %v3485_v2, 2  ;;  %v3428_v59 = vrot.slane %v3427_v39, 4  ;;  %v3497_v47 = vsel %vm198_vm10, %v11549_v24, 0.0 }
 0xdbf   :  { %v3475_v3 = vadd.f32 %v3474_v44, %v3473_v11  ;;  %v3417_v10 = vadd.f32 %v3416_v28, %v3415_v31  ;;  %v3498_v9 = vrot.slane %v3497_v47, 4  ;;  %v3387_v21 = vmul.f32 1.442695, %v3368_v16 }
 0xdc0   :  { %v11556_v52 = vpop.eup %9600  ;;  %v3482_v43 = vadd.f32 %v3481_v22, %v3480_v7  ;;  %v3487_v38 = vadd.f32 %v3486_v45, %v3485_v2  ;;  %v3429_v42 = vadd.f32 %v3428_v59, %v3427_v39  ;;  %v3403_v5 = vmul.f32 1.442695, %v3376_v30  ;;  %v3202_v2 = vpop.permute.xlu0 %3201 }
 0xdc1   :  { %v11558_v17 = vpop.eup %9602  ;;  %9604 = vrcp.f32 %v3475_v3  ;;  %v3418_v23 = vrot.slane %v3417_v10, 1  ;;  %v3499_v62 = vadd.f32 %v3498_v9, %v3497_v47  ;;  %v3441_v15 = vsel %vm198_vm10, %v11556_v52, 0.0  ;;  %v3188_v39 = vpop.permute.xlu1 %3187 }
 0xdc2   :  { %9606 = vrcp.f32 %v3482_v43  ;;  %v3488_v61 = vrot.slane %v3487_v38, 1  ;;  %v3430_v12 = vrot.slane %v3429_v42, 2  ;;  %v3442_v37 = vrot.slane %v3441_v15, 4 }
 0xdc3   :  { %v3419_v40 = vadd.f32 %v3418_v23, %v3417_v10  ;;  %v3500_v8 = vrot.slane %v3499_v62, 2  ;;  %v3420_v1 = vsel %vm198_vm10, %v11558_v17, 0.0  ;;  %9608 = vpow2.f32 %v3387_v21 }
 0xdc4   :  { %v3489_v20 = vadd.f32 %v3488_v61, %v3487_v38  ;;  %v3431_v13 = vadd.f32 %v3430_v12, %v3429_v42  ;;  %v3443_v35 = vadd.f32 %v3442_v37, %v3441_v15  ;;  %v3421_v41 = vrot.slane %v3420_v1, 4 }
 0xdc5   :  { %9610 = vrcp.f32 %v3419_v40  ;;  %v3501_v53 = vadd.f32 %v3500_v8, %v3499_v62  ;;  %v3370_v29 = vsub.f32 %v11519_v51, %v3294_v58  ;;  %v3346_v11 = vmax.f32 %v3344_v4, %v3345_v19 }
 0xdc6   :  { %9612 = vrcp.f32 %v3489_v20  ;;  %v3432_v31 = vrot.slane %v3431_v13, 1  ;;  %v3444_v54 = vrot.slane %v3443_v35, 2  ;;  %v3422_v7 = vadd.f32 %v3421_v41, %v3420_v1 }
 0xdc7   :  { %v3502_v16 = vrot.slane %v3501_v53, 1  ;;  %9614 = vpow2.f32 %v3403_v5  ;;  %v3391_v44 = vmul.f32 1.442695, %v3370_v29  ;;  %v3347_v28 = vrot.slane %v3346_v11, 2 }
 0xdc8   :  { %v3433_v30 = vadd.f32 %v3432_v31, %v3431_v13  ;;  %v3445_v22 = vadd.f32 %v3444_v54, %v3443_v35  ;;  %v3423_v45 = vrot.slane %v3422_v7, 2  ;;  %v3227_v59 = vadd.f32 %v3186_v49, %v11436_v34 }
 0xdc9   :  { %v3503_v47 = vadd.f32 %v3502_v16, %v3501_v53  ;;  %9616 = vpow2.f32 %v3391_v44  ;;  %v3348_v3 = vmax.f32 %v3346_v11, %v3347_v28  ;;  %v3235_v51 = vadd.f32 %v3202_v2, %v11438_v32 }
 0xdca   :  { %9618 = vrcp.f32 %v3433_v30  ;;  %v3446_v4 = vrot.slane %v3445_v22, 1  ;;  %v3424_v19 = vadd.f32 %v3423_v45, %v3422_v7  ;;  %v11567_v58 = vmul.f32 0.70710677, %v3227_v59 }
 0xdcb   :  { %v9605_v10 = vpop.eup %9604  ;;  %9620 = vrcp.f32 %v3503_v47  ;;  %v3349_v9 = vrot.slane %v3348_v3, 1  ;;  %v11569_v21 = vmul.f32 0.70710677, %v3235_v51  ;;  %v3228_v43 = vadd.f32 %v3188_v39, %v11445_v57  ;;  %v3204_v57 = vpop.permute.xlu1 %3203 }
 0xdcc   :  { %v9607_v38 = vpop.eup %9606  ;;  %v11573_v34 = vmul.f32 %v9605_v10, %v11525_v33  ;;  %v3447_v42 = vadd.f32 %v3446_v4, %v3445_v22  ;;  %v3425_v5 = vrot.slane %v3424_v19, 1  ;;  %v3295_v32 = vsel %vm198_vm10, %v11567_v58, -inf }
 0xdcd   :  { %v11577_v23 = vpop.eup %9608  ;;  %v11580_v62 = vmul.f32 %v9607_v38, %v11530_v18  ;;  %v3350_v15 = vmax.f32 %v3348_v3, %v3349_v9  ;;  %v3296_v49 = vrot.slane %v3295_v32, 4  ;;  %v3351_v61 = vsel %vm198_vm10, %v11569_v21, -inf }
 0xdce   :  { %9622 = vrcp.f32 %v3447_v42  ;;  %v3426_v12 = vadd.f32 %v3425_v5, %v3424_v19  ;;  %v3434_v33 = vsel %vm198_vm10, %v11577_v23, 0.0  ;;  %v3352_v37 = vrot.slane %v3351_v61, 4 }
 0xdcf   :  { %v9611_v40 = vpop.eup %9610  ;;  %v3435_v8 = vrot.slane %v3434_v33, 4  ;;  %v3378_v1 = vsub.f32 %v11528_v27, %v3350_v15  ;;  %v3297_v20 = vmax.f32 %v3295_v32, %v3296_v49  ;;  %v11587_v13 = vmul.f32 0.70710677, %v3228_v43  ;;  %v11598_v27 = vpop.permute.xlu0 %3693 }
 0xdd0   :  { %v9613_v18 = vpop.eup %9612  ;;  %v11590_v35 = vmul.f32 %v9611_v40, %v11536_v50  ;;  %9624 = vrcp.f32 %v3426_v12  ;;  %v3353_v41 = vmax.f32 %v3351_v61, %v3352_v37  ;;  %v3236_v53 = vadd.f32 %v3204_v57, %v11448_v36 }
 0xdd1   :  { %v11593_v29 = vpop.eup %9614  ;;  %v11596_v11 = vmul.f32 %v9613_v18, %v11540_v0  ;;  %v3436_v31 = vadd.f32 %v3435_v8, %v3434_v33  ;;  %v3407_v54 = vmul.f32 1.442695, %v3378_v1  ;;  %v3298_v7 = vrot.slane %v3297_v20, 2 }
 0xdd2   :  { %v3490_v2 = vsel %vm198_vm10, %v11593_v29, 0.0  ;;  %v3354_v16 = vrot.slane %v3353_v41, 2  ;;  %v3302_v50 = vsel %vm198_vm10, %v11587_v13, -inf  ;;  %v11606_v36 = vmul.f32 %v11598_v27, %v11590_v35 }
 0xdd3   :  { %v11608_v44 = vpop.eup %9616  ;;  %v3437_v0 = vrot.slane %v3436_v31, 2  ;;  %v3491_v28 = vrot.slane %v3490_v2, 4  ;;  %9626 = vpow2.f32 %v3407_v54  ;;  %v3299_v39 = vmax.f32 %v3297_v20, %v3298_v7 }
 0xdd4   :  { %v9619_v30 = vpop.eup %9618  ;;  %v3448_v22 = vsel %vm198_vm10, %v11608_v44, 0.0  ;;  %v3355_v45 = vmax.f32 %v3353_v41, %v3354_v16  ;;  %v3303_v59 = vrot.slane %v3302_v50, 4  ;;  %v11612_v47 = vmul.f32 0.70710677, %v3236_v53 }
 0xdd5   :  { %v9621_v3 = vpop.eup %9620  ;;  %v11615_v51 = vmul.f32 %v9619_v30, %v11546_v48  ;;  %v3438_v4 = vadd.f32 %v3437_v0, %v3436_v31  ;;  %v3492_v19 = vadd.f32 %v3491_v28, %v3490_v2  ;;  %v3449_v10 = vrot.slane %v3448_v22, 4  ;;  %v11628_v0 = vpop.permute.xlu0 %3559 }
 0xdd6   :  { %v11618_v9 = vmul.f32 %v9621_v3, %v11549_v24  ;;  %v3300_v43 = vrot.slane %v3299_v39, 1  ;;  %v3356_v38 = vrot.slane %v3355_v45, 1  ;;  %v3304_v42 = vmax.f32 %v3302_v50, %v3303_v59  ;;  %v11630_v28 = vpop.permute.xlu1 %3695 }
 0xdd7   :  { %v3439_v5 = vrot.slane %v3438_v4, 1  ;;  %v3493_v32 = vrot.slane %v3492_v19, 2  ;;  %v3450_v15 = vadd.f32 %v3449_v10, %v3448_v22  ;;  %v3358_v49 = vsel %vm198_vm10, %v11612_v47, -inf }
 0xdd8   :  { %v9623_v61 = vpop.eup %9622  ;;  %v3301_v57 = vmax.f32 %v3299_v39, %v3300_v43  ;;  %v3357_v12 = vmax.f32 %v3355_v45, %v3356_v38  ;;  %v3305_v48 = vrot.slane %v3304_v42, 2  ;;  %v3359_v33 = vrot.slane %v3358_v49, 4 }
 0xdd9   :  { %v11623_v37 = vmul.f32 %v9623_v61, %v11556_v52  ;;  %v3440_v40 = vadd.f32 %v3439_v5, %v3438_v4  ;;  %v3494_v24 = vadd.f32 %v3493_v32, %v3492_v19  ;;  %v3451_v8 = vrot.slane %v3450_v15, 2 }
 0xdda   :  { %v9625_v1 = vpop.eup %9624  ;;  %v3371_v20 = vsub.f32 %v11567_v58, %v3301_v57  ;;  %v3379_v18 = vsub.f32 %v11569_v21, %v3357_v12  ;;  %v3306_v41 = vmax.f32 %v3304_v42, %v3305_v48  ;;  %v3360_v53 = vmax.f32 %v3358_v49, %v3359_v33 }
 0xddb   :  { %v3528_v31 = vmul.f32 %v9625_v1, %v11558_v17  ;;  %9628 = vrcp.f32 %v3440_v40  ;;  %v3495_v54 = vrot.slane %v3494_v24, 1  ;;  %v3452_v7 = vadd.f32 %v3451_v8, %v3450_v15 }
 0xddc   :  { %v3393_v2 = vmul.f32 1.442695, %v3371_v20  ;;  %v3409_v16 = vmul.f32 1.442695, %v3379_v18  ;;  %v3307_v50 = vrot.slane %v3306_v41, 1  ;;  %v3361_v52 = vrot.slane %v3360_v53, 2 }
 0xddd   :  { %v11632_v39 = vpop.eup %9626  ;;  %v3496_v58 = vadd.f32 %v3495_v54, %v3494_v24  ;;  %v3453_v30 = vrot.slane %v3452_v7, 1  ;;  %v11635_v21 = vmul.f32 %v11598_v27, %v3528_v31  ;;  %v3565_v17 = vmul.f32 %v11628_v0, %v11590_v35 }
 0xdde   :  { %v3504_v22 = vsel %vm198_vm10, %v11632_v39, 0.0  ;;  %9630 = vpow2.f32 %v3393_v2  ;;  %v3308_v45 = vmax.f32 %v3306_v41, %v3307_v50  ;;  %v3362_v59 = vmax.f32 %v3360_v53, %v3361_v52 }
 0xddf   :  { %9632 = vrcp.f32 %v3496_v58  ;;  %v3454_v3 = vadd.f32 %v3453_v30, %v3452_v7  ;;  %v3505_v4 = vrot.slane %v3504_v22, 4  ;;  %v3566_v19 = vmul.f32 %v11628_v0, %v3528_v31 }
 0xde0   :  { %9634 = vpow2.f32 %v3409_v16  ;;  %v3372_v10 = vsub.f32 %v11587_v13, %v3308_v45  ;;  %v3363_v43 = vrot.slane %v3362_v59, 1  ;;  %v11645_v38 = vmul.f32 %v11628_v0, %v11615_v51  ;;  %v11655_v13 = vpop.permute.xlu1 %3561 }
 0xde1   :  { %9636 = vrcp.f32 %v3454_v3  ;;  %v3506_v35 = vadd.f32 %v3505_v4, %v3504_v22  ;;  %v11648_v42 = vsel %vm198_vm10, %v3565_v17, 0.0  ;;  %v11651_v5 = vsel %vm198_vm10, %v3566_v19, 0.0 }
 0xde2   :  { %v3395_v32 = vmul.f32 1.442695, %v3372_v10  ;;  %v3364_v15 = vmax.f32 %v3362_v59, %v3363_v43  ;;  %v11659_v12 = vmul.f32 %v11630_v28, %v11573_v34  ;;  %v11663_v48 = vmul.f32 %v11630_v28, %v11580_v62 }
 0xde3   :  { %v3507_v57 = vrot.slane %v3506_v35, 2  ;;  %v3573_v33 = vmul.f32 %v11655_v13, %v11573_v34  ;;  %v3574_v24 = vmul.f32 %v11655_v13, %v11580_v62  ;;  %v3575_v8 = vmul.f32 %v11655_v13, %v11596_v11 }
 0xde4   :  { %9638 = vpow2.f32 %v3395_v32  ;;  %v3380_v40 = vsub.f32 %v11612_v47, %v3364_v15  ;;  %v11674_v18 = vmul.f32 %v11655_v13, %v11618_v9  ;;  %v3701_v34 = vmul.f32 %v11598_v27, %v11615_v51 }
 0xde5   :  { %v9629_v1 = vpop.eup %9628  ;;  %v3508_v20 = vadd.f32 %v3507_v57, %v3506_v35  ;;  %v3637_v41 = vsel %vm198_vm10, %v3573_v33, 0.0  ;;  %v3644_v62 = vsel %vm198_vm10, %v3574_v24, 0.0  ;;  %v3651_v2 = vsel %vm198_vm10, %v3575_v8, 0.0 }
 0xde6   :  { %v11680_v53 = vmul.f32 %v9629_v1, %v11577_v23  ;;  %v3411_v47 = vmul.f32 1.442695, %v3380_v40  ;;  %v3638_v31 = vrot.slane %v3637_v41, 4  ;;  %v3645_v7 = vrot.slane %v3644_v62, 4 }
 0xde7   :  { %v3509_v54 = vrot.slane %v3508_v20, 1  ;;  %v3703_v16 = vmul.f32 %v11598_v27, %v11623_v37  ;;  %v3652_v51 = vrot.slane %v3651_v2, 4  ;;  %v3715_v45 = vsel %vm198_vm10, %v11606_v36, 0.0 }
 0xde8   :  { %v11686_v50 = vpop.eup %9630  ;;  %9640 = vpow2.f32 %v3411_v47  ;;  %v11688_v52 = vadd.f32 %v3638_v31, %v3637_v41  ;;  %v3702_v23 = vmul.f32 %v11598_v27, %v11680_v53  ;;  %v11694_v22 = vadd.f32 %v3645_v7, %v3644_v62 }
 0xde9   :  { %v9633_v58 = vpop.eup %9632  ;;  %v3510_v30 = vadd.f32 %v3509_v54, %v3508_v20  ;;  %v3455_v17 = vsel %vm198_vm10, %v11686_v50, 0.0  ;;  %v11704_v10 = vadd.f32 %v3652_v51, %v3651_v2  ;;  %v3716_v15 = vrot.slane %v3715_v45, 4 }
 0xdea   :  { %v11698_v59 = vpop.eup %9634  ;;  %v11701_v3 = vmul.f32 %v9633_v58, %v11593_v29  ;;  %v3456_v4 = vrot.slane %v3455_v17, 4  ;;  %v3722_v24 = vsel %vm198_vm10, %v11635_v21, 0.0  ;;  %v3729_v8 = vsel %vm198_vm10, %v3701_v34, 0.0 }
 0xdeb   :  { %v9637_v43 = vpop.eup %9636  ;;  %9642 = vrcp.f32 %v3510_v30  ;;  %v3511_v35 = vsel %vm198_vm10, %v11698_v59, 0.0  ;;  %v3717_v40 = vadd.f32 %v3716_v15, %v3715_v45  ;;  %v3736_v1 = vsel %vm198_vm10, %v3702_v23, 0.0 }
 0xdec   :  { %v11710_v36 = vmul.f32 %v9637_v43, %v11608_v44  ;;  %v3457_v57 = vadd.f32 %v3456_v4, %v3455_v17  ;;  %v3512_v33 = vrot.slane %v3511_v35, 4  ;;  %v3576_v29 = vmul.f32 %v11655_v13, %v11701_v3 }
 0xded   :  { %v3718_v21 = vrot.slane %v3717_v40, 2  ;;  %v3723_v7 = vrot.slane %v3722_v24, 4  ;;  %v3730_v23 = vrot.slane %v3729_v8, 4  ;;  %v3737_v17 = vrot.slane %v3736_v1, 4 }
 0xdee   :  { %v11718_v20 = vpop.eup %9638  ;;  %v3458_v41 = vrot.slane %v3457_v57, 2  ;;  %v3513_v47 = vadd.f32 %v3512_v33, %v3511_v35  ;;  %v11721_v44 = vsel %vm198_vm10, %v3576_v29, 0.0  ;;  %v3704_v31 = vmul.f32 %v11598_v27, %v11710_v36 }
 0xdef   :  { %v3462_v62 = vsel %vm198_vm10, %v11718_v20, 0.0  ;;  %v3719_v58 = vadd.f32 %v3718_v21, %v3717_v40  ;;  %v3724_v30 = vadd.f32 %v3723_v7, %v3722_v24  ;;  %v3743_v45 = vsel %vm198_vm10, %v3703_v16, 0.0 }
 0xdf0   :  { %v3459_v34 = vadd.f32 %v3458_v41, %v3457_v57  ;;  %v3514_v2 = vrot.slane %v3513_v47, 2  ;;  %v3463_v51 = vrot.slane %v3462_v62, 4  ;;  %v3731_v33 = vadd.f32 %v3730_v23, %v3729_v8 }
 0xdf1   :  { %v3720_v54 = vrot.slane %v3719_v58, 1  ;;  %v3725_v32 = vrot.slane %v3724_v30, 2  ;;  %v3738_v57 = vadd.f32 %v3737_v17, %v3736_v1  ;;  %v3744_v17 = vrot.slane %v3743_v45, 4 }
 0xdf2   :  { %v11729_v4 = vpop.eup %9640  ;;  %v3460_v43 = vrot.slane %v3459_v34, 1  ;;  %v3515_v35 = vadd.f32 %v3514_v2, %v3513_v47  ;;  %v3464_v15 = vadd.f32 %v3463_v51, %v3462_v62  ;;  %v3732_v16 = vrot.slane %v3731_v33, 2 }
 0xdf3   :  { %v3518_v29 = vsel %vm198_vm10, %v11729_v4, 0.0  ;;  %v3721_v21 = vadd.f32 %v3720_v54, %v3719_v58  ;;  %v3726_v7 = vadd.f32 %v3725_v32, %v3724_v30  ;;  %v3739_v49 = vrot.slane %v3738_v57, 2 }
 0xdf4   :  { %v3461_v41 = vadd.f32 %v3460_v43, %v3459_v34  ;;  %v3516_v19 = vrot.slane %v3515_v35, 1  ;;  %v3465_v61 = vrot.slane %v3464_v15, 2  ;;  %v3519_v40 = vrot.slane %v3518_v29, 4 }
 0xdf5   :  { %v9643_v24 = vpop.eup %9642  ;;  %v3727_v2 = vrot.slane %v3726_v7, 1  ;;  %v3733_v51 = vadd.f32 %v3732_v16, %v3731_v33  ;;  %v3740_v23 = vadd.f32 %v3739_v49, %v3738_v57  ;;  %v3745_v14 = vadd.f32 %v3744_v17, %v3743_v45 }
 0xdf6   :  { %v3552_v26 = vmul.f32 %v9643_v24, %v11632_v39  ;;  %9644 = vrcp.f32 %v3461_v41  ;;  %v3517_v47 = vadd.f32 %v3516_v19, %v3515_v35  ;;  %v3466_v8 = vadd.f32 %v3465_v61, %v3464_v15 }
 0xdf7   :  { %v3520_v62 = vadd.f32 %v3519_v40, %v3518_v29  ;;  %v3728_v54 = vadd.f32 %v3727_v2, %v3726_v7  ;;  %v3734_v32 = vrot.slane %v3733_v51, 1  ;;  %v3741_v58 = vrot.slane %v3740_v23, 1 }
 0xdf8   :  { %9646 = vrcp.f32 %v3517_v47  ;;  %v3467_v1 = vrot.slane %v3466_v8, 1  ;;  %v11735_v34 = vmul.f32 %v11655_v13, %v3552_v26  ;;  %v3750_v39 = vsel %vm198_vm10, %v3704_v31, 0.0 }
 0xdf9   :  { %v3521_v43 = vrot.slane %v3520_v62, 2  ;;  %v3709_v61 = vmul.f32 %v11630_v28, %v11596_v11  ;;  %v3735_v35 = vadd.f32 %v3734_v32, %v3733_v51  ;;  %v3742_v49 = vadd.f32 %v3741_v58, %v3740_v23 }
 0xdfa   :  { %v3468_v30 = vadd.f32 %v3467_v1, %v3466_v8  ;;  %v3751_v15 = vrot.slane %v3750_v39, 4  ;;  %v3746_v33 = vrot.slane %v3745_v14, 2  ;;  %v3875_v29 = vsel %vm1200_vm12, %v3728_v54, %v3721_v21 }
 0xdfb   :  { %v3522_v19 = vadd.f32 %v3521_v43, %v3520_v62  ;;  %v3710_v57 = vmul.f32 %v11630_v28, %v11701_v3  ;;  %v3876_v45 = vsel %vm1202_vm13, %v3735_v35, %v3875_v29  ;;  %v3711_v31 = vmul.f32 %v11630_v28, %v11618_v9 }
 0xdfc   :  { %9648 = vrcp.f32 %v3468_v30  ;;  %v3752_v40 = vadd.f32 %v3751_v15, %v3750_v39  ;;  %v3747_v24 = vadd.f32 %v3746_v33, %v3745_v14  ;;  %v3877_v11 = vsel %vm1204_vm14, %v3742_v49, %v3876_v45 }
 0xdfd   :  { %v3523_v41 = vrot.slane %v3522_v19, 1  ;;  %v3712_v7 = vmul.f32 %v11630_v28, %v3552_v26  ;;  %v3771_v16 = vsel %vm198_vm10, %v11659_v12, 0.0  ;;  %v3778_v3 = vsel %vm198_vm10, %v11663_v48, 0.0 }
 0xdfe   :  { %v3753_v21 = vrot.slane %v3752_v40, 2  ;;  %v3772_v8 = vrot.slane %v3771_v16, 4  ;;  %v3748_v2 = vrot.slane %v3747_v24, 1  ;;  %v3779_v51 = vrot.slane %v3778_v3, 4 }
 0xdff   :  { %v3524_v47 = vadd.f32 %v3523_v41, %v3522_v19  ;;  %v3785_v23 = vsel %vm198_vm10, %v3709_v61, 0.0  ;;  %v3792_v14 = vsel %vm198_vm10, %v3710_v57, 0.0 }
 0xe00   :  { %v9645_v62 = vpop.eup %9644  ;;  %v3754_v26 = vadd.f32 %v3753_v21, %v3752_v40  ;;  %v3773_v1 = vadd.f32 %v3772_v8, %v3771_v16  ;;  %v3749_v17 = vadd.f32 %v3748_v2, %v3747_v24  ;;  %v3780_v43 = vadd.f32 %v3779_v51, %v3778_v3 }
 0xe01   :  { %v11755_v9 = vmul.f32 %v9645_v62, %v11686_v50  ;;  %9650 = vrcp.f32 %v3524_v47  ;;  %v3786_v54 = vrot.slane %v3785_v23, 4  ;;  %v3793_v32 = vrot.slane %v3792_v14, 4 }
 0xe02   :  { %v9647_v12 = vpop.eup %9646  ;;  %v3755_v30 = vrot.slane %v3754_v26, 1  ;;  %v3774_v39 = vrot.slane %v3773_v1, 2  ;;  %v3878_v61 = vsel %vm1206_vm15, %v3749_v17, %v3877_v11  ;;  %v3781_v50 = vrot.slane %v3780_v43, 2 }
 0xe03   :  { %v11758_v48 = vmul.f32 %v9647_v12, %v11698_v59  ;;  %v3705_v58 = vmul.f32 %v11598_v27, %v11755_v9  ;;  %v3787_v19 = vadd.f32 %v3786_v54, %v3785_v23  ;;  %v3794_v35 = vadd.f32 %v3793_v32, %v3792_v14 }
 0xe04   :  { %v3756_v49 = vadd.f32 %v3755_v30, %v3754_v26  ;;  %v3775_v29 = vadd.f32 %v3774_v39, %v3773_v1  ;;  %v3782_v41 = vadd.f32 %v3781_v50, %v3780_v43  ;;  %v3799_v47 = vsel %vm198_vm10, %v3711_v31, 0.0 }
 0xe05   :  { %v3757_v15 = vsel %vm198_vm10, %v3705_v58, 0.0  ;;  %v3713_v33 = vmul.f32 %v11630_v28, %v11758_v48  ;;  %v3788_v40 = vrot.slane %v3787_v19, 2  ;;  %v3795_v45 = vrot.slane %v3794_v35, 2 }
 0xe06   :  { %v9649_v57 = vpop.eup %9648  ;;  %v3758_v59 = vrot.slane %v3757_v15, 4  ;;  %v3879_v11 = vsel %vm1208_vm1, %v3756_v49, %v3878_v61  ;;  %v3776_v16 = vrot.slane %v3775_v29, 1  ;;  %v3783_v8 = vrot.slane %v3782_v41, 1 }
 0xe07   :  { %v11767_v24 = vmul.f32 %v9649_v57, %v11718_v20  ;;  %v3789_v3 = vadd.f32 %v3788_v40, %v3787_v19  ;;  %v3796_v62 = vadd.f32 %v3795_v45, %v3794_v35  ;;  %v3800_v23 = vrot.slane %v3799_v47, 4  ;;  %v3898_v40 = vld [vmem:[%s13915_s1 + $0xd0] sm:$0xff]  ;;  %v3899_v45 = vld [vmem:[%s13915_s1 + $0xe0] sm:$0xff] }
 0xe08   :  { %v3759_v21 = vadd.f32 %v3758_v59, %v3757_v15  ;;  %v3777_v51 = vadd.f32 %v3776_v16, %v3775_v29  ;;  %v3806_v14 = vsel %vm198_vm10, %v3712_v7, 0.0  ;;  %v3784_v1 = vadd.f32 %v3783_v8, %v3782_v41 }
 0xe09   :  { %v3706_v2 = vmul.f32 %v11598_v27, %v11767_v24  ;;  %v3790_v20 = vrot.slane %v3789_v3, 1  ;;  %v3797_v12 = vrot.slane %v3796_v62, 1  ;;  %v3801_v54 = vadd.f32 %v3800_v23, %v3799_v47  ;;  %v3901_v23 = vld [vmem:[%s13915_s1 + $0x100] sm:$0xff] }
 0xe0a   :  { %v3760_v26 = vrot.slane %v3759_v21, 2  ;;  %v3807_v31 = vrot.slane %v3806_v14, 4  ;;  %v3813_v32 = vsel %vm198_vm10, %v3713_v33, 0.0  ;;  %v3882_v29 = vsel %vm1200_vm12, %v3784_v1, %v3777_v51  ;;  %v3897_v33 = vld [vmem:[%s13915_s1 + $0xc0] sm:$0xff] }
 0xe0b   :  { %v9651_v17 = vpop.eup %9650  ;;  %v3764_v43 = vsel %vm198_vm10, %v3706_v2, 0.0  ;;  %v3791_v27 = vadd.f32 %v3790_v20, %v3789_v3  ;;  %v3798_v61 = vadd.f32 %v3797_v12, %v3796_v62  ;;  %v3802_v50 = vrot.slane %v3801_v54, 2 }
 0xe0c   :  { %v3761_v58 = vadd.f32 %v3760_v26, %v3759_v21  ;;  %v3765_v30 = vrot.slane %v3764_v43, 4  ;;  %v11777_v39 = vmul.f32 %v9651_v17, %v11729_v4  ;;  %v3808_v7 = vadd.f32 %v3807_v31, %v3806_v14  ;;  %v3902_v14 = vld [vmem:[%s13915_s1 + $0x110] sm:$0xff] }
 0xe0d   :  { %v3814_v19 = vrot.slane %v3813_v32, 4  ;;  %v3803_v57 = vadd.f32 %v3802_v50, %v3801_v54  ;;  %v3883_v41 = vsel %vm1202_vm13, %v3791_v27, %v3882_v29  ;;  %v9204_v20 = vpack.c.bf16 %v3898_v40, %v3897_v33 }
 0xe0e   :  { %v3762_v35 = vrot.slane %v3761_v58, 1  ;;  %v3766_v49 = vadd.f32 %v3765_v30, %v3764_v43  ;;  %v3714_v15 = vmul.f32 %v11630_v28, %v11777_v39  ;;  %v3809_v59 = vrot.slane %v3808_v7, 2  ;;  %v3900_v28 = vld [vmem:[%s13915_s1 + $0xf0] sm:$0xff] }
 0xe0f   :  { %v3815_v4 = vadd.f32 %v3814_v19, %v3813_v32  ;;  %v3884_v8 = vsel %vm1204_vm14, %v3798_v61, %v3883_v41  ;;  %v3804_v3 = vrot.slane %v3803_v57, 1  ;;  %v9208_v12 = vpack.c.bf16 %v3900_v28, %v3899_v45  ;;  %9205 = vmatprep.subr.bf16.mxu0 %v9204_v20 }
 0xe10   :  { %v3763_v16 = vadd.f32 %v3762_v35, %v3761_v58  ;;  %v3767_v47 = vrot.slane %v3766_v49, 2  ;;  %v3820_v21 = vsel %vm198_vm10, %v3714_v15, 0.0  ;;  %v3810_v62 = vadd.f32 %v3809_v59, %v3808_v7  ;;  %9207 = vmatpush3.bf16.msra.mxu0 %v9204_v20 }
 0xe11   :  { %v3816_v2 = vrot.slane %v3815_v4, 2  ;;  %v3821_v51 = vrot.slane %v3820_v21, 4  ;;  %v3805_v17 = vadd.f32 %v3804_v3, %v3803_v57  ;;  %v9212_v58 = vpack.c.bf16 %v3902_v14, %v3901_v23  ;;  %9209 = vmatprep.subr.bf16.mxu0 %v9208_v12 }
 0xe12   :  { %v3768_v26 = vadd.f32 %v3767_v47, %v3766_v49  ;;  %v3880_v1 = vsel %vm1210_vm2, %v3763_v16, %v3879_v11  ;;  %v3811_v43 = vrot.slane %v3810_v62, 1  ;;  %v3568_v30 = vmul.f32 %v11628_v0, %v11680_v53 }
 0xe13   :  { %v3817_v54 = vadd.f32 %v3816_v2, %v3815_v4  ;;  %v3822_v31 = vadd.f32 %v3821_v51, %v3820_v21  ;;  %v3569_v27 = vmul.f32 %v11628_v0, %v11623_v37  ;;  %v3885_v11 = vsel %vm1206_vm15, %v3805_v17, %v3884_v8  ;;  %v3903_v17 = vld [vmem:[%s13915_s1 + $0x120] sm:$0xff] }
 0xe14   :  { %v3769_v32 = vrot.slane %v3768_v26, 1  ;;  %v3812_v61 = vadd.f32 %v3811_v43, %v3810_v62  ;;  %v3570_v35 = vmul.f32 %v11628_v0, %v11710_v36  ;;  %v3571_v49 = vmul.f32 %v11628_v0, %v11755_v9  ;;  %9211 = vmatpush3.bf16.msra.mxu0 %v9208_v12  ;;  %v3904_v43 = vld [vmem:[%s13915_s1 + $0x130] sm:$0xff] }
 0xe15   :  { %v3818_v50 = vrot.slane %v3817_v54, 1  ;;  %v3823_v7 = vrot.slane %v3822_v31, 2  ;;  %v14002_v53 = vrot.slane %v11648_v42, 4  ;;  %v14003_v57 = vrot.slane %v11651_v5, 4  ;;  %9213 = vmatprep.subr.bf16.mxu0 %v9212_v58 }
 0xe16   :  { %v3770_v19 = vadd.f32 %v3769_v32, %v3768_v26  ;;  %v3886_v33 = vsel %vm1208_vm1, %v3812_v61, %v3885_v11  ;;  %v3595_v36 = vsel %vm198_vm10, %v11645_v38, 0.0  ;;  %v3602_v9 = vsel %vm198_vm10, %v3568_v30, 0.0 }
 0xe17   :  { %v3583_v15 = vadd.f32 %v14002_v53, %v11648_v42  ;;  %v3819_v29 = vadd.f32 %v3818_v50, %v3817_v54  ;;  %v3824_v37 = vadd.f32 %v3823_v7, %v3822_v31  ;;  %v3590_v59 = vadd.f32 %v14003_v57, %v11651_v5 }
 0xe18   :  { %v3881_v4 = vsel %vm1212_vm3, %v3770_v19, %v3880_v1  ;;  %v3596_v28 = vrot.slane %v3595_v36, 4  ;;  %v3603_v47 = vrot.slane %v3602_v9, 4  ;;  %v3609_v5 = vsel %vm198_vm10, %v3569_v27, 0.0  ;;  %9215 = vmatpush3.bf16.msra.mxu0 %v9212_v58 }
 0xe19   :  { %v3584_v41 = vrot.slane %v3583_v15, 2  ;;  %3889 = vrot.lane.b32.xlu0 %v3881_v4, %s9904_s0  ;;  %v3825_v40 = vrot.slane %v3824_v37, 1  ;;  %v3887_v42 = vsel %vm1210_vm2, %v3819_v29, %v3886_v33  ;;  %v3591_v45 = vrot.slane %v3590_v59, 2 }
 0xe1a   :  { %v3616_v21 = vsel %vm198_vm10, %v3570_v35, 0.0  ;;  %v3597_v38 = vadd.f32 %v3596_v28, %v3595_v36  ;;  %v3610_v62 = vrot.slane %v3609_v5, 4  ;;  %v3604_v51 = vadd.f32 %v3603_v47, %v3602_v9 }
 0xe1b   :  { %v3585_v16 = vadd.f32 %v3584_v41, %v3583_v15  ;;  %v3826_v8 = vadd.f32 %v3825_v40, %v3824_v37  ;;  %v3592_v3 = vadd.f32 %v3591_v45, %v3590_v59  ;;  %v3617_v23 = vrot.slane %v3616_v21, 4 }
 0xe1c   :  { %v3623_v14 = vsel %vm198_vm10, %v3571_v49, 0.0  ;;  %v3598_v20 = vrot.slane %v3597_v38, 2  ;;  %v3611_v12 = vadd.f32 %v3610_v62, %v3609_v5  ;;  %v3605_v31 = vrot.slane %v3604_v51, 2 }
 0xe1d   :  { %v3586_v2 = vrot.slane %v3585_v16, 1  ;;  %v3888_v26 = vsel %vm1212_vm3, %v3826_v8, %v3887_v42  ;;  %v3593_v1 = vrot.slane %v3592_v3, 1  ;;  %v3618_v32 = vadd.f32 %v3617_v23, %v3616_v21 }
 0xe1e   :  { %3891 = vrot.lane.b32.xlu1 %v3888_v26, %s9904_s0  ;;  %v3624_v30 = vrot.slane %v3623_v14, 4  ;;  %v3599_v61 = vadd.f32 %v3598_v20, %v3597_v38  ;;  %v3612_v58 = vrot.slane %v3611_v12, 2  ;;  %v3572_v50 = vmul.f32 %v11628_v0, %v11767_v24 }
 0xe1f   :  { %v3587_v54 = vadd.f32 %v3586_v2, %v3585_v16  ;;  %v3594_v27 = vadd.f32 %v3593_v1, %v3592_v3  ;;  %v3606_v7 = vadd.f32 %v3605_v31, %v3604_v51  ;;  %v3619_v11 = vrot.slane %v3618_v32, 2 }
 0xe20   :  { %v3625_v19 = vadd.f32 %v3624_v30, %v3623_v14  ;;  %v9216_v35 = vpack.c.bf16 %v3904_v43, %v3903_v17  ;;  %v3600_v49 = vrot.slane %v3599_v61, 1  ;;  %v3613_v53 = vadd.f32 %v3612_v58, %v3611_v12 }
 0xe21   :  { %v3843_v15 = vsel %vm1200_vm12, %v3594_v27, %v3587_v54  ;;  %v3630_v29 = vsel %vm198_vm10, %v3572_v50, 0.0  ;;  %v3607_v37 = vrot.slane %v3606_v7, 1  ;;  %v3620_v33 = vadd.f32 %v3619_v11, %v3618_v32 }
 0xe22   :  { %v3626_v57 = vrot.slane %v3625_v19, 2  ;;  %v3631_v59 = vrot.slane %v3630_v29, 4  ;;  %9217 = vmatprep.subr.bf16.mxu0 %v9216_v35  ;;  %v3601_v4 = vadd.f32 %v3600_v49, %v3599_v61  ;;  %v3614_v41 = vrot.slane %v3613_v53, 1 }
 0xe23   :  { %9219 = vmatpush3.bf16.msra.mxu0 %v9216_v35  ;;  %v3579_v0 = vmul.f32 %v11655_v13, %v11758_v48  ;;  %v3580_v24 = vmul.f32 %v11655_v13, %v11777_v39  ;;  %v3608_v36 = vadd.f32 %v3607_v37, %v3606_v7  ;;  %v3621_v9 = vrot.slane %v3620_v33, 1 }
 0xe24   :  { %v3627_v40 = vadd.f32 %v3626_v57, %v3625_v19  ;;  %v3632_v42 = vadd.f32 %v3631_v59, %v3630_v29  ;;  %v3615_v45 = vadd.f32 %v3614_v41, %v3613_v53  ;;  %v3844_v28 = vsel %vm1202_vm13, %v3601_v4, %v3843_v15 }
 0xe25   :  { %v14004_v16 = vrot.slane %v11688_v52, 2  ;;  %v14005_v5 = vrot.slane %v11694_v22, 2  ;;  %v3622_v8 = vadd.f32 %v3621_v9, %v3620_v33  ;;  %v3845_v3 = vsel %vm1204_vm14, %v3608_v36, %v3844_v28 }
 0xe26   :  { %v3628_v48 = vrot.slane %v3627_v40, 1  ;;  %v3633_v13 = vrot.slane %v3632_v42, 2  ;;  %v3846_v39 = vsel %vm1206_vm15, %v3615_v45, %v3845_v3  ;;  %v3654_v2 = vrot.slane %v11704_v10, 2 }
 0xe27   :  { %v3641_v47 = vadd.f32 %v14004_v16, %v11688_v52  ;;  %v3648_v21 = vadd.f32 %v14005_v5, %v11694_v22  ;;  %v3847_v23 = vsel %vm1208_vm1, %v3622_v8, %v3846_v39  ;;  %v14006_v52 = vrot.slane %v11721_v44, 4 }
 0xe28   :  { %v3629_v51 = vadd.f32 %v3628_v48, %v3627_v40  ;;  %v3634_v14 = vadd.f32 %v3633_v13, %v3632_v42  ;;  %v3655_v20 = vadd.f32 %v3654_v2, %v11704_v10  ;;  %v3665_v12 = vsel %vm198_vm10, %v11674_v18, 0.0 }
 0xe29   :  { %v3642_v38 = vrot.slane %v3641_v47, 1  ;;  %v3649_v62 = vrot.slane %v3648_v21, 1  ;;  %v3660_v26 = vadd.f32 %v14006_v52, %v11721_v44  ;;  %v3666_v31 = vrot.slane %v3665_v12, 4 }
 0xe2a   :  { %v3848_v17 = vsel %vm1210_vm2, %v3629_v51, %v3847_v23  ;;  %v3635_v43 = vrot.slane %v3634_v14, 1  ;;  %v3656_v32 = vrot.slane %v3655_v20, 1  ;;  %v3672_v30 = vsel %vm198_vm10, %v11735_v34, 0.0  ;;  %v3905_v51 = vld [vmem:[%s13915_s1 + $0xb0] ss:$0 sm:$0xff] }
 0xe2b   :  { %v3643_v22 = vadd.f32 %v3642_v38, %v3641_v47  ;;  %v3650_v1 = vadd.f32 %v3649_v62, %v3648_v21  ;;  %v3661_v54 = vrot.slane %v3660_v26, 2  ;;  %v3679_v27 = vsel %vm198_vm10, %v3579_v0, 0.0 }
 0xe2c   :  { %v3686_v44 = vsel %vm198_vm10, %v3580_v24, 0.0  ;;  %v3636_v61 = vadd.f32 %v3635_v43, %v3634_v14  ;;  %v3667_v50 = vadd.f32 %v3666_v31, %v3665_v12  ;;  %v3673_v10 = vrot.slane %v3672_v30, 4 }
 0xe2d   :  { %v3662_v58 = vadd.f32 %v3661_v54, %v3660_v26  ;;  %v3657_v7 = vadd.f32 %v3656_v32, %v3655_v20  ;;  %v3680_v11 = vrot.slane %v3679_v27, 4  ;;  %v3687_v18 = vrot.slane %v3686_v44, 4 }
 0xe2e   :  { %v3850_v19 = vsel %vm1200_vm12, %v3650_v1, %v3643_v22  ;;  %v3849_v35 = vsel %vm1212_vm3, %v3636_v61, %v3848_v17  ;;  %v3668_v53 = vrot.slane %v3667_v50, 2  ;;  %v3674_v15 = vadd.f32 %v3673_v10, %v3672_v30 }
 0xe2f   :  { %v3663_v49 = vrot.slane %v3662_v58, 1  ;;  %v3681_v29 = vadd.f32 %v3680_v11, %v3679_v27  ;;  %v3688_v34 = vadd.f32 %v3687_v18, %v3686_v44  ;;  %v3851_v37 = vsel %vm1202_vm13, %v3657_v7, %v3850_v19  ;;  %v4024_v7 = vld [vmem:[%s13915_s1 + $0x220] sm:$0xff]  ;;  %v4025_v18 = vld [vmem:[%s13915_s1 + $0x230] sm:$0xff] }
 0xe30   :  { %v3669_v57 = vadd.f32 %v3668_v53, %v3667_v50  ;;  %v3675_v59 = vrot.slane %v3674_v15, 2  ;;  %v4023_v50 = vld [vmem:[%s13915_s1 + $0x210] sm:$0xff]  ;;  %v4026_v19 = vld [vmem:[%s13915_s1 + $0x240] sm:$0xff] }
 0xe31   :  { %v3664_v33 = vadd.f32 %v3663_v49, %v3662_v58  ;;  %v3682_v4 = vrot.slane %v3681_v29, 2  ;;  %v3689_v41 = vrot.slane %v3688_v34, 2  ;;  %v4022_v58 = vld [vmem:[%s13915_s1 + $0x200] sm:$0xff]  ;;  %v9224_v11 = vpack.c.bf16 %v4024_v7, %v4023_v50  ;;  %v4027_v49 = vld [vmem:[%s13915_s1 + $0x250] sm:$0xff] }
 0xe32   :  { %v3670_v0 = vrot.slane %v3669_v57, 1  ;;  %v3676_v24 = vadd.f32 %v3675_v59, %v3674_v15  ;;  %v4028_v53 = vld [vmem:[%s13915_s1 + $0x260] sm:$0xff] }
 0xe33   :  { %v3852_v36 = vsel %vm1204_vm14, %v3664_v33, %v3851_v37  ;;  %v3683_v9 = vadd.f32 %v3682_v4, %v3681_v29  ;;  %v3690_v40 = vadd.f32 %v3689_v41, %v3688_v34  ;;  %v9232_v15 = vpack.c.bf16 %v4028_v53, %v4027_v49  ;;  %v3989_v41 = vld [vmem:[%s13915_s1 + $0x2c0] ss:$0 sm:$0xff]  ;;  %v4237_v49 = vld [vmem:[%s13915_s1 + $0xa70] sm:$0xff] }
 0xe34   :  { %v3671_v42 = vadd.f32 %v3670_v0, %v3669_v57  ;;  %v3677_v45 = vrot.slane %v3676_v24, 1  ;;  %v4234_v7 = vld [vmem:[%s13915_s1 + $0xa40] sm:$0xff] }
 0xe35   :  { %v3684_v28 = vrot.slane %v3683_v9, 1  ;;  %v3691_v16 = vrot.slane %v3690_v40, 1  ;;  %v4238_v53 = vld [vmem:[%s13915_s1 + $0xa80] sm:$0xff] }
 0xe36   :  { %v3678_v47 = vadd.f32 %v3677_v45, %v3676_v24  ;;  %v3853_v5 = vsel %vm1206_vm15, %v3671_v42, %v3852_v36  ;;  %v3990_v24 = vld [vmem:[%s13915_s1 + $0x2b0] ss:$0 sm:$0xff] }
 0xe37   :  { %v3685_v21 = vadd.f32 %v3684_v28, %v3683_v9  ;;  %v3692_v8 = vadd.f32 %v3691_v16, %v3690_v40  ;;  %v14007_v28 = vld [vmem:[#allocation6_spill] sm:$0xff]  ;;  %v14008_v16 = vld [vmem:[#allocation7_spill] sm:$0xff] }
 0xe38   :  { %v3854_v48 = vsel %vm1208_vm1, %v3678_v47, %v3853_v5  ;;  %v14009_v47 = vld [vmem:[#allocation8_spill] sm:$0xff]  ;;  %v14010_v5 = vld [vmem:[#allocation9_spill] sm:$0xff] }
 0xe39   :  { %v3855_v3 = vsel %vm1210_vm2, %v3685_v21, %v3854_v48  ;;  %v14011_v21 = vld [vmem:[#allocation10_spill] sm:$0xff] }
 0xe3a   :  { %v3856_v13 = vsel %vm1212_vm3, %v3692_v8, %v3855_v3  ;;  %v14012_v8 = vld [vmem:[#allocation11_spill] sm:$0xff]  ;;  %v14013_v48 = vld [vmem:[#allocation22_spill] sm:$0xff] }
 0xe3b   :  { %v4114_v3 = vld [vmem:[%s13915_s1 + $0x280] sm:$0xff] }
 0xe8b   :  { %v3890_v39 = vpop.permute.xlu0 %3889 }
 0xe8c   :  { %v3895_v38 = vsel %vm198_vm10, %v3849_v35, %v3890_v39  ;;  %v9228_v35 = vpack.c.bf16 %v4026_v19, %v4025_v18  ;;  %v4029_v39 = vld [vmem:[%s13915_s1 + $0x1d0] ss:$0 sm:$0xff]  ;;  %v4236_v19 = vld [vmem:[%s13915_s1 + $0xa60] sm:$0xff] }
 0xe8d   :  { %8857 = vmatprep.mubr.msk.f32.mxu0 %vm234_vm11, %v3895_v38 }
 0xe90   :  { %v3892_v62 = vpop.permute.xlu1 %3891 }
 0xe91   :  { %v3896_v2 = vsel %vm198_vm10, %v3856_v13, %v3892_v62 }
 0xe92   :  { %8858 = vmatmul.mubr.msk.f32.vlgmr.msra.gmra.mrb[12].mxu0 %vm234_vm11, %v3896_v2 }
 0xf65   :  { %v8859_v23 = vpop.f32.mrb[12].mxu0 }
 0xf66   :  { %v3984_v14 = vadd.f32 %v8859_v23, %v3905_v51  ;;  %v3978_v52 = vpop.f32.mrb[13].mxu0 }
 0xf67   :  { %v3979_v26 = vadd.f32 %v3978_v52, %v3905_v51 }
 0xf68   :  { %v3988_v22 = vadd.f32 %v3984_v14, %v11372_v25 }
 0xf69   :  { %v3987_v1 = vadd.f32 %v3979_v26, %v11369_v6  ;;  %v4021_v6 = vld [vmem:[%s13915_s1 + $0x1f0] sm:$0xff]  ;;  %v4198_v26 = vld [vmem:[%s13915_s1 + $0x1e0] ss:$0 sm:$0xff] }
 0xf6a   :  { %v3994_v20 = vsel %vm234_vm11, %v3988_v22, 0.0  ;;  %v9220_v10 = vpack.c.bf16 %v4022_v58, %v4021_v6 }
 0xf6b   :  { %3995 = vadd.xlane.f32.xlu1 %v3994_v20  ;;  %v3991_v12 = vsel %vm234_vm11, %v3987_v1, 0.0 }
 0xf6c   :  { %3992 = vadd.xlane.f32.xlu0 %v3991_v12  ;;  %9221 = vmatprep.subr.bf16.mxu1 %v9220_v10 }
 0xf6d   :  { %9223 = vmatpush3.bf16.msra.mxu1 %v9220_v10  ;;  %v4233_v10 = vld [vmem:[%s13915_s1 + $0xa30] sm:$0xff] }
 0xf6e   :  { %9225 = vmatprep.subr.bf16.mxu1 %v9224_v11  ;;  %v11957_v18 = vpack.c.bf16 %v4234_v7, %v4233_v10  ;;  %v9888_v10 = vld [vmem:[%s13915_s1 + $0xab0] sm:$0xff] }
 0xf70   :  { %14014 = vst [vmem:[#allocation6_spill] sm:$0xff] %v11957_v18 }
 0xf71   :  { %9227 = vmatpush3.bf16.msra.mxu1 %v9224_v11  ;;  %v4235_v11 = vld [vmem:[%s13915_s1 + $0xa50] sm:$0xff] }
 0xf72   :  { %9229 = vmatprep.subr.bf16.mxu1 %v9228_v35 }
 0xf75   :  { %9231 = vmatpush3.bf16.msra.mxu1 %v9228_v35  ;;  %v11962_v35 = vpack.c.bf16 %v4236_v19, %v4235_v11  ;;  %v14025_v19 = vld [vmem:[#allocation23_spill] sm:$0xff] }
 0xf76   :  { %9233 = vmatprep.subr.bf16.mxu1 %v9232_v15 }
 0xf77   :  { %14015 = vst [vmem:[#allocation7_spill] sm:$0xff] %v11962_v35 }
 0xf79   :  { %9235 = vmatpush3.bf16.msra.mxu1 %v9232_v15  ;;  %v11973_v15 = vpack.c.bf16 %v4238_v53, %v4237_v49  ;;  %v14026_v49 = vld [vmem:[#allocation24_spill] sm:$0xff]  ;;  %v14027_v53 = vld [vmem:[#allocation25_spill] sm:$0xff] }
 0xf7a   :  { %9257 = vmatprep.subr.bf16.mxu1 %v9965_v56 }
 0xf7b   :  { %14016 = vst [vmem:[#allocation8_spill] sm:$0xff] %v11973_v15 }
 0xff8   :  { %v3996_v17 = vpop.xlane.xlu1 %3995 }
 0xff9   :  { %v3998_v43 = vmul.f32 0.015625, %v3996_v17  ;;  %v3993_v54 = vpop.xlane.xlu0 %3992 }
 0xffa   :  { %v3997_v31 = vmul.f32 0.015625, %v3993_v54 }
 0xffb   :  { %v4000_v32 = vsub.f32 %v3988_v22, %v3998_v43 }
 0xffc   :  { %v3999_v30 = vsub.f32 %v3987_v1, %v3997_v31 }
 0xffd   :  { %v4002_v61 = vmul.f32 %v4000_v32, %v4000_v32 }
 0xffe   :  { %v4001_v27 = vmul.f32 %v3999_v30, %v3999_v30 }
 0xfff   :  { %v4006_v25 = vsel %vm234_vm11, %v4002_v61, 0.0 }
0x1000   :  { %v4003_v44 = vsel %vm234_vm11, %v4001_v27, 0.0 }
0x1001   :  { %4004 = vadd.xlane.f32.xlu0 %v4003_v44 }
0x1005   :  { %4007 = vadd.xlane.f32.xlu0 %v4006_v25 }
0x108e   :  { %v4005_v29 = vpop.xlane.xlu0 %4004 }
0x108f   :  { %v4009_v34 = vmul.f32 0.015625, %v4005_v29  ;;  %v4239_v29 = vld [vmem:[%s13915_s1 + $0xa90] sm:$0xff] }
0x1091   :  { %v4011_v37 = vadd.f32 1e-05, %v4009_v34  ;;  %v4240_v34 = vld [vmem:[%s13915_s1 + $0xaa0] sm:$0xff] }
0x1092   :  { %v4008_v33 = vpop.xlane.xlu0 %4007 }
0x1093   :  { %9652 = vrsqrt.f32 %v4011_v37  ;;  %v4010_v57 = vmul.f32 0.015625, %v4008_v33  ;;  %v11983_v37 = vpack.c.bf16 %v4240_v34, %v4239_v29  ;;  %v14018_v33 = vld [vmem:[#allocation18_spill] sm:$0xff]  ;;  %v14028_v34 = vld [vmem:[#allocation15_spill] sm:$0xff] }
0x1095   :  { %v4012_v59 = vadd.f32 1e-05, %v4010_v57  ;;  %14017 = vst [vmem:[#allocation9_spill] sm:$0xff] %v11983_v37 }
0x1097   :  { %9654 = vrsqrt.f32 %v4012_v59 }
0x109d   :  { %v9653_v4 = vpop.eup %9652 }
0x109e   :  { %v4015_v0 = vmul.f32 %v9653_v4, %v3999_v30 }
0x10a0   :  { %v4017_v36 = vmul.f32 %v4015_v0, %v3989_v41 }
0x10a1   :  { %v9655_v56 = vpop.eup %9654 }
0x10a2   :  { %v4016_v9 = vmul.f32 %v9655_v56, %v4000_v32  ;;  %v4019_v40 = vadd.f32 %v4017_v36, %v3990_v24  ;;  %v4201_v56 = vld [vmem:[%s13915_s1 + $0x2e0] ss:$0 sm:$0xff] }
0x10a4   :  { %v4018_v42 = vmul.f32 %v4016_v9, %v3989_v41  ;;  %8876 = vmatprep.mubr.msk.f32.mxu1 %vm234_vm11, %v4019_v40 }
0x10a6   :  { %v4020_v45 = vadd.f32 %v4018_v42, %v3990_v24 }
0x10a8   :  { %8877 = vmatmul.mubr.msk.f32.vlgmr.msra.gmra.mrb[10].mxu1 %vm234_vm11, %v4020_v45 }
0x10a9   :  { %9259 = vmatpush1.bf16.msra.mxu1 %v9976_v60  ;;  %4423 = vmatprep.mubr.f32.mxu1 %v13997_v55  ;;  %v4113_v60 = vld [vmem:[%s13915_s1 + $0x270] sm:$0xff] }
0x10aa   :  { %9261 = vmatprep.subr.bf16.mxu1 %v14007_v28  ;;  %v9236_v13 = vpack.c.bf16 %v4114_v3, %v4113_v60  ;;  %v14021_v60 = vld [vmem:[#allocation21_spill] sm:$0xff]  ;;  %v14022_v3 = vld [vmem:[#allocation26_spill] sm:$0xff] }
0x10ac   :  { %9237 = vmatprep.subr.bf16.mxu0 %v9236_v13 }
0x10ad   :  { %9263 = vmatpush1.bf16.msra.mxu1 %v14008_v16  ;;  %9239 = vmatpush3.bf16.msra.mxu0 %v9236_v13  ;;  %v4241_v13 = vld [vmem:[%s13915_s1 + $0xa20] ss:$0 sm:$0xff] }
0x10ae   :  { %9265 = vmatprep.subr.bf16.mxu1 %v14009_v47  ;;  %9241 = vmatprep.subr.bf16.mxu0 %v11957_v18 }
0x10b1   :  { %9267 = vmatpush1.bf16.msra.mxu1 %v14010_v5 }
0x10b2   :  { %9269 = vmatprep.subr.bf16.mxu1 %v14011_v21  ;;  %v14019_v21 = vld [vmem:[#allocation19_spill] sm:$0xff] }
0x10b5   :  { %9271 = vmatpush1.bf16.msra.mxu1 %v14012_v8  ;;  %v14020_v8 = vld [vmem:[#allocation20_spill] sm:$0xff] }
0x10b6   :  { %9289 = vmatprep.subr.bf16.mxu1 %v14013_v48 }
0x117b   :  { %v8878_v38 = vpop.f32.mrb[10].mxu1 }
0x117c   :  { %v4108_v62 = vadd.f32 %v8878_v38, %v4029_v39  ;;  %v4102_v2 = vpop.f32.mrb[11].mxu1 }
0x117d   :  { %v4103_v51 = vadd.f32 %v4102_v2, %v4029_v39 }
0x117e   :  { %v4112_v14 = vmax.f32 %v4108_v62, 0.0 }
0x117f   :  { %v4111_v23 = vmax.f32 %v4103_v51, 0.0 }
0x1181   :  { %8883 = vmatprep.mubr.msk.f32.mxu0 %vm1480_vm4, %v4111_v23 }
0x1182   :  { %8884 = vmatmul.mubr.msk.f32.vlgmr.msra.gmra.mrb[14].mxu0 %vm1480_vm4, %v4112_v14 }
0x1183   :  { %9243 = vmatpush3.bf16.msra.mxu0 %v11957_v18 }
0x1184   :  { %9245 = vmatprep.subr.bf16.mxu0 %v11962_v35 }
0x1187   :  { %9247 = vmatpush3.bf16.msra.mxu0 %v11962_v35 }
0x1188   :  { %9249 = vmatprep.subr.bf16.mxu0 %v11973_v15 }
0x118b   :  { %9251 = vmatpush3.bf16.msra.mxu0 %v11973_v15 }
0x118c   :  { %9253 = vmatprep.subr.bf16.mxu0 %v11983_v37 }
0x118f   :  { %9255 = vmatpush3.bf16.msra.mxu0 %v11983_v37 }
0x1190   :  { %9273 = vmatprep.subr.bf16.mxu0 %v14018_v33 }
0x1255   :  { %v8885_v52 = vpop.f32.mrb[14].mxu0 }
0x1256   :  { %v4197_v22 = vadd.f32 %v8885_v52, %v4020_v45  ;;  %v4187_v1 = vpop.f32.mrb[15].mxu0  ;;  %v4202_v45 = vld [vmem:[%s13915_s1 + $0x2d0] ss:$0 sm:$0xff] }
0x1257   :  { %v4196_v20 = vadd.f32 %v4187_v1, %v4019_v40 }
0x1258   :  { %v4200_v12 = vadd.f32 %v4198_v26, %v4197_v22 }
0x1259   :  { %v4199_v17 = vadd.f32 %v4198_v26, %v4196_v20 }
0x125a   :  { %v4206_v43 = vsel %vm234_vm11, %v4200_v12, 0.0 }
0x125b   :  { %4207 = vadd.xlane.f32.xlu0 %v4206_v43  ;;  %v4203_v54 = vsel %vm234_vm11, %v4199_v17, 0.0  ;;  %v14023_v43 = vld [vmem:[#allocation12_spill] sm:$0xff] }
0x125c   :  { %4204 = vadd.xlane.f32.xlu1 %v4203_v54 }
0x12e8   :  { %v4208_v31 = vpop.xlane.xlu0 %4207 }
0x12e9   :  { %v4210_v32 = vmul.f32 0.015625, %v4208_v31  ;;  %v4205_v30 = vpop.xlane.xlu1 %4204  ;;  %v14024_v31 = vld [vmem:[#allocation13_spill] sm:$0xff] }
0x12ea   :  { %v4209_v27 = vmul.f32 0.015625, %v4205_v30 }
0x12eb   :  { %v4212_v44 = vsub.f32 %v4200_v12, %v4210_v32 }
0x12ec   :  { %v4211_v61 = vsub.f32 %v4199_v17, %v4209_v27 }
0x12ed   :  { %v4214_v25 = vmul.f32 %v4212_v44, %v4212_v44 }
0x12ee   :  { %v4213_v6 = vmul.f32 %v4211_v61, %v4211_v61 }
0x12ef   :  { %v4218_v58 = vsel %vm234_vm11, %v4214_v25, 0.0 }
0x12f0   :  { %4219 = vadd.xlane.f32.xlu0 %v4218_v58  ;;  %v4215_v50 = vsel %vm234_vm11, %v4213_v6, 0.0 }
0x12f1   :  { %4216 = vadd.xlane.f32.xlu1 %v4215_v50 }
0x137d   :  { %v4220_v57 = vpop.xlane.xlu0 %4219 }
0x137e   :  { %v4222_v59 = vmul.f32 0.015625, %v4220_v57  ;;  %v4217_v4 = vpop.xlane.xlu1 %4216 }
0x137f   :  { %v4221_v41 = vmul.f32 0.015625, %v4217_v4 }
0x1380   :  { %v4224_v0 = vadd.f32 1e-05, %v4222_v59 }
0x1381   :  { %v4223_v24 = vadd.f32 1e-05, %v4221_v41 }
0x1382   :  { %9656 = vrsqrt.f32 %v4224_v0 }
0x1383   :  { %9658 = vrsqrt.f32 %v4223_v24 }
0x138c   :  { %v9657_v36 = vpop.eup %9656 }
0x138d   :  { %v9659_v9 = vpop.eup %9658  ;;  %v4228_v40 = vmul.f32 %v9657_v36, %v4212_v44 }
0x138e   :  { %v4227_v42 = vmul.f32 %v9659_v9, %v4211_v61 }
0x138f   :  { %v4230_v28 = vmul.f32 %v4228_v40, %v4201_v56 }
0x1390   :  { %v4229_v16 = vmul.f32 %v4227_v42, %v4201_v56 }
0x1391   :  { %v4232_v5 = vadd.f32 %v4230_v28, %v4202_v45 }
0x1392   :  { %v4231_v47 = vadd.f32 %v4229_v16, %v4202_v45 }
0x1394   :  { %8902 = vmatprep.mubr.msk.f32.mxu0 %vm234_vm11, %v4231_v47 }
0x1395   :  { %8903 = vmatmul.mubr.msk.f32.vlgmr.msra.gmra.mrb[16].mxu0 %vm234_vm11, %v4232_v5 }
0x1396   :  { %9275 = vmatpush3.bf16.msra.mxu0 %v14018_v33 }
0x1397   :  { %9277 = vmatprep.subr.bf16.mxu0 %v14019_v21 }
0x139a   :  { %9279 = vmatpush3.bf16.msra.mxu0 %v14019_v21 }
0x139b   :  { %9281 = vmatprep.subr.bf16.mxu0 %v14020_v8 }
0x139e   :  { %9283 = vmatpush3.bf16.msra.mxu0 %v14020_v8 }
0x139f   :  { %9285 = vmatprep.subr.bf16.mxu0 %v14021_v60 }
0x13a2   :  { %9287 = vmatpush3.bf16.msra.mxu0 %v14021_v60 }
0x13a3   :  { %9305 = vmatprep.subr.bf16.mxu0 %v14022_v3 }
0x1468   :  { %v8904_v39 = vpop.f32.mrb[16].mxu0 }
0x1469   :  { %v4320_v38 = vadd.f32 %v8904_v39, %v4241_v13  ;;  %v4314_v62 = vpop.f32.mrb[17].mxu0 }
0x146a   :  { %v4315_v2 = vadd.f32 %v4314_v62, %v4241_v13 }
0x146b   :  { %v4324_v51 = vsub.f32 0.0, %v4320_v38 }
0x146c   :  { %v4323_v23 = vsub.f32 0.0, %v4315_v2 }
0x146d   :  { %v4327_v14 = vmul.f32 1.442695, %v4324_v51 }
0x146e   :  { %v4325_v52 = vmul.f32 1.442695, %v4323_v23 }
0x146f   :  { %9660 = vpow2.f32 %v4327_v14 }
0x1470   :  { %9662 = vpow2.f32 %v4325_v52 }
0x1479   :  { %v9661_v26 = vpop.eup %9660 }
0x147a   :  { %v9663_v22 = vpop.eup %9662  ;;  %v4330_v1 = vadd.f32 1.0, %v9661_v26 }
0x147b   :  { %v4329_v20 = vadd.f32 1.0, %v9663_v22 }
0x147c   :  { %9664 = vrcp.f32 %v4330_v1 }
0x147d   :  { %9666 = vrcp.f32 %v4329_v20 }
0x1486   :  { %v9665_v12 = vpop.eup %9664 }
0x1487   :  { %v9667_v17 = vpop.eup %9666  ;;  %v4336_v54 = vsub.f32 %v9665_v12, %v14023_v43 }
0x1488   :  { %v4335_v32 = vsub.f32 %v9667_v17, %v14024_v31 }
0x1489   :  { %v4338_v30 = vmul.f32 %v4336_v54, %v4336_v54 }
0x148a   :  { %v4337_v27 = vmul.f32 %v4335_v32, %v4335_v32 }
0x148b   :  { %4343 = vrot.lane.b32.xlu0 %v4338_v30, %s9904_s0 }
0x148c   :  { %4341 = vrot.lane.b32.xlu1 %v4337_v27, %s9904_s0 }
0x14fd   :  { %v4344_v44 = vpop.permute.xlu0 %4343 }
0x14fe   :  { %v4342_v61 = vpop.permute.xlu1 %4341  ;;  %v4348_v25 = vsel %vm198_vm10, %v14023_v43, %v4344_v44 }
0x14ff   :  { %v4347_v6 = vsel %vm198_vm10, %v14024_v31, %v4342_v61  ;;  %v4350_v50 = vmul.f32 5.656854, %v4348_v25 }
0x1500   :  { %v4349_v58 = vmul.f32 5.656854, %v4347_v6 }
0x1501   :  { %v12025_v11 = vadd.f32 %v9888_v10, %v4350_v50 }
0x1502   :  { %v12019_v7 = vadd.f32 %v9888_v10, %v4349_v58 }
0x1504   :  { %8519 = vmatmul.mubr.msk.f32.vlgmr.msra.gmra.mrb[12].mxu1 %vm234_vm11, %v12019_v7 }
0x1505   :  { %4429 = vmatprep.mubr.f32.mxu1 %v13997_v55  ;;  %9291 = vmatpush3.bf16.msra.mxu1 %v14013_v48 }
0x1506   :  { %9293 = vmatprep.subr.bf16.mxu1 %v14025_v19 }
0x1508   :  { %8520 = vmatmul.mubr.msk.f32.gmra.mrb[14].mxu1 %vm234_vm11, %v12025_v11 }
0x1509   :  { %9295 = vmatpush3.bf16.msra.mxu1 %v14025_v19 }
0x150a   :  { %9297 = vmatprep.subr.bf16.mxu1 %v14026_v49 }
0x150d   :  { %9299 = vmatpush3.bf16.msra.mxu1 %v14026_v49 }
0x150e   :  { %9301 = vmatprep.subr.bf16.mxu1 %v14027_v53 }
0x1511   :  { %9303 = vmatpush3.bf16.msra.mxu1 %v14027_v53 }
0x15d7   :  { %v4425_v29 = vpop.f32.mrb[12].mxu1 }
0x15d8   :  { %v4426_v48 = vadd.f32 %v4425_v29, %v14028_v34  ;;  %v12036_v33 = vpop.f32.mrb[13].mxu1 }
0x15da   :  { %4616 = vrot.lane.b32.xlu1 %v4426_v48, %s9901_s27  ;;  %v4445_v41 = vrot.slane %v4426_v48, %v10079_v63  ;;  %v4438_v24 = vcombine.high %v4426_v48, %v4426_v48 }
0x15db   :  { %v4431_v57 = vpop.f32.mrb[14].mxu1 }
0x15dc   :  { %v4432_v59 = vadd.f32 %v4431_v57, %v14028_v34  ;;  %v12040_v4 = vpop.f32.mrb[15].mxu1  ;;  %v4453_v0 = vcombine.high %v4445_v41, %v4445_v41  ;;  %v4461_v36 = vrot.slane %v4445_v41, %v10079_v63  ;;  %v4452_v40 = vrot.slane %v4438_v24, %v10079_v63 }
0x15de   :  { %4618 = vrot.lane.b32.xlu1 %v4432_v59, %s9901_s27  ;;  %v4494_v56 = vrot.slane %v4432_v59, %v10079_v63  ;;  %v4475_v9 = vrot.slane %v4453_v0, %v10079_v63  ;;  %v4483_v42 = vcombine.high %v4461_v36, %v4461_v36  ;;  %v4539_v28 = vrot.slane %v4461_v36, %v10059_v46 }
0x15df   :  { %v4454_v60 = vcombine.high %v4452_v40, %v4452_v40  ;;  %v4468_v13 = vrot.slane %v4452_v40, %v10079_v63  ;;  %v4487_v52 = vcombine.high %v4432_v59, %v4432_v59 }
0x15e0   :  { %v4502_v45 = vcombine.high %v4494_v56, %v4494_v56  ;;  %v4543_v16 = vrot.slane %v4475_v9, %v10059_v46  ;;  %v4485_v47 = vcombine.high %v4475_v9, %v4475_v9  ;;  %v4547_v39 = vrot.slane %v4483_v42, %v10059_v46 }
0x15e1   :  { %v4510_v38 = vrot.slane %v4494_v56, %v10079_v63  ;;  %v4482_v14 = vrot.slane %v4454_v60, %v10079_v63  ;;  %v4555_v20 = vrot.slane %v4468_v13, %v10059_v46  ;;  %v4484_v43 = vcombine.high %v4468_v13, %v4468_v13 }
0x15e2   :  { %v4524_v62 = vrot.slane %v4502_v45, %v10079_v63  ;;  %v4551_v2 = vrot.slane %v4485_v47, %v10059_v46  ;;  %v4501_v54 = vrot.slane %v4487_v52, %v10079_v63  ;;  %v14029_v45 = vld [vmem:[#allocation17_spill] sm:$0xff] }
0x15e3   :  { %v4532_v22 = vcombine.high %v4510_v38, %v4510_v38  ;;  %v4559_v30 = vrot.slane %v4482_v14, %v10059_v46  ;;  %v4563_v58 = vrot.slane %v4484_v43, %v10059_v46  ;;  %v4571_v19 = vrot.slane %v4510_v38, %v10059_v46 }
0x15e4   :  { %v4575_v1 = vrot.slane %v4524_v62, %v10059_v46  ;;  %v4534_v31 = vcombine.high %v4524_v62, %v4524_v62  ;;  %v4503_v61 = vcombine.high %v4501_v54, %v4501_v54  ;;  %v4517_v25 = vrot.slane %v4501_v54, %v10079_v63 }
0x15e5   :  { %v4579_v32 = vrot.slane %v4532_v22, %v10059_v46  ;;  %v4486_v29 = vcombine.high %v4482_v14, %v4482_v14 }
0x15e6   :  { %v4583_v6 = vrot.slane %v4534_v31, %v10059_v46  ;;  %v4531_v49 = vrot.slane %v4503_v61, %v10079_v63  ;;  %v4587_v53 = vrot.slane %v4517_v25, %v10059_v46  ;;  %v4533_v57 = vcombine.high %v4517_v25, %v4517_v25 }
0x15e7   :  { %v4567_v41 = vrot.slane %v4486_v29, %v10059_v46 }
0x15e8   :  { %v4591_v59 = vrot.slane %v4531_v49, %v10059_v46  ;;  %v4535_v0 = vcombine.high %v4531_v49, %v4531_v49  ;;  %v4595_v56 = vrot.slane %v4533_v57, %v10059_v46 }
0x15ea   :  { %v4599_v9 = vrot.slane %v4535_v0, %v10059_v46 }
0x164c   :  { %v4617_v5 = vpop.permute.xlu1 %4616 }
0x164d   :  { %v12050_v21 = vmul.f32 %v4617_v5, %v4539_v28  ;;  %v12052_v8 = vmul.f32 %v4617_v5, %v4543_v16  ;;  %v12063_v51 = vmul.f32 %v4617_v5, %v4547_v39  ;;  %v12065_v23 = vmul.f32 %v4617_v5, %v4551_v2 }
0x164e   :  { %v12076_v17 = vmul.f32 %v4617_v5, %v4555_v20  ;;  %v12087_v44 = vmul.f32 %v4617_v5, %v4559_v30  ;;  %v12098_v10 = vmul.f32 %v4617_v5, %v4563_v58  ;;  %v12119_v36 = vmul.f32 %v4617_v5, %v4567_v41 }
0x164f   :  { %4654 = vrot.lane.b32.xlu0 %v12050_v21, %s9903_s28  ;;  %4656 = vrot.lane.b32.xlu1 %v12052_v8, %s9903_s28  ;;  %v12137_v28 = vadd.f32 %v12036_v33, %v14029_v45  ;;  %v12141_v16 = vadd.f32 %v12040_v4, %v14029_v45 }
0x1650   :  { %v4619_v26 = vpop.permute.xlu1 %4618 }
0x1651   :  { %v12074_v12 = vmul.f32 %v4619_v26, %v4575_v1  ;;  %v12085_v27 = vmul.f32 %v4619_v26, %v4579_v32  ;;  %v12096_v50 = vmul.f32 %v4619_v26, %v4583_v6  ;;  %v12107_v34 = vmul.f32 %v4619_v26, %v4587_v53 }
0x1652   :  { %v12109_v48 = vmul.f32 %v4619_v26, %v4571_v19  ;;  %v12117_v24 = vmul.f32 %v4619_v26, %v4591_v59  ;;  %v12127_v40 = vmul.f32 %v4619_v26, %v4595_v56  ;;  %v12129_v42 = vmul.f32 %v4619_v26, %v4599_v9 }
0x1653   :  { %4658 = vrot.lane.b32.xlu0 %v12063_v51, %s9903_s28  ;;  %4660 = vrot.lane.b32.xlu1 %v12065_v23, %s9903_s28 }
0x1657   :  { %4672 = vrot.lane.b32.xlu0 %v12074_v12, %s9903_s28  ;;  %4662 = vrot.lane.b32.xlu1 %v12076_v17, %s9903_s28 }
0x165b   :  { %4674 = vrot.lane.b32.xlu0 %v12085_v27, %s9903_s28  ;;  %4664 = vrot.lane.b32.xlu1 %v12087_v44, %s9903_s28 }
0x165f   :  { %4676 = vrot.lane.b32.xlu0 %v12096_v50, %s9903_s28  ;;  %4666 = vrot.lane.b32.xlu1 %v12098_v10, %s9903_s28 }
0x1663   :  { %4678 = vrot.lane.b32.xlu0 %v12107_v34, %s9903_s28  ;;  %4670 = vrot.lane.b32.xlu1 %v12109_v48, %s9903_s28 }
0x1667   :  { %4680 = vrot.lane.b32.xlu0 %v12117_v24, %s9903_s28  ;;  %4668 = vrot.lane.b32.xlu1 %v12119_v36, %s9903_s28 }
0x166b   :  { %4682 = vrot.lane.b32.xlu0 %v12127_v40, %s9903_s28  ;;  %4684 = vrot.lane.b32.xlu1 %v12129_v42, %s9903_s28 }
0x166f   :  { %5168 = vrot.lane.b32.xlu0 %v12137_v28, %s9903_s28  ;;  %5170 = vrot.lane.b32.xlu1 %v12141_v16, %s9903_s28 }
0x16c1   :  { %v4655_v47 = vpop.permute.xlu0 %4654  ;;  %v4657_v5 = vpop.permute.xlu1 %4656 }
0x16c2   :  { %v4702_v60 = vadd.f32 %v4655_v47, %v12050_v21  ;;  %v4703_v13 = vadd.f32 %v4657_v5, %v12052_v8 }
0x16c4   :  { %v4718_v39 = vmul.f32 0.70710677, %v4702_v60  ;;  %v4719_v38 = vmul.f32 0.70710677, %v4703_v13 }
0x16c5   :  { %v4659_v33 = vpop.permute.xlu0 %4658  ;;  %v4661_v62 = vpop.permute.xlu1 %4660 }
0x16c6   :  { %v4734_v2 = vsel %vm198_vm10, %v4718_v39, -inf  ;;  %v4741_v4 = vsel %vm198_vm10, %v4719_v38, -inf  ;;  %v4704_v14 = vadd.f32 %v4659_v33, %v12063_v51  ;;  %v4705_v52 = vadd.f32 %v4661_v62, %v12065_v23 }
0x16c7   :  { %v4735_v26 = vrot.slane %v4734_v2, 4  ;;  %v4742_v22 = vrot.slane %v4741_v4, 4 }
0x16c8   :  { %v12153_v1 = vmul.f32 0.70710677, %v4704_v14  ;;  %v12155_v20 = vmul.f32 0.70710677, %v4705_v52 }
0x16c9   :  { %v4736_v21 = vmax.f32 %v4734_v2, %v4735_v26  ;;  %v4743_v8 = vmax.f32 %v4741_v4, %v4742_v22  ;;  %v4673_v43 = vpop.permute.xlu0 %4672  ;;  %v4663_v54 = vpop.permute.xlu1 %4662 }
0x16ca   :  { %v4748_v31 = vsel %vm198_vm10, %v12153_v1, -inf  ;;  %v4755_v32 = vsel %vm198_vm10, %v12155_v20, -inf  ;;  %v4711_v51 = vadd.f32 %v4673_v43, %v12074_v12  ;;  %v4706_v23 = vadd.f32 %v4663_v54, %v12076_v17 }
0x16cb   :  { %v4737_v30 = vrot.slane %v4736_v21, 2  ;;  %v4744_v61 = vrot.slane %v4743_v8, 2  ;;  %v4749_v25 = vrot.slane %v4748_v31, 4  ;;  %v4756_v6 = vrot.slane %v4755_v32, 4 }
0x16cc   :  { %v12163_v58 = vmul.f32 0.70710677, %v4711_v51  ;;  %v12165_v19 = vmul.f32 0.70710677, %v4706_v23 }
0x16cd   :  { %v4738_v49 = vmax.f32 %v4736_v21, %v4737_v30  ;;  %v4745_v53 = vmax.f32 %v4743_v8, %v4744_v61  ;;  %v4750_v29 = vmax.f32 %v4748_v31, %v4749_v25  ;;  %v4757_v57 = vmax.f32 %v4755_v32, %v4756_v6  ;;  %v4675_v59 = vpop.permute.xlu0 %4674  ;;  %v4665_v41 = vpop.permute.xlu1 %4664 }
0x16ce   :  { %v4797_v0 = vsel %vm198_vm10, %v12163_v58, -inf  ;;  %v4762_v12 = vsel %vm198_vm10, %v12165_v19, -inf  ;;  %v4712_v17 = vadd.f32 %v4675_v59, %v12085_v27  ;;  %v4707_v56 = vadd.f32 %v4665_v41, %v12087_v44 }
0x16cf   :  { %v4739_v9 = vrot.slane %v4738_v49, 1  ;;  %v4746_v45 = vrot.slane %v4745_v53, 1  ;;  %v4751_v47 = vrot.slane %v4750_v29, 2  ;;  %v4758_v5 = vrot.slane %v4757_v57, 2 }
0x16d0   :  { %v4798_v60 = vrot.slane %v4797_v0, 4  ;;  %v4763_v13 = vrot.slane %v4762_v12, 4  ;;  %v12173_v33 = vmul.f32 0.70710677, %v4712_v17  ;;  %v12175_v62 = vmul.f32 0.70710677, %v4707_v56 }
0x16d1   :  { %v4740_v2 = vmax.f32 %v4738_v49, %v4739_v9  ;;  %v4747_v4 = vmax.f32 %v4745_v53, %v4746_v45  ;;  %v4752_v14 = vmax.f32 %v4750_v29, %v4751_v47  ;;  %v4759_v52 = vmax.f32 %v4757_v57, %v4758_v5  ;;  %v4677_v21 = vpop.permute.xlu0 %4676  ;;  %v4667_v41 = vpop.permute.xlu1 %4666 }
0x16d2   :  { %v4799_v26 = vmax.f32 %v4797_v0, %v4798_v60  ;;  %v4764_v22 = vmax.f32 %v4762_v12, %v4763_v13  ;;  %v4804_v27 = vsel %vm198_vm10, %v12173_v33, -inf  ;;  %v4769_v44 = vsel %vm198_vm10, %v12175_v62, -inf }
0x16d3   :  { %v4846_v8 = vsub.f32 %v4718_v39, %v4740_v2  ;;  %v4847_v43 = vsub.f32 %v4719_v38, %v4747_v4  ;;  %v4753_v54 = vrot.slane %v4752_v14, 1  ;;  %v4760_v31 = vrot.slane %v4759_v52, 1 }
0x16d4   :  { %v4800_v32 = vrot.slane %v4799_v26, 2  ;;  %v4765_v51 = vrot.slane %v4764_v22, 2  ;;  %v4805_v23 = vrot.slane %v4804_v27, 4  ;;  %v4770_v30 = vrot.slane %v4769_v44, 4 }
0x16d5   :  { %v4862_v61 = vmul.f32 1.442695, %v4846_v8  ;;  %v4864_v25 = vmul.f32 1.442695, %v4847_v43  ;;  %v4754_v6 = vmax.f32 %v4752_v14, %v4753_v54  ;;  %v4761_v49 = vmax.f32 %v4759_v52, %v4760_v31  ;;  %v4679_v9 = vpop.permute.xlu0 %4678 }
0x16d6   :  { %v4801_v53 = vmax.f32 %v4799_v26, %v4800_v32  ;;  %v4766_v29 = vmax.f32 %v4764_v22, %v4765_v51  ;;  %v4806_v57 = vmax.f32 %v4804_v27, %v4805_v23  ;;  %v4771_v59 = vmax.f32 %v4769_v44, %v4770_v30  ;;  %v4671_v27 = vpop.permute.xlu1 %4670 }
0x16d7   :  { %9668 = vpow2.f32 %v4862_v61  ;;  %v4848_v0 = vsub.f32 %v12153_v1, %v4754_v6  ;;  %v4849_v39 = vsub.f32 %v12155_v20, %v4761_v49  ;;  %v4713_v38 = vadd.f32 %v4677_v21, %v12096_v50 }
0x16d8   :  { %9670 = vpow2.f32 %v4864_v25  ;;  %v4802_v12 = vrot.slane %v4801_v53, 1  ;;  %v4767_v17 = vrot.slane %v4766_v29, 1  ;;  %v4807_v56 = vrot.slane %v4806_v57, 2 }
0x16d9   :  { %v4866_v45 = vmul.f32 1.442695, %v4848_v0  ;;  %v4868_v47 = vmul.f32 1.442695, %v4849_v39  ;;  %v4772_v5 = vrot.slane %v4771_v59, 2  ;;  %v4708_v60 = vadd.f32 %v4667_v41, %v12098_v10 }
0x16da   :  { %v4803_v13 = vmax.f32 %v4801_v53, %v4802_v12  ;;  %v4768_v2 = vmax.f32 %v4766_v29, %v4767_v17  ;;  %v4808_v4 = vmax.f32 %v4806_v57, %v4807_v56  ;;  %v12185_v14 = vmul.f32 0.70710677, %v4713_v38 }
0x16db   :  { %9672 = vpow2.f32 %v4866_v45  ;;  %v4773_v1 = vmax.f32 %v4771_v59, %v4772_v5  ;;  %v12187_v20 = vmul.f32 0.70710677, %v4708_v60  ;;  %v4714_v50 = vadd.f32 %v4679_v9, %v12107_v34 }
0x16dc   :  { %9674 = vpow2.f32 %v4868_v47  ;;  %v4855_v52 = vsub.f32 %v12163_v58, %v4803_v13  ;;  %v4850_v26 = vsub.f32 %v12165_v19, %v4768_v2  ;;  %v4809_v22 = vrot.slane %v4808_v4, 1 }
0x16dd   :  { %v4774_v44 = vrot.slane %v4773_v1, 1  ;;  %v4811_v10 = vsel %vm198_vm10, %v12185_v14, -inf  ;;  %v4776_v21 = vsel %vm198_vm10, %v12187_v20, -inf  ;;  %v12196_v8 = vmul.f32 0.70710677, %v4714_v50 }
0x16de   :  { %v4880_v43 = vmul.f32 1.442695, %v4855_v52  ;;  %v4870_v54 = vmul.f32 1.442695, %v4850_v26  ;;  %v4810_v31 = vmax.f32 %v4808_v4, %v4809_v22  ;;  %v4812_v34 = vrot.slane %v4811_v10, 4 }
0x16df   :  { %v4775_v32 = vmax.f32 %v4773_v1, %v4774_v44  ;;  %v4777_v51 = vrot.slane %v4776_v21, 4  ;;  %v4818_v58 = vsel %vm198_vm10, %v12196_v8, -inf  ;;  %v4710_v19 = vadd.f32 %v4671_v27, %v12109_v48 }
0x16e0   :  { %9676 = vpow2.f32 %v4880_v43  ;;  %v4856_v23 = vsub.f32 %v12173_v33, %v4810_v31  ;;  %v4813_v30 = vmax.f32 %v4811_v10, %v4812_v34  ;;  %v4819_v61 = vrot.slane %v4818_v58, 4 }
0x16e1   :  { %v12202_v25 = vpop.eup %9668  ;;  %9678 = vpow2.f32 %v4870_v54  ;;  %v4851_v6 = vsub.f32 %v12175_v62, %v4775_v32  ;;  %v4778_v49 = vmax.f32 %v4776_v21, %v4777_v51  ;;  %v12205_v53 = vmul.f32 0.70710677, %v4710_v19 }
0x16e2   :  { %v12207_v29 = vpop.eup %9670  ;;  %v4894_v57 = vsel %vm198_vm10, %v12202_v25, 0.0  ;;  %v4882_v59 = vmul.f32 1.442695, %v4856_v23  ;;  %v4814_v48 = vrot.slane %v4813_v30, 2  ;;  %v4820_v41 = vmax.f32 %v4818_v58, %v4819_v61 }
0x16e3   :  { %v4895_v0 = vrot.slane %v4894_v57, 4  ;;  %v4901_v33 = vsel %vm198_vm10, %v12207_v29, 0.0  ;;  %v4872_v39 = vmul.f32 1.442695, %v4851_v6  ;;  %v4779_v38 = vrot.slane %v4778_v49, 2 }
0x16e4   :  { %v4902_v12 = vrot.slane %v4901_v33, 4  ;;  %9680 = vpow2.f32 %v4882_v59  ;;  %v4815_v62 = vmax.f32 %v4813_v30, %v4814_v48  ;;  %v4821_v17 = vrot.slane %v4820_v41, 2 }
0x16e5   :  { %v12213_v56 = vpop.eup %9672  ;;  %v4896_v9 = vadd.f32 %v4895_v0, %v4894_v57  ;;  %9682 = vpow2.f32 %v4872_v39  ;;  %v4780_v45 = vmax.f32 %v4778_v49, %v4779_v38  ;;  %v4790_v47 = vsel %vm198_vm10, %v12205_v53, -inf }
0x16e6   :  { %v12217_v5 = vpop.eup %9674  ;;  %v4903_v60 = vadd.f32 %v4902_v12, %v4901_v33  ;;  %v4908_v13 = vsel %vm198_vm10, %v12213_v56, 0.0  ;;  %v4816_v2 = vrot.slane %v4815_v62, 1  ;;  %v4822_v4 = vmax.f32 %v4820_v41, %v4821_v17 }
0x16e7   :  { %v4897_v1 = vrot.slane %v4896_v9, 2  ;;  %v4909_v50 = vrot.slane %v4908_v13, 4  ;;  %v4915_v52 = vsel %vm198_vm10, %v12217_v5, 0.0  ;;  %v4781_v26 = vrot.slane %v4780_v45, 1 }
0x16e8   :  { %v4904_v22 = vrot.slane %v4903_v60, 2  ;;  %v4916_v27 = vrot.slane %v4915_v52, 4  ;;  %v4817_v44 = vmax.f32 %v4815_v62, %v4816_v2  ;;  %v4823_v10 = vrot.slane %v4822_v4, 1 }
0x16e9   :  { %v4898_v21 = vadd.f32 %v4897_v1, %v4896_v9  ;;  %v4910_v43 = vadd.f32 %v4909_v50, %v4908_v13  ;;  %v4782_v54 = vmax.f32 %v4780_v45, %v4781_v26  ;;  %v4791_v31 = vrot.slane %v4790_v47, 4  ;;  %v4681_v50 = vpop.permute.xlu0 %4680 }
0x16ea   :  { %v12223_v34 = vpop.eup %9676  ;;  %v4905_v32 = vadd.f32 %v4904_v22, %v4903_v60  ;;  %v4917_v51 = vadd.f32 %v4916_v27, %v4915_v52  ;;  %v4857_v58 = vsub.f32 %v12185_v14, %v4817_v44  ;;  %v4824_v19 = vmax.f32 %v4822_v4, %v4823_v10 }
0x16eb   :  { %v12226_v23 = vpop.eup %9678  ;;  %v4899_v30 = vrot.slane %v4898_v21, 1  ;;  %v4911_v61 = vrot.slane %v4910_v43, 2  ;;  %v4957_v6 = vsel %vm198_vm10, %v12223_v34, 0.0  ;;  %v4852_v49 = vsub.f32 %v12187_v20, %v4782_v54 }
0x16ec   :  { %v4906_v57 = vrot.slane %v4905_v32, 1  ;;  %v4918_v59 = vrot.slane %v4917_v51, 2  ;;  %v4958_v48 = vrot.slane %v4957_v6, 4  ;;  %v4922_v41 = vsel %vm198_vm10, %v12226_v23, 0.0 }
0x16ed   :  { %v4900_v0 = vadd.f32 %v4899_v30, %v4898_v21  ;;  %v4912_v33 = vadd.f32 %v4911_v61, %v4910_v43  ;;  %v4923_v39 = vrot.slane %v4922_v41, 4  ;;  %v4884_v14 = vmul.f32 1.442695, %v4857_v58  ;;  %v4669_v61 = vpop.permute.xlu1 %4668 }
0x16ee   :  { %v12233_v38 = vpop.eup %9680  ;;  %v4907_v12 = vadd.f32 %v4906_v57, %v4905_v32  ;;  %v4919_v62 = vadd.f32 %v4918_v59, %v4917_v51  ;;  %v4959_v17 = vadd.f32 %v4958_v48, %v4957_v6  ;;  %v4874_v9 = vmul.f32 1.442695, %v4852_v49 }
0x16ef   :  { %v12235_v45 = vpop.eup %9682  ;;  %9684 = vrcp.f32 %v4900_v0  ;;  %v4913_v20 = vrot.slane %v4912_v33, 1  ;;  %v4924_v60 = vadd.f32 %v4923_v39, %v4922_v41  ;;  %v4964_v13 = vsel %vm198_vm10, %v12233_v38, 0.0 }
0x16f0   :  { %9686 = vrcp.f32 %v4907_v12  ;;  %v4920_v2 = vrot.slane %v4919_v62, 1  ;;  %v4960_v4 = vrot.slane %v4959_v17, 2  ;;  %v4965_v1 = vrot.slane %v4964_v13, 4 }
0x16f1   :  { %v4914_v52 = vadd.f32 %v4913_v20, %v4912_v33  ;;  %v4925_v26 = vrot.slane %v4924_v60, 2  ;;  %v4929_v22 = vsel %vm198_vm10, %v12235_v45, 0.0  ;;  %9688 = vpow2.f32 %v4884_v14  ;;  %v4683_v33 = vpop.permute.xlu0 %4682 }
0x16f2   :  { %v4921_v27 = vadd.f32 %v4920_v2, %v4919_v62  ;;  %v4961_v44 = vadd.f32 %v4960_v4, %v4959_v17  ;;  %v4966_v10 = vadd.f32 %v4965_v1, %v4964_v13  ;;  %v4930_v21 = vrot.slane %v4929_v22, 4 }
0x16f3   :  { %9690 = vrcp.f32 %v4914_v52  ;;  %v4926_v43 = vadd.f32 %v4925_v26, %v4924_v60  ;;  %v4858_v54 = vsub.f32 %v12196_v8, %v4824_v19  ;;  %v4792_v32 = vmax.f32 %v4790_v47, %v4791_v31 }
0x16f4   :  { %9692 = vrcp.f32 %v4921_v27  ;;  %v4962_v51 = vrot.slane %v4961_v44, 1  ;;  %v4967_v58 = vrot.slane %v4966_v10, 2  ;;  %v4931_v30 = vadd.f32 %v4930_v21, %v4929_v22 }
0x16f5   :  { %v4927_v6 = vrot.slane %v4926_v43, 1  ;;  %9694 = vpow2.f32 %v4874_v9  ;;  %v4886_v49 = vmul.f32 1.442695, %v4858_v54  ;;  %v4793_v57 = vrot.slane %v4792_v32, 2 }
0x16f6   :  { %v4963_v59 = vadd.f32 %v4962_v51, %v4961_v44  ;;  %v4968_v48 = vadd.f32 %v4967_v58, %v4966_v10  ;;  %v4932_v41 = vrot.slane %v4931_v30, 2  ;;  %v4715_v0 = vadd.f32 %v4681_v50, %v12117_v24 }
0x16f7   :  { %v4928_v39 = vadd.f32 %v4927_v6, %v4926_v43  ;;  %9696 = vpow2.f32 %v4886_v49  ;;  %v4794_v14 = vmax.f32 %v4792_v32, %v4793_v57  ;;  %v4709_v8 = vadd.f32 %v4669_v61, %v12119_v36 }
0x16f8   :  { %9698 = vrcp.f32 %v4963_v59  ;;  %v4969_v47 = vrot.slane %v4968_v48, 1  ;;  %v4933_v31 = vadd.f32 %v4932_v41, %v4931_v30  ;;  %v12244_v19 = vmul.f32 0.70710677, %v4715_v0 }
0x16f9   :  { %v9685_v12 = vpop.eup %9684  ;;  %9700 = vrcp.f32 %v4928_v39  ;;  %v4795_v62 = vrot.slane %v4794_v14, 1  ;;  %v12246_v17 = vmul.f32 0.70710677, %v4709_v8  ;;  %v12249_v9 = vadd.f32 %v4683_v33, %v12127_v40 }
0x16fa   :  { %v9687_v24 = vpop.eup %9686  ;;  %v12252_v20 = vmul.f32 %v9685_v12, %v12202_v25  ;;  %v4970_v60 = vadd.f32 %v4969_v47, %v4968_v48  ;;  %v4934_v13 = vrot.slane %v4933_v31, 1  ;;  %v4825_v36 = vsel %vm198_vm10, %v12244_v19, -inf }
0x16fb   :  { %v12256_v2 = vpop.eup %9688  ;;  %v12259_v4 = vmul.f32 %v9687_v24, %v12207_v29  ;;  %v4796_v1 = vmax.f32 %v4794_v14, %v4795_v62  ;;  %v4826_v50 = vrot.slane %v4825_v36, 4  ;;  %v12263_v40 = vsel %vm198_vm10, %v12246_v17, -inf }
0x16fc   :  { %v5038_v25 = vmul.f32 %v12252_v20, %v12137_v28  ;;  %9702 = vrcp.f32 %v4970_v60  ;;  %v4935_v52 = vadd.f32 %v4934_v13, %v4933_v31  ;;  %v4971_v26 = vsel %vm198_vm10, %v12256_v2, 0.0 }
0x16fd   :  { %v9691_v22 = vpop.eup %9690  ;;  %v5039_v27 = vmul.f32 %v12259_v4, %v12137_v28  ;;  %v4972_v29 = vrot.slane %v4971_v26, 4  ;;  %v4854_v44 = vsub.f32 %v12205_v53, %v4796_v1  ;;  %v12272_v10 = vmax.f32 %v4825_v36, %v4826_v50 }
0x16fe   :  { %v9693_v21 = vpop.eup %9692  ;;  %v5054_v43 = vsel %vm198_vm10, %v5038_v25, 0.0  ;;  %v12276_v54 = vmul.f32 %v9691_v22, %v12213_v56  ;;  %9704 = vrcp.f32 %v4935_v52  ;;  %v4784_v32 = vrot.slane %v12263_v40, 4 }
0x16ff   :  { %v12279_v51 = vpop.eup %9694  ;;  %v5055_v58 = vrot.slane %v5054_v43, 4  ;;  %v5061_v30 = vsel %vm198_vm10, %v5039_v27, 0.0  ;;  %v12283_v61 = vmul.f32 %v9693_v21, %v12217_v5  ;;  %v4973_v53 = vadd.f32 %v4972_v29, %v4971_v26 }
0x1700   :  { %v5062_v6 = vrot.slane %v5061_v30, 4  ;;  %v5040_v49 = vmul.f32 %v12276_v54, %v12137_v28  ;;  %v4936_v56 = vsel %vm198_vm10, %v12279_v51, 0.0  ;;  %v4878_v57 = vmul.f32 1.442695, %v4854_v44 }
0x1701   :  { %v12289_v59 = vpop.eup %9696  ;;  %v5056_v48 = vadd.f32 %v5055_v58, %v5054_v43  ;;  %v5041_v41 = vmul.f32 %v12283_v61, %v12137_v28  ;;  %v4974_v0 = vrot.slane %v4973_v53, 2  ;;  %v4937_v33 = vrot.slane %v4936_v56, 4 }
0x1702   :  { %v9699_v39 = vpop.eup %9698  ;;  %v5063_v5 = vadd.f32 %v5062_v6, %v5061_v30  ;;  %v5068_v14 = vsel %vm198_vm10, %v5040_v49, 0.0  ;;  %v4978_v8 = vsel %vm198_vm10, %v12289_v59, 0.0  ;;  %9706 = vpow2.f32 %v4878_v57 }
0x1703   :  { %v9701_v47 = vpop.eup %9700  ;;  %v5057_v31 = vrot.slane %v5056_v48, 2  ;;  %v5069_v12 = vrot.slane %v5068_v14, 4  ;;  %v5075_v62 = vsel %vm198_vm10, %v5041_v41, 0.0  ;;  %v12298_v24 = vmul.f32 %v9699_v39, %v12223_v34 }
0x1704   :  { %v5064_v60 = vrot.slane %v5063_v5, 2  ;;  %v5076_v13 = vrot.slane %v5075_v62, 4  ;;  %v12301_v36 = vmul.f32 %v9701_v47, %v12226_v23  ;;  %v4975_v1 = vadd.f32 %v4974_v0, %v4973_v53 }
0x1705   :  { %v12303_v50 = vadd.f32 %v5057_v31, %v5056_v48  ;;  %v12305_v25 = vadd.f32 %v5069_v12, %v5068_v14  ;;  %v5047_v52 = vmul.f32 %v12298_v24, %v12141_v16  ;;  %v4938_v26 = vadd.f32 %v4937_v33, %v4936_v56 }
0x1706   :  { %v9703_v22 = vpop.eup %9702  ;;  %v12309_v27 = vadd.f32 %v5064_v60, %v5063_v5  ;;  %v12311_v29 = vadd.f32 %v5076_v13, %v5075_v62  ;;  %v5042_v34 = vmul.f32 %v12301_v36, %v12137_v28  ;;  %v4976_v44 = vrot.slane %v4975_v1, 1 }
0x1707   :  { %v5117_v21 = vsel %vm198_vm10, %v5047_v52, 0.0  ;;  %v12318_v43 = vmul.f32 %v9703_v22, %v12233_v38  ;;  %v4939_v58 = vrot.slane %v4938_v26, 2  ;;  %v4979_v56 = vrot.slane %v4978_v8, 4 }
0x1708   :  { %v9705_v30 = vpop.eup %9704  ;;  %v5118_v53 = vrot.slane %v5117_v21, 4  ;;  %v12321_v6 = vsel %vm198_vm10, %v5042_v34, 0.0  ;;  %v4977_v49 = vadd.f32 %v4976_v44, %v4975_v1  ;;  %v4828_v39 = vrot.slane %v12272_v10, 2  ;;  %v4685_v44 = vpop.permute.xlu1 %4684 }
0x1709   :  { %v5048_v48 = vmul.f32 %v12318_v43, %v12141_v16  ;;  %v12327_v41 = vmul.f32 %v9705_v30, %v12235_v45  ;;  %v4940_v0 = vadd.f32 %v4939_v58, %v4938_v26  ;;  %v4980_v38 = vadd.f32 %v4979_v56, %v4978_v8 }
0x170a   :  { %v5119_v33 = vadd.f32 %v5118_v53, %v5117_v21  ;;  %9708 = vrcp.f32 %v4977_v49  ;;  %v4785_v31 = vmax.f32 %v12263_v40, %v4784_v32  ;;  %v4829_v13 = vmax.f32 %v12272_v10, %v4828_v39 }
0x170b   :  { %v5124_v5 = vsel %vm198_vm10, %v5048_v48, 0.0  ;;  %v12333_v14 = vmul.f32 %v12327_v41, %v12137_v28  ;;  %v4941_v47 = vrot.slane %v4940_v0, 1  ;;  %v4981_v60 = vrot.slane %v4980_v38, 2 }
0x170c   :  { %v12336_v12 = vpop.eup %9706  ;;  %v5120_v62 = vrot.slane %v5119_v33, 2  ;;  %v5125_v45 = vrot.slane %v5124_v5, 4  ;;  %v4786_v52 = vrot.slane %v4785_v31, 2  ;;  %v12342_v26 = vmul.f32 0.70710677, %v12249_v9  ;;  %v12351_v9 = vpop.permute.xlu0 %5168 }
0x170d   :  { %v4942_v1 = vadd.f32 %v4941_v47, %v4940_v0  ;;  %v4950_v8 = vsel %vm198_vm10, %v12336_v12, 0.0  ;;  %v4982_v40 = vadd.f32 %v4981_v60, %v4980_v38  ;;  %v4830_v21 = vrot.slane %v4829_v13, 1 }
0x170e   :  { %v12344_v22 = vadd.f32 %v5120_v62, %v5119_v33  ;;  %v12346_v34 = vadd.f32 %v5125_v45, %v5124_v5  ;;  %v4951_v32 = vrot.slane %v4950_v8, 4  ;;  %v4787_v58 = vmax.f32 %v4785_v31, %v4786_v52 }
0x170f   :  { %9710 = vrcp.f32 %v4942_v1  ;;  %v4832_v10 = vsel %vm198_vm10, %v12342_v26, -inf  ;;  %v4983_v53 = vrot.slane %v4982_v40, 1  ;;  %v4831_v48 = vmax.f32 %v4829_v13, %v4830_v21 }
0x1710   :  { %v4952_v49 = vadd.f32 %v4951_v32, %v4950_v8  ;;  %v4833_v56 = vrot.slane %v4832_v10, 4  ;;  %v4788_v0 = vrot.slane %v4787_v58, 1  ;;  %v4717_v33 = vadd.f32 %v4685_v44, %v12129_v42 }
0x1711   :  { %v5174_v38 = vmul.f32 %v12351_v9, %v12252_v20  ;;  %v4984_v39 = vadd.f32 %v4983_v53, %v4982_v40  ;;  %v5175_v31 = vmul.f32 %v12351_v9, %v12259_v4  ;;  %v4859_v62 = vsub.f32 %v12244_v19, %v4831_v48 }
0x1712   :  { %v4953_v5 = vrot.slane %v4952_v49, 2  ;;  %v4834_v47 = vmax.f32 %v4832_v10, %v4833_v56  ;;  %v4789_v45 = vmax.f32 %v4787_v58, %v4788_v0  ;;  %v12359_v60 = vmul.f32 0.70710677, %v4717_v33 }
0x1713   :  { %v5176_v13 = vmul.f32 %v12351_v9, %v12276_v54  ;;  %9712 = vrcp.f32 %v4984_v39  ;;  %v5177_v20 = vmul.f32 %v12351_v9, %v12283_v61  ;;  %v4888_v40 = vmul.f32 1.442695, %v4859_v62 }
0x1714   :  { %v9709_v1 = vpop.eup %9708  ;;  %v4954_v42 = vadd.f32 %v4953_v5, %v4952_v49  ;;  %v4835_v8 = vrot.slane %v4834_v47, 2  ;;  %v4853_v4 = vsub.f32 %v12246_v17, %v4789_v45  ;;  %v4839_v19 = vsel %vm198_vm10, %v12359_v60, -inf }
0x1715   :  { %v5029_v52 = vmul.f32 %v9709_v1, %v12256_v2  ;;  %v4840_v21 = vrot.slane %v4839_v19, 4  ;;  %v12371_v54 = vmul.f32 %v12351_v9, %v12301_v36  ;;  %9714 = vpow2.f32 %v4888_v40 }
0x1716   :  { %v4955_v32 = vrot.slane %v4954_v42, 1  ;;  %v4836_v44 = vmax.f32 %v4834_v47, %v4835_v8  ;;  %v4876_v10 = vmul.f32 1.442695, %v4853_v4  ;;  %v5190_v61 = vsel %vm198_vm10, %v5174_v38, 0.0 }
0x1717   :  { %v5049_v58 = vmul.f32 %v5029_v52, %v12141_v16  ;;  %v4841_v49 = vmax.f32 %v4839_v19, %v4840_v21  ;;  %v5191_v17 = vrot.slane %v5190_v61, 4  ;;  %v5197_v0 = vsel %vm198_vm10, %v5175_v31, 0.0 }
0x1718   :  { %v4956_v2 = vadd.f32 %v4955_v32, %v4954_v42  ;;  %v4837_v53 = vrot.slane %v4836_v44, 1  ;;  %9716 = vpow2.f32 %v4876_v10  ;;  %v5204_v33 = vsel %vm198_vm10, %v5176_v13, 0.0 }
0x1719   :  { %v9711_v56 = vpop.eup %9710  ;;  %v5131_v48 = vsel %vm198_vm10, %v5049_v58, 0.0  ;;  %v4842_v47 = vrot.slane %v4841_v49, 2  ;;  %v5192_v62 = vadd.f32 %v5191_v17, %v5190_v61  ;;  %v5198_v38 = vrot.slane %v5197_v0, 4 }
0x171a   :  { %v5132_v36 = vrot.slane %v5131_v48, 4  ;;  %v5019_v39 = vmul.f32 %v9711_v56, %v12279_v51  ;;  %9718 = vrcp.f32 %v4956_v2  ;;  %v4838_v5 = vmax.f32 %v4836_v44, %v4837_v53  ;;  %v12386_v51 = vpop.permute.xlu1 %5170 }
0x171b   :  { %v5205_v45 = vrot.slane %v5204_v33, 4  ;;  %v5211_v31 = vsel %vm198_vm10, %v5177_v20, 0.0  ;;  %v4843_v40 = vmax.f32 %v4841_v49, %v4842_v47  ;;  %v5193_v13 = vrot.slane %v5192_v62, 2 }
0x171c   :  { %v12379_v1 = vadd.f32 %v5132_v36, %v5131_v48  ;;  %v12382_v42 = vmul.f32 %v5019_v39, %v12137_v28  ;;  %v4860_v8 = vsub.f32 %v12342_v26, %v4838_v5  ;;  %v5199_v4 = vadd.f32 %v5198_v38, %v5197_v0 }
0x171d   :  { %v5206_v19 = vadd.f32 %v5205_v45, %v5204_v33  ;;  %v9713_v32 = vpop.eup %9712  ;;  %v5212_v21 = vrot.slane %v5211_v31, 4  ;;  %v5183_v58 = vmul.f32 %v12386_v51, %v12298_v24  ;;  %v5184_v10 = vmul.f32 %v12386_v51, %v12318_v43 }
0x171e   :  { %v4890_v44 = vmul.f32 1.442695, %v4860_v8  ;;  %v5031_v61 = vmul.f32 %v9713_v32, %v12289_v59  ;;  %v4844_v26 = vrot.slane %v4843_v40, 1  ;;  %v5200_v2 = vrot.slane %v5199_v4, 2 }
0x171f   :  { %v5185_v20 = vmul.f32 %v12386_v51, %v5029_v52  ;;  %v5253_v53 = vsel %vm198_vm10, %v5183_v58, 0.0  ;;  %v5260_v49 = vsel %vm198_vm10, %v5184_v10, 0.0  ;;  %v12398_v17 = vmul.f32 %v12351_v9, %v12327_v41  ;;  %v12400_v56 = vpop.eup %9714 }
0x1720   :  { %9720 = vpow2.f32 %v4890_v44  ;;  %v5050_v24 = vmul.f32 %v5031_v61, %v12141_v16  ;;  %v4845_v43 = vmax.f32 %v4843_v40, %v4844_v26  ;;  %v12404_v59 = vmul.f32 %v12386_v51, %v5031_v61 }
0x1721   :  { %v5254_v48 = vrot.slane %v5253_v53, 4  ;;  %v4985_v52 = vsel %vm198_vm10, %v12400_v56, 0.0  ;;  %v5261_v0 = vrot.slane %v5260_v49, 4  ;;  %v12409_v33 = vsel %vm198_vm10, %v5185_v20, 0.0 }
0x1722   :  { %v12412_v36 = vmul.f32 %v12351_v9, %v5019_v39  ;;  %v12414_v41 = vpop.eup %9716  ;;  %v12417_v5 = vsel %vm198_vm10, %v5050_v24, 0.0  ;;  %v4986_v47 = vrot.slane %v4985_v52, 4  ;;  %v4861_v38 = vsub.f32 %v12359_v60, %v4845_v43 }
0x1723   :  { %v12420_v45 = vadd.f32 %v5254_v48, %v5253_v53  ;;  %v4943_v32 = vsel %vm198_vm10, %v12414_v41, 0.0  ;;  %v12425_v44 = vadd.f32 %v5261_v0, %v5260_v49  ;;  %v5194_v60 = vadd.f32 %v5193_v13, %v5192_v62 }
0x1724   :  { %v9719_v8 = vpop.eup %9718  ;;  %v4987_v10 = vadd.f32 %v4986_v47, %v4985_v52  ;;  %v4944_v61 = vrot.slane %v4943_v32, 4  ;;  %v4892_v26 = vmul.f32 1.442695, %v4861_v38  ;;  %v5201_v53 = vadd.f32 %v5200_v2, %v5199_v4 }
0x1725   :  { %v5023_v58 = vmul.f32 %v9719_v8, %v12336_v12  ;;  %v5207_v24 = vrot.slane %v5206_v19, 2  ;;  %v5195_v0 = vrot.slane %v5194_v60, 1  ;;  %v5213_v38 = vadd.f32 %v5212_v21, %v5211_v31 }
0x1726   :  { %v4988_v48 = vrot.slane %v4987_v10, 2  ;;  %v4945_v40 = vadd.f32 %v4944_v61, %v4943_v32  ;;  %9722 = vpow2.f32 %v4892_v26  ;;  %v5202_v30 = vrot.slane %v5201_v53, 1 }
0x1727   :  { %v5046_v43 = vmul.f32 %v5023_v58, %v12141_v16  ;;  %v5182_v49 = vmul.f32 %v12386_v51, %v5023_v58  ;;  %v5208_v57 = vadd.f32 %v5207_v24, %v5206_v19  ;;  %v5196_v4 = vadd.f32 %v5195_v0, %v5194_v60 }
0x1728   :  { %v4989_v52 = vadd.f32 %v4988_v48, %v4987_v10  ;;  %v4946_v47 = vrot.slane %v4945_v40, 2  ;;  %v5203_v2 = vadd.f32 %v5202_v30, %v5201_v53  ;;  %v5218_v21 = vsel %vm198_vm10, %v12371_v54, 0.0 }
0x1729   :  { %v5110_v12 = vsel %vm198_vm10, %v5046_v43, 0.0  ;;  %v5246_v13 = vsel %vm198_vm10, %v5182_v49, 0.0  ;;  %v5209_v24 = vrot.slane %v5208_v57, 1  ;;  %v5214_v43 = vrot.slane %v5213_v38, 2 }
0x172a   :  { %v12433_v8 = vpop.eup %9720  ;;  %v5111_v62 = vrot.slane %v5110_v12, 4  ;;  %v4990_v23 = vrot.slane %v4989_v52, 1  ;;  %v4947_v32 = vadd.f32 %v4946_v47, %v4945_v40  ;;  %v5247_v61 = vrot.slane %v5246_v13, 4 }
0x172b   :  { %v4992_v58 = vsel %vm198_vm10, %v12433_v8, 0.0  ;;  %v5210_v60 = vadd.f32 %v5209_v24, %v5208_v57  ;;  %v5215_v30 = vadd.f32 %v5214_v43, %v5213_v38  ;;  %v5219_v0 = vrot.slane %v5218_v21, 4 }
0x172c   :  { %v5112_v26 = vadd.f32 %v5111_v62, %v5110_v12  ;;  %v4993_v19 = vrot.slane %v4992_v58, 4  ;;  %v4991_v10 = vadd.f32 %v4990_v23, %v4989_v52  ;;  %v4948_v48 = vrot.slane %v4947_v32, 1 }
0x172d   :  { %v5248_v31 = vadd.f32 %v5247_v61, %v5246_v13  ;;  %v5216_v62 = vrot.slane %v5215_v30, 1  ;;  %v5225_v23 = vsel %vm198_vm10, %v12398_v17, 0.0  ;;  %v5220_v13 = vadd.f32 %v5219_v0, %v5218_v21 }
0x172e   :  { %v5113_v39 = vrot.slane %v5112_v26, 2  ;;  %v4994_v49 = vadd.f32 %v4993_v19, %v4992_v58  ;;  %9724 = vrcp.f32 %v4991_v10  ;;  %v4949_v40 = vadd.f32 %v4948_v48, %v4947_v32 }
0x172f   :  { %v5249_v53 = vrot.slane %v5248_v31, 2  ;;  %v5226_v54 = vrot.slane %v5225_v23, 4  ;;  %v5232_v57 = vsel %vm198_vm10, %v12412_v36, 0.0  ;;  %v5217_v58 = vadd.f32 %v5216_v62, %v5215_v30 }
0x1730   :  { %v12440_v47 = vadd.f32 %v5113_v39, %v5112_v26  ;;  %v4995_v12 = vrot.slane %v4994_v49, 2  ;;  %v12444_v52 = vpop.eup %9722  ;;  %9726 = vrcp.f32 %v4949_v40  ;;  %v5233_v39 = vrot.slane %v5232_v57, 4 }
0x1731   :  { %v4999_v32 = vsel %vm198_vm10, %v12444_v52, 0.0  ;;  %v5221_v26 = vrot.slane %v5220_v13, 2  ;;  %v5227_v19 = vadd.f32 %v5226_v54, %v5225_v23  ;;  %v5350_v24 = vsel %vm1200_vm12, %v5203_v2, %v5196_v4 }
0x1732   :  { %v4996_v38 = vadd.f32 %v4995_v12, %v4994_v49  ;;  %v5000_v61 = vrot.slane %v4999_v32, 4  ;;  %v5234_v43 = vadd.f32 %v5233_v39, %v5232_v57  ;;  %v5351_v10 = vsel %vm1202_vm13, %v5210_v60, %v5350_v24 }
0x1733   :  { %v5250_v48 = vadd.f32 %v5249_v53, %v5248_v31  ;;  %v5222_v40 = vadd.f32 %v5221_v26, %v5220_v13  ;;  %v5228_v0 = vrot.slane %v5227_v19, 2  ;;  %v5352_v36 = vsel %vm1204_vm14, %v5217_v58, %v5351_v10 }
0x1734   :  { %v4997_v17 = vrot.slane %v4996_v38, 1  ;;  %v5001_v21 = vadd.f32 %v5000_v61, %v4999_v32  ;;  %v5235_v12 = vrot.slane %v5234_v43, 2  ;;  %v14030_v30 = vrot.slane %v12420_v45, 2 }
0x1735   :  { %v5251_v20 = vrot.slane %v5250_v48, 1  ;;  %v5223_v54 = vrot.slane %v5222_v40, 1  ;;  %v5229_v4 = vadd.f32 %v5228_v0, %v5227_v19  ;;  %v5263_v2 = vrot.slane %v12425_v44, 2 }
0x1736   :  { %v4998_v49 = vadd.f32 %v4997_v17, %v4996_v38  ;;  %v5257_v62 = vadd.f32 %v14030_v30, %v12420_v45  ;;  %v5002_v23 = vrot.slane %v5001_v21, 2  ;;  %v5236_v60 = vadd.f32 %v5235_v12, %v5234_v43 }
0x1737   :  { %v5252_v31 = vadd.f32 %v5251_v20, %v5250_v48  ;;  %v5224_v32 = vadd.f32 %v5223_v54, %v5222_v40  ;;  %v5230_v58 = vrot.slane %v5229_v4, 1  ;;  %v5264_v38 = vadd.f32 %v5263_v2, %v12425_v44 }
0x1738   :  { %9728 = vrcp.f32 %v4998_v49  ;;  %v5258_v53 = vrot.slane %v5257_v62, 1  ;;  %v9725_v13 = vpop.eup %9724  ;;  %v5003_v57 = vadd.f32 %v5002_v23, %v5001_v21  ;;  %v5237_v61 = vrot.slane %v5236_v60, 1 }
0x1739   :  { %v5033_v39 = vmul.f32 %v9725_v13, %v12400_v56  ;;  %v14031_v45 = vrot.slane %v12409_v33, 4  ;;  %v5231_v10 = vadd.f32 %v5230_v58, %v5229_v4  ;;  %v5353_v20 = vsel %vm1206_vm15, %v5224_v32, %v5352_v36 }
0x173a   :  { %v5259_v26 = vadd.f32 %v5258_v53, %v5257_v62  ;;  %v9727_v24 = vpop.eup %9726  ;;  %v5004_v17 = vrot.slane %v5003_v57, 1  ;;  %v5265_v43 = vrot.slane %v5264_v38, 1  ;;  %v5238_v44 = vadd.f32 %v5237_v61, %v5236_v60 }
0x173b   :  { %v5269_v19 = vadd.f32 %v14031_v45, %v12409_v33  ;;  %v12464_v48 = vmul.f32 %v5033_v39, %v12141_v16  ;;  %v12467_v21 = vmul.f32 %v9727_v24, %v12414_v41  ;;  %v5187_v56 = vmul.f32 %v12386_v51, %v5033_v39 }
0x173c   :  { %v5005_v40 = vadd.f32 %v5004_v17, %v5003_v57  ;;  %v5354_v0 = vsel %vm1208_vm1, %v5231_v10, %v5353_v20  ;;  %v5266_v49 = vadd.f32 %v5265_v43, %v5264_v38  ;;  %v5274_v30 = vsel %vm198_vm10, %v12404_v59, 0.0 }
0x173d   :  { %v5270_v33 = vrot.slane %v5269_v19, 2  ;;  %v5181_v12 = vmul.f32 %v12351_v9, %v12467_v21  ;;  %v5355_v36 = vsel %vm1210_vm2, %v5238_v44, %v5354_v0  ;;  %v5281_v62 = vsel %vm198_vm10, %v5187_v56, 0.0 }
0x173e   :  { %9730 = vrcp.f32 %v5005_v40  ;;  %v5275_v23 = vrot.slane %v5274_v30, 4  ;;  %v5282_v54 = vrot.slane %v5281_v62, 4  ;;  %v5357_v2 = vsel %vm1200_vm12, %v5259_v26, %v5252_v31 }
0x173f   :  { %v5271_v41 = vadd.f32 %v5270_v33, %v5269_v19  ;;  %v5239_v4 = vsel %vm198_vm10, %v5181_v12, 0.0  ;;  %v5059_v60 = vrot.slane %v12303_v50, 1  ;;  %v5066_v53 = vrot.slane %v12309_v27, 1 }
0x1740   :  { %v5240_v9 = vrot.slane %v5239_v4, 4  ;;  %v5276_v57 = vadd.f32 %v5275_v23, %v5274_v30  ;;  %v5283_v32 = vadd.f32 %v5282_v54, %v5281_v62  ;;  %v5358_v59 = vsel %vm1202_vm13, %v5266_v49, %v5357_v2 }
0x1741   :  { %v5272_v13 = vrot.slane %v5271_v41, 1  ;;  %v5060_v38 = vadd.f32 %v5059_v60, %v12303_v50  ;;  %v5067_v39 = vadd.f32 %v5066_v53, %v12309_v27  ;;  %v14032_v61 = vrot.slane %v12305_v25, 2 }
0x1742   :  { %v9729_v58 = vpop.eup %9728  ;;  %v5241_v26 = vadd.f32 %v5240_v9, %v5239_v4  ;;  %v5277_v24 = vrot.slane %v5276_v57, 2  ;;  %v5284_v17 = vrot.slane %v5283_v32, 2  ;;  %v5078_v20 = vrot.slane %v12311_v29, 2 }
0x1743   :  { %v5072_v45 = vadd.f32 %v14032_v61, %v12305_v25  ;;  %v5035_v31 = vmul.f32 %v9729_v58, %v12433_v8  ;;  %v5273_v19 = vadd.f32 %v5272_v13, %v5271_v41  ;;  %v14033_v43 = vrot.slane %v12321_v6, 4 }
0x1744   :  { %v5242_v27 = vrot.slane %v5241_v26, 2  ;;  %v5278_v25 = vadd.f32 %v5277_v24, %v5276_v57  ;;  %v5285_v40 = vadd.f32 %v5284_v17, %v5283_v32  ;;  %v5079_v49 = vadd.f32 %v5078_v20, %v12311_v29 }
0x1745   :  { %v5073_v10 = vrot.slane %v5072_v45, 1  ;;  %v5084_v44 = vadd.f32 %v14033_v43, %v12321_v6  ;;  %v12493_v50 = vmul.f32 %v5035_v31, %v12141_v16  ;;  %v5188_v56 = vmul.f32 %v12386_v51, %v5035_v31 }
0x1746   :  { %v5359_v8 = vsel %vm1204_vm14, %v5273_v19, %v5358_v59  ;;  %v5243_v33 = vadd.f32 %v5242_v27, %v5241_v26  ;;  %v5279_v12 = vrot.slane %v5278_v25, 1  ;;  %v5286_v41 = vrot.slane %v5285_v40, 1 }
0x1747   :  { %v5074_v0 = vadd.f32 %v5073_v10, %v5072_v45  ;;  %v5288_v30 = vsel %vm198_vm10, %v5188_v56, 0.0  ;;  %v5085_v62 = vrot.slane %v5084_v44, 2  ;;  %v5080_v23 = vrot.slane %v5079_v49, 1 }
0x1748   :  { %v5289_v6 = vrot.slane %v5288_v30, 4  ;;  %v5089_v54 = vsel %vm198_vm10, %v12333_v14, 0.0  ;;  %v9731_v4 = vpop.eup %9730  ;;  %v5244_v2 = vrot.slane %v5243_v33, 1  ;;  %v5280_v60 = vadd.f32 %v5279_v12, %v5278_v25 }
0x1749   :  { %v5086_v53 = vadd.f32 %v5085_v62, %v5084_v44  ;;  %v5090_v9 = vrot.slane %v5089_v54, 4  ;;  %v5037_v13 = vmul.f32 %v9731_v4, %v12444_v52  ;;  %v5287_v57 = vadd.f32 %v5286_v41, %v5285_v40 }
0x174a   :  { %v5290_v29 = vadd.f32 %v5289_v6, %v5288_v30  ;;  %v5081_v32 = vadd.f32 %v5080_v23, %v5079_v49  ;;  %v5245_v58 = vadd.f32 %v5244_v2, %v5243_v33  ;;  %v5360_v59 = vsel %vm1206_vm15, %v5280_v60, %v5359_v8 }
0x174b   :  { %v5087_v61 = vrot.slane %v5086_v53, 1  ;;  %v5091_v45 = vadd.f32 %v5090_v9, %v5089_v54  ;;  %v5189_v31 = vmul.f32 %v12386_v51, %v5037_v13  ;;  %v5361_v14 = vsel %vm1208_vm1, %v5287_v57, %v5360_v59 }
0x174c   :  { %v5291_v26 = vrot.slane %v5290_v29, 2  ;;  %v5096_v19 = vsel %vm198_vm10, %v12382_v42, 0.0  ;;  %v5356_v24 = vsel %vm1212_vm3, %v5245_v58, %v5355_v36  ;;  %v5318_v44 = vsel %vm1200_vm12, %v5067_v39, %v5060_v38 }
0x174d   :  { %v5088_v17 = vadd.f32 %v5087_v61, %v5086_v53  ;;  %v5092_v52 = vrot.slane %v5091_v45, 2  ;;  %v5097_v10 = vrot.slane %v5096_v19, 4  ;;  %5364 = vrot.lane.b32.xlu0 %v5356_v24, %s9904_s0  ;;  %v5295_v43 = vsel %vm198_vm10, %v5189_v31, 0.0 }
0x174e   :  { %v5292_v20 = vadd.f32 %v5291_v26, %v5290_v29  ;;  %v5045_v51 = vmul.f32 %v12467_v21, %v12137_v28  ;;  %v5296_v27 = vrot.slane %v5295_v43, 4  ;;  %v5319_v42 = vsel %vm1202_vm13, %v5074_v0, %v5318_v44 }
0x174f   :  { %v5093_v56 = vadd.f32 %v5092_v52, %v5091_v45  ;;  %v5098_v25 = vadd.f32 %v5097_v10, %v5096_v19  ;;  %v5320_v36 = vsel %vm1204_vm14, %v5081_v32, %v5319_v42  ;;  %v5053_v49 = vmul.f32 %v5037_v13, %v12141_v16 }
0x1750   :  { %v5293_v40 = vrot.slane %v5292_v20, 1  ;;  %v5103_v8 = vsel %vm198_vm10, %v5045_v51, 0.0  ;;  %v5297_v33 = vadd.f32 %v5296_v27, %v5295_v43  ;;  %v5321_v38 = vsel %vm1206_vm15, %v5088_v17, %v5320_v36 }
0x1751   :  { %v5094_v12 = vrot.slane %v5093_v56, 1  ;;  %v5099_v30 = vrot.slane %v5098_v25, 2  ;;  %v5104_v62 = vrot.slane %v5103_v8, 4  ;;  %v5115_v28 = vrot.slane %v12440_v47, 1 }
0x1752   :  { %v5294_v39 = vadd.f32 %v5293_v40, %v5292_v20  ;;  %v5122_v21 = vrot.slane %v12344_v22, 1  ;;  %v5298_v41 = vrot.slane %v5297_v33, 2  ;;  %v14034_v23 = vrot.slane %v12346_v34, 2 }
0x1753   :  { %v5095_v0 = vadd.f32 %v5094_v12, %v5093_v56  ;;  %v5100_v6 = vadd.f32 %v5099_v30, %v5098_v25  ;;  %v5105_v4 = vadd.f32 %v5104_v62, %v5103_v8  ;;  %v5116_v2 = vadd.f32 %v5115_v28, %v12440_v47 }
0x1754   :  { %v5128_v54 = vadd.f32 %v14034_v23, %v12346_v34  ;;  %v5362_v16 = vsel %vm1210_vm2, %v5294_v39, %v5361_v14  ;;  %v5123_v60 = vadd.f32 %v5122_v21, %v12344_v22  ;;  %v5299_v53 = vadd.f32 %v5298_v41, %v5297_v33 }
0x1755   :  { %v5101_v9 = vrot.slane %v5100_v6, 1  ;;  %v5322_v13 = vsel %vm1208_vm1, %v5095_v0, %v5321_v38  ;;  %v5106_v29 = vrot.slane %v5105_v4, 2  ;;  %v5134_v32 = vrot.slane %v12379_v1, 2 }
0x1756   :  { %v5129_v57 = vrot.slane %v5128_v54, 1  ;;  %v14035_v58 = vrot.slane %v12417_v5, 4  ;;  %v5145_v34 = vsel %vm198_vm10, %v12464_v48, 0.0  ;;  %v5300_v61 = vrot.slane %v5299_v53, 1 }
0x1757   :  { %v5102_v45 = vadd.f32 %v5101_v9, %v5100_v6  ;;  %v5146_v31 = vrot.slane %v5145_v34, 4  ;;  %v5107_v22 = vadd.f32 %v5106_v29, %v5105_v4  ;;  %v5135_v26 = vadd.f32 %v5134_v32, %v12379_v1  ;;  %v9889_v29 = vld [vmem:[%s13915_s1 + $0x900] ss:$0 sm:$0xff] }
0x1758   :  { %v5140_v59 = vadd.f32 %v14035_v58, %v12417_v5  ;;  %v5130_v47 = vadd.f32 %v5129_v57, %v5128_v54  ;;  %v5152_v19 = vsel %vm198_vm10, %v12493_v50, 0.0  ;;  %v5301_v24 = vadd.f32 %v5300_v61, %v5299_v53 }
0x1759   :  { %v5323_v17 = vsel %vm1210_vm2, %v5102_v45, %v5322_v13  ;;  %v5147_v52 = vadd.f32 %v5146_v31, %v5145_v34  ;;  %v5153_v10 = vrot.slane %v5152_v19, 4  ;;  %v5108_v5 = vrot.slane %v5107_v22, 1 }
0x175a   :  { %v5141_v14 = vrot.slane %v5140_v59, 2  ;;  %v5136_v20 = vrot.slane %v5135_v26, 1  ;;  %v5159_v48 = vsel %vm198_vm10, %v5053_v49, 0.0  ;;  %v5363_v44 = vsel %vm1212_vm3, %v5301_v24, %v5362_v16 }
0x175b   :  { %v5148_v51 = vrot.slane %v5147_v52, 2  ;;  %v5154_v27 = vadd.f32 %v5153_v10, %v5152_v19  ;;  %v5160_v56 = vrot.slane %v5159_v48, 4  ;;  %5366 = vrot.lane.b32.xlu1 %v5363_v44, %s9904_s0  ;;  %v5109_v1 = vadd.f32 %v5108_v5, %v5107_v22 }
0x175c   :  { %v5142_v43 = vadd.f32 %v5141_v14, %v5140_v59  ;;  %v5137_v25 = vadd.f32 %v5136_v20, %v5135_v26  ;;  %v5325_v42 = vsel %vm1200_vm12, %v5123_v60, %v5116_v2 }
0x175d   :  { %v5149_v40 = vadd.f32 %v5148_v51, %v5147_v52  ;;  %v5155_v36 = vrot.slane %v5154_v27, 2  ;;  %v5161_v8 = vadd.f32 %v5160_v56, %v5159_v48  ;;  %v5326_v33 = vsel %vm1202_vm13, %v5130_v47, %v5325_v42 }
0x175e   :  { %v5143_v50 = vrot.slane %v5142_v43, 1  ;;  %v5324_v12 = vsel %vm1212_vm3, %v5109_v1, %v5323_v17  ;;  %v5327_v30 = vsel %vm1204_vm14, %v5137_v25, %v5326_v33  ;;  %v5686_v33 = vld [vmem:[%s13915_s1 + $0x798] sm:$0xff] }
0x175f   :  { %v5150_v38 = vrot.slane %v5149_v40, 1  ;;  %v5156_v39 = vadd.f32 %v5155_v36, %v5154_v27  ;;  %v5162_v62 = vrot.slane %v5161_v8, 2  ;;  %v9890_v27 = vld [vmem:[%s13915_s1 + $0x8d0] ss:$0 sm:$0xff] }
0x1760   :  { %v5144_v49 = vadd.f32 %v5143_v50, %v5142_v43  ;;  %v9891_v50 = vld [vmem:[%s13915_s1 + $0x8c0] ss:$0 sm:$0xff] }
0x1761   :  { %v5151_v21 = vadd.f32 %v5150_v38, %v5149_v40  ;;  %v5157_v41 = vrot.slane %v5156_v39, 1  ;;  %v5163_v0 = vadd.f32 %v5162_v62, %v5161_v8  ;;  %v5684_v8 = vld [vmem:[%s13915_s1 + $0x788] sm:$0xff]  ;;  %v5683_v62 = vld [vmem:[%s13915_s1 + $0x780] sm:$0xff] }
0x1762   :  { %v5328_v28 = vsel %vm1206_vm15, %v5144_v49, %v5327_v30  ;;  %v9892_v30 = vld [vmem:[%s13915_s1 + $0x800] ss:$0 sm:$0xff] }
0x1763   :  { %v5158_v6 = vadd.f32 %v5157_v41, %v5156_v39  ;;  %v5164_v23 = vrot.slane %v5163_v0, 1  ;;  %v5329_v54 = vsel %vm1208_vm1, %v5151_v21, %v5328_v28  ;;  %v5685_v28 = vld [vmem:[%s13915_s1 + $0x790] sm:$0xff]  ;;  %v5688_v41 = vld [vmem:[%s13915_s1 + $0x7a8] sm:$0xff] }
0x1765   :  { %v5165_v16 = vadd.f32 %v5164_v23, %v5163_v0  ;;  %v5330_v4 = vsel %vm1210_vm2, %v5158_v6, %v5329_v54  ;;  %v5690_v0 = vld [vmem:[%s13915_s1 + $0x7b8] sm:$0xff]  ;;  %v9310_v23 = vpack.c.bf16 %v5685_v28, %v5683_v62 }
0x1767   :  { %v5331_v2 = vsel %vm1212_vm3, %v5165_v16, %v5330_v4  ;;  %v9312_v16 = vpack.c.bf16 %v5690_v0, %v5688_v41  ;;  %v5687_v4 = vld [vmem:[%s13915_s1 + $0x7a0] sm:$0xff] }
0x17bf   :  { %v5365_v60 = vpop.permute.xlu0 %5364 }
0x17c0   :  { %v5370_v53 = vsel %vm198_vm10, %v5324_v12, %v5365_v60  ;;  %v9308_v12 = vpack.c.bf16 %v5686_v33, %v5684_v8  ;;  %v5692_v60 = vld [vmem:[%s13915_s1 + $0x7c8] sm:$0xff] }
0x17c1   :  { %8921 = vmatprep.mubr.msk.f32.mxu0 %vm234_vm11, %v5370_v53  ;;  %v5694_v53 = vld [vmem:[%s13915_s1 + $0x7d8] sm:$0xff] }
0x17cd   :  { %v5367_v9 = vpop.permute.xlu1 %5366 }
0x17ce   :  { %v5371_v13 = vsel %vm198_vm10, %v5331_v2, %v5367_v9  ;;  %v5689_v2 = vld [vmem:[%s13915_s1 + $0x7b0] sm:$0xff] }
0x17cf   :  { %8922 = vmatmul.mubr.msk.f32.vlgmr.msra.gmra.mrb[18].mxu0 %vm234_vm11, %v5371_v13  ;;  %v9314_v9 = vpack.c.bf16 %v5689_v2, %v5687_v4  ;;  %v9316_v13 = vpack.c.bf16 %v5694_v53, %v5692_v60 }
0x17d0   :  { %9307 = vmatpush3.bf16.msra.mxu0 %v14022_v3 }
0x17d1   :  { %9309 = vmatprep.subr.bf16.mxu0 %v9308_v12 }
0x18a2   :  { %v8923_v57 = vpop.f32.mrb[18].mxu0 }
0x18a3   :  { %v5450_v32 = vadd.f32 %v9889_v29, %v8923_v57  ;;  %v5444_v58 = vpop.f32.mrb[19].mxu0  ;;  %v5691_v57 = vld [vmem:[%s13915_s1 + $0x7c0] sm:$0xff] }
0x18a4   :  { %v5445_v59 = vadd.f32 %v9889_v29, %v5444_v58  ;;  %v5693_v29 = vld [vmem:[%s13915_s1 + $0x7d0] sm:$0xff]  ;;  %v5698_v58 = vld [vmem:[%s13915_s1 + $0x7f8] sm:$0xff] }
0x18a5   :  { %v5454_v34 = vadd.f32 %v5450_v32, %v12025_v11  ;;  %v5696_v32 = vld [vmem:[%s13915_s1 + $0x7e8] sm:$0xff] }
0x18a6   :  { %v5453_v61 = vadd.f32 %v5445_v59, %v12019_v7  ;;  %v9318_v59 = vpack.c.bf16 %v5693_v29, %v5691_v57 }
0x18a7   :  { %v5458_v45 = vsel %vm234_vm11, %v5454_v34, 0.0 }
0x18a8   :  { %5459 = vadd.xlane.f32.xlu1 %v5458_v45  ;;  %v5455_v47 = vsel %vm234_vm11, %v5453_v61, 0.0  ;;  %v5697_v45 = vld [vmem:[%s13915_s1 + $0x7f0] sm:$0xff] }
0x18a9   :  { %5456 = vadd.xlane.f32.xlu0 %v5455_v47 }
0x1935   :  { %v5460_v31 = vpop.xlane.xlu1 %5459 }
0x1936   :  { %v5462_v3 = vmul.f32 0.015625, %v5460_v31  ;;  %v5457_v22 = vpop.xlane.xlu0 %5456  ;;  %v14036_v31 = vld [vmem:[#allocation27_spill] sm:$0xff] }
0x1937   :  { %v5461_v26 = vmul.f32 0.015625, %v5457_v22 }
0x1938   :  { %v5464_v14 = vsub.f32 %v5454_v34, %v5462_v3  ;;  %v9320_v34 = vpack.c.bf16 %v5698_v58, %v5696_v32  ;;  %v14037_v3 = vld [vmem:[#allocation28_spill] sm:$0xff] }
0x1939   :  { %v5463_v19 = vsub.f32 %v5453_v61, %v5461_v26  ;;  %v5695_v61 = vld [vmem:[%s13915_s1 + $0x7e0] sm:$0xff] }
0x193a   :  { %v5466_v52 = vmul.f32 %v5464_v14, %v5464_v14  ;;  %v9322_v47 = vpack.c.bf16 %v5697_v45, %v5695_v61 }
0x193b   :  { %v5465_v24 = vmul.f32 %v5463_v19, %v5463_v19 }
0x193c   :  { %v5470_v11 = vsel %vm234_vm11, %v5466_v52, 0.0 }
0x193d   :  { %v5467_v17 = vsel %vm234_vm11, %v5465_v24, 0.0  ;;  %v14038_v24 = vld [vmem:[#allocation16_spill] sm:$0xff] }
0x193e   :  { %5468 = vadd.xlane.f32.xlu0 %v5467_v17 }
0x1942   :  { %5471 = vadd.xlane.f32.xlu0 %v5470_v11 }
0x19cb   :  { %v5469_v7 = vpop.xlane.xlu0 %5468 }
0x19cc   :  { %v5473_v10 = vmul.f32 0.015625, %v5469_v7 }
0x19ce   :  { %v5475_v5 = vadd.f32 1e-05, %v5473_v10 }
0x19cf   :  { %v5472_v20 = vpop.xlane.xlu0 %5471 }
0x19d0   :  { %9732 = vrsqrt.f32 %v5475_v5  ;;  %v5474_v43 = vmul.f32 0.015625, %v5472_v20 }
0x19d2   :  { %v5476_v48 = vadd.f32 1e-05, %v5474_v43 }
0x19d4   :  { %9734 = vrsqrt.f32 %v5476_v48 }
0x19da   :  { %v9733_v44 = vpop.eup %9732 }
0x19db   :  { %v5479_v51 = vmul.f32 %v9733_v44, %v5463_v19 }
0x19dd   :  { %v5481_v56 = vmul.f32 %v9890_v27, %v5479_v51 }
0x19de   :  { %v9735_v1 = vpop.eup %9734 }
0x19df   :  { %v5480_v25 = vmul.f32 %v9735_v1, %v5464_v14  ;;  %v12568_v42 = vadd.f32 %v9891_v50, %v5481_v56  ;;  %v8527_v14 = vld [vmem:[%s13915_s1 + $0x770] ss:$8 sm:$0x3] }
0x19e0   :  { %v5705_v19 = vrot.slane %v8527_v14, %v10059_v46  ;;  %v5709_v17 = vrot.slane %v8527_v14, %v14038_v24 }
0x19e1   :  { %v5482_v40 = vmul.f32 %v9890_v27, %v5480_v25  ;;  %8940 = vmatprep.mubr.msk.f32.mxu1 %vm234_vm11, %v12568_v42 }
0x19e3   :  { %v12572_v36 = vadd.f32 %v9891_v50, %v5482_v40 }
0x19e5   :  { %8941 = vmatmul.mubr.msk.f32.vlgmr.msra.gmra.mrb[16].mxu1 %vm234_vm11, %v12572_v36 }
0x1ab8   :  { %v8942_v49 = vpop.f32.mrb[16].mxu1 }
0x1ab9   :  { %v5563_v38 = vadd.f32 %v9892_v30, %v8942_v49  ;;  %v5557_v39 = vpop.f32.mrb[17].mxu1 }
0x1aba   :  { %v5558_v21 = vadd.f32 %v9892_v30, %v5557_v39 }
0x1abb   :  { %v5567_v54 = vmax.f32 %v5563_v38, 0.0 }
0x1abc   :  { %v5566_v6 = vmax.f32 %v5558_v21, 0.0 }
0x1abe   :  { %8947 = vmatprep.mubr.msk.f32.mxu0 %vm1480_vm4, %v5566_v6 }
0x1abf   :  { %8948 = vmatmul.mubr.msk.f32.vlgmr.msra.gmra.mrb[20].mxu0 %vm1480_vm4, %v5567_v54 }
0x1ac0   :  { %9311 = vmatpush1.bf16.msra.mxu0 %v9310_v23  ;;  %5776 = vmatprep.mubr.f32.mxu0 %v13997_v55 }
0x1ac1   :  { %9313 = vmatprep.subr.bf16.mxu0 %v9312_v16 }
0x1ac4   :  { %9315 = vmatpush1.bf16.msra.mxu0 %v9314_v9 }
0x1ac5   :  { %9317 = vmatprep.subr.bf16.mxu0 %v9316_v13 }
0x1ac8   :  { %9319 = vmatpush1.bf16.msra.mxu0 %v9318_v59 }
0x1ac9   :  { %9321 = vmatprep.subr.bf16.mxu0 %v9320_v34 }
0x1acc   :  { %9323 = vmatpush1.bf16.msra.mxu0 %v9322_v47 }
0x1acf   :  { %8528 = vmatmul.mubr.msk.f32.vlgmr.msra.gmra.mrb[22].mxu0 %vm234_vm11, %v14036_v31 }
0x1ad0   :  { %5782 = vmatprep.mubr.f32.mxu0 %v13997_v55 }
0x1ad3   :  { %8529 = vmatmul.mubr.msk.f32.gmra.mrb[24].mxu0 %vm234_vm11, %v14037_v3 }
0x1b92   :  { %v12635_v22 = vpop.f32.mrb[20].mxu0 }
0x1b93   :  { %v12637_v26 = vpop.f32.mrb[21].mxu0 }
0x1ba2   :  { %v5778_v52 = vpop.f32.mrb[22].mxu0 }
0x1ba3   :  { %v5779_v11 = vadd.f32 %v5778_v52, %v5705_v19  ;;  %v5780_v7 = vpop.f32.mrb[23].mxu0 }
0x1ba4   :  { %v12644_v10 = vadd.f32 %v5780_v7, %v5709_v17 }
0x1ba5   :  { %5969 = vrot.lane.b32.xlu1 %v5779_v11, %s9901_s27  ;;  %v5798_v48 = vrot.slane %v5779_v11, %v10079_v63  ;;  %v5791_v25 = vcombine.high %v5779_v11, %v5779_v11 }
0x1ba6   :  { %v5784_v55 = vpop.f32.mrb[24].mxu0 }
0x1ba7   :  { %v5785_v5 = vadd.f32 %v5784_v55, %v5705_v19  ;;  %v5786_v20 = vpop.f32.mrb[25].mxu0  ;;  %v5814_v44 = vrot.slane %v5798_v48, %v10079_v63  ;;  %v5806_v27 = vcombine.high %v5798_v48, %v5798_v48  ;;  %v5805_v39 = vrot.slane %v5791_v25, %v10079_v63 }
0x1ba8   :  { %v12647_v43 = vadd.f32 %v5786_v20, %v5709_v17 }
0x1ba9   :  { %5971 = vrot.lane.b32.xlu0 %v5785_v5, %s9901_s27  ;;  %v5847_v51 = vrot.slane %v5785_v5, %v10079_v63  ;;  %v5836_v56 = vcombine.high %v5814_v44, %v5814_v44  ;;  %v5828_v50 = vrot.slane %v5806_v27, %v10079_v63  ;;  %v5892_v40 = vrot.slane %v5814_v44, %v10059_v46 }
0x1baa   :  { %v5840_v28 = vcombine.high %v5785_v5, %v5785_v5  ;;  %v5807_v16 = vcombine.high %v5805_v39, %v5805_v39  ;;  %v5821_v4 = vrot.slane %v5805_v39, %v10079_v63 }
0x1bab   :  { %v5855_v1 = vcombine.high %v5847_v51, %v5847_v51  ;;  %v5863_v8 = vrot.slane %v5847_v51, %v10079_v63  ;;  %v5900_v12 = vrot.slane %v5836_v56, %v10059_v46  ;;  %v5838_v62 = vcombine.high %v5828_v50, %v5828_v50 }
0x1bac   :  { %v5896_v0 = vrot.slane %v5828_v50, %v10059_v46  ;;  %v5854_v2 = vrot.slane %v5840_v28, %v10079_v63  ;;  %v5835_v29 = vrot.slane %v5807_v16, %v10079_v63  ;;  %v5908_v32 = vrot.slane %v5821_v4, %v10059_v46 }
0x1bad   :  { %v5877_v33 = vrot.slane %v5855_v1, %v10079_v63  ;;  %v5885_v21 = vcombine.high %v5863_v8, %v5863_v8  ;;  %v5904_v9 = vrot.slane %v5838_v62, %v10059_v46  ;;  %v5837_v47 = vcombine.high %v5821_v4, %v5821_v4 }
0x1bae   :  { %v5856_v58 = vcombine.high %v5854_v2, %v5854_v2  ;;  %v5870_v59 = vrot.slane %v5854_v2, %v10079_v63  ;;  %v5912_v24 = vrot.slane %v5835_v29, %v10059_v46  ;;  %v5924_v48 = vrot.slane %v5863_v8, %v10059_v46 }
0x1baf   :  { %v5928_v41 = vrot.slane %v5877_v33, %v10059_v46  ;;  %v5887_v60 = vcombine.high %v5877_v33, %v5877_v33  ;;  %v5932_v53 = vrot.slane %v5885_v21, %v10059_v46  ;;  %v5916_v55 = vrot.slane %v5837_v47, %v10059_v46 }
0x1bb0   :  { %v5884_v14 = vrot.slane %v5856_v58, %v10079_v63  ;;  %v5940_v19 = vrot.slane %v5870_v59, %v10059_v46  ;;  %v5886_v11 = vcombine.high %v5870_v59, %v5870_v59  ;;  %v5839_v51 = vcombine.high %v5835_v29, %v5835_v29 }
0x1bb1   :  { %v5936_v34 = vrot.slane %v5887_v60, %v10059_v46 }
0x1bb2   :  { %v5944_v7 = vrot.slane %v5884_v14, %v10059_v46  ;;  %v5948_v44 = vrot.slane %v5886_v11, %v10059_v46  ;;  %v5920_v1 = vrot.slane %v5839_v51, %v10059_v46  ;;  %v5888_v25 = vcombine.high %v5884_v14, %v5884_v14 }
0x1c17   :  { %v5970_v49 = vpop.permute.xlu1 %5969 }
0x1c18   :  { %v12658_v30 = vmul.f32 %v5970_v49, %v5892_v40  ;;  %v12660_v38 = vmul.f32 %v5970_v49, %v5900_v12  ;;  %v12671_v54 = vmul.f32 %v5970_v49, %v5896_v0  ;;  %v12683_v57 = vmul.f32 %v5970_v49, %v5904_v9 }
0x1c19   :  { %v12695_v45 = vmul.f32 %v5970_v49, %v5908_v32  ;;  %v12706_v52 = vmul.f32 %v5970_v49, %v5912_v24  ;;  %v12716_v20 = vmul.f32 %v5970_v49, %v5916_v55  ;;  %v12733_v50 = vmul.f32 %v5970_v49, %v5920_v1 }
0x1c1a   :  { %6007 = vrot.lane.b32.xlu1 %v12658_v30, %s9903_s28  ;;  %6011 = vrot.lane.b32.xlu0 %v12660_v38, %s9903_s28  ;;  %v5952_v40 = vrot.slane %v5888_v25, %v10059_v46 }
0x1c1b   :  { %v5972_v6 = vpop.permute.xlu0 %5971 }
0x1c1c   :  { %v12669_v23 = vmul.f32 %v5972_v6, %v5928_v41  ;;  %v12681_v13 = vmul.f32 %v5972_v6, %v5932_v53  ;;  %v12693_v61 = vmul.f32 %v5972_v6, %v5936_v34  ;;  %v12704_v17 = vmul.f32 %v5972_v6, %v5940_v19 }
0x1c1d   :  { %v12714_v5 = vmul.f32 %v5972_v6, %v5944_v7  ;;  %v12724_v27 = vmul.f32 %v5972_v6, %v5948_v44  ;;  %v12726_v56 = vmul.f32 %v5972_v6, %v5924_v48  ;;  %v12740_v8 = vmul.f32 %v5972_v6, %v5952_v40 }
0x1c1e   :  { %6025 = vrot.lane.b32.xlu0 %v12669_v23, %s9903_s28  ;;  %6009 = vrot.lane.b32.xlu1 %v12671_v54, %s9903_s28 }
0x1c22   :  { %6027 = vrot.lane.b32.xlu0 %v12681_v13, %s9903_s28  ;;  %6013 = vrot.lane.b32.xlu1 %v12683_v57, %s9903_s28 }
0x1c26   :  { %6029 = vrot.lane.b32.xlu0 %v12693_v61, %s9903_s28  ;;  %6015 = vrot.lane.b32.xlu1 %v12695_v45, %s9903_s28 }
0x1c2a   :  { %6031 = vrot.lane.b32.xlu0 %v12704_v17, %s9903_s28  ;;  %6017 = vrot.lane.b32.xlu1 %v12706_v52, %s9903_s28 }
0x1c2e   :  { %6033 = vrot.lane.b32.xlu0 %v12714_v5, %s9903_s28  ;;  %6019 = vrot.lane.b32.xlu1 %v12716_v20, %s9903_s28 }
0x1c32   :  { %6035 = vrot.lane.b32.xlu0 %v12724_v27, %s9903_s28  ;;  %6023 = vrot.lane.b32.xlu1 %v12726_v56, %s9903_s28 }
0x1c36   :  { %6521 = vrot.lane.b32.xlu0 %v12644_v10, %s9903_s28  ;;  %6021 = vrot.lane.b32.xlu1 %v12733_v50, %s9903_s28 }
0x1c3a   :  { %6037 = vrot.lane.b32.xlu1 %v12740_v8, %s9903_s28 }
0x1c3e   :  { %6523 = vrot.lane.b32.xlu1 %v12647_v43, %s9903_s28 }
0x1c8c   :  { %v6008_v33 = vpop.permute.xlu1 %6007  ;;  %v6012_v12 = vpop.permute.xlu0 %6011 }
0x1c8d   :  { %v6055_v49 = vadd.f32 %v6008_v33, %v12658_v30  ;;  %v6057_v39 = vadd.f32 %v6012_v12, %v12660_v38 }
0x1c8f   :  { %v6071_v62 = vmul.f32 0.70710677, %v6055_v49  ;;  %v6073_v28 = vmul.f32 0.70710677, %v6057_v39 }
0x1c90   :  { %v6026_v21 = vpop.permute.xlu0 %6025  ;;  %v6010_v41 = vpop.permute.xlu1 %6009 }
0x1c91   :  { %v6087_v0 = vsel %vm198_vm10, %v6071_v62, -inf  ;;  %v6101_v6 = vsel %vm198_vm10, %v6073_v28, -inf  ;;  %v6064_v16 = vadd.f32 %v6026_v21, %v12669_v23  ;;  %v6056_v4 = vadd.f32 %v6010_v41, %v12671_v54 }
0x1c92   :  { %v6088_v2 = vrot.slane %v6087_v0, 4  ;;  %v6102_v60 = vrot.slane %v6101_v6, 4 }
0x1c93   :  { %v12752_v53 = vmul.f32 0.70710677, %v6064_v16  ;;  %v12754_v9 = vmul.f32 0.70710677, %v6056_v4 }
0x1c94   :  { %v6089_v30 = vmax.f32 %v6087_v0, %v6088_v2  ;;  %v6103_v38 = vmax.f32 %v6101_v6, %v6102_v60  ;;  %v6028_v29 = vpop.permute.xlu0 %6027  ;;  %v6014_v32 = vpop.permute.xlu1 %6013 }
0x1c95   :  { %v6150_v58 = vsel %vm198_vm10, %v12752_v53, -inf  ;;  %v6094_v59 = vsel %vm198_vm10, %v12754_v9, -inf  ;;  %v6065_v23 = vadd.f32 %v6028_v29, %v12681_v13  ;;  %v6058_v54 = vadd.f32 %v6014_v32, %v12683_v57 }
0x1c96   :  { %v6090_v34 = vrot.slane %v6089_v30, 2  ;;  %v6104_v47 = vrot.slane %v6103_v38, 2  ;;  %v6151_v14 = vrot.slane %v6150_v58, 4  ;;  %v6095_v19 = vrot.slane %v6094_v59, 4 }
0x1c97   :  { %v12762_v24 = vmul.f32 0.70710677, %v6065_v23  ;;  %v12764_v11 = vmul.f32 0.70710677, %v6058_v54 }
0x1c98   :  { %v6091_v7 = vmax.f32 %v6089_v30, %v6090_v34  ;;  %v6105_v55 = vmax.f32 %v6103_v38, %v6104_v47  ;;  %v6152_v48 = vmax.f32 %v6150_v58, %v6151_v14  ;;  %v6096_v44 = vmax.f32 %v6094_v59, %v6095_v19  ;;  %v6030_v51 = vpop.permute.xlu0 %6029  ;;  %v6016_v1 = vpop.permute.xlu1 %6015 }
0x1c99   :  { %v6157_v25 = vsel %vm198_vm10, %v12762_v24, -inf  ;;  %v6108_v13 = vsel %vm198_vm10, %v12764_v11, -inf  ;;  %v6066_v57 = vadd.f32 %v6030_v51, %v12693_v61  ;;  %v6059_v40 = vadd.f32 %v6016_v1, %v12695_v45 }
0x1c9a   :  { %v6092_v33 = vrot.slane %v6091_v7, 1  ;;  %v6106_v12 = vrot.slane %v6105_v55, 1  ;;  %v6153_v49 = vrot.slane %v6152_v48, 2  ;;  %v6097_v39 = vrot.slane %v6096_v44, 2 }
0x1c9b   :  { %v6158_v21 = vrot.slane %v6157_v25, 4  ;;  %v6109_v41 = vrot.slane %v6108_v13, 4  ;;  %v12772_v0 = vmul.f32 0.70710677, %v6066_v57  ;;  %v12774_v6 = vmul.f32 0.70710677, %v6059_v40 }
0x1c9c   :  { %v6093_v16 = vmax.f32 %v6091_v7, %v6092_v33  ;;  %v6107_v4 = vmax.f32 %v6105_v55, %v6106_v12  ;;  %v6154_v2 = vmax.f32 %v6152_v48, %v6153_v49  ;;  %v6098_v60 = vmax.f32 %v6096_v44, %v6097_v39  ;;  %v6032_v29 = vpop.permute.xlu0 %6031 }
0x1c9d   :  { %v6159_v30 = vmax.f32 %v6157_v25, %v6158_v21  ;;  %v6110_v38 = vmax.f32 %v6108_v13, %v6109_v41  ;;  %v6164_v61 = vsel %vm198_vm10, %v12772_v0, -inf  ;;  %v6115_v45 = vsel %vm198_vm10, %v12774_v6, -inf  ;;  %v6018_v13 = vpop.permute.xlu1 %6017 }
0x1c9e   :  { %v6199_v32 = vsub.f32 %v6071_v62, %v6093_v16  ;;  %v6201_v58 = vsub.f32 %v6073_v28, %v6107_v4  ;;  %v6155_v59 = vrot.slane %v6154_v2, 1  ;;  %v6099_v23 = vrot.slane %v6098_v60, 1 }
0x1c9f   :  { %v6160_v54 = vrot.slane %v6159_v30, 2  ;;  %v6111_v34 = vrot.slane %v6110_v38, 2  ;;  %v6165_v47 = vrot.slane %v6164_v61, 4  ;;  %v6116_v14 = vrot.slane %v6115_v45, 4 }
0x1ca0   :  { %v6215_v19 = vmul.f32 1.442695, %v6199_v32  ;;  %v6219_v7 = vmul.f32 1.442695, %v6201_v58  ;;  %v6156_v55 = vmax.f32 %v6154_v2, %v6155_v59  ;;  %v6100_v48 = vmax.f32 %v6098_v60, %v6099_v23  ;;  %v6034_v49 = vpop.permute.xlu0 %6033 }
0x1ca1   :  { %v6161_v44 = vmax.f32 %v6159_v30, %v6160_v54  ;;  %v6112_v51 = vmax.f32 %v6110_v38, %v6111_v34  ;;  %v6166_v1 = vmax.f32 %v6164_v61, %v6165_v47  ;;  %v6117_v25 = vmax.f32 %v6115_v45, %v6116_v14 }
0x1ca2   :  { %9736 = vpow2.f32 %v6215_v19  ;;  %v6208_v57 = vsub.f32 %v12752_v53, %v6156_v55  ;;  %v6200_v62 = vsub.f32 %v12754_v9, %v6100_v48  ;;  %v6067_v28 = vadd.f32 %v6032_v29, %v12704_v17  ;;  %v6020_v29 = vpop.permute.xlu1 %6019 }
0x1ca3   :  { %9738 = vpow2.f32 %v6219_v7  ;;  %v6162_v40 = vrot.slane %v6161_v44, 1  ;;  %v6113_v33 = vrot.slane %v6112_v51, 1  ;;  %v6167_v12 = vrot.slane %v6166_v1, 2 }
0x1ca4   :  { %v6233_v39 = vmul.f32 1.442695, %v6208_v57  ;;  %v6217_v21 = vmul.f32 1.442695, %v6200_v62  ;;  %v6118_v41 = vrot.slane %v6117_v25, 2  ;;  %v6060_v16 = vadd.f32 %v6018_v13, %v12706_v52 }
0x1ca5   :  { %v6163_v4 = vmax.f32 %v6161_v44, %v6162_v40  ;;  %v6114_v2 = vmax.f32 %v6112_v51, %v6113_v33  ;;  %v6168_v60 = vmax.f32 %v6166_v1, %v6167_v12  ;;  %v12784_v30 = vmul.f32 0.70710677, %v6067_v28 }
0x1ca6   :  { %9740 = vpow2.f32 %v6233_v39  ;;  %v6119_v53 = vmax.f32 %v6117_v25, %v6118_v41  ;;  %v12786_v9 = vmul.f32 0.70710677, %v6060_v16  ;;  %v6068_v17 = vadd.f32 %v6034_v49, %v12714_v5 }
0x1ca7   :  { %9742 = vpow2.f32 %v6217_v21  ;;  %v6209_v38 = vsub.f32 %v12762_v24, %v6163_v4  ;;  %v6202_v61 = vsub.f32 %v12764_v11, %v6114_v2  ;;  %v6169_v45 = vrot.slane %v6168_v60, 1 }
0x1ca8   :  { %v6120_v32 = vrot.slane %v6119_v53, 1  ;;  %v6171_v52 = vsel %vm198_vm10, %v12784_v30, -inf  ;;  %v6122_v58 = vsel %vm198_vm10, %v12786_v9, -inf  ;;  %v12795_v59 = vmul.f32 0.70710677, %v6068_v17 }
0x1ca9   :  { %v6235_v23 = vmul.f32 1.442695, %v6209_v38  ;;  %v6221_v54 = vmul.f32 1.442695, %v6202_v61  ;;  %v6170_v34 = vmax.f32 %v6168_v60, %v6169_v45  ;;  %v6172_v5 = vrot.slane %v6171_v52, 4 }
0x1caa   :  { %v6121_v47 = vmax.f32 %v6119_v53, %v6120_v32  ;;  %v6123_v14 = vrot.slane %v6122_v58, 4  ;;  %v6178_v24 = vsel %vm198_vm10, %v12795_v59, -inf  ;;  %v6061_v11 = vadd.f32 %v6020_v29, %v12716_v20 }
0x1cab   :  { %9744 = vpow2.f32 %v6235_v23  ;;  %v6210_v19 = vsub.f32 %v12772_v0, %v6170_v34  ;;  %v6173_v7 = vmax.f32 %v6171_v52, %v6172_v5  ;;  %v6179_v55 = vrot.slane %v6178_v24, 4 }
0x1cac   :  { %v12801_v48 = vpop.eup %9736  ;;  %9746 = vpow2.f32 %v6221_v54  ;;  %v6203_v44 = vsub.f32 %v12774_v6, %v6121_v47  ;;  %v6124_v51 = vmax.f32 %v6122_v58, %v6123_v14  ;;  %v12804_v1 = vmul.f32 0.70710677, %v6061_v11 }
0x1cad   :  { %v12806_v25 = vpop.eup %9738  ;;  %v6247_v13 = vsel %vm198_vm10, %v12801_v48, 0.0  ;;  %v6237_v57 = vmul.f32 1.442695, %v6210_v19  ;;  %v6174_v20 = vrot.slane %v6173_v7, 2  ;;  %v6180_v62 = vmax.f32 %v6178_v24, %v6179_v55 }
0x1cae   :  { %v6248_v28 = vrot.slane %v6247_v13, 4  ;;  %v6261_v0 = vsel %vm198_vm10, %v12806_v25, 0.0  ;;  %v6223_v40 = vmul.f32 1.442695, %v6203_v44  ;;  %v6125_v33 = vrot.slane %v6124_v51, 2 }
0x1caf   :  { %v6262_v12 = vrot.slane %v6261_v0, 4  ;;  %9748 = vpow2.f32 %v6237_v57  ;;  %v6175_v6 = vmax.f32 %v6173_v7, %v6174_v20  ;;  %v6181_v49 = vrot.slane %v6180_v62, 2 }
0x1cb0   :  { %v12812_v39 = vpop.eup %9740  ;;  %v6249_v21 = vadd.f32 %v6248_v28, %v6247_v13  ;;  %9750 = vpow2.f32 %v6223_v40  ;;  %v6126_v41 = vmax.f32 %v6124_v51, %v6125_v33  ;;  %v6129_v16 = vsel %vm198_vm10, %v12804_v1, -inf }
0x1cb1   :  { %v12816_v4 = vpop.eup %9742  ;;  %v6263_v2 = vadd.f32 %v6262_v12, %v6261_v0  ;;  %v6310_v60 = vsel %vm198_vm10, %v12812_v39, 0.0  ;;  %v6176_v53 = vrot.slane %v6175_v6, 1  ;;  %v6182_v17 = vmax.f32 %v6180_v62, %v6181_v49 }
0x1cb2   :  { %v6250_v38 = vrot.slane %v6249_v21, 2  ;;  %v6311_v61 = vrot.slane %v6310_v60, 4  ;;  %v6254_v45 = vsel %vm198_vm10, %v12816_v4, 0.0  ;;  %v6127_v29 = vrot.slane %v6126_v41, 1 }
0x1cb3   :  { %v6264_v32 = vrot.slane %v6263_v2, 2  ;;  %v6255_v52 = vrot.slane %v6254_v45, 4  ;;  %v6177_v58 = vmax.f32 %v6175_v6, %v6176_v53  ;;  %v6183_v23 = vrot.slane %v6182_v17, 1 }
0x1cb4   :  { %v6251_v54 = vadd.f32 %v6250_v38, %v6249_v21  ;;  %v6312_v34 = vadd.f32 %v6311_v61, %v6310_v60  ;;  %v6128_v5 = vmax.f32 %v6126_v41, %v6127_v29  ;;  %v6130_v47 = vrot.slane %v6129_v16, 4 }
0x1cb5   :  { %v12822_v14 = vpop.eup %9744  ;;  %v6265_v24 = vadd.f32 %v6264_v32, %v6263_v2  ;;  %v6256_v11 = vadd.f32 %v6255_v52, %v6254_v45  ;;  %v6211_v19 = vsub.f32 %v12784_v30, %v6177_v58  ;;  %v6184_v7 = vmax.f32 %v6182_v17, %v6183_v23 }
0x1cb6   :  { %v12825_v55 = vpop.eup %9746  ;;  %v6252_v44 = vrot.slane %v6251_v54, 1  ;;  %v6313_v51 = vrot.slane %v6312_v34, 2  ;;  %v6317_v13 = vsel %vm198_vm10, %v12822_v14, 0.0  ;;  %v6204_v57 = vsub.f32 %v12786_v9, %v6128_v5 }
0x1cb7   :  { %v6266_v20 = vrot.slane %v6265_v24, 1  ;;  %v6257_v62 = vrot.slane %v6256_v11, 2  ;;  %v6318_v28 = vrot.slane %v6317_v13, 4  ;;  %v6268_v0 = vsel %vm198_vm10, %v12825_v55, 0.0 }
0x1cb8   :  { %v6253_v40 = vadd.f32 %v6252_v44, %v6251_v54  ;;  %v6314_v33 = vadd.f32 %v6313_v51, %v6312_v34  ;;  %v6269_v12 = vrot.slane %v6268_v0, 4  ;;  %v6239_v30 = vmul.f32 1.442695, %v6211_v19  ;;  %v6036_v19 = vpop.permute.xlu0 %6035 }
0x1cb9   :  { %v12832_v6 = vpop.eup %9748  ;;  %v6267_v49 = vadd.f32 %v6266_v20, %v6265_v24  ;;  %v6258_v21 = vadd.f32 %v6257_v62, %v6256_v11  ;;  %v6319_v41 = vadd.f32 %v6318_v28, %v6317_v13  ;;  %v6225_v2 = vmul.f32 1.442695, %v6204_v57  ;;  %v6024_v57 = vpop.permute.xlu1 %6023 }
0x1cba   :  { %v12834_v60 = vpop.eup %9750  ;;  %9752 = vrcp.f32 %v6253_v40  ;;  %v6315_v9 = vrot.slane %v6314_v33, 1  ;;  %v6270_v53 = vadd.f32 %v6269_v12, %v6268_v0  ;;  %v6324_v17 = vsel %vm198_vm10, %v12832_v6, 0.0 }
0x1cbb   :  { %9754 = vrcp.f32 %v6267_v49  ;;  %v6259_v38 = vrot.slane %v6258_v21, 1  ;;  %v6320_v61 = vrot.slane %v6319_v41, 2  ;;  %v6325_v45 = vrot.slane %v6324_v17, 4 }
0x1cbc   :  { %v6316_v29 = vadd.f32 %v6315_v9, %v6314_v33  ;;  %v6271_v32 = vrot.slane %v6270_v53, 2  ;;  %v6275_v52 = vsel %vm198_vm10, %v12834_v60, 0.0  ;;  %9756 = vpow2.f32 %v6239_v30 }
0x1cbd   :  { %v6260_v58 = vadd.f32 %v6259_v38, %v6258_v21  ;;  %v6321_v23 = vadd.f32 %v6320_v61, %v6319_v41  ;;  %v6326_v54 = vadd.f32 %v6325_v45, %v6324_v17  ;;  %v6276_v34 = vrot.slane %v6275_v52, 4 }
0x1cbe   :  { %9758 = vrcp.f32 %v6316_v29  ;;  %v6272_v5 = vadd.f32 %v6271_v32, %v6270_v53  ;;  %v6212_v24 = vsub.f32 %v12795_v59, %v6184_v7  ;;  %v6131_v11 = vmax.f32 %v6129_v16, %v6130_v47 }
0x1cbf   :  { %9760 = vrcp.f32 %v6260_v58  ;;  %v6322_v44 = vrot.slane %v6321_v23, 1  ;;  %v6327_v51 = vrot.slane %v6326_v54, 2  ;;  %v6277_v13 = vadd.f32 %v6276_v34, %v6275_v52 }
0x1cc0   :  { %v6273_v20 = vrot.slane %v6272_v5, 1  ;;  %9762 = vpow2.f32 %v6225_v2  ;;  %v6241_v62 = vmul.f32 1.442695, %v6212_v24  ;;  %v6132_v28 = vrot.slane %v6131_v11, 2 }
0x1cc1   :  { %v6323_v0 = vadd.f32 %v6322_v44, %v6321_v23  ;;  %v6328_v40 = vadd.f32 %v6327_v51, %v6326_v54  ;;  %v6278_v33 = vrot.slane %v6277_v13, 2  ;;  %v6069_v12 = vadd.f32 %v6036_v19, %v12724_v27  ;;  %v6022_v27 = vpop.permute.xlu1 %6021 }
0x1cc2   :  { %v6274_v30 = vadd.f32 %v6273_v20, %v6272_v5  ;;  %9764 = vpow2.f32 %v6241_v62  ;;  %v6133_v49 = vmax.f32 %v6131_v11, %v6132_v28  ;;  %v6063_v59 = vadd.f32 %v6024_v57, %v12726_v56 }
0x1cc3   :  { %9766 = vrcp.f32 %v6323_v0  ;;  %v6329_v16 = vrot.slane %v6328_v40, 1  ;;  %v6279_v47 = vadd.f32 %v6278_v33, %v6277_v13  ;;  %v12843_v7 = vmul.f32 0.70710677, %v6069_v12 }
0x1cc4   :  { %v9753_v21 = vpop.eup %9752  ;;  %9768 = vrcp.f32 %v6274_v30  ;;  %v6134_v41 = vrot.slane %v6133_v49, 1  ;;  %v12855_v29 = vmul.f32 0.70710677, %v6063_v59  ;;  %v12865_v34 = vadd.f32 %v6022_v27, %v12733_v50 }
0x1cc5   :  { %v9755_v2 = vpop.eup %9754  ;;  %v12846_v9 = vmul.f32 %v9753_v21, %v12801_v48  ;;  %v6330_v53 = vadd.f32 %v6329_v16, %v6328_v40  ;;  %v6280_v17 = vrot.slane %v6279_v47, 1  ;;  %v6185_v45 = vsel %vm198_vm10, %v12843_v7, -inf }
0x1cc6   :  { %v12848_v38 = vpop.eup %9756  ;;  %v12851_v61 = vmul.f32 %v9755_v2, %v12806_v25  ;;  %v6135_v56 = vmax.f32 %v6133_v49, %v6134_v41  ;;  %v6186_v19 = vrot.slane %v6185_v45, 4  ;;  %v6143_v59 = vsel %vm198_vm10, %v12855_v29, -inf }
0x1cc7   :  { %v6391_v32 = vmul.f32 %v12846_v9, %v12644_v10  ;;  %9770 = vrcp.f32 %v6330_v53  ;;  %v6281_v48 = vadd.f32 %v6280_v17, %v6279_v47  ;;  %v6331_v52 = vsel %vm198_vm10, %v12848_v38, 0.0 }
0x1cc8   :  { %v9759_v58 = vpop.eup %9758  ;;  %v6393_v23 = vmul.f32 %v12851_v61, %v12644_v10  ;;  %v6332_v25 = vrot.slane %v6331_v52, 4  ;;  %v6205_v54 = vsub.f32 %v12804_v1, %v6135_v56  ;;  %v6187_v49 = vmax.f32 %v6185_v45, %v6186_v19 }
0x1cc9   :  { %v9761_v5 = vpop.eup %9760  ;;  %v6407_v24 = vsel %vm198_vm10, %v6391_v32, 0.0  ;;  %v12869_v11 = vmul.f32 %v9759_v58, %v12812_v39  ;;  %9772 = vrcp.f32 %v6281_v48 }
0x1cca   :  { %v12871_v44 = vpop.eup %9762  ;;  %v6408_v51 = vrot.slane %v6407_v24, 4  ;;  %v6421_v13 = vsel %vm198_vm10, %v6393_v23, 0.0  ;;  %v12875_v57 = vmul.f32 %v9761_v5, %v12816_v4  ;;  %v6333_v1 = vadd.f32 %v6332_v25, %v6331_v52 }
0x1ccb   :  { %v6422_v20 = vrot.slane %v6421_v13, 4  ;;  %v6400_v50 = vmul.f32 %v12869_v11, %v12647_v43  ;;  %v6282_v62 = vsel %vm198_vm10, %v12871_v44, 0.0  ;;  %v6227_v39 = vmul.f32 1.442695, %v6205_v54 }
0x1ccc   :  { %v12881_v28 = vpop.eup %9764  ;;  %v6409_v0 = vadd.f32 %v6408_v51, %v6407_v24  ;;  %v6392_v40 = vmul.f32 %v12875_v57, %v12644_v10  ;;  %v6334_v33 = vrot.slane %v6333_v1, 2  ;;  %v6283_v12 = vrot.slane %v6282_v62, 4 }
0x1ccd   :  { %v9767_v30 = vpop.eup %9766  ;;  %v6470_v4 = vsel %vm198_vm10, %v6400_v50, 0.0  ;;  %9774 = vpow2.f32 %v6227_v39  ;;  %v6338_v2 = vsel %vm198_vm10, %v12881_v28, 0.0  ;;  %v12894_v53 = vadd.f32 %v6422_v20, %v6421_v13 }
0x1cce   :  { %v9769_v16 = vpop.eup %9768  ;;  %v6471_v47 = vrot.slane %v6470_v4, 4  ;;  %v6414_v21 = vsel %vm198_vm10, %v6392_v40, 0.0  ;;  %v12890_v41 = vmul.f32 %v9767_v30, %v12822_v14  ;;  %v6335_v56 = vadd.f32 %v6334_v33, %v6333_v1 }
0x1ccf   :  { %v6415_v17 = vrot.slane %v6414_v21, 4  ;;  %v6366_v27 = vmul.f32 %v9769_v16, %v12825_v55  ;;  %v6410_v45 = vrot.slane %v6409_v0, 2  ;;  %v6284_v52 = vadd.f32 %v6283_v12, %v6282_v62 }
0x1cd0   :  { %v6472_v32 = vadd.f32 %v6471_v47, %v6470_v4  ;;  %v6401_v48 = vmul.f32 %v12890_v41, %v12647_v43  ;;  %v6336_v25 = vrot.slane %v6335_v56, 1  ;;  %v6339_v54 = vrot.slane %v6338_v2, 4 }
0x1cd1   :  { %v9771_v58 = vpop.eup %9770  ;;  %v6416_v23 = vadd.f32 %v6415_v17, %v6414_v21  ;;  %v6394_v14 = vmul.f32 %v6366_v27, %v12644_v10  ;;  %v6285_v55 = vrot.slane %v6284_v52, 2  ;;  %v6144_v33 = vrot.slane %v6143_v59, 4 }
0x1cd2   :  { %v6473_v5 = vrot.slane %v6472_v32, 2  ;;  %v6477_v24 = vsel %vm198_vm10, %v6401_v48, 0.0  ;;  %v12902_v19 = vmul.f32 %v9771_v58, %v12832_v6  ;;  %v6337_v50 = vadd.f32 %v6336_v25, %v6335_v56 }
0x1cd3   :  { %v9773_v51 = vpop.eup %9772  ;;  %v6417_v13 = vrot.slane %v6416_v23, 2  ;;  %v6478_v1 = vrot.slane %v6477_v24, 4  ;;  %v6428_v20 = vsel %vm198_vm10, %v6394_v14, 0.0  ;;  %v6286_v6 = vadd.f32 %v6285_v55, %v6284_v52 }
0x1cd4   :  { %v6429_v62 = vrot.slane %v6428_v20, 4  ;;  %v6402_v39 = vmul.f32 %v12902_v19, %v12647_v43  ;;  %v12908_v40 = vmul.f32 %v9773_v51, %v12834_v60  ;;  %9776 = vrcp.f32 %v6337_v50 }
0x1cd5   :  { %v12911_v30 = vadd.f32 %v6478_v1, %v6477_v24  ;;  %v12913_v4 = vadd.f32 %v6410_v45, %v6409_v0  ;;  %v12915_v16 = vadd.f32 %v6473_v5, %v6472_v32  ;;  %v6340_v21 = vadd.f32 %v6339_v54, %v6338_v2  ;;  %v12929_v5 = vpop.permute.xlu0 %6521 }
0x1cd6   :  { %v6484_v47 = vsel %vm198_vm10, %v6402_v39, 0.0  ;;  %v12920_v56 = vadd.f32 %v6417_v13, %v6416_v23  ;;  %v12922_v60 = vadd.f32 %v6429_v62, %v6428_v20  ;;  %v6287_v48 = vrot.slane %v6286_v6, 1 }
0x1cd7   :  { %v12918_v17 = vpop.eup %9774  ;;  %v6188_v58 = vrot.slane %v6187_v49, 2  ;;  %v6395_v14 = vmul.f32 %v12908_v40, %v12644_v10  ;;  %v6341_v25 = vrot.slane %v6340_v21, 2  ;;  %v6145_v45 = vmax.f32 %v6143_v59, %v6144_v33 }
0x1cd8   :  { %v6289_v0 = vsel %vm198_vm10, %v12918_v17, 0.0  ;;  %v6485_v52 = vrot.slane %v6484_v47, 4  ;;  %v6288_v2 = vadd.f32 %v6287_v48, %v6286_v6  ;;  %v6527_v51 = vmul.f32 %v12929_v5, %v12846_v9 }
0x1cd9   :  { %v6290_v54 = vrot.slane %v6289_v0, 4  ;;  %v6342_v23 = vadd.f32 %v6341_v25, %v6340_v21  ;;  %v6189_v24 = vmax.f32 %v6187_v49, %v6188_v58  ;;  %v6146_v55 = vrot.slane %v6145_v45, 2  ;;  %v6038_v25 = vpop.permute.xlu1 %6037 }
0x1cda   :  { %9778 = vrcp.f32 %v6288_v2  ;;  %v6528_v1 = vmul.f32 %v12929_v5, %v12875_v57  ;;  %v6529_v59 = vmul.f32 %v12929_v5, %v12851_v61  ;;  %v6530_v39 = vmul.f32 %v12929_v5, %v6366_v27 }
0x1cdb   :  { %v6291_v13 = vadd.f32 %v6290_v54, %v6289_v0  ;;  %v6343_v20 = vrot.slane %v6342_v23, 1  ;;  %v6190_v50 = vrot.slane %v6189_v24, 1  ;;  %v6147_v62 = vmax.f32 %v6145_v45, %v6146_v55 }
0x1cdc   :  { %v12939_v33 = vsel %vm198_vm10, %v6395_v14, 0.0  ;;  %v6543_v6 = vsel %vm198_vm10, %v6527_v51, 0.0  ;;  %v6550_v9 = vsel %vm198_vm10, %v6528_v1, 0.0  ;;  %v6557_v45 = vsel %vm198_vm10, %v6529_v59, 0.0 }
0x1cdd   :  { %v6292_v49 = vrot.slane %v6291_v13, 2  ;;  %v6344_v21 = vadd.f32 %v6343_v20, %v6342_v23  ;;  %v6191_v48 = vmax.f32 %v6189_v24, %v6190_v50  ;;  %v6148_v58 = vrot.slane %v6147_v62, 1 }
0x1cde   :  { %v6544_v57 = vrot.slane %v6543_v6, 4  ;;  %v9777_v0 = vpop.eup %9776  ;;  %v6551_v2 = vrot.slane %v6550_v9, 4  ;;  %v12945_v27 = vsel %vm198_vm10, %v6530_v39, 0.0  ;;  %v12949_v51 = vadd.f32 %v6485_v52, %v6484_v47 }
0x1cdf   :  { %v6293_v61 = vadd.f32 %v6292_v49, %v6291_v13  ;;  %v6384_v14 = vmul.f32 %v9777_v0, %v12848_v38  ;;  %9780 = vrcp.f32 %v6344_v21  ;;  %v6213_v54 = vsub.f32 %v12843_v7, %v6191_v48 }
0x1ce0   :  { %v6149_v55 = vmax.f32 %v6147_v62, %v6148_v58  ;;  %v6545_v1 = vadd.f32 %v6544_v57, %v6543_v6  ;;  %v6552_v50 = vadd.f32 %v6551_v2, %v6550_v9  ;;  %v6531_v38 = vmul.f32 %v12929_v5, %v12908_v40  ;;  %v12960_v6 = vpop.permute.xlu1 %6523 }
0x1ce1   :  { %v6294_v24 = vrot.slane %v6293_v61, 1  ;;  %v6403_v13 = vmul.f32 %v6384_v14, %v12647_v43  ;;  %v6243_v20 = vmul.f32 1.442695, %v6213_v54  ;;  %v6558_v49 = vrot.slane %v6557_v45, 4 }
0x1ce2   :  { %v6207_v59 = vsub.f32 %v12855_v29, %v6149_v55  ;;  %v6565_v7 = vrot.slane %v12945_v27, 4  ;;  %v6546_v52 = vrot.slane %v6545_v1, 2  ;;  %v12958_v62 = vmul.f32 0.70710677, %v12865_v34 }
0x1ce3   :  { %v6295_v39 = vadd.f32 %v6294_v24, %v6293_v61  ;;  %9782 = vpow2.f32 %v6243_v20  ;;  %v12963_v48 = vsel %vm198_vm10, %v6403_v13, 0.0  ;;  %v6070_v29 = vadd.f32 %v6038_v25, %v12740_v8 }
0x1ce4   :  { %v6231_v47 = vmul.f32 1.442695, %v6207_v59  ;;  %v9779_v21 = vpop.eup %9778  ;;  %v6536_v40 = vmul.f32 %v12960_v6, %v12869_v11  ;;  %v6553_v9 = vrot.slane %v6552_v50, 2  ;;  %v6136_v58 = vsel %vm198_vm10, %v12958_v62, -inf }
0x1ce5   :  { %9784 = vrcp.f32 %v6295_v39  ;;  %v6537_v34 = vmul.f32 %v12960_v6, %v12890_v41  ;;  %v6370_v57 = vmul.f32 %v9779_v21, %v12871_v44  ;;  %v6137_v0 = vrot.slane %v6136_v58, 4 }
0x1ce6   :  { %9786 = vpow2.f32 %v6231_v47  ;;  %v12973_v61 = vmul.f32 0.70710677, %v6070_v29  ;;  %v6538_v2 = vmul.f32 %v12960_v6, %v12902_v19  ;;  %v6559_v25 = vadd.f32 %v6558_v49, %v6557_v45 }
0x1ce7   :  { %v6606_v11 = vsel %vm198_vm10, %v6536_v40, 0.0  ;;  %v6613_v54 = vsel %vm198_vm10, %v6537_v34, 0.0  ;;  %v6138_v55 = vmax.f32 %v6136_v58, %v6137_v0  ;;  %v6547_v39 = vadd.f32 %v6546_v52, %v6545_v1 }
0x1ce8   :  { %v6192_v24 = vsel %vm198_vm10, %v12973_v61, -inf  ;;  %v6607_v41 = vrot.slane %v6606_v11, 4  ;;  %v6614_v13 = vrot.slane %v6613_v54, 4  ;;  %v12983_v59 = vsel %vm198_vm10, %v6538_v2, 0.0 }
0x1ce9   :  { %v9781_v44 = vpop.eup %9780  ;;  %v6193_v20 = vrot.slane %v6192_v24, 4  ;;  %v6554_v19 = vadd.f32 %v6553_v9, %v6552_v50  ;;  %v12986_v47 = vmul.f32 %v6370_v57, %v12644_v10  ;;  %v6139_v45 = vrot.slane %v6138_v55, 2 }
0x1cea   :  { %v12989_v49 = vmul.f32 %v12960_v6, %v6384_v14  ;;  %v12991_v21 = vadd.f32 %v6607_v41, %v6606_v11  ;;  %v12994_v29 = vmul.f32 %v9781_v44, %v12881_v28  ;;  %v12996_v58 = vadd.f32 %v6614_v13, %v6613_v54 }
0x1ceb   :  { %v6194_v40 = vmax.f32 %v6192_v24, %v6193_v20  ;;  %v6532_v34 = vmul.f32 %v12929_v5, %v6370_v57  ;;  %v6140_v0 = vmax.f32 %v6138_v55, %v6139_v45  ;;  %v6548_v50 = vrot.slane %v6547_v39, 1 }
0x1cec   :  { %v6560_v52 = vrot.slane %v6559_v25, 2  ;;  %v6609_v14 = vrot.slane %v12991_v21, 2  ;;  %v6555_v11 = vrot.slane %v6554_v19, 1  ;;  %v6566_v41 = vadd.f32 %v6565_v7, %v12945_v27 }
0x1ced   :  { %v13000_v9 = vpop.eup %9782  ;;  %v6195_v2 = vrot.slane %v6194_v40, 2  ;;  %v6141_v24 = vrot.slane %v6140_v0, 1  ;;  %v6571_v57 = vsel %vm198_vm10, %v6531_v38, 0.0  ;;  %v6549_v7 = vadd.f32 %v6548_v50, %v6547_v39 }
0x1cee   :  { %v6345_v54 = vsel %vm198_vm10, %v13000_v9, 0.0  ;;  %v6561_v13 = vadd.f32 %v6560_v52, %v6559_v25  ;;  %v6567_v8 = vrot.slane %v6566_v41, 2  ;;  %v6572_v23 = vrot.slane %v6571_v57, 4 }
0x1cef   :  { %v9785_v28 = vpop.eup %9784  ;;  %v6346_v20 = vrot.slane %v6345_v54, 4  ;;  %v6196_v45 = vmax.f32 %v6194_v40, %v6195_v2  ;;  %v6142_v27 = vmax.f32 %v6140_v0, %v6141_v24  ;;  %v6556_v25 = vadd.f32 %v6555_v11, %v6554_v19 }
0x1cf0   :  { %v13007_v55 = vpop.eup %9786  ;;  %v13010_v44 = vmul.f32 %v9785_v28, %v12918_v17  ;;  %v6562_v17 = vrot.slane %v6561_v13, 1  ;;  %v6568_v28 = vadd.f32 %v6567_v8, %v6566_v41  ;;  %v6573_v35 = vadd.f32 %v6572_v23, %v6571_v57 }
0x1cf1   :  { %v6303_v32 = vsel %vm198_vm10, %v13007_v55, 0.0  ;;  %v6347_v12 = vadd.f32 %v6346_v20, %v6345_v54  ;;  %v6197_v37 = vrot.slane %v6196_v45, 1  ;;  %v6206_v38 = vsub.f32 %v12958_v62, %v6142_v27 }
0x1cf2   :  { %v6304_v1 = vrot.slane %v6303_v32, 4  ;;  %v6533_v52 = vmul.f32 %v12929_v5, %v13010_v44  ;;  %v6569_v46 = vrot.slane %v6568_v28, 1  ;;  %v6578_v39 = vsel %vm198_vm10, %v6532_v34, 0.0 }
0x1cf3   :  { %v6348_v15 = vrot.slane %v6347_v12, 2  ;;  %v6198_v2 = vmax.f32 %v6196_v45, %v6197_v37  ;;  %v6229_v18 = vmul.f32 1.442695, %v6206_v38  ;;  %v6574_v62 = vrot.slane %v6573_v35, 2 }
0x1cf4   :  { %v6305_v40 = vadd.f32 %v6304_v1, %v6303_v32  ;;  %v6585_v0 = vsel %vm198_vm10, %v6533_v52, 0.0  ;;  %v6563_v11 = vadd.f32 %v6562_v17, %v6561_v13  ;;  %v6579_v24 = vrot.slane %v6578_v39, 4 }
0x1cf5   :  { %v6349_v50 = vadd.f32 %v6348_v15, %v6347_v12  ;;  %v6214_v19 = vsub.f32 %v12973_v61, %v6198_v2  ;;  %9788 = vpow2.f32 %v6229_v18  ;;  %v6586_v20 = vrot.slane %v6585_v0, 4 }
0x1cf6   :  { %v6306_v54 = vrot.slane %v6305_v40, 2  ;;  %v6575_v37 = vadd.f32 %v6574_v62, %v6573_v35  ;;  %v6570_v23 = vadd.f32 %v6569_v46, %v6568_v28  ;;  %v6580_v1 = vadd.f32 %v6579_v24, %v6578_v39  ;;  %v6725_v28 = vld [vmem:[%s13915_s1 + $0x6f0] sm:$0xff]  ;;  %v6728_v62 = vld [vmem:[%s13915_s1 + $0x720] sm:$0xff] }
0x1cf7   :  { %v6350_v8 = vrot.slane %v6349_v50, 1  ;;  %v6245_v32 = vmul.f32 1.442695, %v6214_v19  ;;  %v6587_v57 = vadd.f32 %v6586_v20, %v6585_v0  ;;  %v6703_v34 = vsel %vm1200_vm12, %v6556_v25, %v6549_v7  ;;  %v6727_v19 = vld [vmem:[%s13915_s1 + $0x710] sm:$0xff] }
0x1cf8   :  { %v6307_v41 = vadd.f32 %v6306_v54, %v6305_v40  ;;  %v6576_v15 = vrot.slane %v6575_v37, 1  ;;  %v13023_v12 = vmul.f32 %v12994_v29, %v12647_v43  ;;  %v6581_v18 = vrot.slane %v6580_v1, 2 }
0x1cf9   :  { %v6351_v45 = vadd.f32 %v6350_v8, %v6349_v50  ;;  %9790 = vpow2.f32 %v6245_v32  ;;  %v6588_v61 = vrot.slane %v6587_v57, 2  ;;  %v6610_v13 = vadd.f32 %v6609_v14, %v12991_v21  ;;  %v6726_v21 = vld [vmem:[%s13915_s1 + $0x700] sm:$0xff] }
0x1cfa   :  { %v6308_v27 = vrot.slane %v6307_v41, 1  ;;  %v6704_v46 = vsel %vm1202_vm13, %v6563_v11, %v6703_v34  ;;  %v6540_v35 = vmul.f32 %v12960_v6, %v12994_v29  ;;  %v6577_v7 = vadd.f32 %v6576_v15, %v6575_v37  ;;  %v6729_v37 = vld [vmem:[%s13915_s1 + $0x730] sm:$0xff] }
0x1cfb   :  { %9792 = vrcp.f32 %v6351_v45  ;;  %v6582_v25 = vadd.f32 %v6581_v18, %v6580_v1  ;;  %v6589_v52 = vadd.f32 %v6588_v61, %v6587_v57  ;;  %v6616_v17 = vrot.slane %v12996_v58, 2 }
0x1cfc   :  { %v6309_v38 = vadd.f32 %v6308_v27, %v6307_v41  ;;  %v6705_v14 = vsel %vm1204_vm14, %v6570_v23, %v6704_v46  ;;  %v14039_v40 = vrot.slane %v12983_v59, 4  ;;  %v6627_v2 = vsel %vm198_vm10, %v12989_v49, 0.0  ;;  %v6730_v23 = vld [vmem:[%s13915_s1 + $0x740] sm:$0xff] }
0x1cfd   :  { %v6583_v39 = vrot.slane %v6582_v25, 1  ;;  %v6590_v0 = vrot.slane %v6589_v52, 1  ;;  %v6611_v50 = vrot.slane %v6610_v13, 1  ;;  %v6617_v54 = vadd.f32 %v6616_v17, %v12996_v58 }
0x1cfe   :  { %9794 = vrcp.f32 %v6309_v38  ;;  %v6622_v29 = vadd.f32 %v14039_v40, %v12983_v59  ;;  %v6628_v24 = vrot.slane %v6627_v2, 4  ;;  %v6634_v59 = vsel %vm198_vm10, %v6540_v35, 0.0 }
0x1cff   :  { %v9324_v20 = vpack.c.bf16 %v6726_v21, %v6725_v28  ;;  %v13050_v8 = vpop.eup %9788  ;;  %v13054_v49 = vmul.f32 %v13010_v44, %v12644_v10  ;;  %v6584_v58 = vadd.f32 %v6583_v39, %v6582_v25  ;;  %v6706_v41 = vsel %vm1206_vm15, %v6577_v7, %v6705_v14 }
0x1d00   :  { %v6623_v11 = vrot.slane %v6622_v29, 2  ;;  %v6635_v32 = vrot.slane %v6634_v59, 4  ;;  %v6296_v1 = vsel %vm198_vm10, %v13050_v8, 0.0  ;;  %v6629_v34 = vadd.f32 %v6628_v24, %v6627_v2 }
0x1d01   :  { %9325 = vmatprep.subr.bf16.mxu1 %v9324_v20  ;;  %v9328_v44 = vpack.c.bf16 %v6728_v62, %v6727_v19  ;;  %v6297_v45 = vrot.slane %v6296_v1, 4  ;;  %v6591_v27 = vadd.f32 %v6590_v0, %v6589_v52  ;;  %v6618_v15 = vrot.slane %v6617_v54, 1 }
0x1d02   :  { %v6624_v57 = vadd.f32 %v6623_v11, %v6622_v29  ;;  %v6636_v18 = vadd.f32 %v6635_v32, %v6634_v59  ;;  %9327 = vmatpush3.bf16.msra.mxu1 %v9324_v20  ;;  %v13067_v38 = vadd.f32 %v6611_v50, %v6610_v13  ;;  %v6630_v35 = vrot.slane %v6629_v34, 2 }
0x1d03   :  { %v13065_v61 = vpop.eup %9790  ;;  %9329 = vmatprep.subr.bf16.mxu1 %v9328_v44  ;;  %v9332_v7 = vpack.c.bf16 %v6730_v23, %v6729_v37  ;;  %v6298_v25 = vadd.f32 %v6297_v45, %v6296_v1  ;;  %v6412_v21 = vrot.slane %v12913_v4, 1  ;;  %v6707_v40 = vsel %vm1208_vm1, %v6584_v58, %v6706_v41 }
0x1d04   :  { %v6625_v46 = vrot.slane %v6624_v57, 1  ;;  %v6352_v17 = vsel %vm198_vm10, %v13065_v61, 0.0  ;;  %v6637_v28 = vrot.slane %v6636_v18, 2  ;;  %v13073_v29 = vadd.f32 %v6630_v35, %v6629_v34 }
0x1d05   :  { %v9793_v14 = vpop.eup %9792  ;;  %v6353_v52 = vrot.slane %v6352_v17, 4  ;;  %v6419_v13 = vrot.slane %v12920_v56, 1  ;;  %v6299_v39 = vrot.slane %v6298_v25, 2  ;;  %v13078_v0 = vsel %vm1210_vm2, %v6591_v27, %v6707_v40 }
0x1d06   :  { %v6388_v2 = vmul.f32 %v9793_v14, %v13000_v9  ;;  %v13080_v50 = vadd.f32 %v6618_v15, %v6617_v54  ;;  %9331 = vmatpush3.bf16.msra.mxu1 %v9328_v44  ;;  %v13082_v11 = vadd.f32 %v6625_v46, %v6624_v57  ;;  %v6638_v24 = vadd.f32 %v6637_v28, %v6636_v18 }
0x1d07   :  { %v6354_v62 = vadd.f32 %v6353_v52, %v6352_v17  ;;  %9333 = vmatprep.subr.bf16.mxu1 %v9332_v7  ;;  %v14040_v59 = vrot.slane %v12894_v53, 2  ;;  %v6300_v9 = vadd.f32 %v6299_v39, %v6298_v25  ;;  %v6413_v32 = vadd.f32 %v6412_v21, %v12913_v4 }
0x1d08   :  { %v9795_v19 = vpop.eup %9794  ;;  %v6541_v41 = vmul.f32 %v12960_v6, %v6388_v2  ;;  %v13091_v54 = vmul.f32 %v6388_v2, %v12647_v43  ;;  %v6632_v23 = vrot.slane %v13073_v29, 1  ;;  %v6420_v1 = vadd.f32 %v6419_v13, %v12920_v56 }
0x1d09   :  { %v6425_v20 = vadd.f32 %v14040_v59, %v12894_v53  ;;  %v6376_v58 = vmul.f32 %v9795_v19, %v13007_v55  ;;  %v6355_v37 = vrot.slane %v6354_v62, 2  ;;  %v6301_v34 = vrot.slane %v6300_v9, 1 }
0x1d0a   :  { %v6641_v55 = vsel %vm198_vm10, %v6541_v41, 0.0  ;;  %9335 = vmatpush3.bf16.msra.mxu1 %v9332_v7  ;;  %v6639_v45 = vrot.slane %v6638_v24, 1  ;;  %v6431_v35 = vrot.slane %v12922_v60, 2  ;;  %v14041_v7 = vrot.slane %v12939_v33, 4 }
0x1d0b   :  { %v6399_v57 = vmul.f32 %v6376_v58, %v12647_v43  ;;  %v6535_v53 = vmul.f32 %v12960_v6, %v6376_v58  ;;  %v6356_v44 = vadd.f32 %v6355_v37, %v6354_v62  ;;  %v6642_v27 = vrot.slane %v6641_v55, 4 }
0x1d0c   :  { %v6426_v4 = vrot.slane %v6425_v20, 1  ;;  %v6302_v18 = vadd.f32 %v6301_v34, %v6300_v9  ;;  %v6432_v21 = vadd.f32 %v6431_v35, %v12922_v60  ;;  %v6437_v14 = vadd.f32 %v14041_v7, %v12939_v33 }
0x1d0d   :  { %v6463_v15 = vsel %vm198_vm10, %v6399_v57, 0.0  ;;  %v6599_v46 = vsel %vm198_vm10, %v6535_v53, 0.0  ;;  %v6357_v25 = vrot.slane %v6356_v44, 1  ;;  %v6643_v28 = vadd.f32 %v6642_v27, %v6641_v55 }
0x1d0e   :  { %v6464_v56 = vrot.slane %v6463_v15, 4  ;;  %v6600_v17 = vrot.slane %v6599_v46, 4  ;;  %9796 = vrcp.f32 %v6302_v18  ;;  %v6442_v52 = vsel %vm198_vm10, %v12986_v47, 0.0 }
0x1d0f   :  { %v6358_v13 = vadd.f32 %v6357_v25, %v6356_v44  ;;  %v6644_v39 = vrot.slane %v6643_v28, 2  ;;  %v6433_v19 = vrot.slane %v6432_v21, 1  ;;  %v6438_v62 = vrot.slane %v6437_v14, 2 }
0x1d10   :  { %v6465_v40 = vadd.f32 %v6464_v56, %v6463_v15  ;;  %v6601_v2 = vadd.f32 %v6600_v17, %v6599_v46  ;;  %v6443_v59 = vrot.slane %v6442_v52, 4  ;;  %v6449_v58 = vsel %vm198_vm10, %v13054_v49, 0.0 }
0x1d11   :  { %9798 = vrcp.f32 %v6358_v13  ;;  %v6427_v41 = vadd.f32 %v6426_v4, %v6425_v20  ;;  %v6434_v37 = vadd.f32 %v6433_v19, %v6432_v21  ;;  %v6439_v57 = vadd.f32 %v6438_v62, %v6437_v14 }
0x1d12   :  { %v6466_v9 = vrot.slane %v6465_v40, 2  ;;  %v6602_v60 = vrot.slane %v6601_v2, 2  ;;  %v6444_v33 = vadd.f32 %v6443_v59, %v6442_v52  ;;  %v6450_v34 = vrot.slane %v6449_v58, 4 }
0x1d13   :  { %v13109_v55 = vadd.f32 %v6644_v39, %v6643_v28  ;;  %v6671_v44 = vsel %vm1200_vm12, %v6420_v1, %v6413_v32  ;;  %v6440_v27 = vrot.slane %v6439_v57, 1  ;;  %v6633_v35 = vadd.f32 %v6632_v23, %v13073_v29 }
0x1d14   :  { %v6467_v53 = vadd.f32 %v6466_v9, %v6465_v40  ;;  %v6603_v47 = vadd.f32 %v6602_v60, %v6601_v2  ;;  %v6445_v15 = vrot.slane %v6444_v33, 2  ;;  %v6451_v18 = vadd.f32 %v6450_v34, %v6449_v58 }
0x1d15   :  { %v6672_v46 = vsel %vm1202_vm13, %v6427_v41, %v6671_v44  ;;  %v6640_v56 = vadd.f32 %v6639_v45, %v6638_v24  ;;  %v6441_v25 = vadd.f32 %v6440_v27, %v6439_v57  ;;  %v6646_v28 = vrot.slane %v13109_v55, 1 }
0x1d16   :  { %v6604_v49 = vrot.slane %v6603_v47, 1  ;;  %v6673_v20 = vsel %vm1204_vm14, %v6434_v37, %v6672_v46  ;;  %v6468_v4 = vrot.slane %v6467_v53, 1  ;;  %v6446_v17 = vadd.f32 %v6445_v15, %v6444_v33 }
0x1d17   :  { %v6452_v21 = vrot.slane %v6451_v18, 2  ;;  %v14042_v32 = vrot.slane %v12911_v30, 2  ;;  %v6487_v14 = vrot.slane %v12949_v51, 2  ;;  %v6674_v29 = vsel %vm1206_vm15, %v6441_v25, %v6673_v20 }
0x1d18   :  { %v6605_v7 = vadd.f32 %v6604_v49, %v6603_v47  ;;  %v9797_v52 = vpop.eup %9796  ;;  %v6447_v40 = vrot.slane %v6446_v17, 1  ;;  %v6475_v23 = vrot.slane %v12915_v16, 1  ;;  %v6469_v2 = vadd.f32 %v6468_v4, %v6467_v53 }
0x1d19   :  { %v6481_v1 = vadd.f32 %v14042_v32, %v12911_v30  ;;  %v6453_v13 = vadd.f32 %v6452_v21, %v6451_v18  ;;  %v6374_v24 = vmul.f32 %v9797_v52, %v13050_v8  ;;  %v6488_v59 = vadd.f32 %v6487_v14, %v12949_v51 }
0x1d1a   :  { %v6710_v45 = vsel %vm1200_vm12, %v13067_v38, %v6605_v7  ;;  %v6448_v30 = vadd.f32 %v6447_v40, %v6446_v17  ;;  %v14043_v38 = vrot.slane %v12963_v48, 4 }
0x1d1b   :  { %v6482_v39 = vrot.slane %v6481_v1, 1  ;;  %v6711_v19 = vsel %vm1202_vm13, %v13080_v50, %v6710_v45  ;;  %v6454_v62 = vrot.slane %v6453_v13, 1  ;;  %v9799_v58 = vpop.eup %9798  ;;  %v6534_v9 = vmul.f32 %v12929_v5, %v6374_v24 }
0x1d1c   :  { %v6712_v60 = vsel %vm1204_vm14, %v13082_v11, %v6711_v19  ;;  %v6398_v8 = vmul.f32 %v6374_v24, %v12644_v10  ;;  %v6493_v41 = vadd.f32 %v14043_v38, %v12963_v48  ;;  %v6390_v37 = vmul.f32 %v9799_v58, %v13065_v61  ;;  %v6731_v11 = vld [vmem:[%s13915_s1 + $0x750] sm:$0xff]  ;;  %v6732_v10 = vld [vmem:[%s13915_s1 + $0x760] sm:$0xff] }
0x1d1d   :  { %v6713_v50 = vsel %vm1206_vm15, %v6633_v35, %v6712_v60  ;;  %v6455_v57 = vadd.f32 %v6454_v62, %v6453_v13  ;;  %v6675_v33 = vsel %vm1208_vm1, %v6448_v30, %v6674_v29  ;;  %v6592_v51 = vsel %vm198_vm10, %v6534_v9, 0.0 }
0x1d1e   :  { %v6456_v5 = vsel %vm198_vm10, %v6398_v8, 0.0  ;;  %v6476_v48 = vadd.f32 %v6475_v23, %v12915_v16  ;;  %v6483_v61 = vadd.f32 %v6482_v39, %v6481_v1  ;;  %v6593_v34 = vrot.slane %v6592_v51, 4 }
0x1d1f   :  { %v6542_v53 = vmul.f32 %v12960_v6, %v6390_v37  ;;  %v6714_v47 = vsel %vm1208_vm1, %v6640_v56, %v6713_v50  ;;  %v6676_v44 = vsel %vm1210_vm2, %v6455_v57, %v6675_v33  ;;  %v6457_v27 = vrot.slane %v6456_v5, 4 }
0x1d20   :  { %v9336_v15 = vpack.c.bf16 %v6732_v10, %v6731_v11  ;;  %v6406_v18 = vmul.f32 %v6390_v37, %v12647_v43  ;;  %v6489_v46 = vrot.slane %v6488_v59, 1  ;;  %v6594_v49 = vadd.f32 %v6593_v34, %v6592_v51 }
0x1d21   :  { %v6648_v35 = vsel %vm198_vm10, %v6542_v53, 0.0  ;;  %v6494_v20 = vrot.slane %v6493_v41, 2  ;;  %v6498_v16 = vsel %vm198_vm10, %v13023_v12, 0.0  ;;  %v6458_v25 = vadd.f32 %v6457_v27, %v6456_v5 }
0x1d22   :  { %v6649_v4 = vrot.slane %v6648_v35, 4  ;;  %9337 = vmatprep.subr.bf16.mxu1 %v9336_v15  ;;  %v6499_v6 = vrot.slane %v6498_v16, 4  ;;  %v6505_v56 = vsel %vm198_vm10, %v13091_v54, 0.0  ;;  %v6595_v17 = vrot.slane %v6594_v49, 2 }
0x1d23   :  { %9339 = vmatpush3.bf16.msra.mxu1 %v9336_v15  ;;  %v6495_v21 = vadd.f32 %v6494_v20, %v6493_v41  ;;  %v6506_v7 = vrot.slane %v6505_v56, 4  ;;  %v6512_v43 = vsel %vm198_vm10, %v6406_v18, 0.0  ;;  %v6459_v1 = vrot.slane %v6458_v25, 2  ;;  %v6733_v20 = vld [vmem:[%s13915_s1 + $0x6e0] ss:$0 sm:$0xff] }
0x1d24   :  { %v6650_v32 = vadd.f32 %v6649_v4, %v6648_v35  ;;  %v6500_v14 = vadd.f32 %v6499_v6, %v6498_v16  ;;  %v6513_v52 = vrot.slane %v6512_v43, 4  ;;  %v6596_v40 = vadd.f32 %v6595_v17, %v6594_v49 }
0x1d25   :  { %v6496_v13 = vrot.slane %v6495_v21, 1  ;;  %v6507_v12 = vadd.f32 %v6506_v7, %v6505_v56  ;;  %v6678_v29 = vsel %vm1200_vm12, %v6476_v48, %v6469_v2  ;;  %v6460_v24 = vadd.f32 %v6459_v1, %v6458_v25 }
0x1d26   :  { %v6651_v23 = vrot.slane %v6650_v32, 2  ;;  %v6501_v45 = vrot.slane %v6500_v14, 2  ;;  %v6514_v39 = vadd.f32 %v6513_v52, %v6512_v43  ;;  %v6597_v54 = vrot.slane %v6596_v40, 1 }
0x1d27   :  { %v6490_v19 = vadd.f32 %v6489_v46, %v6488_v59  ;;  %v6508_v30 = vrot.slane %v6507_v12, 2  ;;  %v6679_v62 = vsel %vm1202_vm13, %v6483_v61, %v6678_v29  ;;  %v6461_v9 = vrot.slane %v6460_v24, 1 }
0x1d28   :  { %v6652_v58 = vadd.f32 %v6651_v23, %v6650_v32  ;;  %v6502_v60 = vadd.f32 %v6501_v45, %v6500_v14  ;;  %v6515_v8 = vrot.slane %v6514_v39, 2  ;;  %v6598_v38 = vadd.f32 %v6597_v54, %v6596_v40  ;;  %v9893_v32 = vld [vmem:[%s13915_s1 + $0x810] ss:$0 sm:$0xff] }
0x1d29   :  { %v6497_v41 = vadd.f32 %v6496_v13, %v6495_v21  ;;  %v6509_v37 = vadd.f32 %v6508_v30, %v6507_v12  ;;  %v6680_v50 = vsel %vm1204_vm14, %v6490_v19, %v6679_v62  ;;  %v6462_v2 = vadd.f32 %v6461_v9, %v6460_v24 }
0x1d2a   :  { %v6653_v57 = vrot.slane %v6652_v58, 1  ;;  %v6503_v33 = vrot.slane %v6502_v60, 1  ;;  %v6516_v51 = vadd.f32 %v6515_v8, %v6514_v39  ;;  %v6709_v5 = vsel %vm1212_vm3, %v6598_v38, %v13078_v0  ;;  %v6849_v38 = vld [vmem:[%s13915_s1 + $0x540] sm:$0xff] }
0x1d2b   :  { %v6647_v59 = vadd.f32 %v6646_v28, %v13109_v55  ;;  %v6510_v11 = vrot.slane %v6509_v37, 1  ;;  %v6681_v10 = vsel %vm1206_vm15, %v6497_v41, %v6680_v50  ;;  %6717 = vrot.lane.b32.xlu0 %v6709_v5, %s9904_s0  ;;  %v6677_v61 = vsel %vm1212_vm3, %v6462_v2, %v6676_v44  ;;  %v6850_v41 = vld [vmem:[%s13915_s1 + $0x550] sm:$0xff]  ;;  %v6851_v50 = vld [vmem:[%s13915_s1 + $0x560] sm:$0xff] }
0x1d2c   :  { %v6654_v48 = vadd.f32 %v6653_v57, %v6652_v58  ;;  %v6504_v34 = vadd.f32 %v6503_v33, %v6502_v60  ;;  %v6517_v53 = vrot.slane %v6516_v51, 1  ;;  %v5649_v6 = vadd.f32 %v12637_v26, %v12568_v42  ;;  %v6852_v57 = vld [vmem:[%s13915_s1 + $0x570] sm:$0xff]  ;;  %v6939_v33 = vld [vmem:[%s13915_s1 + $0x420] sm:$0xff] }
0x1d2d   :  { %v6715_v27 = vsel %vm1210_vm2, %v6647_v59, %v6714_v47  ;;  %v6511_v15 = vadd.f32 %v6510_v11, %v6509_v37  ;;  %v5650_v43 = vadd.f32 %v12635_v22, %v12572_v36  ;;  %v9340_v37 = vpack.c.bf16 %v6850_v41, %v6849_v38  ;;  %v6853_v59 = vld [vmem:[%s13915_s1 + $0x580] sm:$0xff]  ;;  %v6854_v11 = vld [vmem:[%s13915_s1 + $0x590] sm:$0xff] }
0x1d2e   :  { %v6716_v18 = vsel %vm1212_vm3, %v6654_v48, %v6715_v27  ;;  %v6518_v0 = vadd.f32 %v6517_v53, %v6516_v51  ;;  %v6682_v46 = vsel %vm1208_vm1, %v6504_v34, %v6681_v10  ;;  %v5651_v1 = vadd.f32 %v9893_v32, %v5649_v6  ;;  %v6940_v51 = vld [vmem:[%s13915_s1 + $0x430] sm:$0xff]  ;;  %v6941_v10 = vld [vmem:[%s13915_s1 + $0x440] sm:$0xff] }
0x1d2f   :  { %6719 = vrot.lane.b32.xlu1 %v6716_v18, %s9904_s0  ;;  %v6683_v55 = vsel %vm1210_vm2, %v6511_v15, %v6682_v46  ;;  %v5652_v42 = vadd.f32 %v9893_v32, %v5650_v43  ;;  %9341 = vmatprep.subr.bf16.mxu0 %v9340_v37  ;;  %v9344_v2 = vpack.c.bf16 %v6852_v57, %v6851_v50  ;;  %v6855_v34 = vld [vmem:[%s13915_s1 + $0x5a0] sm:$0xff]  ;;  %v6856_v53 = vld [vmem:[%s13915_s1 + $0x5b0] sm:$0xff] }
0x1d30   :  { %v6684_v28 = vsel %vm1212_vm3, %v6518_v0, %v6683_v55  ;;  %v5653_v26 = vsel %vm234_vm11, %v5651_v1, 0.0  ;;  %9343 = vmatpush3.bf16.msra.mxu0 %v9340_v37  ;;  %v9356_v5 = vpack.c.bf16 %v6940_v51, %v6939_v33  ;;  %v9348_v48 = vpack.c.bf16 %v6854_v11, %v6853_v59  ;;  %v6943_v18 = vld [vmem:[%s13915_s1 + $0x460] sm:$0xff]  ;;  %v6944_v0 = vld [vmem:[%s13915_s1 + $0x470] sm:$0xff] }
0x1d31   :  { %9345 = vmatprep.subr.bf16.mxu0 %v9344_v2  ;;  %v9352_v15 = vpack.c.bf16 %v6856_v53, %v6855_v34  ;;  %v9364_v46 = vpack.c.bf16 %v6944_v0, %v6943_v18  ;;  %v6945_v55 = vld [vmem:[%s13915_s1 + $0x480] sm:$0xff]  ;;  %v6817_v32 = vld [vmem:[%s13915_s1 + $0x690] ss:$0 sm:$0xff] }
0x1d32   :  { %9357 = vmatprep.subr.bf16.mxu1 %v9356_v5 }
0x1d34   :  { %9347 = vmatpush3.bf16.msra.mxu0 %v9344_v2 }
0x1d35   :  { %9349 = vmatprep.subr.bf16.mxu0 %v9348_v48 }
0x1d38   :  { %9351 = vmatpush3.bf16.msra.mxu0 %v9348_v48 }
0x1d39   :  { %9353 = vmatprep.subr.bf16.mxu0 %v9352_v15 }
0x1d3c   :  { %9355 = vmatpush3.bf16.msra.mxu0 %v9352_v15 }
0x1d9d   :  { %v6718_v49 = vpop.permute.xlu0 %6717 }
0x1d9e   :  { %v6723_v35 = vsel %vm198_vm10, %v6677_v61, %v6718_v49  ;;  %v6942_v61 = vld [vmem:[%s13915_s1 + $0x450] sm:$0xff] }
0x1d9f   :  { %8966 = vmatprep.mubr.msk.f32.mxu1 %vm234_vm11, %v6723_v35  ;;  %v9360_v27 = vpack.c.bf16 %v6942_v61, %v6941_v10  ;;  %v14044_v61 = vld [vmem:[#allocation14_spill] sm:$0xff] }
0x1da1   :  { %v6720_v44 = vpop.permute.xlu1 %6719 }
0x1da2   :  { %v6724_v47 = vsel %vm198_vm10, %v6684_v28, %v6720_v44  ;;  %v6946_v28 = vld [vmem:[%s13915_s1 + $0x490] sm:$0xff] }
0x1da3   :  { %8967 = vmatmul.mubr.msk.f32.vlgmr.msra.gmra.mrb[18].mxu1 %vm234_vm11, %v6724_v47  ;;  %v9368_v49 = vpack.c.bf16 %v6946_v28, %v6945_v55 }
0x1da4   :  { %9359 = vmatpush3.bf16.msra.mxu1 %v9356_v5 }
0x1da5   :  { %9361 = vmatprep.subr.bf16.mxu1 %v9360_v27 }
0x1da8   :  { %9363 = vmatpush3.bf16.msra.mxu1 %v9360_v27 }
0x1da9   :  { %9365 = vmatprep.subr.bf16.mxu1 %v9364_v46 }
0x1dac   :  { %9367 = vmatpush3.bf16.msra.mxu1 %v9364_v46 }
0x1dad   :  { %9369 = vmatprep.subr.bf16.mxu1 %v9368_v49 }
0x1db0   :  { %9371 = vmatpush3.bf16.msra.mxu1 %v9368_v49 }
0x1e76   :  { %v8968_v16 = vpop.f32.mrb[18].mxu1 }
0x1e77   :  { %v6812_v4 = vadd.f32 %v8968_v16, %v6733_v20  ;;  %v6806_v25 = vpop.f32.mrb[19].mxu1 }
0x1e78   :  { %v6807_v56 = vadd.f32 %v6806_v25, %v6733_v20 }
0x1e79   :  { %v6816_v17 = vadd.f32 %v6812_v4, %v14037_v3 }
0x1e7a   :  { %v6815_v21 = vadd.f32 %v6807_v56, %v14036_v31  ;;  %v5656_v31 = vsel %vm234_vm11, %v5652_v42, 0.0 }
0x1e7b   :  { %v6822_v7 = vsel %vm234_vm11, %v6816_v17, 0.0 }
0x1e7c   :  { %6823 = vadd.xlane.f32.xlu1 %v6822_v7  ;;  %v6819_v14 = vsel %vm234_vm11, %v6815_v21, 0.0 }
0x1e7d   :  { %6820 = vadd.xlane.f32.xlu0 %v6819_v14 }
0x1e81   :  { %5654 = vadd.xlane.f32.xlu0 %v5653_v26  ;;  %v6818_v26 = vld [vmem:[%s13915_s1 + $0x680] ss:$0 sm:$0xff] }
0x1e85   :  { %5657 = vadd.xlane.f32.xlu0 %v5656_v31 }
0x1f09   :  { %v6824_v3 = vpop.xlane.xlu1 %6823 }
0x1f0a   :  { %v6826_v52 = vmul.f32 0.015625, %v6824_v3  ;;  %v6821_v40 = vpop.xlane.xlu0 %6820 }
0x1f0b   :  { %v6825_v36 = vmul.f32 0.015625, %v6821_v40 }
0x1f0c   :  { %v13194_v22 = vsub.f32 %v6816_v17, %v6826_v52 }
0x1f0d   :  { %v13196_v13 = vsub.f32 %v6815_v21, %v6825_v36 }
0x1f0e   :  { %v5655_v12 = vpop.xlane.xlu0 %5654  ;;  %v6830_v29 = vmul.f32 %v13194_v22, %v13194_v22 }
0x1f0f   :  { %v5659_v23 = vmul.f32 0.015625, %v5655_v12  ;;  %v6829_v24 = vmul.f32 %v13196_v13, %v13196_v13 }
0x1f10   :  { %v6834_v45 = vsel %vm234_vm11, %v6830_v29, 0.0 }
0x1f11   :  { %v13203_v39 = vsub.f32 %v5651_v1, %v5659_v23  ;;  %6835 = vadd.xlane.f32.xlu0 %v6834_v45  ;;  %v6831_v54 = vsel %vm234_vm11, %v6829_v24, 0.0  ;;  %v9895_v24 = vld [vmem:[%s13915_s1 + $0x8e0] ss:$0 sm:$0xff] }
0x1f12   :  { %6832 = vadd.xlane.f32.xlu1 %v6831_v54  ;;  %v5658_v19 = vpop.xlane.xlu0 %5657 }
0x1f13   :  { %v5660_v30 = vmul.f32 0.015625, %v5658_v19  ;;  %v5663_v62 = vmul.f32 %v13203_v39, %v13203_v39  ;;  %v6857_v19 = vld [vmem:[%s13915_s1 + $0x530] ss:$0 sm:$0xff] }
0x1f15   :  { %v13208_v58 = vsub.f32 %v5652_v42, %v5660_v30  ;;  %v5665_v9 = vsel %vm234_vm11, %v5663_v62, 0.0 }
0x1f16   :  { %5666 = vadd.xlane.f32.xlu1 %v5665_v9 }
0x1f17   :  { %v5664_v60 = vmul.f32 %v13208_v58, %v13208_v58 }
0x1f19   :  { %v5668_v8 = vsel %vm234_vm11, %v5664_v60, 0.0 }
0x1f1a   :  { %5669 = vadd.xlane.f32.xlu0 %v5668_v8 }
0x1f9e   :  { %v6836_v35 = vpop.xlane.xlu0 %6835 }
0x1f9f   :  { %v6838_v44 = vmul.f32 0.015625, %v6836_v35  ;;  %v6833_v47 = vpop.xlane.xlu1 %6832 }
0x1fa0   :  { %v6837_v20 = vmul.f32 0.015625, %v6833_v47 }
0x1fa1   :  { %v6840_v16 = vadd.f32 1e-05, %v6838_v44 }
0x1fa2   :  { %v6839_v4 = vadd.f32 1e-05, %v6837_v20  ;;  %v6947_v20 = vld [vmem:[%s13915_s1 + $0x410] ss:$0 sm:$0xff] }
0x1fa3   :  { %9800 = vrsqrt.f32 %v6840_v16  ;;  %v5667_v25 = vpop.xlane.xlu1 %5666 }
0x1fa4   :  { %9802 = vrsqrt.f32 %v6839_v4  ;;  %v5671_v6 = vmul.f32 0.015625, %v5667_v25 }
0x1fa6   :  { %v5673_v56 = vadd.f32 1e-05, %v5671_v6 }
0x1fa7   :  { %v5670_v17 = vpop.xlane.xlu0 %5669 }
0x1fa8   :  { %9804 = vrsqrt.f32 %v5673_v56  ;;  %v5672_v21 = vmul.f32 0.015625, %v5670_v17 }
0x1faa   :  { %v5674_v7 = vadd.f32 1e-05, %v5672_v21 }
0x1fac   :  { %9806 = vrsqrt.f32 %v5674_v7 }
0x1fad   :  { %v9801_v43 = vpop.eup %9800 }
0x1fae   :  { %v9803_v1 = vpop.eup %9802  ;;  %v6844_v14 = vmul.f32 %v9801_v43, %v13194_v22  ;;  %v9894_v22 = vld [vmem:[%s13915_s1 + $0x8f0] ss:$0 sm:$0xff] }
0x1faf   :  { %v6843_v42 = vmul.f32 %v9803_v1, %v13196_v13 }
0x1fb0   :  { %v6846_v31 = vmul.f32 %v6844_v14, %v6817_v32 }
0x1fb1   :  { %v6845_v3 = vmul.f32 %v6843_v42, %v6817_v32 }
0x1fb2   :  { %v9805_v52 = vpop.eup %9804  ;;  %v13273_v12 = vadd.f32 %v6846_v31, %v6818_v26 }
0x1fb3   :  { %v13270_v40 = vadd.f32 %v6845_v3, %v6818_v26  ;;  %v5677_v36 = vmul.f32 %v9805_v52, %v13203_v39 }
0x1fb5   :  { %8985 = vmatprep.mubr.msk.f32.mxu0 %vm234_vm11, %v13270_v40  ;;  %v5679_v13 = vmul.f32 %v9894_v22, %v5677_v36 }
0x1fb6   :  { %v9807_v29 = vpop.eup %9806  ;;  %8986 = vmatmul.mubr.msk.f32.vlgmr.msra.gmra.mrb[26].mxu0 %vm234_vm11, %v13273_v12 }
0x1fb7   :  { %v5678_v23 = vmul.f32 %v9807_v29, %v13208_v58  ;;  %v5681_v45 = vadd.f32 %v9895_v24, %v5679_v13 }
0x1fb9   :  { %9004 = vmatprep.mubr.msk.f32.mxu1 %vm234_vm11, %v5681_v45  ;;  %v5680_v39 = vmul.f32 %v9894_v22, %v5678_v23 }
0x1fbb   :  { %v5682_v54 = vadd.f32 %v9895_v24, %v5680_v39 }
0x1fbd   :  { %9005 = vmatmul.mubr.msk.f32.vlgmr.msra.gmra.mrb[20].mxu1 %vm234_vm11, %v5682_v54 }
0x2089   :  { %v8987_v30 = vpop.f32.mrb[26].mxu0 }
0x208a   :  { %v6936_v62 = vadd.f32 %v8987_v30, %v6857_v19  ;;  %v6930_v9 = vpop.f32.mrb[27].mxu0 }
0x208b   :  { %v6931_v60 = vadd.f32 %v6930_v9, %v6857_v19 }
0x208c   :  { %v7080_v58 = vcombine.high %v6936_v62, %v6936_v62  ;;  %v7087_v8 = vrot.slane %v6936_v62, %v10079_v63 }
0x208d   :  { %v7031_v38 = vcombine.high %v6931_v60, %v6931_v60  ;;  %v7038_v41 = vrot.slane %v6931_v60, %v10079_v63 }
0x208e   :  { %v7094_v37 = vrot.slane %v7080_v58, %v10079_v63  ;;  %v7095_v50 = vcombine.high %v7087_v8, %v7087_v8  ;;  %v7103_v57 = vrot.slane %v7087_v8, %v10079_v63 }
0x208f   :  { %v7045_v2 = vrot.slane %v7031_v38, %v10079_v63  ;;  %v7046_v33 = vcombine.high %v7038_v41, %v7038_v41  ;;  %v7054_v51 = vrot.slane %v7038_v41, %v10079_v63 }
0x2090   :  { %v7096_v5 = vcombine.high %v7094_v37, %v7094_v37  ;;  %v7110_v59 = vrot.slane %v7094_v37, %v10079_v63  ;;  %v7117_v11 = vrot.slane %v7095_v50, %v10079_v63  ;;  %v7125_v10 = vcombine.high %v7103_v57, %v7103_v57  ;;  %v9006_v48 = vpop.f32.mrb[20].mxu1 }
0x2091   :  { %v7164_v34 = vrot.slane %v7103_v57, %v14044_v61  ;;  %v7047_v53 = vcombine.high %v7045_v2, %v7045_v2  ;;  %v7061_v27 = vrot.slane %v7045_v2, %v10079_v63  ;;  %v7068_v15 = vrot.slane %v7046_v33, %v10079_v63  ;;  %v7020_v18 = vpop.f32.mrb[21].mxu1 }
0x2092   :  { %v7124_v0 = vrot.slane %v7096_v5, %v10079_v63  ;;  %v7126_v46 = vcombine.high %v7110_v59, %v7110_v59  ;;  %v7127_v55 = vcombine.high %v7117_v11, %v7117_v11  ;;  %v7168_v28 = vrot.slane %v7117_v11, %v14044_v61 }
0x2093   :  { %v7172_v49 = vrot.slane %v7125_v10, %v14044_v61  ;;  %v7180_v35 = vrot.slane %v7110_v59, %v14044_v61  ;;  %v7075_v44 = vrot.slane %v7047_v53, %v10079_v63  ;;  %v7076_v47 = vcombine.high %v7054_v51, %v7054_v51 }
0x2094   :  { %v7128_v16 = vcombine.high %v7124_v0, %v7124_v0  ;;  %v7077_v4 = vcombine.high %v7061_v27, %v7061_v27  ;;  %v7078_v25 = vcombine.high %v7068_v15, %v7068_v15  ;;  %v7132_v6 = vrot.slane %v7054_v51, %v14044_v61 }
0x2095   :  { %v7079_v56 = vcombine.high %v7075_v44, %v7075_v44  ;;  %v7136_v17 = vrot.slane %v7068_v15, %v14044_v61  ;;  %v7140_v21 = vrot.slane %v7076_v47, %v14044_v61  ;;  %v7148_v7 = vrot.slane %v7061_v27, %v14044_v61 }
0x2096   :  { %v7026_v43 = vadd.f32 %v9006_v48, %v6947_v20  ;;  %v7021_v32 = vadd.f32 %v7020_v18, %v6947_v20  ;;  %v7144_v63 = vrot.slane %v7078_v25, %v14044_v61  ;;  %v7176_v1 = vrot.slane %v7127_v55, %v14044_v61 }
0x2097   :  { %v7152_v14 = vrot.slane %v7075_v44, %v14044_v61  ;;  %v7184_v42 = vrot.slane %v7124_v0, %v14044_v61  ;;  %v7156_v26 = vrot.slane %v7077_v4, %v14044_v61  ;;  %v7188_v31 = vrot.slane %v7126_v46, %v14044_v61 }
0x2098   :  { %v7217_v3 = vmul.f32 %v7164_v34, %v7026_v43  ;;  %v7218_v52 = vmul.f32 %v7168_v28, %v7026_v43  ;;  %v7209_v36 = vmul.f32 %v7132_v6, %v7021_v32  ;;  %v7219_v22 = vmul.f32 %v7172_v49, %v7026_v43 }
0x2099   :  { %v7211_v13 = vmul.f32 %v7140_v21, %v7021_v32  ;;  %v7221_v29 = vmul.f32 %v7180_v35, %v7026_v43  ;;  %v13320_v23 = vmul.f32 %v7148_v7, %v7021_v32  ;;  %v13322_v24 = vmul.f32 %v7136_v17, %v7021_v32 }
0x209a   :  { %7257 = vrot.lane.b32.xlu1 %v7217_v3, %s9903_s28  ;;  %7259 = vrot.lane.b32.xlu0 %v7218_v52, %s9903_s28  ;;  %v13326_v45 = vmul.f32 %v7144_v63, %v7021_v32  ;;  %v13328_v39 = vmul.f32 %v7176_v1, %v7026_v43  ;;  %v13330_v54 = vmul.f32 %v7152_v14, %v7021_v32 }
0x209b   :  { %v13332_v19 = vmul.f32 %v7184_v42, %v7026_v43  ;;  %v13334_v30 = vmul.f32 %v7156_v26, %v7021_v32  ;;  %v13336_v62 = vmul.f32 %v7188_v31, %v7026_v43  ;;  %v7160_v9 = vrot.slane %v7079_v56, %v14044_v61 }
0x209c   :  { %v7192_v60 = vrot.slane %v7128_v16, %v14044_v61 }
0x209d   :  { %v13340_v58 = vmul.f32 %v7160_v9, %v7021_v32 }
0x209e   :  { %7241 = vrot.lane.b32.xlu1 %v7209_v36, %s9903_s28  ;;  %7261 = vrot.lane.b32.xlu0 %v7219_v22, %s9903_s28  ;;  %v13344_v8 = vmul.f32 %v7192_v60, %v7026_v43 }
0x20a2   :  { %7245 = vrot.lane.b32.xlu1 %v7211_v13, %s9903_s28  ;;  %7265 = vrot.lane.b32.xlu0 %v7221_v29, %s9903_s28 }
0x20a6   :  { %7249 = vrot.lane.b32.xlu1 %v13320_v23, %s9903_s28  ;;  %7243 = vrot.lane.b32.xlu0 %v13322_v24, %s9903_s28 }
0x20aa   :  { %7247 = vrot.lane.b32.xlu1 %v13326_v45, %s9903_s28  ;;  %7263 = vrot.lane.b32.xlu0 %v13328_v39, %s9903_s28 }
0x20ae   :  { %7251 = vrot.lane.b32.xlu1 %v13330_v54, %s9903_s28  ;;  %7267 = vrot.lane.b32.xlu0 %v13332_v19, %s9903_s28 }
0x20b2   :  { %7253 = vrot.lane.b32.xlu1 %v13334_v30, %s9903_s28  ;;  %7269 = vrot.lane.b32.xlu0 %v13336_v62, %s9903_s28 }
0x20b6   :  { %7255 = vrot.lane.b32.xlu1 %v13340_v58, %s9903_s28  ;;  %7761 = vrot.lane.b32.xlu0 %v7021_v32, %s9904_s0 }
0x20ba   :  { %7271 = vrot.lane.b32.xlu1 %v13344_v8, %s9903_s28  ;;  %7627 = vrot.lane.b32.xlu0 %v7021_v32, %s9901_s27 }
0x20be   :  { %7763 = vrot.lane.b32.xlu1 %v7026_v43, %s9904_s0 }
0x20c2   :  { %7629 = vrot.lane.b32.xlu1 %v7026_v43, %s9901_s27 }
0x210c   :  { %v7258_v38 = vpop.permute.xlu1 %7257  ;;  %v7260_v41 = vpop.permute.xlu0 %7259 }
0x210d   :  { %v7297_v37 = vadd.f32 %v7258_v38, %v7217_v3  ;;  %v7298_v50 = vadd.f32 %v7260_v41, %v7218_v52 }
0x210f   :  { %v7313_v57 = vmul.f32 0.70710677, %v7297_v37  ;;  %v7314_v2 = vmul.f32 0.70710677, %v7298_v50 }
0x2110   :  { %v7242_v33 = vpop.permute.xlu1 %7241  ;;  %v7262_v51 = vpop.permute.xlu0 %7261 }
0x2111   :  { %v7377_v5 = vsel %vm198_vm10, %v7313_v57, -inf  ;;  %v7384_v59 = vsel %vm198_vm10, %v7314_v2, -inf  ;;  %v7289_v11 = vadd.f32 %v7242_v33, %v7209_v36  ;;  %v7299_v10 = vadd.f32 %v7262_v51, %v7219_v22 }
0x2112   :  { %v7378_v48 = vrot.slane %v7377_v5, 4  ;;  %v7385_v61 = vrot.slane %v7384_v59, 4 }
0x2113   :  { %v13374_v34 = vmul.f32 0.70710677, %v7289_v11  ;;  %v13376_v53 = vmul.f32 0.70710677, %v7299_v10 }
0x2114   :  { %v7379_v27 = vmax.f32 %v7377_v5, %v7378_v48  ;;  %v7386_v15 = vmax.f32 %v7384_v59, %v7385_v61  ;;  %v7246_v18 = vpop.permute.xlu1 %7245  ;;  %v7266_v0 = vpop.permute.xlu0 %7265 }
0x2115   :  { %v7321_v46 = vsel %vm198_vm10, %v13374_v34, -inf  ;;  %v7391_v55 = vsel %vm198_vm10, %v13376_v53, -inf  ;;  %v7291_v28 = vadd.f32 %v7246_v18, %v7211_v13  ;;  %v7301_v49 = vadd.f32 %v7266_v0, %v7221_v29 }
0x2116   :  { %v7380_v35 = vrot.slane %v7379_v27, 2  ;;  %v7387_v44 = vrot.slane %v7386_v15, 2  ;;  %v7322_v47 = vrot.slane %v7321_v46, 4  ;;  %v7392_v20 = vrot.slane %v7391_v55, 4 }
0x2117   :  { %v13382_v16 = vmul.f32 0.70710677, %v7291_v28  ;;  %v13384_v4 = vmul.f32 0.70710677, %v7301_v49 }
0x2118   :  { %v7381_v25 = vmax.f32 %v7379_v27, %v7380_v35  ;;  %v7388_v6 = vmax.f32 %v7386_v15, %v7387_v44  ;;  %v7323_v56 = vmax.f32 %v7321_v46, %v7322_v47  ;;  %v7393_v17 = vmax.f32 %v7391_v55, %v7392_v20  ;;  %v7250_v21 = vpop.permute.xlu1 %7249  ;;  %v7244_v7 = vpop.permute.xlu0 %7243 }
0x2119   :  { %v7335_v43 = vsel %vm198_vm10, %v13382_v16, -inf  ;;  %v7405_v32 = vsel %vm198_vm10, %v13384_v4, -inf  ;;  %v7293_v63 = vadd.f32 %v7250_v21, %v13320_v23  ;;  %v7290_v1 = vadd.f32 %v7244_v7, %v13322_v24 }
0x211a   :  { %v7382_v14 = vrot.slane %v7381_v25, 1  ;;  %v7389_v42 = vrot.slane %v7388_v6, 1  ;;  %v7324_v26 = vrot.slane %v7323_v56, 2  ;;  %v7394_v31 = vrot.slane %v7393_v17, 2 }
0x211b   :  { %v7336_v3 = vrot.slane %v7335_v43, 4  ;;  %v7406_v52 = vrot.slane %v7405_v32, 4  ;;  %v13392_v36 = vmul.f32 0.70710677, %v7293_v63  ;;  %v13394_v22 = vmul.f32 0.70710677, %v7290_v1 }
0x211c   :  { %v7383_v13 = vmax.f32 %v7381_v25, %v7382_v14  ;;  %v7390_v29 = vmax.f32 %v7388_v6, %v7389_v42  ;;  %v7325_v9 = vmax.f32 %v7323_v56, %v7324_v26  ;;  %v7395_v60 = vmax.f32 %v7393_v17, %v7394_v31  ;;  %v7248_v37 = vpop.permute.xlu1 %7247  ;;  %v7264_v49 = vpop.permute.xlu0 %7263 }
0x211d   :  { %v7337_v38 = vmax.f32 %v7335_v43, %v7336_v3  ;;  %v7407_v41 = vmax.f32 %v7405_v32, %v7406_v52  ;;  %v7349_v23 = vsel %vm198_vm10, %v13392_v36, -inf  ;;  %v7328_v24 = vsel %vm198_vm10, %v13394_v22, -inf }
0x211e   :  { %v7441_v50 = vsub.f32 %v7313_v57, %v7383_v13  ;;  %v7442_v33 = vsub.f32 %v7314_v2, %v7390_v29  ;;  %v7326_v51 = vrot.slane %v7325_v9, 1  ;;  %v7396_v5 = vrot.slane %v7395_v60, 1 }
0x211f   :  { %v7338_v59 = vrot.slane %v7337_v38, 2  ;;  %v7408_v11 = vrot.slane %v7407_v41, 2  ;;  %v7350_v10 = vrot.slane %v7349_v23, 4  ;;  %v7329_v48 = vrot.slane %v7328_v24, 4 }
0x2120   :  { %v7465_v61 = vmul.f32 1.442695, %v7441_v50  ;;  %v7467_v27 = vmul.f32 1.442695, %v7442_v33  ;;  %v7327_v15 = vmax.f32 %v7325_v9, %v7326_v51  ;;  %v7397_v18 = vmax.f32 %v7395_v60, %v7396_v5  ;;  %v7252_v25 = vpop.permute.xlu1 %7251  ;;  %v7268_v26 = vpop.permute.xlu0 %7267 }
0x2121   :  { %v7339_v0 = vmax.f32 %v7337_v38, %v7338_v59  ;;  %v7409_v46 = vmax.f32 %v7407_v41, %v7408_v11  ;;  %v7351_v55 = vmax.f32 %v7349_v23, %v7350_v10  ;;  %v7330_v28 = vmax.f32 %v7328_v24, %v7329_v48 }
0x2122   :  { %9808 = vpow2.f32 %v7465_v61  ;;  %v7433_v35 = vsub.f32 %v13374_v34, %v7327_v15  ;;  %v7443_v57 = vsub.f32 %v13376_v53, %v7397_v18  ;;  %v7292_v2 = vadd.f32 %v7248_v37, %v13326_v45 }
0x2123   :  { %9810 = vpow2.f32 %v7467_v27  ;;  %v7340_v44 = vrot.slane %v7339_v0, 1  ;;  %v7410_v47 = vrot.slane %v7409_v46, 1  ;;  %v7352_v20 = vrot.slane %v7351_v55, 2 }
0x2124   :  { %v7449_v6 = vmul.f32 1.442695, %v7433_v35  ;;  %v7469_v56 = vmul.f32 1.442695, %v7443_v57  ;;  %v7331_v17 = vrot.slane %v7330_v28, 2  ;;  %v7300_v21 = vadd.f32 %v7264_v49, %v13328_v39 }
0x2125   :  { %v7341_v7 = vmax.f32 %v7339_v0, %v7340_v44  ;;  %v7411_v43 = vmax.f32 %v7409_v46, %v7410_v47  ;;  %v7353_v32 = vmax.f32 %v7351_v55, %v7352_v20  ;;  %v13404_v63 = vmul.f32 0.70710677, %v7292_v2 }
0x2126   :  { %9812 = vpow2.f32 %v7449_v6  ;;  %v7332_v34 = vmax.f32 %v7330_v28, %v7331_v17  ;;  %v13406_v53 = vmul.f32 0.70710677, %v7300_v21  ;;  %v7294_v45 = vadd.f32 %v7252_v25, %v13330_v54 }
0x2127   :  { %9814 = vpow2.f32 %v7469_v56  ;;  %v7435_v1 = vsub.f32 %v13382_v16, %v7341_v7  ;;  %v7445_v14 = vsub.f32 %v13384_v4, %v7411_v43  ;;  %v7354_v42 = vrot.slane %v7353_v32, 1 }
0x2128   :  { %v7333_v31 = vrot.slane %v7332_v34, 1  ;;  %v7342_v39 = vsel %vm198_vm10, %v13404_v63, -inf  ;;  %v7398_v3 = vsel %vm198_vm10, %v13406_v53, -inf  ;;  %v13415_v52 = vmul.f32 0.70710677, %v7294_v45 }
0x2129   :  { %v7453_v13 = vmul.f32 1.442695, %v7435_v1  ;;  %v7473_v29 = vmul.f32 1.442695, %v7445_v14  ;;  %v7355_v9 = vmax.f32 %v7353_v32, %v7354_v42  ;;  %v7343_v54 = vrot.slane %v7342_v39, 4 }
0x212a   :  { %v7334_v60 = vmax.f32 %v7332_v34, %v7333_v31  ;;  %v7399_v38 = vrot.slane %v7398_v3, 4  ;;  %v7356_v16 = vsel %vm198_vm10, %v13415_v52, -inf  ;;  %v7302_v4 = vadd.f32 %v7268_v26, %v13332_v19 }
0x212b   :  { %9816 = vpow2.f32 %v7453_v13  ;;  %v7437_v41 = vsub.f32 %v13392_v36, %v7355_v9  ;;  %v7344_v23 = vmax.f32 %v7342_v39, %v7343_v54  ;;  %v7357_v24 = vrot.slane %v7356_v16, 4 }
0x212c   :  { %v13421_v37 = vpop.eup %9808  ;;  %9818 = vpow2.f32 %v7473_v29  ;;  %v7434_v50 = vsub.f32 %v13394_v22, %v7334_v60  ;;  %v7400_v33 = vmax.f32 %v7398_v3, %v7399_v38  ;;  %v13424_v51 = vmul.f32 0.70710677, %v7302_v4 }
0x212d   :  { %v13426_v5 = vpop.eup %9810  ;;  %v7537_v59 = vsel %vm198_vm10, %v13421_v37, 0.0  ;;  %v7457_v11 = vmul.f32 1.442695, %v7437_v41  ;;  %v7345_v19 = vrot.slane %v7344_v23, 2  ;;  %v7358_v10 = vmax.f32 %v7356_v16, %v7357_v24 }
0x212e   :  { %v7538_v48 = vrot.slane %v7537_v59, 4  ;;  %v7544_v36 = vsel %vm198_vm10, %v13426_v5, 0.0  ;;  %v7451_v61 = vmul.f32 1.442695, %v7434_v50  ;;  %v7401_v27 = vrot.slane %v7400_v33, 2 }
0x212f   :  { %v7545_v15 = vrot.slane %v7544_v36, 4  ;;  %9820 = vpow2.f32 %v7457_v11  ;;  %v7346_v22 = vmax.f32 %v7344_v23, %v7345_v19  ;;  %v7359_v18 = vrot.slane %v7358_v10, 2 }
0x2130   :  { %v13432_v0 = vpop.eup %9812  ;;  %v7539_v46 = vadd.f32 %v7538_v48, %v7537_v59  ;;  %9822 = vpow2.f32 %v7451_v61  ;;  %v7402_v55 = vmax.f32 %v7400_v33, %v7401_v27  ;;  %v7412_v28 = vsel %vm198_vm10, %v13424_v51, -inf }
0x2131   :  { %v13436_v49 = vpop.eup %9814  ;;  %v7546_v35 = vadd.f32 %v7545_v15, %v7544_v36  ;;  %v7481_v57 = vsel %vm198_vm10, %v13432_v0, 0.0  ;;  %v7347_v2 = vrot.slane %v7346_v22, 1  ;;  %v7360_v44 = vmax.f32 %v7358_v10, %v7359_v18  ;;  %v7254_v36 = vpop.permute.xlu1 %7253 }
0x2132   :  { %v7540_v47 = vrot.slane %v7539_v46, 2  ;;  %v7482_v20 = vrot.slane %v7481_v57, 4  ;;  %v7551_v25 = vsel %vm198_vm10, %v13436_v49, 0.0  ;;  %v7403_v6 = vrot.slane %v7402_v55, 1 }
0x2133   :  { %v7547_v56 = vrot.slane %v7546_v35, 2  ;;  %v7552_v17 = vrot.slane %v7551_v25, 4  ;;  %v7348_v21 = vmax.f32 %v7346_v22, %v7347_v2  ;;  %v7361_v7 = vrot.slane %v7360_v44, 1 }
0x2134   :  { %v7541_v43 = vadd.f32 %v7540_v47, %v7539_v46  ;;  %v7483_v32 = vadd.f32 %v7482_v20, %v7481_v57  ;;  %v7404_v34 = vmax.f32 %v7402_v55, %v7403_v6  ;;  %v7413_v45 = vrot.slane %v7412_v28, 4 }
0x2135   :  { %v13442_v1 = vpop.eup %9816  ;;  %v7548_v14 = vadd.f32 %v7547_v56, %v7546_v35  ;;  %v7553_v42 = vadd.f32 %v7552_v17, %v7551_v25  ;;  %v7436_v26 = vsub.f32 %v13404_v63, %v7348_v21  ;;  %v7362_v31 = vmax.f32 %v7360_v44, %v7361_v7  ;;  %v7270_v17 = vpop.permute.xlu0 %7269 }
0x2136   :  { %v13445_v39 = vpop.eup %9818  ;;  %v7542_v3 = vrot.slane %v7541_v43, 1  ;;  %v7484_v13 = vrot.slane %v7483_v32, 2  ;;  %v7495_v29 = vsel %vm198_vm10, %v13442_v1, 0.0  ;;  %v7444_v9 = vsub.f32 %v13406_v53, %v7404_v34 }
0x2137   :  { %v7549_v54 = vrot.slane %v7548_v14, 1  ;;  %v7554_v60 = vrot.slane %v7553_v42, 2  ;;  %v7496_v38 = vrot.slane %v7495_v29, 4  ;;  %v7565_v16 = vsel %vm198_vm10, %v13445_v39, 0.0 }
0x2138   :  { %v7543_v4 = vadd.f32 %v7542_v3, %v7541_v43  ;;  %v7485_v41 = vadd.f32 %v7484_v13, %v7483_v32  ;;  %v7566_v23 = vrot.slane %v7565_v16, 4  ;;  %v7455_v63 = vmul.f32 1.442695, %v7436_v26  ;;  %v7256_v32 = vpop.permute.xlu1 %7255 }
0x2139   :  { %v13452_v24 = vpop.eup %9820  ;;  %v7550_v50 = vadd.f32 %v7549_v54, %v7548_v14  ;;  %v7555_v33 = vadd.f32 %v7554_v60, %v7553_v42  ;;  %v7497_v59 = vadd.f32 %v7496_v38, %v7495_v29  ;;  %v7471_v11 = vmul.f32 1.442695, %v7444_v9 }
0x213a   :  { %v13454_v19 = vpop.eup %9822  ;;  %9824 = vrcp.f32 %v7543_v4  ;;  %v7486_v53 = vrot.slane %v7485_v41, 1  ;;  %v7567_v10 = vadd.f32 %v7566_v23, %v7565_v16  ;;  %v7509_v48 = vsel %vm198_vm10, %v13452_v24, 0.0 }
0x213b   :  { %9826 = vrcp.f32 %v7550_v50  ;;  %v7556_v61 = vrot.slane %v7555_v33, 1  ;;  %v7498_v27 = vrot.slane %v7497_v59, 2  ;;  %v7510_v15 = vrot.slane %v7509_v48, 4 }
0x213c   :  { %v7487_v22 = vadd.f32 %v7486_v53, %v7485_v41  ;;  %v7568_v18 = vrot.slane %v7567_v10, 2  ;;  %v7488_v46 = vsel %vm198_vm10, %v13454_v19, 0.0  ;;  %9828 = vpow2.f32 %v7455_v63 }
0x213d   :  { %v7557_v55 = vadd.f32 %v7556_v61, %v7555_v33  ;;  %v7499_v35 = vadd.f32 %v7498_v27, %v7497_v59  ;;  %v7511_v57 = vadd.f32 %v7510_v15, %v7509_v48  ;;  %v7489_v2 = vrot.slane %v7488_v46, 4 }
0x213e   :  { %9830 = vrcp.f32 %v7487_v22  ;;  %v7569_v44 = vadd.f32 %v7568_v18, %v7567_v10  ;;  %v7438_v47 = vsub.f32 %v13415_v52, %v7362_v31  ;;  %v7414_v20 = vmax.f32 %v7412_v28, %v7413_v45 }
0x213f   :  { %9832 = vrcp.f32 %v7557_v55  ;;  %v7500_v25 = vrot.slane %v7499_v35, 1  ;;  %v7512_v6 = vrot.slane %v7511_v57, 2  ;;  %v7490_v56 = vadd.f32 %v7489_v2, %v7488_v46 }
0x2140   :  { %v7570_v21 = vrot.slane %v7569_v44, 1  ;;  %9834 = vpow2.f32 %v7471_v11  ;;  %v7459_v7 = vmul.f32 1.442695, %v7438_v47  ;;  %v7415_v43 = vrot.slane %v7414_v20, 2 }
0x2141   :  { %v7501_v34 = vadd.f32 %v7500_v25, %v7499_v35  ;;  %v7513_v14 = vadd.f32 %v7512_v6, %v7511_v57  ;;  %v7491_v42 = vrot.slane %v7490_v56, 2  ;;  %v7295_v26 = vadd.f32 %v7254_v36, %v13334_v30  ;;  %v13496_v57 = vpop.permute.xlu0 %7761 }
0x2142   :  { %v7571_v3 = vadd.f32 %v7570_v21, %v7569_v44  ;;  %9836 = vpow2.f32 %v7459_v7  ;;  %v7416_v13 = vmax.f32 %v7414_v20, %v7415_v43  ;;  %v7303_v52 = vadd.f32 %v7270_v17, %v13336_v62 }
0x2143   :  { %9838 = vrcp.f32 %v7501_v34  ;;  %v7514_v28 = vrot.slane %v7513_v14, 1  ;;  %v7492_v45 = vadd.f32 %v7491_v42, %v7490_v56  ;;  %v13463_v31 = vmul.f32 0.70710677, %v7295_v26 }
0x2144   :  { %v9825_v29 = vpop.eup %9824  ;;  %9840 = vrcp.f32 %v7571_v3  ;;  %v7417_v9 = vrot.slane %v7416_v13, 1  ;;  %v13465_v54 = vmul.f32 0.70710677, %v7303_v52  ;;  %v7296_v60 = vadd.f32 %v7256_v32, %v13340_v58  ;;  %v7272_v58 = vpop.permute.xlu1 %7271 }
0x2145   :  { %v9827_v38 = vpop.eup %9826  ;;  %v13469_v30 = vmul.f32 %v9825_v29, %v13421_v37  ;;  %v7515_v16 = vadd.f32 %v7514_v28, %v7513_v14  ;;  %v7493_v4 = vrot.slane %v7492_v45, 1  ;;  %v7363_v62 = vsel %vm198_vm10, %v13463_v31, -inf }
0x2146   :  { %v13473_v41 = vpop.eup %9828  ;;  %v13476_v23 = vmul.f32 %v9827_v38, %v13426_v5  ;;  %v7418_v63 = vmax.f32 %v7416_v13, %v7417_v9  ;;  %v7364_v50 = vrot.slane %v7363_v62, 4  ;;  %v7419_v33 = vsel %vm198_vm10, %v13465_v54, -inf }
0x2147   :  { %9842 = vrcp.f32 %v7515_v16  ;;  %v7494_v59 = vadd.f32 %v7493_v4, %v7492_v45  ;;  %v7502_v37 = vsel %vm198_vm10, %v13473_v41, 0.0  ;;  %v7420_v11 = vrot.slane %v7419_v33, 4 }
0x2148   :  { %v9831_v53 = vpop.eup %9830  ;;  %v7503_v10 = vrot.slane %v7502_v37, 4  ;;  %v7446_v48 = vsub.f32 %v13424_v51, %v7418_v63  ;;  %v7365_v36 = vmax.f32 %v7363_v62, %v7364_v50  ;;  %v13483_v61 = vmul.f32 0.70710677, %v7296_v60 }
0x2149   :  { %v9833_v5 = vpop.eup %9832  ;;  %v13486_v27 = vmul.f32 %v9831_v53, %v13432_v0  ;;  %9844 = vrcp.f32 %v7494_v59  ;;  %v7421_v15 = vmax.f32 %v7419_v33, %v7420_v11  ;;  %v13489_v22 = vadd.f32 %v7272_v58, %v13344_v8 }
0x214a   :  { %v13491_v18 = vpop.eup %9834  ;;  %v13494_v46 = vmul.f32 %v9833_v5, %v13436_v49  ;;  %v7504_v55 = vadd.f32 %v7503_v10, %v7502_v37  ;;  %v7475_v35 = vmul.f32 1.442695, %v7446_v48  ;;  %v7366_v51 = vrot.slane %v7365_v36, 2 }
0x214b   :  { %v7558_v2 = vsel %vm198_vm10, %v13491_v18, 0.0  ;;  %v7422_v0 = vrot.slane %v7421_v15, 2  ;;  %v7370_v44 = vsel %vm198_vm10, %v13483_v61, -inf  ;;  %v7767_v8 = vmul.f32 %v13496_v57, %v13486_v27 }
0x214c   :  { %v13504_v47 = vpop.eup %9836  ;;  %v7505_v20 = vrot.slane %v7504_v55, 2  ;;  %v7559_v49 = vrot.slane %v7558_v2, 4  ;;  %9846 = vpow2.f32 %v7475_v35  ;;  %v7367_v25 = vmax.f32 %v7365_v36, %v7366_v51 }
0x214d   :  { %v9839_v6 = vpop.eup %9838  ;;  %v7516_v56 = vsel %vm198_vm10, %v13504_v47, 0.0  ;;  %v7423_v17 = vmax.f32 %v7421_v15, %v7422_v0  ;;  %v7371_v21 = vrot.slane %v7370_v44, 4  ;;  %v7783_v7 = vsel %vm198_vm10, %v7767_v8, 0.0 }
0x214e   :  { %v9841_v43 = vpop.eup %9840  ;;  %v7598_v32 = vmul.f32 %v9839_v6, %v13442_v1  ;;  %v7506_v34 = vadd.f32 %v7505_v20, %v7504_v55  ;;  %v7560_v14 = vadd.f32 %v7559_v49, %v7558_v2  ;;  %v7517_v42 = vrot.slane %v7516_v56, 4 }
0x214f   :  { %v13511_v26 = vmul.f32 %v9841_v43, %v13445_v39  ;;  %v7368_v3 = vrot.slane %v7367_v25, 1  ;;  %v7424_v13 = vrot.slane %v7423_v17, 1  ;;  %v7372_v52 = vmax.f32 %v7370_v44, %v7371_v21 }
0x2150   :  { %v7507_v28 = vrot.slane %v7506_v34, 1  ;;  %v7561_v45 = vrot.slane %v7560_v14, 2  ;;  %v7518_v29 = vadd.f32 %v7517_v42, %v7516_v56  ;;  %v7769_v9 = vmul.f32 %v13496_v57, %v7598_v32  ;;  %v13532_v56 = vpop.permute.xlu0 %7627 }
0x2151   :  { %v9843_v60 = vpop.eup %9842  ;;  %v7369_v38 = vmax.f32 %v7367_v25, %v7368_v3  ;;  %v7425_v16 = vmax.f32 %v7423_v17, %v7424_v13  ;;  %v7373_v4 = vrot.slane %v7372_v52, 2  ;;  %v7784_v62 = vrot.slane %v7783_v7, 4 }
0x2152   :  { %v7602_v1 = vmul.f32 %v9843_v60, %v13452_v24  ;;  %v7508_v63 = vadd.f32 %v7507_v28, %v7506_v34  ;;  %v7562_v50 = vadd.f32 %v7561_v45, %v7560_v14  ;;  %v7519_v33 = vrot.slane %v7518_v29, 2 }
0x2153   :  { %v9845_v39 = vpop.eup %9844  ;;  %v7439_v58 = vsub.f32 %v13463_v31, %v7369_v38  ;;  %v7447_v59 = vsub.f32 %v13465_v54, %v7425_v16  ;;  %v7374_v37 = vmax.f32 %v7372_v52, %v7373_v4  ;;  %v13517_v11 = vadd.f32 %v7784_v62, %v7783_v7 }
0x2154   :  { %v7596_v53 = vmul.f32 %v9845_v39, %v13454_v19  ;;  %9848 = vrcp.f32 %v7508_v63  ;;  %v7563_v10 = vrot.slane %v7562_v50, 1  ;;  %v7520_v48 = vadd.f32 %v7519_v33, %v7518_v29 }
0x2155   :  { %v7461_v36 = vmul.f32 1.442695, %v7439_v58  ;;  %v7477_v5 = vmul.f32 1.442695, %v7447_v59  ;;  %v7375_v15 = vrot.slane %v7374_v37, 1  ;;  %v13521_v24 = vmul.f32 %v13496_v57, %v7602_v1 }
0x2156   :  { %v13523_v55 = vpop.eup %9846  ;;  %v7564_v35 = vadd.f32 %v7563_v10, %v7562_v50  ;;  %v7521_v31 = vrot.slane %v7520_v48, 1  ;;  %v7768_v54 = vmul.f32 %v13496_v57, %v7596_v53  ;;  %v7786_v51 = vrot.slane %v13517_v11, 2 }
0x2157   :  { %v7572_v19 = vsel %vm198_vm10, %v13523_v55, 0.0  ;;  %9850 = vpow2.f32 %v7461_v36  ;;  %v7376_v2 = vmax.f32 %v7374_v37, %v7375_v15  ;;  %v7797_v0 = vsel %vm198_vm10, %v7769_v9, 0.0 }
0x2158   :  { %9852 = vrcp.f32 %v7564_v35  ;;  %v7522_v44 = vadd.f32 %v7521_v31, %v7520_v48  ;;  %v7573_v8 = vrot.slane %v7572_v19, 4  ;;  %v7790_v20 = vsel %vm198_vm10, %v7768_v54, 0.0 }
0x2159   :  { %9854 = vpow2.f32 %v7477_v5  ;;  %v7440_v49 = vsub.f32 %v13483_v61, %v7376_v2  ;;  %v7791_v25 = vrot.slane %v7790_v20, 4  ;;  %v7798_v6 = vrot.slane %v7797_v0, 4 }
0x215a   :  { %9856 = vrcp.f32 %v7522_v44  ;;  %v7574_v17 = vadd.f32 %v7573_v8, %v7572_v19  ;;  %v13535_v21 = vmul.f32 0.70710677, %v13489_v22  ;;  %v7633_v7 = vmul.f32 %v13532_v56, %v13486_v27 }
0x215b   :  { %v7463_v43 = vmul.f32 1.442695, %v7440_v49  ;;  %v13539_v34 = vadd.f32 %v7791_v25, %v7790_v20  ;;  %v13541_v14 = vadd.f32 %v7798_v6, %v7797_v0  ;;  %v7634_v42 = vmul.f32 %v13532_v56, %v7596_v53 }
0x215c   :  { %v7575_v61 = vrot.slane %v7574_v17, 2  ;;  %v7426_v3 = vsel %vm198_vm10, %v13535_v21, -inf  ;;  %v7635_v13 = vmul.f32 %v13532_v56, %v7598_v32  ;;  %v13548_v52 = vmul.f32 %v13532_v56, %v7602_v1  ;;  %v13555_v1 = vpop.permute.xlu1 %7763 }
0x215d   :  { %9858 = vpow2.f32 %v7463_v43  ;;  %v7793_v22 = vrot.slane %v13539_v34, 2  ;;  %v7427_v27 = vrot.slane %v7426_v3, 4  ;;  %v7649_v28 = vsel %vm198_vm10, %v7633_v7, 0.0 }
0x215e   :  { %v9849_v45 = vpop.eup %9848  ;;  %v7576_v29 = vadd.f32 %v7575_v61, %v7574_v17  ;;  %v7650_v9 = vrot.slane %v7649_v28, 4  ;;  %v7656_v60 = vsel %vm198_vm10, %v7634_v42, 0.0  ;;  %v7663_v38 = vsel %vm198_vm10, %v7635_v13, 0.0 }
0x215f   :  { %v7600_v16 = vmul.f32 %v9849_v45, %v13473_v41  ;;  %v7428_v4 = vmax.f32 %v7426_v3, %v7427_v27  ;;  %v7657_v32 = vrot.slane %v7656_v60, 4  ;;  %v7664_v62 = vrot.slane %v7663_v38, 4 }
0x2160   :  { %v7577_v63 = vrot.slane %v7576_v29, 1  ;;  %v13557_v50 = vadd.f32 %v7650_v9, %v7649_v28  ;;  %v7775_v33 = vmul.f32 %v13555_v1, %v13469_v30  ;;  %v7776_v39 = vmul.f32 %v13555_v1, %v13476_v23 }
0x2161   :  { %v13563_v58 = vpop.eup %9850  ;;  %v7770_v59 = vmul.f32 %v13496_v57, %v7600_v16  ;;  %v7429_v37 = vrot.slane %v7428_v4, 2  ;;  %v7636_v41 = vmul.f32 %v13532_v56, %v7600_v16  ;;  %v13567_v53 = vadd.f32 %v7657_v32, %v7656_v60 }
0x2162   :  { %v9853_v10 = vpop.eup %9852  ;;  %v7578_v48 = vadd.f32 %v7577_v63, %v7576_v29  ;;  %v7523_v36 = vsel %vm198_vm10, %v13563_v58, 0.0  ;;  %v7652_v5 = vrot.slane %v13557_v50, 2  ;;  %v13572_v15 = vadd.f32 %v7664_v62, %v7663_v38 }
0x2163   :  { %v13574_v35 = vpop.eup %9854  ;;  %v7616_v31 = vmul.f32 %v9853_v10, %v13491_v18  ;;  %v7524_v54 = vrot.slane %v7523_v36, 4  ;;  %v13578_v19 = vsel %vm198_vm10, %v7770_v59, 0.0  ;;  %v7430_v2 = vmax.f32 %v7428_v4, %v7429_v37 }
0x2164   :  { %v9857_v0 = vpop.eup %9856  ;;  %9860 = vrcp.f32 %v7578_v48  ;;  %v7579_v44 = vsel %vm198_vm10, %v13574_v35, 0.0  ;;  %v7805_v8 = vrot.slane %v13578_v19, 4  ;;  %v7659_v20 = vrot.slane %v13567_v53, 2 }
0x2165   :  { %v13585_v49 = vmul.f32 %v9857_v0, %v13504_v47  ;;  %v7525_v25 = vadd.f32 %v7524_v54, %v7523_v36  ;;  %v7580_v6 = vrot.slane %v7579_v44, 4  ;;  %v7431_v18 = vrot.slane %v7430_v2, 1 }
0x2166   :  { %v13588_v17 = vsel %vm198_vm10, %v7636_v41, 0.0  ;;  %v7777_v7 = vmul.f32 %v13555_v1, %v13494_v46  ;;  %v7778_v43 = vmul.f32 %v13555_v1, %v7616_v31  ;;  %v13595_v42 = vmul.f32 %v13555_v1, %v13511_v26 }
0x2167   :  { %v13597_v61 = vpop.eup %9858  ;;  %v7526_v3 = vrot.slane %v7525_v25, 2  ;;  %v7581_v47 = vadd.f32 %v7580_v6, %v7579_v44  ;;  %v7432_v13 = vmax.f32 %v7430_v2, %v7431_v18  ;;  %v13601_v27 = vmul.f32 %v13532_v56, %v13585_v49  ;;  %v13618_v44 = vpop.permute.xlu1 %7629 }
0x2168   :  { %v7530_v28 = vsel %vm198_vm10, %v13597_v61, 0.0  ;;  %v7671_v45 = vrot.slane %v13588_v17, 4  ;;  %v7839_v29 = vsel %vm198_vm10, %v7775_v33, 0.0  ;;  %v7846_v9 = vsel %vm198_vm10, %v7776_v39, 0.0 }
0x2169   :  { %v7527_v60 = vadd.f32 %v7526_v3, %v7525_v25  ;;  %v7582_v38 = vrot.slane %v7581_v47, 2  ;;  %v7531_v16 = vrot.slane %v7530_v28, 4  ;;  %v7448_v4 = vsub.f32 %v13535_v21, %v7432_v13 }
0x216a   :  { %v7840_v32 = vrot.slane %v7839_v29, 4  ;;  %v7847_v62 = vrot.slane %v7846_v9, 4  ;;  %v7853_v63 = vsel %vm198_vm10, %v7777_v7, 0.0  ;;  %v13611_v59 = vsel %vm198_vm10, %v7778_v43, 0.0 }
0x216b   :  { %v7528_v37 = vrot.slane %v7527_v60, 1  ;;  %v7583_v41 = vadd.f32 %v7582_v38, %v7581_v47  ;;  %v7532_v10 = vadd.f32 %v7531_v16, %v7530_v28  ;;  %v7479_v48 = vmul.f32 1.442695, %v7448_v4 }
0x216c   :  { %v13613_v36 = vadd.f32 %v7840_v32, %v7839_v29  ;;  %v13615_v33 = vadd.f32 %v7847_v62, %v7846_v9  ;;  %v7854_v39 = vrot.slane %v7853_v63, 4  ;;  %v7861_v54 = vrot.slane %v13611_v59, 4 }
0x216d   :  { %v7529_v2 = vadd.f32 %v7528_v37, %v7527_v60  ;;  %v7584_v21 = vrot.slane %v7583_v41, 1  ;;  %v7533_v0 = vrot.slane %v7532_v10, 2  ;;  %9862 = vpow2.f32 %v7479_v48 }
0x216e   :  { %v9861_v25 = vpop.eup %9860  ;;  %v7842_v6 = vrot.slane %v13613_v36, 2  ;;  %v7849_v18 = vrot.slane %v13615_v33, 2  ;;  %v13622_v7 = vadd.f32 %v7854_v39, %v7853_v63  ;;  %v7641_v43 = vmul.f32 %v13618_v44, %v13469_v30 }
0x216f   :  { %v7620_v3 = vmul.f32 %v9861_v25, %v13523_v55  ;;  %9864 = vrcp.f32 %v7529_v2  ;;  %v7585_v47 = vadd.f32 %v7584_v21, %v7583_v41  ;;  %v7534_v13 = vadd.f32 %v7533_v0, %v7532_v10 }
0x2170   :  { %v7642_v28 = vmul.f32 %v13618_v44, %v13476_v23  ;;  %v7643_v29 = vmul.f32 %v13618_v44, %v13494_v46  ;;  %v7644_v9 = vmul.f32 %v13618_v44, %v7616_v31  ;;  %v13634_v60 = vmul.f32 %v13618_v44, %v13511_v26 }
0x2171   :  { %9866 = vrcp.f32 %v7585_v47  ;;  %v7535_v38 = vrot.slane %v7534_v13, 1  ;;  %v13637_v30 = vmul.f32 %v13618_v44, %v7620_v3  ;;  %v7705_v55 = vsel %vm198_vm10, %v7641_v43, 0.0 }
0x2172   :  { %v7706_v16 = vrot.slane %v7705_v55, 4  ;;  %v7712_v4 = vsel %vm198_vm10, %v7642_v28, 0.0  ;;  %v7719_v23 = vsel %vm198_vm10, %v7643_v29, 0.0  ;;  %v13643_v46 = vsel %vm198_vm10, %v7644_v9, 0.0 }
0x2173   :  { %v7536_v31 = vadd.f32 %v7535_v38, %v7534_v13  ;;  %v7713_v32 = vrot.slane %v7712_v4, 4  ;;  %v7720_v62 = vrot.slane %v7719_v23, 4  ;;  %v7727_v26 = vrot.slane %v13643_v46, 4 }
0x2174   :  { %v13646_v63 = vadd.f32 %v7706_v16, %v7705_v55  ;;  %v7772_v37 = vmul.f32 %v13496_v57, %v13585_v49  ;;  %v7787_v41 = vadd.f32 %v7786_v51, %v13517_v11  ;;  %v7794_v10 = vadd.f32 %v7793_v22, %v13539_v34 }
0x2175   :  { %9868 = vrcp.f32 %v7536_v31  ;;  %v13656_v48 = vadd.f32 %v7713_v32, %v7712_v4  ;;  %v13658_v39 = vadd.f32 %v7720_v62, %v7719_v23  ;;  %v7800_v2 = vrot.slane %v13541_v14, 2 }
0x2176   :  { %v7708_v21 = vrot.slane %v13646_v63, 2  ;;  %v7788_v0 = vrot.slane %v7787_v41, 1  ;;  %v7795_v25 = vrot.slane %v7794_v10, 1  ;;  %v7806_v49 = vadd.f32 %v7805_v8, %v13578_v19 }
0x2177   :  { %v13665_v11 = vpop.eup %9862  ;;  %v7715_v51 = vrot.slane %v13656_v48, 2  ;;  %v7801_v34 = vadd.f32 %v7800_v2, %v13541_v14  ;;  %v7811_v22 = vsel %vm198_vm10, %v13521_v24, 0.0  ;;  %v7818_v43 = vsel %vm198_vm10, %v7772_v37, 0.0 }
0x2178   :  { %v7586_v47 = vsel %vm198_vm10, %v13665_v11, 0.0  ;;  %v7789_v13 = vadd.f32 %v7788_v0, %v7787_v41  ;;  %v7796_v28 = vadd.f32 %v7795_v25, %v7794_v10  ;;  %v7807_v29 = vrot.slane %v7806_v49, 2 }
0x2179   :  { %v9865_v9 = vpop.eup %9864  ;;  %v7587_v38 = vrot.slane %v7586_v47, 4  ;;  %v7802_v19 = vrot.slane %v7801_v34, 1  ;;  %v7812_v8 = vrot.slane %v7811_v22, 4  ;;  %v7819_v55 = vrot.slane %v7818_v43, 4 }
0x217a   :  { %v13675_v16 = vmul.f32 %v9865_v9, %v13563_v58  ;;  %v7808_v14 = vadd.f32 %v7807_v29, %v7806_v49  ;;  %v7943_v4 = vsel %vm1200_vm12, %v7796_v28, %v7789_v13  ;;  %v7780_v24 = vmul.f32 %v13555_v1, %v7620_v3 }
0x217b   :  { %v9867_v23 = vpop.eup %9866  ;;  %v7588_v31 = vadd.f32 %v7587_v38, %v7586_v47  ;;  %v7803_v32 = vadd.f32 %v7802_v19, %v7801_v34  ;;  %v7813_v62 = vadd.f32 %v7812_v8, %v7811_v22  ;;  %v7820_v37 = vadd.f32 %v7819_v55, %v7818_v43 }
0x217c   :  { %v13680_v41 = vmul.f32 %v9867_v23, %v13574_v35  ;;  %v7773_v10 = vmul.f32 %v13496_v57, %v13675_v16  ;;  %v7809_v2 = vrot.slane %v7808_v14, 1  ;;  %v7843_v58 = vadd.f32 %v7842_v6, %v13613_v36 }
0x217d   :  { %v7589_v0 = vrot.slane %v7588_v31, 2  ;;  %v7814_v25 = vrot.slane %v7813_v62, 2  ;;  %v7821_v49 = vrot.slane %v7820_v37, 2  ;;  %v7944_v13 = vsel %vm1202_vm13, %v7803_v32, %v7943_v4 }
0x217e   :  { %v7810_v3 = vadd.f32 %v7809_v2, %v7808_v14  ;;  %v7825_v47 = vsel %vm198_vm10, %v7773_v10, 0.0  ;;  %v7781_v34 = vmul.f32 %v13555_v1, %v13680_v41  ;;  %v7844_v22 = vrot.slane %v7843_v58, 1 }
0x217f   :  { %v9869_v35 = vpop.eup %9868  ;;  %v7590_v43 = vadd.f32 %v7589_v0, %v7588_v31  ;;  %v7815_v28 = vadd.f32 %v7814_v25, %v7813_v62  ;;  %v7822_v29 = vadd.f32 %v7821_v49, %v7820_v37  ;;  %v7826_v9 = vrot.slane %v7825_v47, 4 }
0x2180   :  { %v13690_v38 = vmul.f32 %v9869_v35, %v13597_v61  ;;  %v7945_v36 = vsel %vm1204_vm14, %v7810_v3, %v7944_v13  ;;  %v7845_v6 = vadd.f32 %v7844_v22, %v7843_v58  ;;  %v7850_v19 = vadd.f32 %v7849_v18, %v13615_v33 }
0x2181   :  { %v7591_v8 = vrot.slane %v7590_v43, 1  ;;  %v7816_v55 = vrot.slane %v7815_v28, 1  ;;  %v7823_v14 = vrot.slane %v7822_v29, 1  ;;  %v7827_v4 = vadd.f32 %v7826_v9, %v7825_v47 }
0x2182   :  { %v7774_v23 = vmul.f32 %v13496_v57, %v13690_v38  ;;  %v7851_v31 = vrot.slane %v7850_v19, 1  ;;  %v7856_v32 = vrot.slane %v13622_v7, 2  ;;  %v7862_v61 = vadd.f32 %v7861_v54, %v13611_v59 }
0x2183   :  { %v7592_v62 = vadd.f32 %v7591_v8, %v7590_v43  ;;  %v7817_v37 = vadd.f32 %v7816_v55, %v7815_v28  ;;  %v7824_v10 = vadd.f32 %v7823_v14, %v7822_v29  ;;  %v7828_v2 = vrot.slane %v7827_v4, 2  ;;  %v7966_v28 = vld [vmem:[%s13915_s1 + $0x4c0] sm:$0xff] }
0x2184   :  { %v7832_v33 = vsel %vm198_vm10, %v7774_v23, 0.0  ;;  %v7852_v18 = vadd.f32 %v7851_v31, %v7850_v19  ;;  %v7857_v58 = vadd.f32 %v7856_v32, %v13622_v7  ;;  %v7863_v0 = vrot.slane %v7862_v61, 2  ;;  %v7965_v7 = vld [vmem:[%s13915_s1 + $0x4b0] sm:$0xff] }
0x2185   :  { %9870 = vrcp.f32 %v7592_v62  ;;  %v7829_v25 = vadd.f32 %v7828_v2, %v7827_v4  ;;  %v7833_v57 = vrot.slane %v7832_v33, 4  ;;  %v7946_v49 = vsel %vm1206_vm15, %v7817_v37, %v7945_v36  ;;  %v7968_v4 = vld [vmem:[%s13915_s1 + $0x4e0] sm:$0xff]  ;;  %v7969_v23 = vld [vmem:[%s13915_s1 + $0x4f0] sm:$0xff] }
0x2186   :  { %v7947_v13 = vsel %vm1208_vm1, %v7824_v10, %v7946_v49  ;;  %v7858_v3 = vrot.slane %v7857_v58, 1  ;;  %v7864_v47 = vadd.f32 %v7863_v0, %v7862_v61  ;;  %v7867_v59 = vsel %vm198_vm10, %v13595_v42, 0.0  ;;  %v7967_v42 = vld [vmem:[%s13915_s1 + $0x4d0] sm:$0xff] }
0x2187   :  { %v7830_v54 = vrot.slane %v7829_v25, 1  ;;  %v7834_v22 = vadd.f32 %v7833_v57, %v7832_v33  ;;  %v7868_v35 = vrot.slane %v7867_v59, 4  ;;  %v7874_v43 = vsel %vm198_vm10, %v7780_v24, 0.0 }
0x2188   :  { %v7859_v29 = vadd.f32 %v7858_v3, %v7857_v58  ;;  %v7865_v9 = vrot.slane %v7864_v47, 1  ;;  %v7875_v36 = vrot.slane %v7874_v43, 4  ;;  %v7881_v19 = vsel %vm198_vm10, %v7781_v34, 0.0  ;;  %v7970_v34 = vld [vmem:[%s13915_s1 + $0x500] sm:$0xff] }
0x2189   :  { %v7831_v8 = vadd.f32 %v7830_v54, %v7829_v25  ;;  %v7835_v55 = vrot.slane %v7834_v22, 2  ;;  %v7869_v24 = vadd.f32 %v7868_v35, %v7867_v59  ;;  %v7882_v14 = vrot.slane %v7881_v19, 4 }
0x218a   :  { %v7866_v31 = vadd.f32 %v7865_v9, %v7864_v47  ;;  %v7876_v32 = vadd.f32 %v7875_v36, %v7874_v43  ;;  %v7950_v61 = vsel %vm1200_vm12, %v7852_v18, %v7845_v6  ;;  %v9372_v62 = vpack.c.bf16 %v7966_v28, %v7965_v7 }
0x218b   :  { %v7836_v37 = vadd.f32 %v7835_v55, %v7834_v22  ;;  %v7948_v10 = vsel %vm1210_vm2, %v7831_v8, %v7947_v13  ;;  %v7870_v2 = vrot.slane %v7869_v24, 2  ;;  %v7883_v33 = vadd.f32 %v7882_v14, %v7881_v19 }
0x218c   :  { %v7877_v58 = vrot.slane %v7876_v32, 2  ;;  %v7951_v0 = vsel %vm1202_vm13, %v7859_v29, %v7950_v61  ;;  %9373 = vmatprep.subr.bf16.mxu0 %v9372_v62  ;;  %v9376_v25 = vpack.c.bf16 %v7968_v4, %v7967_v42  ;;  %v9380_v57 = vpack.c.bf16 %v7970_v34, %v7969_v23 }
0x218d   :  { %v7837_v49 = vrot.slane %v7836_v37, 1  ;;  %v7871_v3 = vadd.f32 %v7870_v2, %v7869_v24  ;;  %v7884_v59 = vrot.slane %v7883_v33, 2  ;;  %v7952_v47 = vsel %vm1204_vm14, %v7866_v31, %v7951_v0  ;;  %9375 = vmatpush3.bf16.msra.mxu0 %v9372_v62 }
0x218e   :  { %v7878_v54 = vadd.f32 %v7877_v58, %v7876_v32  ;;  %9377 = vmatprep.subr.bf16.mxu0 %v9376_v25  ;;  %v7639_v6 = vmul.f32 %v13532_v56, %v13675_v16  ;;  %v7653_v18 = vadd.f32 %v7652_v5, %v13557_v50  ;;  %v7660_v13 = vadd.f32 %v7659_v20, %v13567_v53 }
0x218f   :  { %v9871_v22 = vpop.eup %9870  ;;  %v7838_v35 = vadd.f32 %v7837_v49, %v7836_v37  ;;  %v7872_v43 = vrot.slane %v7871_v3, 1  ;;  %v7885_v7 = vadd.f32 %v7884_v59, %v7883_v33  ;;  %v7666_v28 = vrot.slane %v13572_v15, 2  ;;  %v7971_v33 = vld [vmem:[%s13915_s1 + $0x510] sm:$0xff] }
0x2190   :  { %v7624_v29 = vmul.f32 %v9871_v22, %v13665_v11  ;;  %v7879_v9 = vrot.slane %v7878_v54, 1  ;;  %v7654_v36 = vrot.slane %v7653_v18, 1  ;;  %v7661_v19 = vrot.slane %v7660_v13, 1 }
0x2191   :  { %v7949_v16 = vsel %vm1212_vm3, %v7838_v35, %v7948_v10  ;;  %v7873_v42 = vadd.f32 %v7872_v43, %v7871_v3  ;;  %v7886_v8 = vrot.slane %v7885_v7, 1  ;;  %9379 = vmatpush3.bf16.msra.mxu0 %v9376_v25  ;;  %v7667_v50 = vadd.f32 %v7666_v28, %v13572_v15 }
0x2192   :  { %7957 = vrot.lane.b32.xlu0 %v7949_v16, %s9904_s0  ;;  %v7782_v53 = vmul.f32 %v13555_v1, %v7624_v29  ;;  %v7880_v5 = vadd.f32 %v7879_v9, %v7878_v54  ;;  %9381 = vmatprep.subr.bf16.mxu0 %v9380_v57  ;;  %v7655_v20 = vadd.f32 %v7654_v36, %v7653_v18  ;;  %v7677_v11 = vsel %vm198_vm10, %v13548_v52, 0.0 }
0x2193   :  { %v7887_v55 = vadd.f32 %v7886_v8, %v7885_v7  ;;  %v7953_v24 = vsel %vm1206_vm15, %v7873_v42, %v7952_v47  ;;  %v7662_v14 = vadd.f32 %v7661_v19, %v7660_v13  ;;  %v7668_v4 = vrot.slane %v7667_v50, 1 }
0x2194   :  { %v7888_v23 = vsel %vm198_vm10, %v7782_v53, 0.0  ;;  %v7954_v34 = vsel %vm1208_vm1, %v7880_v5, %v7953_v24  ;;  %v7672_v15 = vadd.f32 %v7671_v45, %v13588_v17  ;;  %v7678_v1 = vrot.slane %v7677_v11, 4  ;;  %v7972_v17 = vld [vmem:[%s13915_s1 + $0x520] sm:$0xff] }
0x2195   :  { %v7889_v31 = vrot.slane %v7888_v23, 4  ;;  %v7955_v32 = vsel %vm1210_vm2, %v7887_v55, %v7954_v34  ;;  %9383 = vmatpush3.bf16.msra.mxu0 %v9380_v57  ;;  %v7669_v61 = vadd.f32 %v7668_v4, %v7667_v50  ;;  %v7684_v52 = vsel %vm198_vm10, %v13601_v27, 0.0 }
0x2196   :  { %v7673_v62 = vrot.slane %v7672_v15, 2  ;;  %v7679_v37 = vadd.f32 %v7678_v1, %v7677_v11  ;;  %v7685_v10 = vrot.slane %v7684_v52, 4  ;;  %v7691_v2 = vsel %vm198_vm10, %v7639_v6, 0.0 }
0x2197   :  { %v7890_v45 = vadd.f32 %v7889_v31, %v7888_v23  ;;  %v7692_v58 = vrot.slane %v7691_v2, 4  ;;  %v7911_v0 = vsel %vm1200_vm12, %v7662_v14, %v7655_v20  ;;  %v7640_v27 = vmul.f32 %v13532_v56, %v13690_v38 }
0x2198   :  { %v7674_v25 = vadd.f32 %v7673_v62, %v7672_v15  ;;  %v7680_v57 = vrot.slane %v7679_v37, 2  ;;  %v7686_v49 = vadd.f32 %v7685_v10, %v7684_v52  ;;  %v7912_v3 = vsel %vm1202_vm13, %v7669_v61, %v7911_v0 }
0x2199   :  { %v7891_v59 = vrot.slane %v7890_v45, 2  ;;  %v7693_v47 = vadd.f32 %v7692_v58, %v7691_v2  ;;  %v7698_v54 = vsel %vm198_vm10, %v7640_v27, 0.0  ;;  %v9384_v6 = vpack.c.bf16 %v7972_v17, %v7971_v33 }
0x219a   :  { %v7675_v18 = vrot.slane %v7674_v25, 1  ;;  %v7681_v13 = vadd.f32 %v7680_v57, %v7679_v37  ;;  %v7687_v22 = vrot.slane %v7686_v49, 2  ;;  %v7699_v35 = vrot.slane %v7698_v54, 4 }
0x219b   :  { %v7892_v43 = vadd.f32 %v7891_v59, %v7890_v45  ;;  %v7694_v7 = vrot.slane %v7693_v47, 2  ;;  %9385 = vmatprep.subr.bf16.mxu0 %v9384_v6  ;;  %v7647_v56 = vmul.f32 %v13618_v44, %v13680_v41  ;;  %v7648_v38 = vmul.f32 %v13618_v44, %v7624_v29 }
0x219c   :  { %v7676_v28 = vadd.f32 %v7675_v18, %v7674_v25  ;;  %v7682_v9 = vrot.slane %v7681_v13, 1  ;;  %v7688_v36 = vadd.f32 %v7687_v22, %v7686_v49  ;;  %v7700_v19 = vadd.f32 %v7699_v35, %v7698_v54  ;;  %9387 = vmatpush3.bf16.msra.mxu0 %v9384_v6 }
0x219d   :  { %v7893_v16 = vrot.slane %v7892_v43, 1  ;;  %v7695_v42 = vadd.f32 %v7694_v7, %v7693_v47  ;;  %v7709_v8 = vadd.f32 %v7708_v21, %v13646_v63  ;;  %v7716_v50 = vadd.f32 %v7715_v51, %v13656_v48 }
0x219e   :  { %v7683_v53 = vadd.f32 %v7682_v9, %v7681_v13  ;;  %v7689_v5 = vrot.slane %v7688_v36, 1  ;;  %v7913_v41 = vsel %vm1204_vm14, %v7676_v28, %v7912_v3  ;;  %v7701_v44 = vrot.slane %v7700_v19, 2 }
0x219f   :  { %v7894_v29 = vadd.f32 %v7893_v16, %v7892_v43  ;;  %v7696_v20 = vrot.slane %v7695_v42, 1  ;;  %v7710_v11 = vrot.slane %v7709_v8, 1  ;;  %v7717_v55 = vrot.slane %v7716_v50, 1 }
0x21a0   :  { %v7690_v24 = vadd.f32 %v7689_v5, %v7688_v36  ;;  %v7914_v14 = vsel %vm1206_vm15, %v7683_v53, %v7913_v41  ;;  %v7702_v4 = vadd.f32 %v7701_v44, %v7700_v19  ;;  %v7722_v23 = vrot.slane %v13658_v39, 2 }
0x21a1   :  { %v7956_v63 = vsel %vm1212_vm3, %v7894_v29, %v7955_v32  ;;  %v7697_v21 = vadd.f32 %v7696_v20, %v7695_v42  ;;  %v7711_v34 = vadd.f32 %v7710_v11, %v7709_v8  ;;  %v7718_v48 = vadd.f32 %v7717_v55, %v7716_v50  ;;  %v7973_v11 = vld [vmem:[%s13915_s1 + $0x4a0] ss:$0 sm:$0xff] }
0x21a2   :  { %7959 = vrot.lane.b32.xlu1 %v7956_v63, %s9904_s0  ;;  %v7915_v51 = vsel %vm1208_vm1, %v7690_v24, %v7914_v14  ;;  %v7703_v15 = vrot.slane %v7702_v4, 1  ;;  %v7723_v1 = vadd.f32 %v7722_v23, %v13658_v39  ;;  %v7728_v31 = vadd.f32 %v7727_v26, %v13643_v46 }
0x21a3   :  { %v7916_v61 = vsel %vm1210_vm2, %v7697_v21, %v7915_v51  ;;  %v7733_v52 = vsel %vm198_vm10, %v13634_v60, 0.0  ;;  %v7740_v32 = vsel %vm198_vm10, %v13637_v30, 0.0  ;;  %v7747_v62 = vsel %vm198_vm10, %v7647_v56, 0.0 }
0x21a4   :  { %v7704_v37 = vadd.f32 %v7703_v15, %v7702_v4  ;;  %v7724_v10 = vrot.slane %v7723_v1, 1  ;;  %v7729_v2 = vrot.slane %v7728_v31, 2  ;;  %v7734_v33 = vrot.slane %v7733_v52, 4 }
0x21a5   :  { %v7741_v17 = vrot.slane %v7740_v32, 4  ;;  %v7748_v39 = vrot.slane %v7747_v62, 4  ;;  %v7754_v45 = vsel %vm198_vm10, %v7648_v38, 0.0  ;;  %v7918_v46 = vsel %vm1200_vm12, %v7718_v48, %v7711_v34 }
0x21a6   :  { %v7917_v26 = vsel %vm1212_vm3, %v7704_v37, %v7916_v61  ;;  %v7725_v58 = vadd.f32 %v7724_v10, %v7723_v1  ;;  %v7730_v0 = vadd.f32 %v7729_v2, %v7728_v31  ;;  %v7735_v60 = vadd.f32 %v7734_v33, %v7733_v52  ;;  %v8090_v37 = vld [vmem:[%s13915_s1 + $0x5f0] sm:$0xff]  ;;  %v8091_v10 = vld [vmem:[%s13915_s1 + $0x600] sm:$0xff] }
0x21a7   :  { %v7742_v27 = vadd.f32 %v7741_v17, %v7740_v32  ;;  %v7749_v25 = vadd.f32 %v7748_v39, %v7747_v62  ;;  %v7755_v30 = vrot.slane %v7754_v45, 4  ;;  %v8092_v33 = vld [vmem:[%s13915_s1 + $0x610] sm:$0xff]  ;;  %v8093_v39 = vld [vmem:[%s13915_s1 + $0x620] sm:$0xff] }
0x21a8   :  { %v7731_v57 = vrot.slane %v7730_v0, 1  ;;  %v7736_v49 = vrot.slane %v7735_v60, 2  ;;  %v7919_v3 = vsel %vm1202_vm13, %v7725_v58, %v7918_v46  ;;  %v9392_v17 = vpack.c.bf16 %v8092_v33, %v8091_v10  ;;  %v8096_v58 = vld [vmem:[%s13915_s1 + $0x650] sm:$0xff] }
0x21a9   :  { %v7743_v59 = vrot.slane %v7742_v27, 2  ;;  %v7750_v47 = vrot.slane %v7749_v25, 2  ;;  %v7756_v54 = vadd.f32 %v7755_v30, %v7754_v45  ;;  %v8094_v45 = vld [vmem:[%s13915_s1 + $0x630] sm:$0xff] }
0x21aa   :  { %v7732_v6 = vadd.f32 %v7731_v57, %v7730_v0  ;;  %v7737_v18 = vadd.f32 %v7736_v49, %v7735_v60  ;;  %v9396_v46 = vpack.c.bf16 %v8094_v45, %v8093_v39  ;;  %v14045_v60 = vld [vmem:[#allocation6_spill] sm:$0xff]  ;;  %v8269_v33 = vld [vmem:[%s13915_s1 + $0x6d0] ss:$0 sm:$0xff] }
0x21ab   :  { %v7744_v13 = vadd.f32 %v7743_v59, %v7742_v27  ;;  %v7751_v22 = vadd.f32 %v7750_v47, %v7749_v25  ;;  %v7757_v35 = vrot.slane %v7756_v54, 2  ;;  %v8057_v47 = vld [vmem:[%s13915_s1 + $0x6b0] ss:$0 sm:$0xff] }
0x21ac   :  { %v7738_v43 = vrot.slane %v7737_v18, 1  ;;  %v7920_v7 = vsel %vm1204_vm14, %v7732_v6, %v7919_v3  ;;  %v8058_v6 = vld [vmem:[%s13915_s1 + $0x6a0] ss:$0 sm:$0xff] }
0x21ad   :  { %v7745_v56 = vrot.slane %v7744_v13, 1  ;;  %v7752_v38 = vrot.slane %v7751_v22, 1  ;;  %v7758_v28 = vadd.f32 %v7757_v35, %v7756_v54 }
0x21ae   :  { %v7739_v9 = vadd.f32 %v7738_v43, %v7737_v18 }
0x21af   :  { %v7746_v36 = vadd.f32 %v7745_v56, %v7744_v13  ;;  %v7753_v19 = vadd.f32 %v7752_v38, %v7751_v22  ;;  %v7759_v16 = vrot.slane %v7758_v28, 1  ;;  %v14046_v56 = vld [vmem:[#allocation7_spill] sm:$0xff]  ;;  %v14047_v38 = vld [vmem:[#allocation8_spill] sm:$0xff] }
0x21b0   :  { %v7921_v42 = vsel %vm1206_vm15, %v7739_v9, %v7920_v7  ;;  %v8181_v9 = vld [vmem:[%s13915_s1 + $0x660] sm:$0xff] }
0x21b1   :  { %v7760_v8 = vadd.f32 %v7759_v16, %v7758_v28  ;;  %v7922_v50 = vsel %vm1208_vm1, %v7746_v36, %v7921_v42  ;;  %v14048_v28 = vld [vmem:[#allocation9_spill] sm:$0xff]  ;;  %v8182_v36 = vld [vmem:[%s13915_s1 + $0x670] sm:$0xff]  ;;  %v8097_v16 = vld [vmem:[%s13915_s1 + $0x5c0] ss:$0 sm:$0xff] }
0x21b2   :  { %v7923_v53 = vsel %vm1210_vm2, %v7753_v19, %v7922_v50  ;;  %v9404_v19 = vpack.c.bf16 %v8182_v36, %v8181_v9 }
0x21b3   :  { %v7924_v5 = vsel %vm1212_vm3, %v7760_v8, %v7923_v53 }
0x21b4   :  { %9405 = vmatprep.subr.bf16.mxu0 %v9404_v19 }
0x2204   :  { %v7958_v41 = vpop.permute.xlu0 %7957 }
0x2205   :  { %v7963_v44 = vsel %vm198_vm10, %v7917_v26, %v7958_v41  ;;  %v8095_v26 = vld [vmem:[%s13915_s1 + $0x640] sm:$0xff] }
0x2206   :  { %9023 = vmatprep.mubr.msk.f32.mxu0 %vm234_vm11, %v7963_v44  ;;  %v9400_v0 = vpack.c.bf16 %v8096_v58, %v8095_v26 }
0x2214   :  { %v7960_v29 = vpop.permute.xlu1 %7959 }
0x2215   :  { %v7964_v20 = vsel %vm198_vm10, %v7924_v5, %v7960_v29  ;;  %v8266_v29 = vld [vmem:[%s13915_s1 + $0x5d0] ss:$0 sm:$0xff] }
0x2216   :  { %9024 = vmatmul.mubr.msk.f32.vlgmr.msra.gmra.mrb[28].mxu0 %vm234_vm11, %v7964_v20 }
0x2217   :  { %9407 = vmatpush3.bf16.msra.mxu0 %v9404_v19  ;;  %v8398_v19 = vld [vmem:[%s13915_s1 + $0xad0] ss:$0 sm:$0xff] }
0x22e9   :  { %v9025_v55 = vpop.f32.mrb[28].mxu0 }
0x22ea   :  { %v8052_v24 = vadd.f32 %v9025_v55, %v7973_v11  ;;  %v8046_v14 = vpop.f32.mrb[29].mxu0 }
0x22eb   :  { %v8047_v4 = vadd.f32 %v8046_v14, %v7973_v11 }
0x22ec   :  { %v8056_v23 = vadd.f32 %v8052_v24, %v13273_v12 }
0x22ed   :  { %v8055_v63 = vadd.f32 %v8047_v4, %v13270_v40  ;;  %v8089_v40 = vld [vmem:[%s13915_s1 + $0x5e0] sm:$0xff] }
0x22ee   :  { %v8062_v21 = vsel %vm234_vm11, %v8056_v23, 0.0  ;;  %v9388_v2 = vpack.c.bf16 %v8090_v37, %v8089_v40 }
0x22ef   :  { %8063 = vadd.xlane.f32.xlu1 %v8062_v21  ;;  %v8059_v34 = vsel %vm234_vm11, %v8055_v63, 0.0 }
0x22f0   :  { %8060 = vadd.xlane.f32.xlu0 %v8059_v34  ;;  %9389 = vmatprep.subr.bf16.mxu1 %v9388_v2 }
0x22f1   :  { %9391 = vmatpush3.bf16.msra.mxu1 %v9388_v2 }
0x22f2   :  { %9393 = vmatprep.subr.bf16.mxu1 %v9392_v17 }
0x22f5   :  { %9395 = vmatpush3.bf16.msra.mxu1 %v9392_v17 }
0x22f6   :  { %9397 = vmatprep.subr.bf16.mxu1 %v9396_v46 }
0x22f9   :  { %9399 = vmatpush3.bf16.msra.mxu1 %v9396_v46  ;;  %v8270_v46 = vld [vmem:[%s13915_s1 + $0x6c0] ss:$0 sm:$0xff] }
0x22fa   :  { %9401 = vmatprep.subr.bf16.mxu1 %v9400_v0 }
0x22fd   :  { %9403 = vmatpush3.bf16.msra.mxu1 %v9400_v0 }
0x22fe   :  { %9409 = vmatprep.subr.bf16.mxu1 %v14045_v60 }
0x237c   :  { %v8064_v48 = vpop.xlane.xlu1 %8063 }
0x237d   :  { %v8066_v51 = vmul.f32 0.015625, %v8064_v48  ;;  %v8061_v15 = vpop.xlane.xlu0 %8060 }
0x237e   :  { %v8065_v1 = vmul.f32 0.015625, %v8061_v15 }
0x237f   :  { %v8068_v31 = vsub.f32 %v8056_v23, %v8066_v51 }
0x2380   :  { %v8067_v61 = vsub.f32 %v8055_v63, %v8065_v1 }
0x2381   :  { %v8070_v62 = vmul.f32 %v8068_v31, %v8068_v31 }
0x2382   :  { %v8069_v52 = vmul.f32 %v8067_v61, %v8067_v61 }
0x2383   :  { %v8074_v12 = vsel %vm234_vm11, %v8070_v62, 0.0 }
0x2384   :  { %v8071_v32 = vsel %vm234_vm11, %v8069_v52, 0.0 }
0x2385   :  { %8072 = vadd.xlane.f32.xlu0 %v8071_v32 }
0x2389   :  { %8075 = vadd.xlane.f32.xlu0 %v8074_v12 }
0x2412   :  { %v8073_v27 = vpop.xlane.xlu0 %8072 }
0x2413   :  { %v8077_v25 = vmul.f32 0.015625, %v8073_v27  ;;  %v8394_v27 = vld [vmem:[%s13915_s1 + $0xae0] sm:$0xff] }
0x2415   :  { %v8079_v30 = vadd.f32 1e-05, %v8077_v25  ;;  %v8395_v25 = vld [vmem:[%s13915_s1 + $0xaf0] sm:$0xff] }
0x2416   :  { %v8076_v57 = vpop.xlane.xlu0 %8075 }
0x2417   :  { %9872 = vrsqrt.f32 %v8079_v30  ;;  %v8078_v49 = vmul.f32 0.015625, %v8076_v57  ;;  %v8396_v30 = vld [vmem:[%s13915_s1 + $0xb00] sm:$0xff]  ;;  %v9424_v57 = vpack.c.bf16 %v8395_v25, %v8394_v27 }
0x2419   :  { %v8080_v3 = vadd.f32 1e-05, %v8078_v49  ;;  %v8397_v49 = vld [vmem:[%s13915_s1 + $0xb10] sm:$0xff]  ;;  %9425 = vmatprep.subr.bf16.mxu0 %v9424_v57 }
0x241b   :  { %9874 = vrsqrt.f32 %v8080_v3  ;;  %v9428_v3 = vpack.c.bf16 %v8397_v49, %v8396_v30 }
0x2421   :  { %v9873_v59 = vpop.eup %9872 }
0x2422   :  { %v8083_v54 = vmul.f32 %v9873_v59, %v8067_v61 }
0x2424   :  { %v8085_v18 = vmul.f32 %v8083_v54, %v8057_v47 }
0x2425   :  { %v9875_v13 = vpop.eup %9874 }
0x2426   :  { %v8084_v22 = vmul.f32 %v9875_v13, %v8068_v31  ;;  %v8087_v35 = vadd.f32 %v8085_v18, %v8058_v6 }
0x2428   :  { %v8086_v43 = vmul.f32 %v8084_v22, %v8057_v47  ;;  %9042 = vmatprep.mubr.msk.f32.mxu1 %vm234_vm11, %v8087_v35  ;;  %v9896_v47 = vld [vmem:[%s13915_s1 + $0xa20] ss:$0 sm:$0xff] }
0x242a   :  { %v8088_v7 = vadd.f32 %v8086_v43, %v8058_v6 }
0x242c   :  { %9043 = vmatmul.mubr.msk.f32.vlgmr.msra.gmra.mrb[22].mxu1 %vm234_vm11, %v8088_v7 }
0x242d   :  { %9411 = vmatpush3.bf16.msra.mxu1 %v14045_v60 }
0x242e   :  { %9413 = vmatprep.subr.bf16.mxu1 %v14046_v56 }
0x2431   :  { %9415 = vmatpush3.bf16.msra.mxu1 %v14046_v56 }
0x2432   :  { %9417 = vmatprep.subr.bf16.mxu1 %v14047_v38 }
0x2435   :  { %9419 = vmatpush3.bf16.msra.mxu1 %v14047_v38 }
0x2436   :  { %9421 = vmatprep.subr.bf16.mxu1 %v14048_v28 }
0x2439   :  { %9423 = vmatpush3.bf16.msra.mxu1 %v14048_v28 }
0x24ff   :  { %v9044_v42 = vpop.f32.mrb[22].mxu1 }
0x2500   :  { %v8176_v8 = vadd.f32 %v9044_v42, %v8097_v16  ;;  %v8170_v50 = vpop.f32.mrb[23].mxu1 }
0x2501   :  { %v8171_v53 = vadd.f32 %v8170_v50, %v8097_v16 }
0x2502   :  { %v8180_v41 = vmax.f32 %v8176_v8, 0.0 }
0x2503   :  { %v8179_v5 = vmax.f32 %v8171_v53, 0.0  ;;  %v14049_v53 = vld [vmem:[#allocation5_spill] sm:$0xff] }
0x2505   :  { %9049 = vmatprep.mubr.msk.f32.mxu0 %vm1480_vm4, %v8179_v5 }
0x2506   :  { %9050 = vmatmul.mubr.msk.f32.vlgmr.msra.gmra.mrb[30].mxu0 %vm1480_vm4, %v8180_v41  ;;  %v14050_v41 = vld [vmem:[#allocation4_spill] sm:$0xff] }
0x2507   :  { %9427 = vmatpush3.bf16.msra.mxu0 %v9424_v57 }
0x2508   :  { %9429 = vmatprep.subr.bf16.mxu0 %v9428_v3 }
0x250b   :  { %9431 = vmatpush3.bf16.msra.mxu0 %v9428_v3 }
0x25d9   :  { %v9051_v44 = vpop.f32.mrb[30].mxu0 }
0x25da   :  { %v8265_v20 = vadd.f32 %v9051_v44, %v8088_v7  ;;  %v8255_v11 = vpop.f32.mrb[31].mxu0 }
0x25db   :  { %v8264_v55 = vadd.f32 %v8255_v11, %v8087_v35  ;;  %v14052_v11 = vld [vmem:[#allocation2_spill] sm:$0xff] }
0x25dc   :  { %v8268_v24 = vadd.f32 %v8266_v29, %v8265_v20 }
0x25dd   :  { %v8267_v14 = vadd.f32 %v8266_v29, %v8264_v55  ;;  %v14051_v29 = vld [vmem:[#allocation3_spill] sm:$0xff] }
0x25de   :  { %v8274_v4 = vsel %vm234_vm11, %v8268_v24, 0.0 }
0x25df   :  { %8275 = vadd.xlane.f32.xlu0 %v8274_v4  ;;  %v8271_v23 = vsel %vm234_vm11, %v8267_v14, 0.0 }
0x25e0   :  { %8272 = vadd.xlane.f32.xlu1 %v8271_v23 }
0x266c   :  { %v8276_v63 = vpop.xlane.xlu0 %8275 }
0x266d   :  { %v8278_v21 = vmul.f32 0.015625, %v8276_v63  ;;  %v8273_v34 = vpop.xlane.xlu1 %8272 }
0x266e   :  { %v8277_v48 = vmul.f32 0.015625, %v8273_v34 }
0x266f   :  { %v8280_v51 = vsub.f32 %v8268_v24, %v8278_v21 }
0x2670   :  { %v8279_v15 = vsub.f32 %v8267_v14, %v8277_v48 }
0x2671   :  { %v8282_v1 = vmul.f32 %v8280_v51, %v8280_v51 }
0x2672   :  { %v8281_v31 = vmul.f32 %v8279_v15, %v8279_v15 }
0x2673   :  { %v8286_v61 = vsel %vm234_vm11, %v8282_v1, 0.0 }
0x2674   :  { %8287 = vadd.xlane.f32.xlu0 %v8286_v61  ;;  %v8283_v52 = vsel %vm234_vm11, %v8281_v31, 0.0 }
0x2675   :  { %8284 = vadd.xlane.f32.xlu1 %v8283_v52 }
0x2701   :  { %v8288_v32 = vpop.xlane.xlu0 %8287 }
0x2702   :  { %v8290_v62 = vmul.f32 0.015625, %v8288_v32  ;;  %v8285_v12 = vpop.xlane.xlu1 %8284 }
0x2703   :  { %v8289_v40 = vmul.f32 0.015625, %v8285_v12 }
0x2704   :  { %v8292_v37 = vadd.f32 1e-05, %v8290_v62 }
0x2705   :  { %v8291_v10 = vadd.f32 1e-05, %v8289_v40 }
0x2706   :  { %9876 = vrsqrt.f32 %v8292_v37 }
0x2707   :  { %9878 = vrsqrt.f32 %v8291_v10 }
0x2710   :  { %v9877_v2 = vpop.eup %9876 }
0x2711   :  { %v9879_v17 = vpop.eup %9878  ;;  %v8296_v39 = vmul.f32 %v9877_v2, %v8280_v51 }
0x2712   :  { %v8295_v45 = vmul.f32 %v9879_v17, %v8279_v15 }
0x2713   :  { %v8298_v26 = vmul.f32 %v8296_v39, %v8269_v33 }
0x2714   :  { %v8297_v58 = vmul.f32 %v8295_v45, %v8269_v33 }
0x2715   :  { %v8300_v60 = vadd.f32 %v8298_v26, %v8270_v46 }
0x2716   :  { %v8299_v0 = vadd.f32 %v8297_v58, %v8270_v46 }
0x2718   :  { %9068 = vmatprep.mubr.msk.f32.mxu1 %vm234_vm11, %v8299_v0 }
0x2719   :  { %9069 = vmatmul.mubr.msk.f32.vlgmr.msra.gmra.mrb[24].mxu1 %vm234_vm11, %v8300_v60 }
0x27ec   :  { %v9070_v59 = vpop.f32.mrb[24].mxu1 }
0x27ed   :  { %v8379_v54 = vadd.f32 %v9896_v47, %v9070_v59  ;;  %v8373_v6 = vpop.f32.mrb[25].mxu1 }
0x27ee   :  { %v8374_v18 = vadd.f32 %v9896_v47, %v8373_v6 }
0x27ef   :  { %v8383_v13 = vsub.f32 0.0, %v8379_v54 }
0x27f0   :  { %v8382_v22 = vsub.f32 0.0, %v8374_v18 }
0x27f1   :  { %v8386_v35 = vmul.f32 1.442695, %v8383_v13 }
0x27f2   :  { %v8384_v43 = vmul.f32 1.442695, %v8382_v22 }
0x27f3   :  { %9880 = vpow2.f32 %v8386_v35 }
0x27f4   :  { %9882 = vpow2.f32 %v8384_v43 }
0x27fd   :  { %v9881_v7 = vpop.eup %9880 }
0x27fe   :  { %v9883_v56 = vpop.eup %9882  ;;  %v8389_v38 = vadd.f32 1.0, %v9881_v7 }
0x27ff   :  { %v8388_v28 = vadd.f32 1.0, %v9883_v56 }
0x2801   :  { %9884 = vrcp.f32 %v8388_v28 }
0x2802   :  { %9886 = vrcp.f32 %v8389_v38 }
0x280b   :  { %v9885_v9 = vpop.eup %9884 }
0x280c   :  { %v9887_v36 = vpop.eup %9886  ;;  %9079 = vmatprep.mubr.msk.f32.mxu0 %vm198_vm10, %v9885_v9 }
0x280d   :  { %9080 = vmatmul.mubr.msk.f32.vlgmr.msra.gmra.mrb[32].mxu0 %vm198_vm10, %v9887_v36 }
0x28e0   :  { %v9081_v16 = vpop.f32.mrb[32].mxu0 }
0x28e1   :  { %v8477_v42 = vadd.f32 %v9081_v16, %v8398_v19  ;;  %v8471_v8 = vpop.f32.mrb[33].mxu0 }
0x28e2   :  { %v8472_v50 = vadd.f32 %v8471_v8, %v8398_v19 }
0x28e3   :  { %v8481_v5 = vmul.f32 %v8477_v42, %v14049_v53 }
0x28e4   :  { %v8480_v44 = vmul.f32 %v8472_v50, %v14050_v41 }
0x28e5   :  { %v8483_v20 = vadd.f32 %v8481_v5, %v14051_v29 }
0x28e6   :  { %v8482_v55 = vadd.f32 %v8480_v44, %v14052_v11 }
0x28e7   :  { %8485 = vst.msk [vmem:[%s13916_s2 + $0x8] sm:$0xff] %vm13_vm0, %v8483_v20 }
0x28e8   :  { %8484 = vst.msk [vmem:[%s13916_s2] sm:$0xff] %vm13_vm0, %v8482_v55 }

</bundles_post_ra>
